<compile_context>
chip_gen: v5e
topology: v5e:2x2
jax: 0.10.0
libtpu: 0.0.40
codegen_flags: <defaults>
</compile_context>

<pallas_src>
import functools

import jax
import jax.numpy as jnp
from jax.experimental import pallas as pl
from jax.experimental.pallas import tpu as pltpu

_BN_EPS = 1e-5


def _round_up8(x):
    return ((x + 7) // 8) * 8


# ---------------------------------------------------------------------------
# In-kernel building block: Conv2d(3x3, s=2, p=1) + train-mode BN + ReLU.
# ---------------------------------------------------------------------------
def _conv_bn_relu(xpad_ref, patch_scr, w_ref, gamma_ref, beta_ref):
    """xpad_ref : (Hp, Wp, N, Cin)  zero-padded activation (true batch N)
       patch_scr: (Ho, Wo, Np, 9*Cin) im2col VMEM scratch, Np = N rounded up to 8
       w_ref    : (9*Cin, Cout) bf16 conv weight, rows ordered (kh, kw, cin)
       gamma/beta: (1, Cout) f32
       returns  : (Ho*Wo*Np, Cout) f32 activation, rows ordered (h, w, n); rows with
                  n >= true batch contain relu(shift) junk and are never consumed."""
    ho, wo, n_pad, k9 = patch_scr.shape
    cin = k9 // 9
    n = xpad_ref.shape[2]

    # Padding-only zeroing: the 9 tap copies below fully cover the first `n` sublane
    # rows, so only the batch-padding rows need an explicit zero (they must stay
    # exactly 0 so the zero-row matmul output keeps the BN sums exact).
    if n_pad > n:
        patch_scr[:, :, n:n_pad, :] = jnp.zeros((ho, wo, n_pad - n, k9),
                                                patch_scr.dtype)

    # In-kernel im2col: 9 stride-2 taps packed side by side along the lane axis.
    # Both strides live on the two leading (non-tiled) dims -> plain address math.
    for kh in range(3):
        for kw in range(3):
            t = kh * 3 + kw
            patch_scr[:, :, 0:n, t * cin:(t + 1) * cin] = xpad_ref[
                pl.ds(kh, ho, 2), pl.ds(kw, wo, 2), :, :]

    m_pad = ho * wo * n_pad
    m_true = ho * wo * n
    patches = patch_scr[...].reshape(m_pad, k9)        # tile-aligned merge (Np % 8 == 0)
    # Single K = 9*Cin contraction on the MXU; bf16 operands, f32 accumulation.
    acc = jnp.dot(patches.astype(jnp.bfloat16), w_ref[...],
                  preferred_element_type=jnp.float32)

    # Training-mode BatchNorm over the m_true valid rows.  Padding rows of `acc` are
    # exactly zero (zero patch rows, no conv bias), so they drop out of both sums
    # with no correction term.  BN affine folded into one scale/shift.
    mean = jnp.sum(acc, axis=0, keepdims=True) / m_true
    var = jnp.sum(acc * acc, axis=0, keepdims=True) / m_true - mean * mean
    scale = gamma_ref[...] * jax.lax.rsqrt(var + _BN_EPS)
    shift = beta_ref[...] - mean * scale
    return jnp.maximum(acc * scale + shift, 0.0)


# ---------------------------------------------------------------------------
# Fused forward kernel: conv stack + feature gather + GRU (last hidden state).
# ---------------------------------------------------------------------------
def _make_fused_kernel(n_convs):
    def kernel(*refs):
        i = 0
        xpad0_ref = refs[i]; i += 1
        conv_refs = []
        for _ in range(n_convs):
            conv_refs.append(refs[i:i + 3]); i += 3
        wi_ref, whh_ref, bi_ref, bh_ref = refs[i:i + 4]; i += 4
        out_ref = refs[i]; i += 1
        scr = refs[i:]

        n = xpad0_ref.shape[2]          # true batch
        n_pad = scr[0].shape[2]         # batch rounded up to 8 sublanes

        # ------------------------- conv stack (stays in VMEM) -------------------------
        cur = xpad0_ref
        si = 0
        y = None
        for li in range(n_convs):
            patch_scr = scr[si]; si += 1
            w_ref, g_ref, b_ref = conv_refs[li]
            y = _conv_bn_relu(cur, patch_scr, w_ref, g_ref, b_ref)
            if li < n_convs - 1:
                nxt = scr[si]; si += 1          # next zero-padded activation
                hp, wp, nb, cc = nxt.shape
                y4 = y.reshape(hp - 2, wp - 2, n_pad, cc)[:, :, 0:nb, :]
                # Zero only the 1-wide halo; the interior is fully overwritten.
                zrow = jnp.zeros((1, wp, nb, cc), nxt.dtype)
                zcol = jnp.zeros((hp, 1, nb, cc), nxt.dtype)
                nxt[0:1, :, :, :] = zrow
                nxt[hp - 1:hp, :, :, :] = zrow
                nxt[:, 0:1, :, :] = zcol
                nxt[:, wp - 1:wp, :, :] = zcol
                nxt[1:hp - 1, 1:wp - 1, :, :] = y4
                cur = nxt

        # y: (H3*W3*Np, C3) f32, rows ordered (t, w, n)
        hid = out_ref.shape[1]
        w3, c3, gw = wi_ref.shape           # gw = 3 * gate_stride
        gs = gw // 3                        # 128-lane-aligned gate stride
        t_out = y.shape[0] // (w3 * n_pad)

        # ---------- GRU input projection: hoisted, fused across the 3 gates ----------
        # The conv-feature -> GRU-row gather is a pure reshape + static slice; the
        # per-mel-position (w) weight slabs reproduce PyTorch's d = c*W3 + w flatten
        # order exactly.  One matmul per w covers all timesteps and all 3 gates.
        y4 = y.reshape(t_out, w3, n_pad, c3)
        gi = jnp.zeros((t_out * n_pad, gw), jnp.float32) + bi_ref[...]
        for w in range(w3):
            feat_w = y4[:, w, :, :].reshape(t_out * n_pad, c3)    # aligned merge
            gi = gi + jnp.dot(feat_w.astype(jnp.bfloat16), wi_ref[w],
                              preferred_element_type=jnp.float32)
        gi_r = gi[:, 0:hid]
        gi_z = gi[:, gs:gs + hid]
        gi_n = gi[:, 2 * gs:2 * gs + hid]

        # ---------- recurrence: ONE fused hidden-projection matmul per step ----------
        # The state keeps all n_pad sublane rows (padding rows carry junk that is
        # never read back), so every per-step slice is 8-sublane aligned.
        # TODO(synk): for long post-conv T, replace the static unroll with
        # lax.fori_loop over a (T, n_pad, 3*gs) gi VMEM scratch.
        h = jnp.zeros((n_pad, hid), jnp.float32)
        for t in range(t_out):
            lo = t * n_pad
            gh = jnp.dot(h.astype(jnp.bfloat16), whh_ref[...],
                         preferred_element_type=jnp.float32) + bh_ref[...]
            r = jax.nn.sigmoid(gi_r[lo:lo + n_pad] + gh[:, 0:hid])
            z = jax.nn.sigmoid(gi_z[lo:lo + n_pad] + gh[:, gs:gs + hid])
            c = jnp.tanh(gi_n[lo:lo + n_pad] + r * gh[:, 2 * gs:2 * gs + hid])
            h = (1.0 - z) * c + z * h
        out_ref[...] = h[0:n, :]

    return kernel


# ---------------------------------------------------------------------------
# Parameters (module-equivalent random init) + host-side wrapper.
# ---------------------------------------------------------------------------
def calculate_channels(L, kernel_size, stride, pad, n_convs):
    for _ in range(n_convs):
        L = (L - kernel_size + 2 * pad) // stride + 1
    return L


def init_params(key, idim, ref_enc_filters, ref_dim):
    filters = [1] + list(ref_enc_filters)
    convs = []
    for i in range(len(ref_enc_filters)):
        cin, cout = filters[i], filters[i + 1]
        key, kw_, kg_, kb_ = jax.random.split(key, 4)
        w = jax.random.normal(kw_, (cout, cin, 3, 3), jnp.float32) * 0.1
        gamma = 1.0 + 0.1 * jax.random.normal(kg_, (cout,), jnp.float32)
        beta = 0.1 * jax.random.normal(kb_, (cout,), jnp.float32)
        # NOTE: Conv2d bias omitted on purpose: under training-mode BatchNorm the
        # per-channel batch-mean subtraction cancels it exactly (identical output).
        w_flat = jnp.transpose(w, (2, 3, 1, 0)).reshape(9 * cin, cout)   # rows (kh,kw,cin)
        convs.append((w_flat.astype(jnp.bfloat16),
                      gamma.reshape(1, cout), beta.reshape(1, cout)))

    w_out = calculate_channels(idim, 3, 2, 1, len(ref_enc_filters))
    c_last = ref_enc_filters[-1]
    d_in = c_last * w_out
    hid = ref_dim
    key, k1, k2, k3, k4 = jax.random.split(key, 5)
    w_ih = jax.random.normal(k1, (3 * hid, d_in), jnp.float32) * 0.1     # [r; z; n]
    w_hh = jax.random.normal(k2, (3 * hid, hid), jnp.float32) * 0.1
    b_ih = jax.random.normal(k3, (3 * hid,), jnp.float32) * 0.1
    b_hh = jax.random.normal(k4, (3 * hid,), jnp.float32) * 0.1

    # Fused gate layout: gate g occupies columns [g*gs, g*gs+hid) with gs a multiple
    # of 128 so the in-kernel r/z/n splits are tile-aligned lane slices.  For
    # ref_dim a multiple of 128 (the realistic config) this is the dense 3H layout.
    gs = ((hid + 127) // 128) * 128

    wi = jnp.zeros((w_out, c_last, 3 * gs), jnp.float32)
    whh = jnp.zeros((hid, 3 * gs), jnp.float32)
    bi = jnp.zeros((1, 3 * gs), jnp.float32)
    bh = jnp.zeros((1, 3 * gs), jnp.float32)
    for g in range(3):
        blk = w_ih[g * hid:(g + 1) * hid]                                # (hid, d_in)
        # torch feature index d = c * w_out + w  ->  per-w slab (w_out, c_last, hid)
        slab = jnp.transpose(blk.reshape(hid, c_last, w_out), (2, 1, 0))
        wi = wi.at[:, :, g * gs:g * gs + hid].set(slab)
        whh = whh.at[:, g * gs:g * gs + hid].set(w_hh[g * hid:(g + 1) * hid].T)
        bi = bi.at[0, g * gs:g * gs + hid].set(b_ih[g * hid:(g + 1) * hid])
        bh = bh.at[0, g * gs:g * gs + hid].set(b_hh[g * hid:(g + 1) * hid])

    return {
        "convs": convs,
        "wi": wi.astype(jnp.bfloat16),
        "whh": whh.astype(jnp.bfloat16),
        "bi": bi,
        "bh": bh,
        "hidden": hid,
        "idim": idim,
        "filters": list(ref_enc_filters),
    }


def reference_encoder(inputs, params):
    """inputs: (N, T, idim) -> (N, ref_dim)   (== PyTorch `out.squeeze(0)`)."""
    n, t, idim = inputs.shape
    assert idim == params["idim"]
    filters = params["filters"]
    n_convs = len(filters)
    hid = params["hidden"]
    chans = [1] + filters
    n_pad = _round_up8(n)

    # Per-layer spatial sizes (H = time, W = mel).
    hs, ws = [t], [idim]
    for _ in range(n_convs):
        hs.append((hs[-1] - 1) // 2 + 1)
        ws.append((ws[-1] - 1) // 2 + 1)

    # Conv-stack input in (H, W, N, C) layout, zero-padded by 1 on H and W (the only
    # host-side glue; everything downstream stays inside the single fused kernel).
    x = jnp.transpose(inputs.astype(jnp.float32), (1, 2, 0)).reshape(t, idim, n, 1)
    xpad0 = jnp.pad(x, ((1, 1), (1, 1), (0, 0), (0, 0)))

    args = [xpad0]
    for (w_flat, gamma, beta) in params["convs"]:
        args += [w_flat, gamma, beta]
    args += [params["wi"], params["whh"], params["bi"], params["bh"]]

    # VMEM scratch: per layer an im2col patches buffer; between layers a zero-padded
    # activation buffer.  Intermediate activations never touch HBM.
    scratch = []
    for li in range(n_convs):
        scratch.append(pltpu.VMEM(
            (hs[li + 1], ws[li + 1], n_pad, 9 * chans[li]), jnp.float32))
        if li < n_convs - 1:
            scratch.append(pltpu.VMEM(
                (hs[li + 1] + 2, ws[li + 1] + 2, n, chans[li + 1]), jnp.float32))

    vm = pl.BlockSpec(memory_space=pltpu.MemorySpace.VMEM)
    return pl.pallas_call(
        _make_fused_kernel(n_convs),
        out_shape=jax.ShapeDtypeStruct((n, hid), jnp.float32),
        in_specs=[vm] * len(args),
        out_specs=vm,
        scratch_shapes=scratch,
        # Demo footprint is ~4 MiB; cap well under v7x's 64 MiB physical VMEM and
        # above v5e's 16 MiB default scoped limit.
        compiler_params=pltpu.CompilerParams(vmem_limit_bytes=32 * 1024 * 1024),
    )(*args)


if __name__ == "__main__":
    # Small config consistent with the module: idim=16 mel bins, 3 conv filters,
    # ref_dim=16, batch=2, 16 time frames  ->  output (2, 16).
    idim = 16
    ref_enc_filters = [8, 8, 16]
    ref_dim = 16
    N, T = 2, 16

    key = jax.random.PRNGKey(0)
    key, kx = jax.random.split(key)
    x = jax.random.normal(kx, (N, T, idim), jnp.float32)

    params = init_params(key, idim, ref_enc_filters, ref_dim)

    fwd = jax.jit(functools.partial(reference_encoder, params=params))
    out = fwd(x)
    jax.block_until_ready(out)
    assert out.shape == (N, ref_dim), out.shape
    print("KERNEL_OK")
</pallas_src>

<mosaic_0001>
module attributes {stable_mosaic.version = 11 : i64} {
  func.func @kernel(%arg0: memref<18x18x2x1xf32, #tpu.memory_space<vmem>>, %arg1: memref<9x8xbf16, #tpu.memory_space<vmem>>, %arg2: memref<1x8xf32, #tpu.memory_space<vmem>>, %arg3: memref<1x8xf32, #tpu.memory_space<vmem>>, %arg4: memref<72x8xbf16, #tpu.memory_space<vmem>>, %arg5: memref<1x8xf32, #tpu.memory_space<vmem>>, %arg6: memref<1x8xf32, #tpu.memory_space<vmem>>, %arg7: memref<72x16xbf16, #tpu.memory_space<vmem>>, %arg8: memref<1x16xf32, #tpu.memory_space<vmem>>, %arg9: memref<1x16xf32, #tpu.memory_space<vmem>>, %arg10: memref<2x16x384xbf16, #tpu.memory_space<vmem>>, %arg11: memref<16x384xbf16, #tpu.memory_space<vmem>>, %arg12: memref<1x384xf32, #tpu.memory_space<vmem>>, %arg13: memref<1x384xf32, #tpu.memory_space<vmem>>, %arg14: memref<2x16xf32, #tpu.memory_space<vmem>>, %arg15: memref<8x8x8x9xf32, #tpu.memory_space<vmem>>, %arg16: memref<10x10x2x8xf32, #tpu.memory_space<vmem>>, %arg17: memref<4x4x8x72xf32, #tpu.memory_space<vmem>>, %arg18: memref<6x6x2x8xf32, #tpu.memory_space<vmem>>, %arg19: memref<2x2x8x72xf32, #tpu.memory_space<vmem>>) attributes {dimension_semantics = [], scalar_prefetch = 0 : i64, scratch_operands = 5 : i64, tpu.core_type = #tpu.core_type<tc>} {
    %cst = arith.constant 0.000000e+00 : f32
    %0 = vector.broadcast %cst : f32 to vector<8x8x6x9xf32>
    %c0 = arith.constant 0 : index
    %c0_0 = arith.constant 0 : index
    %c2 = arith.constant 2 : index
    %c0_1 = arith.constant 0 : index
    %1 = vector.load %arg15[%c0, %c0_0, %c2, %c0_1] : memref<8x8x8x9xf32, #tpu.memory_space<vmem>>, vector<8x8x6x9xf32>
    tpu.vector_store %arg15[%c0, %c0_0, %c2, %c0_1], %0 {strides = array<i32>} : memref<8x8x8x9xf32, #tpu.memory_space<vmem>>, vector<8x8x6x9xf32>,
    %c0_2 = arith.constant 0 : index
    %c0_3 = arith.constant 0 : index
    %c0_4 = arith.constant 0 : index
    %c0_5 = arith.constant 0 : index
    %2 = tpu.strided_load %arg0[%c0_2, %c0_3, %c0_4, %c0_5] {strides = array<i32: 2, 2, 1, 1>} : memref<18x18x2x1xf32, #tpu.memory_space<vmem>>, vector<8x8x2x1xf32>
    %c0_6 = arith.constant 0 : index
    %c0_7 = arith.constant 0 : index
    %c0_8 = arith.constant 0 : index
    %c0_9 = arith.constant 0 : index
    %3 = vector.load %arg15[%c0_6, %c0_7, %c0_8, %c0_9] : memref<8x8x8x9xf32, #tpu.memory_space<vmem>>, vector<8x8x2x1xf32>
    tpu.vector_store %arg15[%c0_6, %c0_7, %c0_8, %c0_9], %2 {strides = array<i32>} : memref<8x8x8x9xf32, #tpu.memory_space<vmem>>, vector<8x8x2x1xf32>,
    %c0_10 = arith.constant 0 : index
    %c1 = arith.constant 1 : index
    %c0_11 = arith.constant 0 : index
    %c0_12 = arith.constant 0 : index
    %4 = tpu.strided_load %arg0[%c0_10, %c1, %c0_11, %c0_12] {strides = array<i32: 2, 2, 1, 1>} : memref<18x18x2x1xf32, #tpu.memory_space<vmem>>, vector<8x8x2x1xf32>
    %c0_13 = arith.constant 0 : index
    %c0_14 = arith.constant 0 : index
    %c0_15 = arith.constant 0 : index
    %c1_16 = arith.constant 1 : index
    %5 = vector.load %arg15[%c0_13, %c0_14, %c0_15, %c1_16] : memref<8x8x8x9xf32, #tpu.memory_space<vmem>>, vector<8x8x2x1xf32>
    tpu.vector_store %arg15[%c0_13, %c0_14, %c0_15, %c1_16], %4 {strides = array<i32>} : memref<8x8x8x9xf32, #tpu.memory_space<vmem>>, vector<8x8x2x1xf32>,
    %c0_17 = arith.constant 0 : index
    %c2_18 = arith.constant 2 : index
    %c0_19 = arith.constant 0 : index
    %c0_20 = arith.constant 0 : index
    %6 = tpu.strided_load %arg0[%c0_17, %c2_18, %c0_19, %c0_20] {strides = array<i32: 2, 2, 1, 1>} : memref<18x18x2x1xf32, #tpu.memory_space<vmem>>, vector<8x8x2x1xf32>
    %c0_21 = arith.constant 0 : index
    %c0_22 = arith.constant 0 : index
    %c0_23 = arith.constant 0 : index
    %c2_24 = arith.constant 2 : index
    %7 = vector.load %arg15[%c0_21, %c0_22, %c0_23, %c2_24] : memref<8x8x8x9xf32, #tpu.memory_space<vmem>>, vector<8x8x2x1xf32>
    tpu.vector_store %arg15[%c0_21, %c0_22, %c0_23, %c2_24], %6 {strides = array<i32>} : memref<8x8x8x9xf32, #tpu.memory_space<vmem>>, vector<8x8x2x1xf32>,
    %c1_25 = arith.constant 1 : index
    %c0_26 = arith.constant 0 : index
    %c0_27 = arith.constant 0 : index
    %c0_28 = arith.constant 0 : index
    %8 = tpu.strided_load %arg0[%c1_25, %c0_26, %c0_27, %c0_28] {strides = array<i32: 2, 2, 1, 1>} : memref<18x18x2x1xf32, #tpu.memory_space<vmem>>, vector<8x8x2x1xf32>
    %c0_29 = arith.constant 0 : index
    %c0_30 = arith.constant 0 : index
    %c0_31 = arith.constant 0 : index
    %c3 = arith.constant 3 : index
    %9 = vector.load %arg15[%c0_29, %c0_30, %c0_31, %c3] : memref<8x8x8x9xf32, #tpu.memory_space<vmem>>, vector<8x8x2x1xf32>
    tpu.vector_store %arg15[%c0_29, %c0_30, %c0_31, %c3], %8 {strides = array<i32>} : memref<8x8x8x9xf32, #tpu.memory_space<vmem>>, vector<8x8x2x1xf32>,
    %c1_32 = arith.constant 1 : index
    %c1_33 = arith.constant 1 : index
    %c0_34 = arith.constant 0 : index
    %c0_35 = arith.constant 0 : index
    %10 = tpu.strided_load %arg0[%c1_32, %c1_33, %c0_34, %c0_35] {strides = array<i32: 2, 2, 1, 1>} : memref<18x18x2x1xf32, #tpu.memory_space<vmem>>, vector<8x8x2x1xf32>
    %c0_36 = arith.constant 0 : index
    %c0_37 = arith.constant 0 : index
    %c0_38 = arith.constant 0 : index
    %c4 = arith.constant 4 : index
    %11 = vector.load %arg15[%c0_36, %c0_37, %c0_38, %c4] : memref<8x8x8x9xf32, #tpu.memory_space<vmem>>, vector<8x8x2x1xf32>
    tpu.vector_store %arg15[%c0_36, %c0_37, %c0_38, %c4], %10 {strides = array<i32>} : memref<8x8x8x9xf32, #tpu.memory_space<vmem>>, vector<8x8x2x1xf32>,
    %c1_39 = arith.constant 1 : index
    %c2_40 = arith.constant 2 : index
    %c0_41 = arith.constant 0 : index
    %c0_42 = arith.constant 0 : index
    %12 = tpu.strided_load %arg0[%c1_39, %c2_40, %c0_41, %c0_42] {strides = array<i32: 2, 2, 1, 1>} : memref<18x18x2x1xf32, #tpu.memory_space<vmem>>, vector<8x8x2x1xf32>
    %c0_43 = arith.constant 0 : index
    %c0_44 = arith.constant 0 : index
    %c0_45 = arith.constant 0 : index
    %c5 = arith.constant 5 : index
    %13 = vector.load %arg15[%c0_43, %c0_44, %c0_45, %c5] : memref<8x8x8x9xf32, #tpu.memory_space<vmem>>, vector<8x8x2x1xf32>
    tpu.vector_store %arg15[%c0_43, %c0_44, %c0_45, %c5], %12 {strides = array<i32>} : memref<8x8x8x9xf32, #tpu.memory_space<vmem>>, vector<8x8x2x1xf32>,
    %c2_46 = arith.constant 2 : index
    %c0_47 = arith.constant 0 : index
    %c0_48 = arith.constant 0 : index
    %c0_49 = arith.constant 0 : index
    %14 = tpu.strided_load %arg0[%c2_46, %c0_47, %c0_48, %c0_49] {strides = array<i32: 2, 2, 1, 1>} : memref<18x18x2x1xf32, #tpu.memory_space<vmem>>, vector<8x8x2x1xf32>
    %c0_50 = arith.constant 0 : index
    %c0_51 = arith.constant 0 : index
    %c0_52 = arith.constant 0 : index
    %c6 = arith.constant 6 : index
    %15 = vector.load %arg15[%c0_50, %c0_51, %c0_52, %c6] : memref<8x8x8x9xf32, #tpu.memory_space<vmem>>, vector<8x8x2x1xf32>
    tpu.vector_store %arg15[%c0_50, %c0_51, %c0_52, %c6], %14 {strides = array<i32>} : memref<8x8x8x9xf32, #tpu.memory_space<vmem>>, vector<8x8x2x1xf32>,
    %c2_53 = arith.constant 2 : index
    %c1_54 = arith.constant 1 : index
    %c0_55 = arith.constant 0 : index
    %c0_56 = arith.constant 0 : index
    %16 = tpu.strided_load %arg0[%c2_53, %c1_54, %c0_55, %c0_56] {strides = array<i32: 2, 2, 1, 1>} : memref<18x18x2x1xf32, #tpu.memory_space<vmem>>, vector<8x8x2x1xf32>
    %c0_57 = arith.constant 0 : index
    %c0_58 = arith.constant 0 : index
    %c0_59 = arith.constant 0 : index
    %c7 = arith.constant 7 : index
    %17 = vector.load %arg15[%c0_57, %c0_58, %c0_59, %c7] : memref<8x8x8x9xf32, #tpu.memory_space<vmem>>, vector<8x8x2x1xf32>
    tpu.vector_store %arg15[%c0_57, %c0_58, %c0_59, %c7], %16 {strides = array<i32>} : memref<8x8x8x9xf32, #tpu.memory_space<vmem>>, vector<8x8x2x1xf32>,
    %c2_60 = arith.constant 2 : index
    %c2_61 = arith.constant 2 : index
    %c0_62 = arith.constant 0 : index
    %c0_63 = arith.constant 0 : index
    %18 = tpu.strided_load %arg0[%c2_60, %c2_61, %c0_62, %c0_63] {strides = array<i32: 2, 2, 1, 1>} : memref<18x18x2x1xf32, #tpu.memory_space<vmem>>, vector<8x8x2x1xf32>
    %c0_64 = arith.constant 0 : index
    %c0_65 = arith.constant 0 : index
    %c0_66 = arith.constant 0 : index
    %c8 = arith.constant 8 : index
    %19 = vector.load %arg15[%c0_64, %c0_65, %c0_66, %c8] : memref<8x8x8x9xf32, #tpu.memory_space<vmem>>, vector<8x8x2x1xf32>
    tpu.vector_store %arg15[%c0_64, %c0_65, %c0_66, %c8], %18 {strides = array<i32>} : memref<8x8x8x9xf32, #tpu.memory_space<vmem>>, vector<8x8x2x1xf32>,
    %c0_67 = arith.constant 0 : index
    %c0_68 = arith.constant 0 : index
    %c0_69 = arith.constant 0 : index
    %c0_70 = arith.constant 0 : index
    %20 = vector.load %arg15[%c0_67, %c0_68, %c0_69, %c0_70] : memref<8x8x8x9xf32, #tpu.memory_space<vmem>>, vector<8x8x8x9xf32>
    %21 = vector.shape_cast %20 : vector<8x8x8x9xf32> to vector<512x9xf32>
    %22 = arith.truncf %21 : vector<512x9xf32> to vector<512x9xbf16>
    %c0_71 = arith.constant 0 : index
    %c0_72 = arith.constant 0 : index
    %23 = vector.load %arg1[%c0_71, %c0_72] : memref<9x8xbf16, #tpu.memory_space<vmem>>, vector<9x8xbf16>
    %cst_73 = arith.constant dense<0.000000e+00> : vector<512x8xf32>
    %24 = tpu.matmul %22, %23, %cst_73 {dimension_numbers = #tpu.dot_dimension_numbers<[1], [0], [0], [1], [0, 0, 1, 1], [], []>} : vector<512x9xbf16>, vector<9x8xbf16>, vector<512x8xf32> -> vector<512x8xf32>
    %cst_74 = arith.constant dense<0.000000e+00> : vector<8xf32>
    %25 = vector.multi_reduction <add>, %24, %cst_74 [0] : vector<512x8xf32> to vector<8xf32>
    %26 = vector.shape_cast %25 : vector<8xf32> to vector<1x8xf32>
    %cst_75 = arith.constant 1.280000e+02 : f32
    %27 = vector.broadcast %cst_75 : f32 to vector<1x8xf32>
    %28 = arith.divf %26, %27 : vector<1x8xf32>
    %29 = arith.mulf %24, %24 : vector<512x8xf32>
    %cst_76 = arith.constant dense<0.000000e+00> : vector<8xf32>
    %30 = vector.multi_reduction <add>, %29, %cst_76 [0] : vector<512x8xf32> to vector<8xf32>
    %31 = vector.shape_cast %30 : vector<8xf32> to vector<1x8xf32>
    %cst_77 = arith.constant 1.280000e+02 : f32
    %32 = vector.broadcast %cst_77 : f32 to vector<1x8xf32>
    %33 = arith.divf %31, %32 : vector<1x8xf32>
    %34 = arith.mulf %28, %28 : vector<1x8xf32>
    %35 = arith.subf %33, %34 : vector<1x8xf32>
    %c0_78 = arith.constant 0 : index
    %c0_79 = arith.constant 0 : index
    %36 = vector.load %arg2[%c0_78, %c0_79] : memref<1x8xf32, #tpu.memory_space<vmem>>, vector<1x8xf32>
    %cst_80 = arith.constant 9.99999974E-6 : f32
    %37 = vector.broadcast %cst_80 : f32 to vector<1x8xf32>
    %38 = arith.addf %35, %37 : vector<1x8xf32>
    %39 = math.rsqrt %38 : vector<1x8xf32>
    %40 = arith.mulf %36, %39 : vector<1x8xf32>
    %c0_81 = arith.constant 0 : index
    %c0_82 = arith.constant 0 : index
    %41 = vector.load %arg3[%c0_81, %c0_82] : memref<1x8xf32, #tpu.memory_space<vmem>>, vector<1x8xf32>
    %42 = arith.mulf %28, %40 : vector<1x8xf32>
    %43 = arith.subf %41, %42 : vector<1x8xf32>
    %44 = vector.broadcast %40 : vector<1x8xf32> to vector<512x8xf32>
    %45 = arith.mulf %24, %44 : vector<512x8xf32>
    %46 = vector.broadcast %43 : vector<1x8xf32> to vector<512x8xf32>
    %47 = arith.addf %45, %46 : vector<512x8xf32>
    %cst_83 = arith.constant 0.000000e+00 : f32
    %48 = vector.broadcast %cst_83 : f32 to vector<512x8xf32>
    %49 = arith.maximumf %47, %48 : vector<512x8xf32>
    %50 = vector.shape_cast %49 : vector<512x8xf32> to vector<8x8x8x8xf32>
    %51 = vector.extract_strided_slice %50 {offsets = [0, 0, 0, 0], sizes = [8, 8, 2, 8], strides = [1, 1, 1, 1]} : vector<8x8x8x8xf32> to vector<8x8x2x8xf32>
    %cst_84 = arith.constant 0.000000e+00 : f32
    %52 = vector.broadcast %cst_84 : f32 to vector<1x10x2x8xf32>
    %cst_85 = arith.constant 0.000000e+00 : f32
    %53 = vector.broadcast %cst_85 : f32 to vector<10x1x2x8xf32>
    %c0_86 = arith.constant 0 : index
    %c0_87 = arith.constant 0 : index
    %c0_88 = arith.constant 0 : index
    %c0_89 = arith.constant 0 : index
    %54 = vector.load %arg16[%c0_86, %c0_87, %c0_88, %c0_89] : memref<10x10x2x8xf32, #tpu.memory_space<vmem>>, vector<1x10x2x8xf32>
    tpu.vector_store %arg16[%c0_86, %c0_87, %c0_88, %c0_89], %52 {strides = array<i32>} : memref<10x10x2x8xf32, #tpu.memory_space<vmem>>, vector<1x10x2x8xf32>,
    %c9 = arith.constant 9 : index
    %c0_90 = arith.constant 0 : index
    %c0_91 = arith.constant 0 : index
    %c0_92 = arith.constant 0 : index
    %55 = vector.load %arg16[%c9, %c0_90, %c0_91, %c0_92] : memref<10x10x2x8xf32, #tpu.memory_space<vmem>>, vector<1x10x2x8xf32>
    tpu.vector_store %arg16[%c9, %c0_90, %c0_91, %c0_92], %52 {strides = array<i32>} : memref<10x10x2x8xf32, #tpu.memory_space<vmem>>, vector<1x10x2x8xf32>,
    %c0_93 = arith.constant 0 : index
    %c0_94 = arith.constant 0 : index
    %c0_95 = arith.constant 0 : index
    %c0_96 = arith.constant 0 : index
    %56 = vector.load %arg16[%c0_93, %c0_94, %c0_95, %c0_96] : memref<10x10x2x8xf32, #tpu.memory_space<vmem>>, vector<10x1x2x8xf32>
    tpu.vector_store %arg16[%c0_93, %c0_94, %c0_95, %c0_96], %53 {strides = array<i32>} : memref<10x10x2x8xf32, #tpu.memory_space<vmem>>, vector<10x1x2x8xf32>,
    %c0_97 = arith.constant 0 : index
    %c9_98 = arith.constant 9 : index
    %c0_99 = arith.constant 0 : index
    %c0_100 = arith.constant 0 : index
    %57 = vector.load %arg16[%c0_97, %c9_98, %c0_99, %c0_100] : memref<10x10x2x8xf32, #tpu.memory_space<vmem>>, vector<10x1x2x8xf32>
    tpu.vector_store %arg16[%c0_97, %c9_98, %c0_99, %c0_100], %53 {strides = array<i32>} : memref<10x10x2x8xf32, #tpu.memory_space<vmem>>, vector<10x1x2x8xf32>,
    %c1_101 = arith.constant 1 : index
    %c1_102 = arith.constant 1 : index
    %c0_103 = arith.constant 0 : index
    %c0_104 = arith.constant 0 : index
    %58 = vector.load %arg16[%c1_101, %c1_102, %c0_103, %c0_104] : memref<10x10x2x8xf32, #tpu.memory_space<vmem>>, vector<8x8x2x8xf32>
    tpu.vector_store %arg16[%c1_101, %c1_102, %c0_103, %c0_104], %51 {strides = array<i32>} : memref<10x10x2x8xf32, #tpu.memory_space<vmem>>, vector<8x8x2x8xf32>,
    %cst_105 = arith.constant 0.000000e+00 : f32
    %59 = vector.broadcast %cst_105 : f32 to vector<4x4x6x72xf32>
    %c0_106 = arith.constant 0 : index
    %c0_107 = arith.constant 0 : index
    %c2_108 = arith.constant 2 : index
    %c0_109 = arith.constant 0 : index
    %60 = vector.load %arg17[%c0_106, %c0_107, %c2_108, %c0_109] : memref<4x4x8x72xf32, #tpu.memory_space<vmem>>, vector<4x4x6x72xf32>
    tpu.vector_store %arg17[%c0_106, %c0_107, %c2_108, %c0_109], %59 {strides = array<i32>} : memref<4x4x8x72xf32, #tpu.memory_space<vmem>>, vector<4x4x6x72xf32>,
    %c0_110 = arith.constant 0 : index
    %c0_111 = arith.constant 0 : index
    %c0_112 = arith.constant 0 : index
    %c0_113 = arith.constant 0 : index
    %61 = tpu.strided_load %arg16[%c0_110, %c0_111, %c0_112, %c0_113] {strides = array<i32: 2, 2, 1, 1>} : memref<10x10x2x8xf32, #tpu.memory_space<vmem>>, vector<4x4x2x8xf32>
    %c0_114 = arith.constant 0 : index
    %c0_115 = arith.constant 0 : index
    %c0_116 = arith.constant 0 : index
    %c0_117 = arith.constant 0 : index
    %62 = vector.load %arg17[%c0_114, %c0_115, %c0_116, %c0_117] : memref<4x4x8x72xf32, #tpu.memory_space<vmem>>, vector<4x4x2x8xf32>
    tpu.vector_store %arg17[%c0_114, %c0_115, %c0_116, %c0_117], %61 {strides = array<i32>} : memref<4x4x8x72xf32, #tpu.memory_space<vmem>>, vector<4x4x2x8xf32>,
    %c0_118 = arith.constant 0 : index
    %c1_119 = arith.constant 1 : index
    %c0_120 = arith.constant 0 : index
    %c0_121 = arith.constant 0 : index
    %63 = tpu.strided_load %arg16[%c0_118, %c1_119, %c0_120, %c0_121] {strides = array<i32: 2, 2, 1, 1>} : memref<10x10x2x8xf32, #tpu.memory_space<vmem>>, vector<4x4x2x8xf32>
    %c0_122 = arith.constant 0 : index
    %c0_123 = arith.constant 0 : index
    %c0_124 = arith.constant 0 : index
    %c8_125 = arith.constant 8 : index
    %64 = vector.load %arg17[%c0_122, %c0_123, %c0_124, %c8_125] : memref<4x4x8x72xf32, #tpu.memory_space<vmem>>, vector<4x4x2x8xf32>
    tpu.vector_store %arg17[%c0_122, %c0_123, %c0_124, %c8_125], %63 {strides = array<i32>} : memref<4x4x8x72xf32, #tpu.memory_space<vmem>>, vector<4x4x2x8xf32>,
    %c0_126 = arith.constant 0 : index
    %c2_127 = arith.constant 2 : index
    %c0_128 = arith.constant 0 : index
    %c0_129 = arith.constant 0 : index
    %65 = tpu.strided_load %arg16[%c0_126, %c2_127, %c0_128, %c0_129] {strides = array<i32: 2, 2, 1, 1>} : memref<10x10x2x8xf32, #tpu.memory_space<vmem>>, vector<4x4x2x8xf32>
    %c0_130 = arith.constant 0 : index
    %c0_131 = arith.constant 0 : index
    %c0_132 = arith.constant 0 : index
    %c16 = arith.constant 16 : index
    %66 = vector.load %arg17[%c0_130, %c0_131, %c0_132, %c16] : memref<4x4x8x72xf32, #tpu.memory_space<vmem>>, vector<4x4x2x8xf32>
    tpu.vector_store %arg17[%c0_130, %c0_131, %c0_132, %c16], %65 {strides = array<i32>} : memref<4x4x8x72xf32, #tpu.memory_space<vmem>>, vector<4x4x2x8xf32>,
    %c1_133 = arith.constant 1 : index
    %c0_134 = arith.constant 0 : index
    %c0_135 = arith.constant 0 : index
    %c0_136 = arith.constant 0 : index
    %67 = tpu.strided_load %arg16[%c1_133, %c0_134, %c0_135, %c0_136] {strides = array<i32: 2, 2, 1, 1>} : memref<10x10x2x8xf32, #tpu.memory_space<vmem>>, vector<4x4x2x8xf32>
    %c0_137 = arith.constant 0 : index
    %c0_138 = arith.constant 0 : index
    %c0_139 = arith.constant 0 : index
    %c24 = arith.constant 24 : index
    %68 = vector.load %arg17[%c0_137, %c0_138, %c0_139, %c24] : memref<4x4x8x72xf32, #tpu.memory_space<vmem>>, vector<4x4x2x8xf32>
    tpu.vector_store %arg17[%c0_137, %c0_138, %c0_139, %c24], %67 {strides = array<i32>} : memref<4x4x8x72xf32, #tpu.memory_space<vmem>>, vector<4x4x2x8xf32>,
    %c1_140 = arith.constant 1 : index
    %c1_141 = arith.constant 1 : index
    %c0_142 = arith.constant 0 : index
    %c0_143 = arith.constant 0 : index
    %69 = tpu.strided_load %arg16[%c1_140, %c1_141, %c0_142, %c0_143] {strides = array<i32: 2, 2, 1, 1>} : memref<10x10x2x8xf32, #tpu.memory_space<vmem>>, vector<4x4x2x8xf32>
    %c0_144 = arith.constant 0 : index
    %c0_145 = arith.constant 0 : index
    %c0_146 = arith.constant 0 : index
    %c32 = arith.constant 32 : index
    %70 = vector.load %arg17[%c0_144, %c0_145, %c0_146, %c32] : memref<4x4x8x72xf32, #tpu.memory_space<vmem>>, vector<4x4x2x8xf32>
    tpu.vector_store %arg17[%c0_144, %c0_145, %c0_146, %c32], %69 {strides = array<i32>} : memref<4x4x8x72xf32, #tpu.memory_space<vmem>>, vector<4x4x2x8xf32>,
    %c1_147 = arith.constant 1 : index
    %c2_148 = arith.constant 2 : index
    %c0_149 = arith.constant 0 : index
    %c0_150 = arith.constant 0 : index
    %71 = tpu.strided_load %arg16[%c1_147, %c2_148, %c0_149, %c0_150] {strides = array<i32: 2, 2, 1, 1>} : memref<10x10x2x8xf32, #tpu.memory_space<vmem>>, vector<4x4x2x8xf32>
    %c0_151 = arith.constant 0 : index
    %c0_152 = arith.constant 0 : index
    %c0_153 = arith.constant 0 : index
    %c40 = arith.constant 40 : index
    %72 = vector.load %arg17[%c0_151, %c0_152, %c0_153, %c40] : memref<4x4x8x72xf32, #tpu.memory_space<vmem>>, vector<4x4x2x8xf32>
    tpu.vector_store %arg17[%c0_151, %c0_152, %c0_153, %c40], %71 {strides = array<i32>} : memref<4x4x8x72xf32, #tpu.memory_space<vmem>>, vector<4x4x2x8xf32>,
    %c2_154 = arith.constant 2 : index
    %c0_155 = arith.constant 0 : index
    %c0_156 = arith.constant 0 : index
    %c0_157 = arith.constant 0 : index
    %73 = tpu.strided_load %arg16[%c2_154, %c0_155, %c0_156, %c0_157] {strides = array<i32: 2, 2, 1, 1>} : memref<10x10x2x8xf32, #tpu.memory_space<vmem>>, vector<4x4x2x8xf32>
    %c0_158 = arith.constant 0 : index
    %c0_159 = arith.constant 0 : index
    %c0_160 = arith.constant 0 : index
    %c48 = arith.constant 48 : index
    %74 = vector.load %arg17[%c0_158, %c0_159, %c0_160, %c48] : memref<4x4x8x72xf32, #tpu.memory_space<vmem>>, vector<4x4x2x8xf32>
    tpu.vector_store %arg17[%c0_158, %c0_159, %c0_160, %c48], %73 {strides = array<i32>} : memref<4x4x8x72xf32, #tpu.memory_space<vmem>>, vector<4x4x2x8xf32>,
    %c2_161 = arith.constant 2 : index
    %c1_162 = arith.constant 1 : index
    %c0_163 = arith.constant 0 : index
    %c0_164 = arith.constant 0 : index
    %75 = tpu.strided_load %arg16[%c2_161, %c1_162, %c0_163, %c0_164] {strides = array<i32: 2, 2, 1, 1>} : memref<10x10x2x8xf32, #tpu.memory_space<vmem>>, vector<4x4x2x8xf32>
    %c0_165 = arith.constant 0 : index
    %c0_166 = arith.constant 0 : index
    %c0_167 = arith.constant 0 : index
    %c56 = arith.constant 56 : index
    %76 = vector.load %arg17[%c0_165, %c0_166, %c0_167, %c56] : memref<4x4x8x72xf32, #tpu.memory_space<vmem>>, vector<4x4x2x8xf32>
    tpu.vector_store %arg17[%c0_165, %c0_166, %c0_167, %c56], %75 {strides = array<i32>} : memref<4x4x8x72xf32, #tpu.memory_space<vmem>>, vector<4x4x2x8xf32>,
    %c2_168 = arith.constant 2 : index
    %c2_169 = arith.constant 2 : index
    %c0_170 = arith.constant 0 : index
    %c0_171 = arith.constant 0 : index
    %77 = tpu.strided_load %arg16[%c2_168, %c2_169, %c0_170, %c0_171] {strides = array<i32: 2, 2, 1, 1>} : memref<10x10x2x8xf32, #tpu.memory_space<vmem>>, vector<4x4x2x8xf32>
    %c0_172 = arith.constant 0 : index
    %c0_173 = arith.constant 0 : index
    %c0_174 = arith.constant 0 : index
    %c64 = arith.constant 64 : index
    %78 = vector.load %arg17[%c0_172, %c0_173, %c0_174, %c64] : memref<4x4x8x72xf32, #tpu.memory_space<vmem>>, vector<4x4x2x8xf32>
    tpu.vector_store %arg17[%c0_172, %c0_173, %c0_174, %c64], %77 {strides = array<i32>} : memref<4x4x8x72xf32, #tpu.memory_space<vmem>>, vector<4x4x2x8xf32>,
    %c0_175 = arith.constant 0 : index
    %c0_176 = arith.constant 0 : index
    %c0_177 = arith.constant 0 : index
    %c0_178 = arith.constant 0 : index
    %79 = vector.load %arg17[%c0_175, %c0_176, %c0_177, %c0_178] : memref<4x4x8x72xf32, #tpu.memory_space<vmem>>, vector<4x4x8x72xf32>
    %80 = vector.shape_cast %79 : vector<4x4x8x72xf32> to vector<128x72xf32>
    %81 = arith.truncf %80 : vector<128x72xf32> to vector<128x72xbf16>
    %c0_179 = arith.constant 0 : index
    %c0_180 = arith.constant 0 : index
    %82 = vector.load %arg4[%c0_179, %c0_180] : memref<72x8xbf16, #tpu.memory_space<vmem>>, vector<72x8xbf16>
    %cst_181 = arith.constant dense<0.000000e+00> : vector<128x8xf32>
    %83 = tpu.matmul %81, %82, %cst_181 {dimension_numbers = #tpu.dot_dimension_numbers<[1], [0], [0], [1], [0, 0, 1, 1], [], []>} : vector<128x72xbf16>, vector<72x8xbf16>, vector<128x8xf32> -> vector<128x8xf32>
    %cst_182 = arith.constant dense<0.000000e+00> : vector<8xf32>
    %84 = vector.multi_reduction <add>, %83, %cst_182 [0] : vector<128x8xf32> to vector<8xf32>
    %85 = vector.shape_cast %84 : vector<8xf32> to vector<1x8xf32>
    %cst_183 = arith.constant 3.200000e+01 : f32
    %86 = vector.broadcast %cst_183 : f32 to vector<1x8xf32>
    %87 = arith.divf %85, %86 : vector<1x8xf32>
    %88 = arith.mulf %83, %83 : vector<128x8xf32>
    %cst_184 = arith.constant dense<0.000000e+00> : vector<8xf32>
    %89 = vector.multi_reduction <add>, %88, %cst_184 [0] : vector<128x8xf32> to vector<8xf32>
    %90 = vector.shape_cast %89 : vector<8xf32> to vector<1x8xf32>
    %cst_185 = arith.constant 3.200000e+01 : f32
    %91 = vector.broadcast %cst_185 : f32 to vector<1x8xf32>
    %92 = arith.divf %90, %91 : vector<1x8xf32>
    %93 = arith.mulf %87, %87 : vector<1x8xf32>
    %94 = arith.subf %92, %93 : vector<1x8xf32>
    %c0_186 = arith.constant 0 : index
    %c0_187 = arith.constant 0 : index
    %95 = vector.load %arg5[%c0_186, %c0_187] : memref<1x8xf32, #tpu.memory_space<vmem>>, vector<1x8xf32>
    %cst_188 = arith.constant 9.99999974E-6 : f32
    %96 = vector.broadcast %cst_188 : f32 to vector<1x8xf32>
    %97 = arith.addf %94, %96 : vector<1x8xf32>
    %98 = math.rsqrt %97 : vector<1x8xf32>
    %99 = arith.mulf %95, %98 : vector<1x8xf32>
    %c0_189 = arith.constant 0 : index
    %c0_190 = arith.constant 0 : index
    %100 = vector.load %arg6[%c0_189, %c0_190] : memref<1x8xf32, #tpu.memory_space<vmem>>, vector<1x8xf32>
    %101 = arith.mulf %87, %99 : vector<1x8xf32>
    %102 = arith.subf %100, %101 : vector<1x8xf32>
    %103 = vector.broadcast %99 : vector<1x8xf32> to vector<128x8xf32>
    %104 = arith.mulf %83, %103 : vector<128x8xf32>
    %105 = vector.broadcast %102 : vector<1x8xf32> to vector<128x8xf32>
    %106 = arith.addf %104, %105 : vector<128x8xf32>
    %cst_191 = arith.constant 0.000000e+00 : f32
    %107 = vector.broadcast %cst_191 : f32 to vector<128x8xf32>
    %108 = arith.maximumf %106, %107 : vector<128x8xf32>
    %109 = vector.shape_cast %108 : vector<128x8xf32> to vector<4x4x8x8xf32>
    %110 = vector.extract_strided_slice %109 {offsets = [0, 0, 0, 0], sizes = [4, 4, 2, 8], strides = [1, 1, 1, 1]} : vector<4x4x8x8xf32> to vector<4x4x2x8xf32>
    %cst_192 = arith.constant 0.000000e+00 : f32
    %111 = vector.broadcast %cst_192 : f32 to vector<1x6x2x8xf32>
    %cst_193 = arith.constant 0.000000e+00 : f32
    %112 = vector.broadcast %cst_193 : f32 to vector<6x1x2x8xf32>
    %c0_194 = arith.constant 0 : index
    %c0_195 = arith.constant 0 : index
    %c0_196 = arith.constant 0 : index
    %c0_197 = arith.constant 0 : index
    %113 = vector.load %arg18[%c0_194, %c0_195, %c0_196, %c0_197] : memref<6x6x2x8xf32, #tpu.memory_space<vmem>>, vector<1x6x2x8xf32>
    tpu.vector_store %arg18[%c0_194, %c0_195, %c0_196, %c0_197], %111 {strides = array<i32>} : memref<6x6x2x8xf32, #tpu.memory_space<vmem>>, vector<1x6x2x8xf32>,
    %c5_198 = arith.constant 5 : index
    %c0_199 = arith.constant 0 : index
    %c0_200 = arith.constant 0 : index
    %c0_201 = arith.constant 0 : index
    %114 = vector.load %arg18[%c5_198, %c0_199, %c0_200, %c0_201] : memref<6x6x2x8xf32, #tpu.memory_space<vmem>>, vector<1x6x2x8xf32>
    tpu.vector_store %arg18[%c5_198, %c0_199, %c0_200, %c0_201], %111 {strides = array<i32>} : memref<6x6x2x8xf32, #tpu.memory_space<vmem>>, vector<1x6x2x8xf32>,
    %c0_202 = arith.constant 0 : index
    %c0_203 = arith.constant 0 : index
    %c0_204 = arith.constant 0 : index
    %c0_205 = arith.constant 0 : index
    %115 = vector.load %arg18[%c0_202, %c0_203, %c0_204, %c0_205] : memref<6x6x2x8xf32, #tpu.memory_space<vmem>>, vector<6x1x2x8xf32>
    tpu.vector_store %arg18[%c0_202, %c0_203, %c0_204, %c0_205], %112 {strides = array<i32>} : memref<6x6x2x8xf32, #tpu.memory_space<vmem>>, vector<6x1x2x8xf32>,
    %c0_206 = arith.constant 0 : index
    %c5_207 = arith.constant 5 : index
    %c0_208 = arith.constant 0 : index
    %c0_209 = arith.constant 0 : index
    %116 = vector.load %arg18[%c0_206, %c5_207, %c0_208, %c0_209] : memref<6x6x2x8xf32, #tpu.memory_space<vmem>>, vector<6x1x2x8xf32>
    tpu.vector_store %arg18[%c0_206, %c5_207, %c0_208, %c0_209], %112 {strides = array<i32>} : memref<6x6x2x8xf32, #tpu.memory_space<vmem>>, vector<6x1x2x8xf32>,
    %c1_210 = arith.constant 1 : index
    %c1_211 = arith.constant 1 : index
    %c0_212 = arith.constant 0 : index
    %c0_213 = arith.constant 0 : index
    %117 = vector.load %arg18[%c1_210, %c1_211, %c0_212, %c0_213] : memref<6x6x2x8xf32, #tpu.memory_space<vmem>>, vector<4x4x2x8xf32>
    tpu.vector_store %arg18[%c1_210, %c1_211, %c0_212, %c0_213], %110 {strides = array<i32>} : memref<6x6x2x8xf32, #tpu.memory_space<vmem>>, vector<4x4x2x8xf32>,
    %cst_214 = arith.constant 0.000000e+00 : f32
    %118 = vector.broadcast %cst_214 : f32 to vector<2x2x6x72xf32>
    %c0_215 = arith.constant 0 : index
    %c0_216 = arith.constant 0 : index
    %c2_217 = arith.constant 2 : index
    %c0_218 = arith.constant 0 : index
    %119 = vector.load %arg19[%c0_215, %c0_216, %c2_217, %c0_218] : memref<2x2x8x72xf32, #tpu.memory_space<vmem>>, vector<2x2x6x72xf32>
    tpu.vector_store %arg19[%c0_215, %c0_216, %c2_217, %c0_218], %118 {strides = array<i32>} : memref<2x2x8x72xf32, #tpu.memory_space<vmem>>, vector<2x2x6x72xf32>,
    %c0_219 = arith.constant 0 : index
    %c0_220 = arith.constant 0 : index
    %c0_221 = arith.constant 0 : index
    %c0_222 = arith.constant 0 : index
    %120 = tpu.strided_load %arg18[%c0_219, %c0_220, %c0_221, %c0_222] {strides = array<i32: 2, 2, 1, 1>} : memref<6x6x2x8xf32, #tpu.memory_space<vmem>>, vector<2x2x2x8xf32>
    %c0_223 = arith.constant 0 : index
    %c0_224 = arith.constant 0 : index
    %c0_225 = arith.constant 0 : index
    %c0_226 = arith.constant 0 : index
    %121 = vector.load %arg19[%c0_223, %c0_224, %c0_225, %c0_226] : memref<2x2x8x72xf32, #tpu.memory_space<vmem>>, vector<2x2x2x8xf32>
    tpu.vector_store %arg19[%c0_223, %c0_224, %c0_225, %c0_226], %120 {strides = array<i32>} : memref<2x2x8x72xf32, #tpu.memory_space<vmem>>, vector<2x2x2x8xf32>,
    %c0_227 = arith.constant 0 : index
    %c1_228 = arith.constant 1 : index
    %c0_229 = arith.constant 0 : index
    %c0_230 = arith.constant 0 : index
    %122 = tpu.strided_load %arg18[%c0_227, %c1_228, %c0_229, %c0_230] {strides = array<i32: 2, 2, 1, 1>} : memref<6x6x2x8xf32, #tpu.memory_space<vmem>>, vector<2x2x2x8xf32>
    %c0_231 = arith.constant 0 : index
    %c0_232 = arith.constant 0 : index
    %c0_233 = arith.constant 0 : index
    %c8_234 = arith.constant 8 : index
    %123 = vector.load %arg19[%c0_231, %c0_232, %c0_233, %c8_234] : memref<2x2x8x72xf32, #tpu.memory_space<vmem>>, vector<2x2x2x8xf32>
    tpu.vector_store %arg19[%c0_231, %c0_232, %c0_233, %c8_234], %122 {strides = array<i32>} : memref<2x2x8x72xf32, #tpu.memory_space<vmem>>, vector<2x2x2x8xf32>,
    %c0_235 = arith.constant 0 : index
    %c2_236 = arith.constant 2 : index
    %c0_237 = arith.constant 0 : index
    %c0_238 = arith.constant 0 : index
    %124 = tpu.strided_load %arg18[%c0_235, %c2_236, %c0_237, %c0_238] {strides = array<i32: 2, 2, 1, 1>} : memref<6x6x2x8xf32, #tpu.memory_space<vmem>>, vector<2x2x2x8xf32>
    %c0_239 = arith.constant 0 : index
    %c0_240 = arith.constant 0 : index
    %c0_241 = arith.constant 0 : index
    %c16_242 = arith.constant 16 : index
    %125 = vector.load %arg19[%c0_239, %c0_240, %c0_241, %c16_242] : memref<2x2x8x72xf32, #tpu.memory_space<vmem>>, vector<2x2x2x8xf32>
    tpu.vector_store %arg19[%c0_239, %c0_240, %c0_241, %c16_242], %124 {strides = array<i32>} : memref<2x2x8x72xf32, #tpu.memory_space<vmem>>, vector<2x2x2x8xf32>,
    %c1_243 = arith.constant 1 : index
    %c0_244 = arith.constant 0 : index
    %c0_245 = arith.constant 0 : index
    %c0_246 = arith.constant 0 : index
    %126 = tpu.strided_load %arg18[%c1_243, %c0_244, %c0_245, %c0_246] {strides = array<i32: 2, 2, 1, 1>} : memref<6x6x2x8xf32, #tpu.memory_space<vmem>>, vector<2x2x2x8xf32>
    %c0_247 = arith.constant 0 : index
    %c0_248 = arith.constant 0 : index
    %c0_249 = arith.constant 0 : index
    %c24_250 = arith.constant 24 : index
    %127 = vector.load %arg19[%c0_247, %c0_248, %c0_249, %c24_250] : memref<2x2x8x72xf32, #tpu.memory_space<vmem>>, vector<2x2x2x8xf32>
    tpu.vector_store %arg19[%c0_247, %c0_248, %c0_249, %c24_250], %126 {strides = array<i32>} : memref<2x2x8x72xf32, #tpu.memory_space<vmem>>, vector<2x2x2x8xf32>,
    %c1_251 = arith.constant 1 : index
    %c1_252 = arith.constant 1 : index
    %c0_253 = arith.constant 0 : index
    %c0_254 = arith.constant 0 : index
    %128 = tpu.strided_load %arg18[%c1_251, %c1_252, %c0_253, %c0_254] {strides = array<i32: 2, 2, 1, 1>} : memref<6x6x2x8xf32, #tpu.memory_space<vmem>>, vector<2x2x2x8xf32>
    %c0_255 = arith.constant 0 : index
    %c0_256 = arith.constant 0 : index
    %c0_257 = arith.constant 0 : index
    %c32_258 = arith.constant 32 : index
    %129 = vector.load %arg19[%c0_255, %c0_256, %c0_257, %c32_258] : memref<2x2x8x72xf32, #tpu.memory_space<vmem>>, vector<2x2x2x8xf32>
    tpu.vector_store %arg19[%c0_255, %c0_256, %c0_257, %c32_258], %128 {strides = array<i32>} : memref<2x2x8x72xf32, #tpu.memory_space<vmem>>, vector<2x2x2x8xf32>,
    %c1_259 = arith.constant 1 : index
    %c2_260 = arith.constant 2 : index
    %c0_261 = arith.constant 0 : index
    %c0_262 = arith.constant 0 : index
    %130 = tpu.strided_load %arg18[%c1_259, %c2_260, %c0_261, %c0_262] {strides = array<i32: 2, 2, 1, 1>} : memref<6x6x2x8xf32, #tpu.memory_space<vmem>>, vector<2x2x2x8xf32>
    %c0_263 = arith.constant 0 : index
    %c0_264 = arith.constant 0 : index
    %c0_265 = arith.constant 0 : index
    %c40_266 = arith.constant 40 : index
    %131 = vector.load %arg19[%c0_263, %c0_264, %c0_265, %c40_266] : memref<2x2x8x72xf32, #tpu.memory_space<vmem>>, vector<2x2x2x8xf32>
    tpu.vector_store %arg19[%c0_263, %c0_264, %c0_265, %c40_266], %130 {strides = array<i32>} : memref<2x2x8x72xf32, #tpu.memory_space<vmem>>, vector<2x2x2x8xf32>,
    %c2_267 = arith.constant 2 : index
    %c0_268 = arith.constant 0 : index
    %c0_269 = arith.constant 0 : index
    %c0_270 = arith.constant 0 : index
    %132 = tpu.strided_load %arg18[%c2_267, %c0_268, %c0_269, %c0_270] {strides = array<i32: 2, 2, 1, 1>} : memref<6x6x2x8xf32, #tpu.memory_space<vmem>>, vector<2x2x2x8xf32>
    %c0_271 = arith.constant 0 : index
    %c0_272 = arith.constant 0 : index
    %c0_273 = arith.constant 0 : index
    %c48_274 = arith.constant 48 : index
    %133 = vector.load %arg19[%c0_271, %c0_272, %c0_273, %c48_274] : memref<2x2x8x72xf32, #tpu.memory_space<vmem>>, vector<2x2x2x8xf32>
    tpu.vector_store %arg19[%c0_271, %c0_272, %c0_273, %c48_274], %132 {strides = array<i32>} : memref<2x2x8x72xf32, #tpu.memory_space<vmem>>, vector<2x2x2x8xf32>,
    %c2_275 = arith.constant 2 : index
    %c1_276 = arith.constant 1 : index
    %c0_277 = arith.constant 0 : index
    %c0_278 = arith.constant 0 : index
    %134 = tpu.strided_load %arg18[%c2_275, %c1_276, %c0_277, %c0_278] {strides = array<i32: 2, 2, 1, 1>} : memref<6x6x2x8xf32, #tpu.memory_space<vmem>>, vector<2x2x2x8xf32>
    %c0_279 = arith.constant 0 : index
    %c0_280 = arith.constant 0 : index
    %c0_281 = arith.constant 0 : index
    %c56_282 = arith.constant 56 : index
    %135 = vector.load %arg19[%c0_279, %c0_280, %c0_281, %c56_282] : memref<2x2x8x72xf32, #tpu.memory_space<vmem>>, vector<2x2x2x8xf32>
    tpu.vector_store %arg19[%c0_279, %c0_280, %c0_281, %c56_282], %134 {strides = array<i32>} : memref<2x2x8x72xf32, #tpu.memory_space<vmem>>, vector<2x2x2x8xf32>,
    %c2_283 = arith.constant 2 : index
    %c2_284 = arith.constant 2 : index
    %c0_285 = arith.constant 0 : index
    %c0_286 = arith.constant 0 : index
    %136 = tpu.strided_load %arg18[%c2_283, %c2_284, %c0_285, %c0_286] {strides = array<i32: 2, 2, 1, 1>} : memref<6x6x2x8xf32, #tpu.memory_space<vmem>>, vector<2x2x2x8xf32>
    %c0_287 = arith.constant 0 : index
    %c0_288 = arith.constant 0 : index
    %c0_289 = arith.constant 0 : index
    %c64_290 = arith.constant 64 : index
    %137 = vector.load %arg19[%c0_287, %c0_288, %c0_289, %c64_290] : memref<2x2x8x72xf32, #tpu.memory_space<vmem>>, vector<2x2x2x8xf32>
    tpu.vector_store %arg19[%c0_287, %c0_288, %c0_289, %c64_290], %136 {strides = array<i32>} : memref<2x2x8x72xf32, #tpu.memory_space<vmem>>, vector<2x2x2x8xf32>,
    %c0_291 = arith.constant 0 : index
    %c0_292 = arith.constant 0 : index
    %c0_293 = arith.constant 0 : index
    %c0_294 = arith.constant 0 : index
    %138 = vector.load %arg19[%c0_291, %c0_292, %c0_293, %c0_294] : memref<2x2x8x72xf32, #tpu.memory_space<vmem>>, vector<2x2x8x72xf32>
    %139 = vector.shape_cast %138 : vector<2x2x8x72xf32> to vector<32x72xf32>
    %140 = arith.truncf %139 : vector<32x72xf32> to vector<32x72xbf16>
    %c0_295 = arith.constant 0 : index
    %c0_296 = arith.constant 0 : index
    %141 = vector.load %arg7[%c0_295, %c0_296] : memref<72x16xbf16, #tpu.memory_space<vmem>>, vector<72x16xbf16>
    %cst_297 = arith.constant dense<0.000000e+00> : vector<32x16xf32>
    %142 = tpu.matmul %140, %141, %cst_297 {dimension_numbers = #tpu.dot_dimension_numbers<[1], [0], [0], [1], [0, 0, 1, 1], [], []>} : vector<32x72xbf16>, vector<72x16xbf16>, vector<32x16xf32> -> vector<32x16xf32>
    %cst_298 = arith.constant dense<0.000000e+00> : vector<16xf32>
    %143 = vector.multi_reduction <add>, %142, %cst_298 [0] : vector<32x16xf32> to vector<16xf32>
    %144 = vector.shape_cast %143 : vector<16xf32> to vector<1x16xf32>
    %cst_299 = arith.constant 8.000000e+00 : f32
    %145 = vector.broadcast %cst_299 : f32 to vector<1x16xf32>
    %146 = arith.divf %144, %145 : vector<1x16xf32>
    %147 = arith.mulf %142, %142 : vector<32x16xf32>
    %cst_300 = arith.constant dense<0.000000e+00> : vector<16xf32>
    %148 = vector.multi_reduction <add>, %147, %cst_300 [0] : vector<32x16xf32> to vector<16xf32>
    %149 = vector.shape_cast %148 : vector<16xf32> to vector<1x16xf32>
    %cst_301 = arith.constant 8.000000e+00 : f32
    %150 = vector.broadcast %cst_301 : f32 to vector<1x16xf32>
    %151 = arith.divf %149, %150 : vector<1x16xf32>
    %152 = arith.mulf %146, %146 : vector<1x16xf32>
    %153 = arith.subf %151, %152 : vector<1x16xf32>
    %c0_302 = arith.constant 0 : index
    %c0_303 = arith.constant 0 : index
    %154 = vector.load %arg8[%c0_302, %c0_303] : memref<1x16xf32, #tpu.memory_space<vmem>>, vector<1x16xf32>
    %cst_304 = arith.constant 9.99999974E-6 : f32
    %155 = vector.broadcast %cst_304 : f32 to vector<1x16xf32>
    %156 = arith.addf %153, %155 : vector<1x16xf32>
    %157 = math.rsqrt %156 : vector<1x16xf32>
    %158 = arith.mulf %154, %157 : vector<1x16xf32>
    %c0_305 = arith.constant 0 : index
    %c0_306 = arith.constant 0 : index
    %159 = vector.load %arg9[%c0_305, %c0_306] : memref<1x16xf32, #tpu.memory_space<vmem>>, vector<1x16xf32>
    %160 = arith.mulf %146, %158 : vector<1x16xf32>
    %161 = arith.subf %159, %160 : vector<1x16xf32>
    %162 = vector.broadcast %158 : vector<1x16xf32> to vector<32x16xf32>
    %163 = arith.mulf %142, %162 : vector<32x16xf32>
    %164 = vector.broadcast %161 : vector<1x16xf32> to vector<32x16xf32>
    %165 = arith.addf %163, %164 : vector<32x16xf32>
    %cst_307 = arith.constant 0.000000e+00 : f32
    %166 = vector.broadcast %cst_307 : f32 to vector<32x16xf32>
    %167 = arith.maximumf %165, %166 : vector<32x16xf32>
    %168 = vector.shape_cast %167 : vector<32x16xf32> to vector<2x2x8x16xf32>
    %cst_308 = arith.constant 0.000000e+00 : f32
    %169 = vector.broadcast %cst_308 : f32 to vector<16x384xf32>
    %c0_309 = arith.constant 0 : index
    %c0_310 = arith.constant 0 : index
    %170 = vector.load %arg12[%c0_309, %c0_310] : memref<1x384xf32, #tpu.memory_space<vmem>>, vector<1x384xf32>
    %171 = vector.broadcast %170 : vector<1x384xf32> to vector<16x384xf32>
    %172 = arith.addf %169, %171 : vector<16x384xf32>
    %173 = vector.extract_strided_slice %168 {offsets = [0, 0, 0, 0], sizes = [2, 1, 8, 16], strides = [1, 1, 1, 1]} : vector<2x2x8x16xf32> to vector<2x1x8x16xf32>
    %174 = vector.shape_cast %173 : vector<2x1x8x16xf32> to vector<2x8x16xf32>
    %175 = vector.shape_cast %174 : vector<2x8x16xf32> to vector<16x16xf32>
    %176 = arith.truncf %175 : vector<16x16xf32> to vector<16x16xbf16>
    %c0_311 = arith.constant 0 : index
    %c0_312 = arith.constant 0 : index
    %c0_313 = arith.constant 0 : index
    %177 = vector.load %arg10[%c0_311, %c0_312, %c0_313] : memref<2x16x384xbf16, #tpu.memory_space<vmem>>, vector<1x16x384xbf16>
    %178 = vector.shape_cast %177 : vector<1x16x384xbf16> to vector<16x384xbf16>
    %cst_314 = arith.constant dense<0.000000e+00> : vector<16x384xf32>
    %179 = tpu.matmul %176, %178, %cst_314 {dimension_numbers = #tpu.dot_dimension_numbers<[1], [0], [0], [1], [0, 0, 1, 1], [], []>} : vector<16x16xbf16>, vector<16x384xbf16>, vector<16x384xf32> -> vector<16x384xf32>
    %180 = arith.addf %172, %179 : vector<16x384xf32>
    %181 = vector.extract_strided_slice %168 {offsets = [0, 1, 0, 0], sizes = [2, 1, 8, 16], strides = [1, 1, 1, 1]} : vector<2x2x8x16xf32> to vector<2x1x8x16xf32>
    %182 = vector.shape_cast %181 : vector<2x1x8x16xf32> to vector<2x8x16xf32>
    %183 = vector.shape_cast %182 : vector<2x8x16xf32> to vector<16x16xf32>
    %184 = arith.truncf %183 : vector<16x16xf32> to vector<16x16xbf16>
    %c1_315 = arith.constant 1 : index
    %c0_316 = arith.constant 0 : index
    %c0_317 = arith.constant 0 : index
    %185 = vector.load %arg10[%c1_315, %c0_316, %c0_317] : memref<2x16x384xbf16, #tpu.memory_space<vmem>>, vector<1x16x384xbf16>
    %186 = vector.shape_cast %185 : vector<1x16x384xbf16> to vector<16x384xbf16>
    %cst_318 = arith.constant dense<0.000000e+00> : vector<16x384xf32>
    %187 = tpu.matmul %184, %186, %cst_318 {dimension_numbers = #tpu.dot_dimension_numbers<[1], [0], [0], [1], [0, 0, 1, 1], [], []>} : vector<16x16xbf16>, vector<16x384xbf16>, vector<16x384xf32> -> vector<16x384xf32>
    %188 = arith.addf %180, %187 : vector<16x384xf32>
    %189 = vector.extract_strided_slice %188 {offsets = [0, 0], sizes = [16, 16], strides = [1, 1]} : vector<16x384xf32> to vector<16x16xf32>
    %190 = vector.extract_strided_slice %188 {offsets = [0, 128], sizes = [16, 16], strides = [1, 1]} : vector<16x384xf32> to vector<16x16xf32>
    %191 = vector.extract_strided_slice %188 {offsets = [0, 256], sizes = [16, 16], strides = [1, 1]} : vector<16x384xf32> to vector<16x16xf32>
    %cst_319 = arith.constant 0.000000e+00 : f32
    %192 = vector.broadcast %cst_319 : f32 to vector<8x16xf32>
    %193 = arith.truncf %192 : vector<8x16xf32> to vector<8x16xbf16>
    %c0_320 = arith.constant 0 : index
    %c0_321 = arith.constant 0 : index
    %194 = vector.load %arg11[%c0_320, %c0_321] : memref<16x384xbf16, #tpu.memory_space<vmem>>, vector<16x384xbf16>
    %cst_322 = arith.constant dense<0.000000e+00> : vector<8x384xf32>
    %195 = tpu.matmul %193, %194, %cst_322 {dimension_numbers = #tpu.dot_dimension_numbers<[1], [0], [0], [1], [0, 0, 1, 1], [], []>} : vector<8x16xbf16>, vector<16x384xbf16>, vector<8x384xf32> -> vector<8x384xf32>
    %c0_323 = arith.constant 0 : index
    %c0_324 = arith.constant 0 : index
    %196 = vector.load %arg13[%c0_323, %c0_324] : memref<1x384xf32, #tpu.memory_space<vmem>>, vector<1x384xf32>
    %197 = vector.broadcast %196 : vector<1x384xf32> to vector<8x384xf32>
    %198 = arith.addf %195, %197 : vector<8x384xf32>
    %199 = vector.extract_strided_slice %189 {offsets = [0, 0], sizes = [8, 16], strides = [1, 1]} : vector<16x16xf32> to vector<8x16xf32>
    %200 = vector.extract_strided_slice %198 {offsets = [0, 0], sizes = [8, 16], strides = [1, 1]} : vector<8x384xf32> to vector<8x16xf32>
    %201 = arith.addf %199, %200 : vector<8x16xf32>
    %202 = arith.negf %201 : vector<8x16xf32>
    %203 = math.exp %202 : vector<8x16xf32>
    %cst_325 = arith.constant 1.000000e+00 : f32
    %204 = vector.broadcast %cst_325 : f32 to vector<8x16xf32>
    %205 = arith.addf %204, %203 : vector<8x16xf32>
    %206 = arith.divf %204, %205 : vector<8x16xf32>
    %207 = vector.extract_strided_slice %190 {offsets = [0, 0], sizes = [8, 16], strides = [1, 1]} : vector<16x16xf32> to vector<8x16xf32>
    %208 = vector.extract_strided_slice %198 {offsets = [0, 128], sizes = [8, 16], strides = [1, 1]} : vector<8x384xf32> to vector<8x16xf32>
    %209 = arith.addf %207, %208 : vector<8x16xf32>
    %210 = arith.negf %209 : vector<8x16xf32>
    %211 = math.exp %210 : vector<8x16xf32>
    %cst_326 = arith.constant 1.000000e+00 : f32
    %212 = vector.broadcast %cst_326 : f32 to vector<8x16xf32>
    %213 = arith.addf %212, %211 : vector<8x16xf32>
    %214 = arith.divf %212, %213 : vector<8x16xf32>
    %215 = vector.extract_strided_slice %191 {offsets = [0, 0], sizes = [8, 16], strides = [1, 1]} : vector<16x16xf32> to vector<8x16xf32>
    %216 = vector.extract_strided_slice %198 {offsets = [0, 256], sizes = [8, 16], strides = [1, 1]} : vector<8x384xf32> to vector<8x16xf32>
    %217 = arith.mulf %206, %216 : vector<8x16xf32>
    %218 = arith.addf %215, %217 : vector<8x16xf32>
    %219 = math.tanh %218 : vector<8x16xf32>
    %cst_327 = arith.constant 1.000000e+00 : f32
    %220 = vector.broadcast %cst_327 : f32 to vector<8x16xf32>
    %221 = arith.subf %220, %214 : vector<8x16xf32>
    %222 = arith.mulf %221, %219 : vector<8x16xf32>
    %223 = arith.mulf %214, %192 : vector<8x16xf32>
    %224 = arith.addf %222, %223 : vector<8x16xf32>
    %225 = arith.truncf %224 : vector<8x16xf32> to vector<8x16xbf16>
    %c0_328 = arith.constant 0 : index
    %c0_329 = arith.constant 0 : index
    %226 = vector.load %arg11[%c0_328, %c0_329] : memref<16x384xbf16, #tpu.memory_space<vmem>>, vector<16x384xbf16>
    %cst_330 = arith.constant dense<0.000000e+00> : vector<8x384xf32>
    %227 = tpu.matmul %225, %226, %cst_330 {dimension_numbers = #tpu.dot_dimension_numbers<[1], [0], [0], [1], [0, 0, 1, 1], [], []>} : vector<8x16xbf16>, vector<16x384xbf16>, vector<8x384xf32> -> vector<8x384xf32>
    %c0_331 = arith.constant 0 : index
    %c0_332 = arith.constant 0 : index
    %228 = vector.load %arg13[%c0_331, %c0_332] : memref<1x384xf32, #tpu.memory_space<vmem>>, vector<1x384xf32>
    %229 = vector.broadcast %228 : vector<1x384xf32> to vector<8x384xf32>
    %230 = arith.addf %227, %229 : vector<8x384xf32>
    %231 = vector.extract_strided_slice %189 {offsets = [8, 0], sizes = [8, 16], strides = [1, 1]} : vector<16x16xf32> to vector<8x16xf32>
    %232 = vector.extract_strided_slice %230 {offsets = [0, 0], sizes = [8, 16], strides = [1, 1]} : vector<8x384xf32> to vector<8x16xf32>
    %233 = arith.addf %231, %232 : vector<8x16xf32>
    %234 = arith.negf %233 : vector<8x16xf32>
    %235 = math.exp %234 : vector<8x16xf32>
    %cst_333 = arith.constant 1.000000e+00 : f32
    %236 = vector.broadcast %cst_333 : f32 to vector<8x16xf32>
    %237 = arith.addf %236, %235 : vector<8x16xf32>
    %238 = arith.divf %236, %237 : vector<8x16xf32>
    %239 = vector.extract_strided_slice %190 {offsets = [8, 0], sizes = [8, 16], strides = [1, 1]} : vector<16x16xf32> to vector<8x16xf32>
    %240 = vector.extract_strided_slice %230 {offsets = [0, 128], sizes = [8, 16], strides = [1, 1]} : vector<8x384xf32> to vector<8x16xf32>
    %241 = arith.addf %239, %240 : vector<8x16xf32>
    %242 = arith.negf %241 : vector<8x16xf32>
    %243 = math.exp %242 : vector<8x16xf32>
    %cst_334 = arith.constant 1.000000e+00 : f32
    %244 = vector.broadcast %cst_334 : f32 to vector<8x16xf32>
    %245 = arith.addf %244, %243 : vector<8x16xf32>
    %246 = arith.divf %244, %245 : vector<8x16xf32>
    %247 = vector.extract_strided_slice %191 {offsets = [8, 0], sizes = [8, 16], strides = [1, 1]} : vector<16x16xf32> to vector<8x16xf32>
    %248 = vector.extract_strided_slice %230 {offsets = [0, 256], sizes = [8, 16], strides = [1, 1]} : vector<8x384xf32> to vector<8x16xf32>
    %249 = arith.mulf %238, %248 : vector<8x16xf32>
    %250 = arith.addf %247, %249 : vector<8x16xf32>
    %251 = math.tanh %250 : vector<8x16xf32>
    %cst_335 = arith.constant 1.000000e+00 : f32
    %252 = vector.broadcast %cst_335 : f32 to vector<8x16xf32>
    %253 = arith.subf %252, %246 : vector<8x16xf32>
    %254 = arith.mulf %253, %251 : vector<8x16xf32>
    %255 = arith.mulf %246, %224 : vector<8x16xf32>
    %256 = arith.addf %254, %255 : vector<8x16xf32>
    %257 = vector.extract_strided_slice %256 {offsets = [0, 0], sizes = [2, 16], strides = [1, 1]} : vector<8x16xf32> to vector<2x16xf32>
    %c0_336 = arith.constant 0 : index
    %c0_337 = arith.constant 0 : index
    %258 = vector.load %arg14[%c0_336, %c0_337] : memref<2x16xf32, #tpu.memory_space<vmem>>, vector<2x16xf32>
    tpu.vector_store %arg14[%c0_336, %c0_337], %257 {strides = array<i32>} : memref<2x16xf32, #tpu.memory_space<vmem>>, vector<2x16xf32>,
    return
  }
}

</mosaic_0001>

<bundles_post_ra>
// kernel: reference_encoder.1
= control target key start
LH: loop header
LB: loop body
LE: loop exit
PB: predicated region body
PF: predicated region fallthrough
CT: control target
= control target key end

     0   :  { %s7036_s17 = smov 1   ;;  %s11719_s0 = inlined_call_operand.vmem [shape: f32[18,18,2,1], index: 0, kind: input, shape index: {}]   ;;  %s11720_s1 = inlined_call_operand.vmem [shape: bf16[9,8], index: 1, kind: input, shape index: {}]   ;;  %s11721_s2 = inlined_call_operand.vmem [shape: f32[1,8], index: 2, kind: input, shape index: {}]   ;;  %s11722_s3 = inlined_call_operand.vmem [shape: f32[1,8], index: 3, kind: input, shape index: {}]   ;;  %s11723_s4 = inlined_call_operand.vmem [shape: bf16[72,8], index: 4, kind: input, shape index: {}]   ;;  %s11724_s5 = inlined_call_operand.vmem [shape: f32[1,8], index: 5, kind: input, shape index: {}]   ;;  %s11725_s6 = inlined_call_operand.vmem [shape: f32[1,8], index: 6, kind: input, shape index: {}]   ;;  %s11726_s7 = inlined_call_operand.vmem [shape: bf16[72,16], index: 7, kind: input, shape index: {}]   ;;  %s11727_s8 = inlined_call_operand.vmem [shape: f32[1,16], index: 8, kind: input, shape index: {}]   ;;  %s11728_s9 = inlined_call_operand.vmem [shape: f32[1,16], index: 9, kind: input, shape index: {}]   ;;  %s11729_s10 = inlined_call_operand.vmem [shape: bf16[2,16,384], index: 10, kind: input, shape index: {}]   ;;  %s11730_s11 = inlined_call_operand.vmem [shape: bf16[16,384], index: 11, kind: input, shape index: {}]   ;;  %s11731_s12 = inlined_call_operand.vmem [shape: f32[1,384], index: 12, kind: input, shape index: {}]   ;;  %s11732_s13 = inlined_call_operand.vmem [shape: f32[1,384], index: 13, kind: input, shape index: {}]   ;;  %s11733_s14 = inlined_call_operand.hbm [shape: f32[2,16], index: 14, kind: output, shape index: {}]  }
   0x1   :  { %v6294_v0 = vld [vmem:[%s11719_s0 + $0xa] sm:$0x3]  ;;  %v6292_v1 = vld [vmem:[%s11719_s0 + $0x2] sm:$0x3]  ;;  %v6296_v2 = vld [vmem:[%s11719_s0 + $0x12] sm:$0x3] }
   0x2   :  { %376 = vrot.lane.b32.xlu1 %v6294_v0, %s7036_s17  ;;  %372 = vrot.lane.b32.xlu0 %v6292_v1, %s7036_s17 }
   0x3   :  { %380 = vrot.lane.b32.xlu2 %v6296_v2, %s7036_s17 }
   0x4   :  { %19 = vsyncpa [#allocation8], 0  ;;  %v6295_v3 = vld [vmem:[%s11719_s0 + $0xe] sm:$0x3]  ;;  %v6293_v4 = vld [vmem:[%s11719_s0 + $0x6] sm:$0x3] }
   0x5   :  { %v6297_v5 = vld [vmem:[%s11719_s0 + $0x16] sm:$0x3]  ;;  %v6299_v6 = vld [vmem:[%s11719_s0 + $0x1e] sm:$0x3]  ;;  %v6298_v7 = vld [vmem:[%s11719_s0 + $0x1a] sm:$0x3] }
   0x6   :  { %v6300_v8 = vld [vmem:[%s11719_s0 + $0x4a] sm:$0x3]  ;;  %v6302_v9 = vld [vmem:[%s11719_s0 + $0x52] sm:$0x3]  ;;  %v6301_v10 = vld [vmem:[%s11719_s0 + $0x4e] sm:$0x3] }
   0x7   :  { %v6303_v11 = vld [vmem:[%s11719_s0 + $0x56] sm:$0x3]  ;;  %v6305_v12 = vld [vmem:[%s11719_s0 + $0x5e] sm:$0x3]  ;;  %v6304_v13 = vld [vmem:[%s11719_s0 + $0x5a] sm:$0x3] }
   0x8   :  { %v6306_v14 = vld [vmem:[%s11719_s0 + $0x62] sm:$0x3]  ;;  %v6308_v15 = vld [vmem:[%s11719_s0 + $0x92] sm:$0x3]  ;;  %v6307_v16 = vld [vmem:[%s11719_s0 + $0x66] sm:$0x3] }
   0x9   :  { %v6309_v17 = vld [vmem:[%s11719_s0 + $0x96] sm:$0x3]  ;;  %v6311_v18 = vld [vmem:[%s11719_s0 + $0x9e] sm:$0x3]  ;;  %v6310_v19 = vld [vmem:[%s11719_s0 + $0x9a] sm:$0x3] }
   0xa   :  { %378 = vrot.lane.b32.xlu1 %v6295_v3, %s7036_s17  ;;  %374 = vrot.lane.b32.xlu0 %v6293_v4, %s7036_s17  ;;  %v6312_v20 = vld [vmem:[%s11719_s0 + $0xa2] sm:$0x3]  ;;  %v6314_v21 = vld [vmem:[%s11719_s0 + $0xaa] sm:$0x3]  ;;  %vm178_vm0 = vcmask 1024   ;;  %vm564_vm1 = vcmask 9224  }
   0xb   :  { %382 = vrot.lane.b32.xlu2 %v6297_v5, %s7036_s17  ;;  %v6313_v22 = vld [vmem:[%s11719_s0 + $0xa6] sm:$0x3]  ;;  %v6315_v23 = vld [vmem:[%s11719_s0 + $0xae] sm:$0x3]  ;;  %v6317_v24 = vld [vmem:[%s11719_s0 + $0xde] sm:$0x3] }
   0xc   :  { %v6316_v25 = vld [vmem:[%s11719_s0 + $0xda] sm:$0x3]  ;;  %v6318_v26 = vld [vmem:[%s11719_s0 + $0xe2] sm:$0x3]  ;;  %v6320_v27 = vld [vmem:[%s11719_s0 + $0xea] sm:$0x3] }
   0xd   :  { %v6319_v28 = vld [vmem:[%s11719_s0 + $0xe6] sm:$0x3]  ;;  %v6321_v29 = vld [vmem:[%s11719_s0 + $0xee] sm:$0x3]  ;;  %v6323_v30 = vld [vmem:[%s11719_s0 + $0xf6] sm:$0x3] }
   0xe   :  { %v6322_v31 = vld [vmem:[%s11719_s0 + $0xf2] sm:$0x3]  ;;  %v6324_v32 = vld [vmem:[%s11719_s0 + $0x122] sm:$0x3]  ;;  %v118_v33 = vld [vmem:[%s11719_s0 + $0x10] sm:$0x3] }
   0xf   :  { %183 = vst.msk [vmem:[#allocation2 + $0x20] sm:$0x3] %vm178_vm0, %v118_v33  ;;  %v116_v34 = vld [vmem:[%s11719_s0 + $0x8] sm:$0x3]  ;;  %v114_v35 = vld [vmem:[%s11719_s0] sm:$0x3] }
  0x10   :  { %181 = vst.msk [vmem:[#allocation2 + $0x10] sm:$0x3] %vm178_vm0, %v116_v34  ;;  %v6326_v36 = vld [vmem:[%s11719_s0 + $0x12a] sm:$0x3]  ;;  %v6325_v37 = vld [vmem:[%s11719_s0 + $0x126] sm:$0x3] }
  0x11   :  { %179 = vst.msk [vmem:[#allocation2] sm:$0x3] %vm178_vm0, %v114_v35  ;;  %v6327_v38 = vld [vmem:[%s11719_s0 + $0x12e] sm:$0x3]  ;;  %v119_v39 = vld [vmem:[%s11719_s0 + $0x14] sm:$0x3] }
  0x12   :  { %386 = vrot.lane.b32.xlu1 %v6299_v6, %s7036_s17  ;;  %384 = vrot.lane.b32.xlu0 %v6298_v7, %s7036_s17  ;;  %184 = vst.msk [vmem:[#allocation2 + $0x28] sm:$0x3] %vm178_vm0, %v119_v39  ;;  %v117_v40 = vld [vmem:[%s11719_s0 + $0xc] sm:$0x3]  ;;  %v115_v41 = vld [vmem:[%s11719_s0 + $0x4] sm:$0x3] }
  0x13   :  { %388 = vrot.lane.b32.xlu2 %v6300_v8, %s7036_s17  ;;  %182 = vst.msk [vmem:[#allocation2 + $0x18] sm:$0x3] %vm178_vm0, %v117_v40  ;;  %v6329_v43 = vld [vmem:[%s11719_s0 + $0x136] sm:$0x3]  ;;  %v6328_v44 = vld [vmem:[%s11719_s0 + $0x132] sm:$0x3] }
  0x14   :  { %180 = vst.msk [vmem:[#allocation2 + $0x8] sm:$0x3] %vm178_vm0, %v115_v41  ;;  %v6330_v45 = vld [vmem:[%s11719_s0 + $0x13a] sm:$0x3]  ;;  %v122_v46 = vld [vmem:[%s11719_s0 + $0x48] sm:$0x3] }
  0x15   :  { %187 = vst.msk [vmem:[#allocation2 + $0x40] sm:$0x3] %vm178_vm0, %v122_v46  ;;  %v121_v47 = vld [vmem:[%s11719_s0 + $0x1c] sm:$0x3]  ;;  %v120_v48 = vld [vmem:[%s11719_s0 + $0x18] sm:$0x3] }
  0x16   :  { %186 = vst.msk [vmem:[#allocation2 + $0x38] sm:$0x3] %vm178_vm0, %v121_v47  ;;  %v6332_v50 = vld [vmem:[%s11719_s0 + $0x16a] sm:$0x3]  ;;  %v6331_v51 = vld [vmem:[%s11719_s0 + $0x13e] sm:$0x3] }
  0x17   :  { %185 = vst.msk [vmem:[#allocation2 + $0x30] sm:$0x3] %vm178_vm0, %v120_v48  ;;  %v6333_v52 = vld [vmem:[%s11719_s0 + $0x16e] sm:$0x3]  ;;  %v125_v53 = vld [vmem:[%s11719_s0 + $0x54] sm:$0x3] }
  0x18   :  { %190 = vst.msk [vmem:[#allocation2 + $0x58] sm:$0x3] %vm178_vm0, %v125_v53  ;;  %v124_v54 = vld [vmem:[%s11719_s0 + $0x50] sm:$0x3]  ;;  %v123_v55 = vld [vmem:[%s11719_s0 + $0x4c] sm:$0x3] }
  0x19   :  { %189 = vst.msk [vmem:[#allocation2 + $0x50] sm:$0x3] %vm178_vm0, %v124_v54  ;;  %v6335_v57 = vld [vmem:[%s11719_s0 + $0x176] sm:$0x3]  ;;  %v6334_v58 = vld [vmem:[%s11719_s0 + $0x172] sm:$0x3] }
  0x1a   :  { %392 = vrot.lane.b32.xlu1 %v6302_v9, %s7036_s17  ;;  %390 = vrot.lane.b32.xlu0 %v6301_v10, %s7036_s17  ;;  %188 = vst.msk [vmem:[#allocation2 + $0x48] sm:$0x3] %vm178_vm0, %v123_v55  ;;  %v6336_v59 = vld [vmem:[%s11719_s0 + $0x17a] sm:$0x3]  ;;  %v128_v60 = vld [vmem:[%s11719_s0 + $0x60] sm:$0x3] }
  0x1b   :  { %394 = vrot.lane.b32.xlu2 %v6303_v11, %s7036_s17  ;;  %193 = vst.msk [vmem:[#allocation2 + $0x70] sm:$0x3] %vm178_vm0, %v128_v60  ;;  %v127_v63 = vld [vmem:[%s11719_s0 + $0x5c] sm:$0x3]  ;;  %v126_v1 = vld [vmem:[%s11719_s0 + $0x58] sm:$0x3] }
  0x1c   :  { %v6338_v2 = vld [vmem:[%s11719_s0 + $0x182] sm:$0x3]  ;;  %v6337_v3 = vld [vmem:[%s11719_s0 + $0x17e] sm:$0x3]  ;;  %192 = vst.msk [vmem:[#allocation2 + $0x68] sm:$0x3] %vm178_vm0, %v127_v63 }
  0x1d   :  { %v6339_v4 = vld [vmem:[%s11719_s0 + $0x186] sm:$0x3]  ;;  %191 = vst.msk [vmem:[#allocation2 + $0x60] sm:$0x3] %vm178_vm0, %v126_v1  ;;  %v131_v5 = vld [vmem:[%s11719_s0 + $0x94] sm:$0x3] }
  0x1e   :  { %196 = vst.msk [vmem:[#allocation2 + $0x88] sm:$0x3] %vm178_vm0, %v131_v5  ;;  %v130_v8 = vld [vmem:[%s11719_s0 + $0x90] sm:$0x3]  ;;  %v129_v10 = vld [vmem:[%s11719_s0 + $0x64] sm:$0x3] }
  0x1f   :  { %v6341_v11 = vld [vmem:[%s11719_s0 + $0x1b6] sm:$0x3]  ;;  %195 = vst.msk [vmem:[#allocation2 + $0x80] sm:$0x3] %vm178_vm0, %v130_v8  ;;  %v139_v35 = vld [vmem:[%s11719_s0 + $0xdc] sm:$0x3] }
  0x20   :  { %194 = vst.msk [vmem:[#allocation2 + $0x78] sm:$0x3] %vm178_vm0, %v129_v10  ;;  %v6349_v39 = vld [vmem:[%s11719_s0 + $0x1fe] sm:$0x3]  ;;  %v6351_v40 = vld [vmem:[%s11719_s0 + $0x206] sm:$0x3] }
  0x21   :  { %204 = vst.msk [vmem:[#allocation2 + $0xc8] sm:$0x3] %vm178_vm0, %v139_v35  ;;  %v143_v41 = vld [vmem:[%s11719_s0 + $0xec] sm:$0x3]  ;;  %v141_v46 = vld [vmem:[%s11719_s0 + $0xe4] sm:$0x3] }
  0x22   :  { %398 = vrot.lane.b32.xlu1 %v6305_v12, %s7036_s17  ;;  %396 = vrot.lane.b32.xlu0 %v6304_v13, %s7036_s17  ;;  %v6340_v12 = vld [vmem:[%s11719_s0 + $0x1b2] sm:$0x3]  ;;  %v6342_v13 = vld [vmem:[%s11719_s0 + $0x1ba] sm:$0x3]  ;;  %208 = vst.msk [vmem:[#allocation2 + $0xe8] sm:$0x3] %vm178_vm0, %v143_v41 }
  0x23   :  { %400 = vrot.lane.b32.xlu2 %v6306_v14, %s7036_s17  ;;  %v134_v14 = vld [vmem:[%s11719_s0 + $0xa0] sm:$0x3]  ;;  %v6353_v47 = vld [vmem:[%s11719_s0 + $0x20e] sm:$0x3]  ;;  %v6352_v48 = vld [vmem:[%s11719_s0 + $0x20a] sm:$0x3] }
  0x24   :  { %199 = vst.msk [vmem:[#allocation2 + $0xa0] sm:$0x3] %vm178_vm0, %v134_v14  ;;  %v145_v53 = vld [vmem:[%s11719_s0 + $0xf4] sm:$0x3]  ;;  %v144_v55 = vld [vmem:[%s11719_s0 + $0xf0] sm:$0x3] }
  0x25   :  { %206 = vst.msk [vmem:[#allocation2 + $0xd8] sm:$0x3] %vm178_vm0, %v141_v46  ;;  %s7037_s16 = smov 2   ;;  %v6359_v1 = vld [vmem:[%s11719_s0 + $0x10] sm:$0x3]  ;;  %vm950_vm2 = vcmask 17424  }
  0x26   :  { %210 = vst.msk [vmem:[#allocation2 + $0xf8] sm:$0x3] %vm178_vm0, %v145_v53  ;;  %v6362_v10 = vld [vmem:[%s11719_s0 + $0x1c] sm:$0x3]  ;;  %s7038_s25 = smov 3   ;;  %s7039_s15 = smov 4  }
  0x27   :  { %209 = vst.msk [vmem:[#allocation2 + $0xf0] sm:$0x3] %vm178_vm0, %v144_v55  ;;  %v6374_v46 = vld [vmem:[%s11719_s0 + $0x9c] sm:$0x3]  ;;  %v6377_v55 = vld [vmem:[%s11719_s0 + $0xa8] sm:$0x3] }
  0x28   :  { %s7040_s23 = smov 5   ;;  %s7041_s30 = smov 6   ;;  %vm1336_vm3 = vcmask 25624   ;;  %vm1722_vm4 = vcmask 33824   ;;  %vm49_vm5 = vcmask 70656   ;;  %vm3531_vm6 = vcmask 1043456  }
  0x29   :  { %s7042_s18 = smov 7   ;;  %s7043_s26 = smov 8   ;;  %vm3532_vm7 = vcmask 1044480   ;;  %vm2108_vm8 = vcmask 42024   ;;  %vm2494_vm9 = vcmask 50224   ;;  %vm2880_vm10 = vcmask 58424  }
  0x2a   :  { %404 = vrot.lane.b32.xlu1 %v6308_v15, %s7036_s17  ;;  %402 = vrot.lane.b32.xlu0 %v6307_v16, %s7036_s17  ;;  %vm3266_vm11 = vcmask 66624   ;;  %vm3434_vm12 = vcmask 72704   ;;  %vm4263_vm13 = vcmask 58368   ;;  %vm3707_vm14 = vcmask 64512   ;;  %s7048_s21 = smov 24   ;;  %s7053_s22 = smov 64  }
  0x2b   :  { %406 = vrot.lane.b32.xlu2 %v6309_v17, %s7036_s17  ;;  %v133_v17 = vld [vmem:[%s11719_s0 + $0x9c] sm:$0x3] }
  0x2c   :  { %198 = vst.msk [vmem:[#allocation2 + $0x98] sm:$0x3] %vm178_vm0, %v133_v17 }
  0x32   :  { %410 = vrot.lane.b32.xlu1 %v6311_v18, %s7036_s17  ;;  %408 = vrot.lane.b32.xlu0 %v6310_v19, %s7036_s17  ;;  %v132_v19 = vld [vmem:[%s11719_s0 + $0x98] sm:$0x3] }
  0x33   :  { %412 = vrot.lane.b32.xlu2 %v6312_v20, %s7036_s17  ;;  %v6344_v20 = vld [vmem:[%s11719_s0 + $0x1c2] sm:$0x3]  ;;  %197 = vst.msk [vmem:[#allocation2 + $0x90] sm:$0x3] %vm178_vm0, %v132_v19  ;;  %v6365_v19 = vld [vmem:[%s11719_s0 + $0x50] sm:$0x3] }
  0x3a   :  { %416 = vrot.lane.b32.xlu1 %v6314_v21, %s7036_s17  ;;  %414 = vrot.lane.b32.xlu0 %v6313_v22, %s7036_s17  ;;  %v6343_v21 = vld [vmem:[%s11719_s0 + $0x1be] sm:$0x3]  ;;  %v6345_v22 = vld [vmem:[%s11719_s0 + $0x1c6] sm:$0x3] }
  0x3b   :  { %418 = vrot.lane.b32.xlu2 %v6315_v23, %s7036_s17  ;;  %v137_v23 = vld [vmem:[%s11719_s0 + $0xac] sm:$0x3] }
  0x3c   :  { %202 = vst.msk [vmem:[#allocation2 + $0xb8] sm:$0x3] %vm178_vm0, %v137_v23 }
  0x42   :  { %422 = vrot.lane.b32.xlu1 %v6317_v24, %s7036_s17  ;;  %420 = vrot.lane.b32.xlu0 %v6316_v25, %s7036_s17 }
  0x43   :  { %424 = vrot.lane.b32.xlu2 %v6318_v26, %s7036_s17  ;;  %v136_v26 = vld [vmem:[%s11719_s0 + $0xa8] sm:$0x3] }
  0x44   :  { %201 = vst.msk [vmem:[#allocation2 + $0xb0] sm:$0x3] %vm178_vm0, %v136_v26 }
  0x4a   :  { %428 = vrot.lane.b32.xlu1 %v6320_v27, %s7036_s17  ;;  %426 = vrot.lane.b32.xlu0 %v6319_v28, %s7036_s17  ;;  %v135_v28 = vld [vmem:[%s11719_s0 + $0xa4] sm:$0x3] }
  0x4b   :  { %430 = vrot.lane.b32.xlu2 %v6321_v29, %s7036_s17  ;;  %v6347_v29 = vld [vmem:[%s11719_s0 + $0x1ce] sm:$0x3]  ;;  %200 = vst.msk [vmem:[#allocation2 + $0xa8] sm:$0x3] %vm178_vm0, %v135_v28  ;;  %v6368_v28 = vld [vmem:[%s11719_s0 + $0x5c] sm:$0x3] }
  0x52   :  { %434 = vrot.lane.b32.xlu1 %v6323_v30, %s7036_s17  ;;  %432 = vrot.lane.b32.xlu0 %v6322_v31, %s7036_s17  ;;  %v6346_v30 = vld [vmem:[%s11719_s0 + $0x1ca] sm:$0x3]  ;;  %v6348_v31 = vld [vmem:[%s11719_s0 + $0x1fa] sm:$0x3] }
  0x53   :  { %436 = vrot.lane.b32.xlu2 %v6324_v32, %s7036_s17  ;;  %v140_v32 = vld [vmem:[%s11719_s0 + $0xe0] sm:$0x3] }
  0x54   :  { %205 = vst.msk [vmem:[#allocation2 + $0xd0] sm:$0x3] %vm178_vm0, %v140_v32 }
  0x5a   :  { %440 = vrot.lane.b32.xlu1 %v6326_v36, %s7036_s17  ;;  %438 = vrot.lane.b32.xlu0 %v6325_v37, %s7036_s17  ;;  %v138_v37 = vld [vmem:[%s11719_s0 + $0xd8] sm:$0x3] }
  0x5b   :  { %442 = vrot.lane.b32.xlu2 %v6327_v38, %s7036_s17  ;;  %v6350_v38 = vld [vmem:[%s11719_s0 + $0x202] sm:$0x3]  ;;  %203 = vst.msk [vmem:[#allocation2 + $0xc0] sm:$0x3] %vm178_vm0, %v138_v37  ;;  %v6371_v37 = vld [vmem:[%s11719_s0 + $0x68] sm:$0x3] }
  0x5d   :  { %v381_v42 = vpop.permute.xlu2 %380 }
  0x5e   :  { %569 = vst.msk [vmem:[#allocation2 + $0x20] sm:$0x3] %vm564_vm1, %v381_v42 }
  0x62   :  { %446 = vrot.lane.b32.xlu1 %v6329_v43, %s7036_s17  ;;  %444 = vrot.lane.b32.xlu0 %v6328_v44, %s7036_s17  ;;  %v142_v44 = vld [vmem:[%s11719_s0 + $0xe8] sm:$0x3] }
  0x63   :  { %448 = vrot.lane.b32.xlu2 %v6330_v45, %s7036_s17  ;;  %207 = vst.msk [vmem:[#allocation2 + $0xe0] sm:$0x3] %vm178_vm0, %v142_v44 }
  0x65   :  { %v383_v49 = vpop.permute.xlu2 %382 }
  0x66   :  { %570 = vst.msk [vmem:[#allocation2 + $0x28] sm:$0x3] %vm564_vm1, %v383_v49  ;;  %v6354_v49 = vld [vmem:[%s11719_s0 + $0x212] sm:$0x3] }
  0x6a   :  { %452 = vrot.lane.b32.xlu1 %v6332_v50, %s7036_s17  ;;  %450 = vrot.lane.b32.xlu0 %v6331_v51, %s7036_s17  ;;  %v146_v50 = vld [vmem:[%s11719_s0 + $0x120] sm:$0x3] }
  0x6b   :  { %454 = vrot.lane.b32.xlu2 %v6333_v52, %s7036_s17  ;;  %211 = vst.msk [vmem:[#allocation2 + $0x100] sm:$0x3] %vm178_vm0, %v146_v50 }
  0x6d   :  { %v389_v56 = vpop.permute.xlu2 %388 }
  0x6e   :  { %573 = vst.msk [vmem:[#allocation2 + $0x40] sm:$0x3] %vm564_vm1, %v389_v56  ;;  %v6356_v56 = vld [vmem:[%s11719_s0 + $0x4] sm:$0x3] }
  0x72   :  { %458 = vrot.lane.b32.xlu1 %v6335_v57, %s7036_s17  ;;  %456 = vrot.lane.b32.xlu0 %v6334_v58, %s7036_s17  ;;  %v6355_v57 = vld [vmem:[%s11719_s0 + $0x216] sm:$0x3]  ;;  %v6357_v58 = vld [vmem:[%s11719_s0 + $0x8] sm:$0x3] }
  0x73   :  { %460 = vrot.lane.b32.xlu2 %v6336_v59, %s7036_s17  ;;  %v149_v59 = vld [vmem:[%s11719_s0 + $0x12c] sm:$0x3] }
  0x74   :  { %v377_v61 = vpop.permute.xlu1 %376  ;;  %v373_v62 = vpop.permute.xlu0 %372  ;;  %214 = vst.msk [vmem:[#allocation2 + $0x118] sm:$0x3] %vm178_vm0, %v149_v59 }
  0x75   :  { %567 = vst.msk [vmem:[#allocation2 + $0x10] sm:$0x3] %vm564_vm1, %v377_v61  ;;  %v395_v0 = vpop.permute.xlu2 %394 }
  0x76   :  { %565 = vst.msk [vmem:[#allocation2] sm:$0x3] %vm564_vm1, %v373_v62  ;;  %v148_v62 = vld [vmem:[%s11719_s0 + $0x128] sm:$0x3] }
  0x77   :  { %576 = vst.msk [vmem:[#allocation2 + $0x58] sm:$0x3] %vm564_vm1, %v395_v0  ;;  %v147_v0 = vld [vmem:[%s11719_s0 + $0x124] sm:$0x3] }
  0x78   :  { %213 = vst.msk [vmem:[#allocation2 + $0x110] sm:$0x3] %vm178_vm0, %v148_v62 }
  0x79   :  { %212 = vst.msk [vmem:[#allocation2 + $0x108] sm:$0x3] %vm178_vm0, %v147_v0  ;;  %v6380_v0 = vld [vmem:[%s11719_s0 + $0xdc] sm:$0x3] }
  0x7a   :  { %464 = vrot.lane.b32.xlu1 %v6338_v2, %s7036_s17  ;;  %462 = vrot.lane.b32.xlu0 %v6337_v3, %s7036_s17  ;;  %v6358_v2 = vld [vmem:[%s11719_s0 + $0xc] sm:$0x3]  ;;  %v6360_v3 = vld [vmem:[%s11719_s0 + $0x14] sm:$0x3] }
  0x7b   :  { %466 = vrot.lane.b32.xlu2 %v6339_v4, %s7036_s17  ;;  %v152_v4 = vld [vmem:[%s11719_s0 + $0x138] sm:$0x3] }
  0x7c   :  { %v379_v6 = vpop.permute.xlu1 %378  ;;  %v375_v7 = vpop.permute.xlu0 %374  ;;  %217 = vst.msk [vmem:[#allocation2 + $0x130] sm:$0x3] %vm178_vm0, %v152_v4 }
  0x7d   :  { %568 = vst.msk [vmem:[#allocation2 + $0x18] sm:$0x3] %vm564_vm1, %v379_v6  ;;  %v401_v9 = vpop.permute.xlu2 %400 }
  0x7e   :  { %566 = vst.msk [vmem:[#allocation2 + $0x8] sm:$0x3] %vm564_vm1, %v375_v7  ;;  %v151_v7 = vld [vmem:[%s11719_s0 + $0x134] sm:$0x3] }
  0x7f   :  { %579 = vst.msk [vmem:[#allocation2 + $0x70] sm:$0x3] %vm564_vm1, %v401_v9  ;;  %v150_v9 = vld [vmem:[%s11719_s0 + $0x130] sm:$0x3] }
  0x80   :  { %216 = vst.msk [vmem:[#allocation2 + $0x128] sm:$0x3] %vm178_vm0, %v151_v7 }
  0x81   :  { %215 = vst.msk [vmem:[#allocation2 + $0x120] sm:$0x3] %vm178_vm0, %v150_v9  ;;  %v6383_v9 = vld [vmem:[%s11719_s0 + $0xe8] sm:$0x3] }
  0x82   :  { %470 = vrot.lane.b32.xlu1 %v6341_v11, %s7036_s17  ;;  %468 = vrot.lane.b32.xlu0 %v6340_v12, %s7036_s17  ;;  %v6361_v11 = vld [vmem:[%s11719_s0 + $0x18] sm:$0x3]  ;;  %v6363_v12 = vld [vmem:[%s11719_s0 + $0x20] sm:$0x3] }
  0x83   :  { %472 = vrot.lane.b32.xlu2 %v6342_v13, %s7036_s17  ;;  %v155_v13 = vld [vmem:[%s11719_s0 + $0x16c] sm:$0x3] }
  0x84   :  { %v387_v15 = vpop.permute.xlu1 %386  ;;  %v385_v16 = vpop.permute.xlu0 %384  ;;  %220 = vst.msk [vmem:[#allocation2 + $0x148] sm:$0x3] %vm178_vm0, %v155_v13 }
  0x85   :  { %572 = vst.msk [vmem:[#allocation2 + $0x38] sm:$0x3] %vm564_vm1, %v387_v15  ;;  %v407_v18 = vpop.permute.xlu2 %406 }
  0x86   :  { %571 = vst.msk [vmem:[#allocation2 + $0x30] sm:$0x3] %vm564_vm1, %v385_v16  ;;  %v154_v16 = vld [vmem:[%s11719_s0 + $0x168] sm:$0x3] }
  0x87   :  { %582 = vst.msk [vmem:[#allocation2 + $0x88] sm:$0x3] %vm564_vm1, %v407_v18  ;;  %v153_v18 = vld [vmem:[%s11719_s0 + $0x13c] sm:$0x3] }
  0x88   :  { %219 = vst.msk [vmem:[#allocation2 + $0x140] sm:$0x3] %vm178_vm0, %v154_v16 }
  0x89   :  { %218 = vst.msk [vmem:[#allocation2 + $0x138] sm:$0x3] %vm178_vm0, %v153_v18  ;;  %v6386_v18 = vld [vmem:[%s11719_s0 + $0xf4] sm:$0x3] }
  0x8a   :  { %476 = vrot.lane.b32.xlu1 %v6344_v20, %s7036_s17  ;;  %474 = vrot.lane.b32.xlu0 %v6343_v21, %s7036_s17  ;;  %v6364_v20 = vld [vmem:[%s11719_s0 + $0x4c] sm:$0x3]  ;;  %v6366_v21 = vld [vmem:[%s11719_s0 + $0x54] sm:$0x3] }
  0x8b   :  { %478 = vrot.lane.b32.xlu2 %v6345_v22, %s7036_s17  ;;  %v158_v22 = vld [vmem:[%s11719_s0 + $0x178] sm:$0x3] }
  0x8c   :  { %v393_v24 = vpop.permute.xlu1 %392  ;;  %v391_v25 = vpop.permute.xlu0 %390  ;;  %223 = vst.msk [vmem:[#allocation2 + $0x160] sm:$0x3] %vm178_vm0, %v158_v22 }
  0x8d   :  { %575 = vst.msk [vmem:[#allocation2 + $0x50] sm:$0x3] %vm564_vm1, %v393_v24  ;;  %v413_v27 = vpop.permute.xlu2 %412 }
  0x8e   :  { %574 = vst.msk [vmem:[#allocation2 + $0x48] sm:$0x3] %vm564_vm1, %v391_v25  ;;  %v157_v25 = vld [vmem:[%s11719_s0 + $0x174] sm:$0x3] }
  0x8f   :  { %585 = vst.msk [vmem:[#allocation2 + $0xa0] sm:$0x3] %vm564_vm1, %v413_v27  ;;  %v156_v27 = vld [vmem:[%s11719_s0 + $0x170] sm:$0x3] }
  0x90   :  { %222 = vst.msk [vmem:[#allocation2 + $0x158] sm:$0x3] %vm178_vm0, %v157_v25  ;;  %v6389_v25 = vld [vmem:[%s11719_s0 + $0x128] sm:$0x3] }
  0x91   :  { %221 = vst.msk [vmem:[#allocation2 + $0x150] sm:$0x3] %vm178_vm0, %v156_v27  ;;  %v6390_v27 = vld [vmem:[%s11719_s0 + $0x12c] sm:$0x3] }
  0x92   :  { %482 = vrot.lane.b32.xlu1 %v6347_v29, %s7036_s17  ;;  %480 = vrot.lane.b32.xlu0 %v6346_v30, %s7036_s17  ;;  %v6367_v29 = vld [vmem:[%s11719_s0 + $0x58] sm:$0x3]  ;;  %v6369_v30 = vld [vmem:[%s11719_s0 + $0x60] sm:$0x3] }
  0x93   :  { %484 = vrot.lane.b32.xlu2 %v6348_v31, %s7036_s17  ;;  %v161_v31 = vld [vmem:[%s11719_s0 + $0x184] sm:$0x3] }
  0x94   :  { %v399_v33 = vpop.permute.xlu1 %398  ;;  %v397_v34 = vpop.permute.xlu0 %396  ;;  %226 = vst.msk [vmem:[#allocation2 + $0x178] sm:$0x3] %vm178_vm0, %v161_v31  ;;  %v6392_v31 = vld [vmem:[%s11719_s0 + $0x134] sm:$0x3] }
  0x95   :  { %578 = vst.msk [vmem:[#allocation2 + $0x68] sm:$0x3] %vm564_vm1, %v399_v33  ;;  %v419_v36 = vpop.permute.xlu2 %418 }
  0x96   :  { %577 = vst.msk [vmem:[#allocation2 + $0x60] sm:$0x3] %vm564_vm1, %v397_v34  ;;  %v160_v34 = vld [vmem:[%s11719_s0 + $0x180] sm:$0x3] }
  0x97   :  { %588 = vst.msk [vmem:[#allocation2 + $0xb8] sm:$0x3] %vm564_vm1, %v419_v36  ;;  %v159_v36 = vld [vmem:[%s11719_s0 + $0x17c] sm:$0x3] }
  0x98   :  { %225 = vst.msk [vmem:[#allocation2 + $0x170] sm:$0x3] %vm178_vm0, %v160_v34 }
  0x99   :  { %224 = vst.msk [vmem:[#allocation2 + $0x168] sm:$0x3] %vm178_vm0, %v159_v36 }
  0x9a   :  { %488 = vrot.lane.b32.xlu1 %v6350_v38, %s7036_s17  ;;  %486 = vrot.lane.b32.xlu0 %v6349_v39, %s7036_s17  ;;  %v6370_v38 = vld [vmem:[%s11719_s0 + $0x64] sm:$0x3]  ;;  %v6372_v39 = vld [vmem:[%s11719_s0 + $0x94] sm:$0x3] }
  0x9b   :  { %490 = vrot.lane.b32.xlu2 %v6351_v40, %s7036_s17  ;;  %v164_v40 = vld [vmem:[%s11719_s0 + $0x1b8] sm:$0x3] }
  0x9c   :  { %v405_v42 = vpop.permute.xlu1 %404  ;;  %v403_v43 = vpop.permute.xlu0 %402  ;;  %229 = vst.msk [vmem:[#allocation2 + $0x190] sm:$0x3] %vm178_vm0, %v164_v40 }
  0x9d   :  { %581 = vst.msk [vmem:[#allocation2 + $0x80] sm:$0x3] %vm564_vm1, %v405_v42  ;;  %v425_v45 = vpop.permute.xlu2 %424 }
  0x9e   :  { %580 = vst.msk [vmem:[#allocation2 + $0x78] sm:$0x3] %vm564_vm1, %v403_v43  ;;  %v163_v43 = vld [vmem:[%s11719_s0 + $0x1b4] sm:$0x3] }
  0x9f   :  { %591 = vst.msk [vmem:[#allocation2 + $0xd0] sm:$0x3] %vm564_vm1, %v425_v45  ;;  %v162_v45 = vld [vmem:[%s11719_s0 + $0x1b0] sm:$0x3] }
  0xa0   :  { %228 = vst.msk [vmem:[#allocation2 + $0x188] sm:$0x3] %vm178_vm0, %v163_v43  ;;  %v6398_v43 = vld [vmem:[%s11719_s0 + $0x174] sm:$0x3] }
  0xa1   :  { %227 = vst.msk [vmem:[#allocation2 + $0x180] sm:$0x3] %vm178_vm0, %v162_v45  ;;  %v6399_v45 = vld [vmem:[%s11719_s0 + $0x178] sm:$0x3] }
  0xa2   :  { %494 = vrot.lane.b32.xlu1 %v6353_v47, %s7036_s17  ;;  %492 = vrot.lane.b32.xlu0 %v6352_v48, %s7036_s17  ;;  %v6373_v47 = vld [vmem:[%s11719_s0 + $0x98] sm:$0x3]  ;;  %v6375_v48 = vld [vmem:[%s11719_s0 + $0xa0] sm:$0x3] }
  0xa3   :  { %496 = vrot.lane.b32.xlu2 %v6354_v49, %s7036_s17  ;;  %v167_v49 = vld [vmem:[%s11719_s0 + $0x1c4] sm:$0x3] }
  0xa4   :  { %v411_v51 = vpop.permute.xlu1 %410  ;;  %v409_v52 = vpop.permute.xlu0 %408  ;;  %232 = vst.msk [vmem:[#allocation2 + $0x1a8] sm:$0x3] %vm178_vm0, %v167_v49  ;;  %v6401_v49 = vld [vmem:[%s11719_s0 + $0x180] sm:$0x3] }
  0xa5   :  { %584 = vst.msk [vmem:[#allocation2 + $0x98] sm:$0x3] %vm564_vm1, %v411_v51  ;;  %v431_v54 = vpop.permute.xlu2 %430 }
  0xa6   :  { %583 = vst.msk [vmem:[#allocation2 + $0x90] sm:$0x3] %vm564_vm1, %v409_v52  ;;  %v166_v52 = vld [vmem:[%s11719_s0 + $0x1c0] sm:$0x3] }
  0xa7   :  { %594 = vst.msk [vmem:[#allocation2 + $0xe8] sm:$0x3] %vm564_vm1, %v431_v54  ;;  %v165_v54 = vld [vmem:[%s11719_s0 + $0x1bc] sm:$0x3] }
  0xa8   :  { %231 = vst.msk [vmem:[#allocation2 + $0x1a0] sm:$0x3] %vm178_vm0, %v166_v52 }
  0xa9   :  { %230 = vst.msk [vmem:[#allocation2 + $0x198] sm:$0x3] %vm178_vm0, %v165_v54 }
  0xaa   :  { %758 = vrot.lane.b32.xlu1 %v6356_v56, %s7037_s16  ;;  %498 = vrot.lane.b32.xlu0 %v6355_v57, %s7036_s17  ;;  %v6376_v56 = vld [vmem:[%s11719_s0 + $0xa4] sm:$0x3]  ;;  %v6378_v57 = vld [vmem:[%s11719_s0 + $0xac] sm:$0x3]  ;;  %s7051_s17 = smov 40  }
  0xab   :  { %760 = vrot.lane.b32.xlu2 %v6357_v58, %s7037_s16  ;;  %v170_v58 = vld [vmem:[%s11719_s0 + $0x1f8] sm:$0x3] }
  0xac   :  { %v417_v60 = vpop.permute.xlu1 %416  ;;  %v415_v61 = vpop.permute.xlu0 %414  ;;  %235 = vst.msk [vmem:[#allocation2 + $0x1c0] sm:$0x3] %vm178_vm0, %v170_v58 }
  0xad   :  { %587 = vst.msk [vmem:[#allocation2 + $0xb0] sm:$0x3] %vm564_vm1, %v417_v60  ;;  %v437_v63 = vpop.permute.xlu2 %436 }
  0xae   :  { %586 = vst.msk [vmem:[#allocation2 + $0xa8] sm:$0x3] %vm564_vm1, %v415_v61  ;;  %v169_v61 = vld [vmem:[%s11719_s0 + $0x1cc] sm:$0x3] }
  0xaf   :  { %597 = vst.msk [vmem:[#allocation2 + $0x100] sm:$0x3] %vm564_vm1, %v437_v63  ;;  %v168_v63 = vld [vmem:[%s11719_s0 + $0x1c8] sm:$0x3] }
  0xb0   :  { %234 = vst.msk [vmem:[#allocation2 + $0x1b8] sm:$0x3] %vm178_vm0, %v169_v61  ;;  %v6407_v61 = vld [vmem:[%s11719_s0 + $0x1c0] sm:$0x3] }
  0xb1   :  { %233 = vst.msk [vmem:[#allocation2 + $0x1b0] sm:$0x3] %vm178_vm0, %v168_v63  ;;  %v6408_v63 = vld [vmem:[%s11719_s0 + $0x1c4] sm:$0x3] }
  0xb2   :  { %764 = vrot.lane.b32.xlu1 %v6359_v1, %s7037_s16  ;;  %762 = vrot.lane.b32.xlu0 %v6358_v2, %s7037_s16  ;;  %v6379_v1 = vld [vmem:[%s11719_s0 + $0xb0] sm:$0x3]  ;;  %v6381_v2 = vld [vmem:[%s11719_s0 + $0xe0] sm:$0x3] }
  0xb3   :  { %766 = vrot.lane.b32.xlu2 %v6360_v3, %s7037_s16  ;;  %v173_v3 = vld [vmem:[%s11719_s0 + $0x204] sm:$0x3] }
  0xb4   :  { %v423_v5 = vpop.permute.xlu1 %422  ;;  %v421_v6 = vpop.permute.xlu0 %420  ;;  %238 = vst.msk [vmem:[#allocation2 + $0x1d8] sm:$0x3] %vm178_vm0, %v173_v3  ;;  %v6410_v3 = vld [vmem:[%s11719_s0 + $0x1cc] sm:$0x3] }
  0xb5   :  { %590 = vst.msk [vmem:[#allocation2 + $0xc8] sm:$0x3] %vm564_vm1, %v423_v5  ;;  %v443_v8 = vpop.permute.xlu2 %442 }
  0xb6   :  { %589 = vst.msk [vmem:[#allocation2 + $0xc0] sm:$0x3] %vm564_vm1, %v421_v6  ;;  %v172_v6 = vld [vmem:[%s11719_s0 + $0x200] sm:$0x3] }
  0xb7   :  { %600 = vst.msk [vmem:[#allocation2 + $0x118] sm:$0x3] %vm564_vm1, %v443_v8  ;;  %v171_v8 = vld [vmem:[%s11719_s0 + $0x1fc] sm:$0x3] }
  0xb8   :  { %237 = vst.msk [vmem:[#allocation2 + $0x1d0] sm:$0x3] %vm178_vm0, %v172_v6 }
  0xb9   :  { %236 = vst.msk [vmem:[#allocation2 + $0x1c8] sm:$0x3] %vm178_vm0, %v171_v8 }
  0xba   :  { %770 = vrot.lane.b32.xlu1 %v6362_v10, %s7037_s16  ;;  %768 = vrot.lane.b32.xlu0 %v6361_v11, %s7037_s16  ;;  %v6382_v10 = vld [vmem:[%s11719_s0 + $0xe4] sm:$0x3]  ;;  %v6384_v11 = vld [vmem:[%s11719_s0 + $0xec] sm:$0x3] }
  0xbb   :  { %772 = vrot.lane.b32.xlu2 %v6363_v12, %s7037_s16  ;;  %v176_v12 = vld [vmem:[%s11719_s0 + $0x210] sm:$0x3] }
  0xbc   :  { %v429_v14 = vpop.permute.xlu1 %428  ;;  %v427_v15 = vpop.permute.xlu0 %426  ;;  %241 = vst.msk [vmem:[#allocation2 + $0x1f0] sm:$0x3] %vm178_vm0, %v176_v12 }
  0xbd   :  { %593 = vst.msk [vmem:[#allocation2 + $0xe0] sm:$0x3] %vm564_vm1, %v429_v14  ;;  %v449_v17 = vpop.permute.xlu2 %448 }
  0xbe   :  { %592 = vst.msk [vmem:[#allocation2 + $0xd8] sm:$0x3] %vm564_vm1, %v427_v15  ;;  %v175_v15 = vld [vmem:[%s11719_s0 + $0x20c] sm:$0x3] }
  0xbf   :  { %603 = vst.msk [vmem:[#allocation2 + $0x130] sm:$0x3] %vm564_vm1, %v449_v17  ;;  %v174_v17 = vld [vmem:[%s11719_s0 + $0x208] sm:$0x3] }
  0xc0   :  { %240 = vst.msk [vmem:[#allocation2 + $0x1e8] sm:$0x3] %vm178_vm0, %v175_v15  ;;  %v6416_v15 = vld [vmem:[%s11719_s0 + $0x20c] sm:$0x3] }
  0xc1   :  { %239 = vst.msk [vmem:[#allocation2 + $0x1e0] sm:$0x3] %vm178_vm0, %v174_v17  ;;  %v6417_v17 = vld [vmem:[%s11719_s0 + $0x210] sm:$0x3] }
  0xc2   :  { %776 = vrot.lane.b32.xlu1 %v6365_v19, %s7037_s16  ;;  %774 = vrot.lane.b32.xlu0 %v6364_v20, %s7037_s16  ;;  %v6385_v19 = vld [vmem:[%s11719_s0 + $0xf0] sm:$0x3]  ;;  %v6387_v20 = vld [vmem:[%s11719_s0 + $0xf8] sm:$0x3] }
  0xc3   :  { %778 = vrot.lane.b32.xlu2 %v6366_v21, %s7037_s16 }
  0xc4   :  { %v435_v23 = vpop.permute.xlu1 %434  ;;  %v433_v24 = vpop.permute.xlu0 %432 }
  0xc5   :  { %596 = vst.msk [vmem:[#allocation2 + $0xf8] sm:$0x3] %vm564_vm1, %v435_v23  ;;  %v455_v26 = vpop.permute.xlu2 %454  ;;  %v177_v23 = vld [vmem:[%s11719_s0 + $0x214] sm:$0x3] }
  0xc6   :  { %595 = vst.msk [vmem:[#allocation2 + $0xf0] sm:$0x3] %vm564_vm1, %v433_v24 }
  0xc7   :  { %606 = vst.msk [vmem:[#allocation2 + $0x148] sm:$0x3] %vm564_vm1, %v455_v26  ;;  %v6388_v26 = vld [vmem:[%s11719_s0 + $0x124] sm:$0x3] }
  0xc8   :  { %242 = vst.msk [vmem:[#allocation2 + $0x1f8] sm:$0x3] %vm178_vm0, %v177_v23  ;;  %v6420_v23 = vld [vmem:[%s11719_s0 + $0x24] sm:$0x3] }
  0xca   :  { %782 = vrot.lane.b32.xlu1 %v6368_v28, %s7037_s16  ;;  %780 = vrot.lane.b32.xlu0 %v6367_v29, %s7037_s16 }
  0xcb   :  { %784 = vrot.lane.b32.xlu2 %v6369_v30, %s7037_s16 }
  0xcc   :  { %v441_v32 = vpop.permute.xlu1 %440  ;;  %v439_v33 = vpop.permute.xlu0 %438 }
  0xcd   :  { %599 = vst.msk [vmem:[#allocation2 + $0x110] sm:$0x3] %vm564_vm1, %v441_v32  ;;  %v461_v35 = vpop.permute.xlu2 %460  ;;  %v6391_v32 = vld [vmem:[%s11719_s0 + $0x130] sm:$0x3] }
  0xce   :  { %598 = vst.msk [vmem:[#allocation2 + $0x108] sm:$0x3] %vm564_vm1, %v439_v33  ;;  %v6393_v33 = vld [vmem:[%s11719_s0 + $0x138] sm:$0x3] }
  0xcf   :  { %609 = vst.msk [vmem:[#allocation2 + $0x160] sm:$0x3] %vm564_vm1, %v461_v35 }
  0xd2   :  { %788 = vrot.lane.b32.xlu1 %v6371_v37, %s7037_s16  ;;  %786 = vrot.lane.b32.xlu0 %v6370_v38, %s7037_s16  ;;  %v6395_v37 = vld [vmem:[%s11719_s0 + $0x140] sm:$0x3]  ;;  %v6394_v38 = vld [vmem:[%s11719_s0 + $0x13c] sm:$0x3] }
  0xd3   :  { %790 = vrot.lane.b32.xlu2 %v6372_v39, %s7037_s16  ;;  %v6396_v39 = vld [vmem:[%s11719_s0 + $0x16c] sm:$0x3] }
  0xd4   :  { %v447_v41 = vpop.permute.xlu1 %446  ;;  %v445_v42 = vpop.permute.xlu0 %444 }
  0xd5   :  { %602 = vst.msk [vmem:[#allocation2 + $0x128] sm:$0x3] %vm564_vm1, %v447_v41  ;;  %v467_v44 = vpop.permute.xlu2 %466 }
  0xd6   :  { %601 = vst.msk [vmem:[#allocation2 + $0x120] sm:$0x3] %vm564_vm1, %v445_v42 }
  0xd7   :  { %612 = vst.msk [vmem:[#allocation2 + $0x178] sm:$0x3] %vm564_vm1, %v467_v44  ;;  %v6397_v44 = vld [vmem:[%s11719_s0 + $0x170] sm:$0x3] }
  0xda   :  { %794 = vrot.lane.b32.xlu1 %v6374_v46, %s7037_s16  ;;  %792 = vrot.lane.b32.xlu0 %v6373_v47, %s7037_s16 }
  0xdb   :  { %796 = vrot.lane.b32.xlu2 %v6375_v48, %s7037_s16 }
  0xdc   :  { %v453_v50 = vpop.permute.xlu1 %452  ;;  %v451_v51 = vpop.permute.xlu0 %450 }
  0xdd   :  { %605 = vst.msk [vmem:[#allocation2 + $0x140] sm:$0x3] %vm564_vm1, %v453_v50  ;;  %v473_v53 = vpop.permute.xlu2 %472  ;;  %v6400_v50 = vld [vmem:[%s11719_s0 + $0x17c] sm:$0x3] }
  0xde   :  { %604 = vst.msk [vmem:[#allocation2 + $0x138] sm:$0x3] %vm564_vm1, %v451_v51  ;;  %v6402_v51 = vld [vmem:[%s11719_s0 + $0x184] sm:$0x3] }
  0xdf   :  { %615 = vst.msk [vmem:[#allocation2 + $0x190] sm:$0x3] %vm564_vm1, %v473_v53 }
  0xe2   :  { %800 = vrot.lane.b32.xlu1 %v6377_v55, %s7037_s16  ;;  %798 = vrot.lane.b32.xlu0 %v6376_v56, %s7037_s16  ;;  %v6404_v55 = vld [vmem:[%s11719_s0 + $0x1b4] sm:$0x3]  ;;  %v6403_v56 = vld [vmem:[%s11719_s0 + $0x188] sm:$0x3] }
  0xe3   :  { %802 = vrot.lane.b32.xlu2 %v6378_v57, %s7037_s16  ;;  %v6405_v57 = vld [vmem:[%s11719_s0 + $0x1b8] sm:$0x3] }
  0xe4   :  { %v459_v59 = vpop.permute.xlu1 %458  ;;  %v457_v60 = vpop.permute.xlu0 %456 }
  0xe5   :  { %608 = vst.msk [vmem:[#allocation2 + $0x158] sm:$0x3] %vm564_vm1, %v459_v59  ;;  %v479_v62 = vpop.permute.xlu2 %478 }
  0xe6   :  { %607 = vst.msk [vmem:[#allocation2 + $0x150] sm:$0x3] %vm564_vm1, %v457_v60 }
  0xe7   :  { %618 = vst.msk [vmem:[#allocation2 + $0x1a8] sm:$0x3] %vm564_vm1, %v479_v62  ;;  %v6406_v62 = vld [vmem:[%s11719_s0 + $0x1bc] sm:$0x3] }
  0xea   :  { %806 = vrot.lane.b32.xlu1 %v6380_v0, %s7037_s16  ;;  %804 = vrot.lane.b32.xlu0 %v6379_v1, %s7037_s16 }
  0xeb   :  { %808 = vrot.lane.b32.xlu2 %v6381_v2, %s7037_s16 }
  0xec   :  { %v465_v4 = vpop.permute.xlu1 %464  ;;  %v463_v5 = vpop.permute.xlu0 %462 }
  0xed   :  { %611 = vst.msk [vmem:[#allocation2 + $0x170] sm:$0x3] %vm564_vm1, %v465_v4  ;;  %v485_v7 = vpop.permute.xlu2 %484  ;;  %v6409_v4 = vld [vmem:[%s11719_s0 + $0x1c8] sm:$0x3] }
  0xee   :  { %610 = vst.msk [vmem:[#allocation2 + $0x168] sm:$0x3] %vm564_vm1, %v463_v5  ;;  %v6411_v5 = vld [vmem:[%s11719_s0 + $0x1d0] sm:$0x3] }
  0xef   :  { %621 = vst.msk [vmem:[#allocation2 + $0x1c0] sm:$0x3] %vm564_vm1, %v485_v7 }
  0xf2   :  { %812 = vrot.lane.b32.xlu1 %v6383_v9, %s7037_s16  ;;  %810 = vrot.lane.b32.xlu0 %v6382_v10, %s7037_s16  ;;  %v6413_v9 = vld [vmem:[%s11719_s0 + $0x200] sm:$0x3]  ;;  %v6412_v10 = vld [vmem:[%s11719_s0 + $0x1fc] sm:$0x3] }
  0xf3   :  { %814 = vrot.lane.b32.xlu2 %v6384_v11, %s7037_s16  ;;  %v6414_v11 = vld [vmem:[%s11719_s0 + $0x204] sm:$0x3] }
  0xf4   :  { %v471_v13 = vpop.permute.xlu1 %470  ;;  %v469_v14 = vpop.permute.xlu0 %468 }
  0xf5   :  { %614 = vst.msk [vmem:[#allocation2 + $0x188] sm:$0x3] %vm564_vm1, %v471_v13  ;;  %v491_v16 = vpop.permute.xlu2 %490 }
  0xf6   :  { %613 = vst.msk [vmem:[#allocation2 + $0x180] sm:$0x3] %vm564_vm1, %v469_v14 }
  0xf7   :  { %624 = vst.msk [vmem:[#allocation2 + $0x1d8] sm:$0x3] %vm564_vm1, %v491_v16  ;;  %v6415_v16 = vld [vmem:[%s11719_s0 + $0x208] sm:$0x3] }
  0xfa   :  { %818 = vrot.lane.b32.xlu1 %v6386_v18, %s7037_s16  ;;  %816 = vrot.lane.b32.xlu0 %v6385_v19, %s7037_s16 }
  0xfb   :  { %820 = vrot.lane.b32.xlu2 %v6387_v20, %s7037_s16 }
  0xfc   :  { %v477_v21 = vpop.permute.xlu1 %476  ;;  %v475_v22 = vpop.permute.xlu0 %474 }
  0xfd   :  { %617 = vst.msk [vmem:[#allocation2 + $0x1a0] sm:$0x3] %vm564_vm1, %v477_v21  ;;  %v497_v24 = vpop.permute.xlu2 %496  ;;  %v6419_v21 = vld [vmem:[%s11719_s0 + $0x218] sm:$0x3] }
  0xfe   :  { %616 = vst.msk [vmem:[#allocation2 + $0x198] sm:$0x3] %vm564_vm1, %v475_v22  ;;  %v6418_v22 = vld [vmem:[%s11719_s0 + $0x214] sm:$0x3] }
  0xff   :  { %627 = vst.msk [vmem:[#allocation2 + $0x1f0] sm:$0x3] %vm564_vm1, %v497_v24 }
 0x102   :  { %824 = vrot.lane.b32.xlu1 %v6389_v25, %s7037_s16  ;;  %822 = vrot.lane.b32.xlu0 %v6388_v26, %s7037_s16 }
 0x103   :  { %826 = vrot.lane.b32.xlu2 %v6390_v27, %s7037_s16  ;;  %v6422_v27 = vld [vmem:[%s11719_s0 + $0x2c] sm:$0x3] }
 0x104   :  { %v483_v28 = vpop.permute.xlu1 %482  ;;  %v481_v29 = vpop.permute.xlu0 %480 }
 0x105   :  { %620 = vst.msk [vmem:[#allocation2 + $0x1b8] sm:$0x3] %vm564_vm1, %v483_v28  ;;  %v761_v30 = vpop.permute.xlu2 %760  ;;  %v6421_v28 = vld [vmem:[%s11719_s0 + $0x28] sm:$0x3] }
 0x106   :  { %619 = vst.msk [vmem:[#allocation2 + $0x1b0] sm:$0x3] %vm564_vm1, %v481_v29  ;;  %v6423_v29 = vld [vmem:[%s11719_s0 + $0x30] sm:$0x3] }
 0x107   :  { %952 = vst.msk [vmem:[#allocation2 + $0x8] sm:$0x3] %vm950_vm2, %v761_v30 }
 0x10a   :  { %830 = vrot.lane.b32.xlu1 %v6392_v31, %s7037_s16  ;;  %828 = vrot.lane.b32.xlu0 %v6391_v32, %s7037_s16 }
 0x10b   :  { %832 = vrot.lane.b32.xlu2 %v6393_v33, %s7037_s16  ;;  %v6425_v33 = vld [vmem:[%s11719_s0 + $0x38] sm:$0x3] }
 0x10c   :  { %v489_v34 = vpop.permute.xlu1 %488  ;;  %v487_v35 = vpop.permute.xlu0 %486 }
 0x10d   :  { %623 = vst.msk [vmem:[#allocation2 + $0x1d0] sm:$0x3] %vm564_vm1, %v489_v34  ;;  %v767_v36 = vpop.permute.xlu2 %766  ;;  %v6424_v34 = vld [vmem:[%s11719_s0 + $0x34] sm:$0x3] }
 0x10e   :  { %622 = vst.msk [vmem:[#allocation2 + $0x1c8] sm:$0x3] %vm564_vm1, %v487_v35  ;;  %v6426_v35 = vld [vmem:[%s11719_s0 + $0x3c] sm:$0x3] }
 0x10f   :  { %955 = vst.msk [vmem:[#allocation2 + $0x20] sm:$0x3] %vm950_vm2, %v767_v36 }
 0x112   :  { %836 = vrot.lane.b32.xlu1 %v6395_v37, %s7037_s16  ;;  %834 = vrot.lane.b32.xlu0 %v6394_v38, %s7037_s16 }
 0x113   :  { %838 = vrot.lane.b32.xlu2 %v6396_v39, %s7037_s16  ;;  %v6428_v39 = vld [vmem:[%s11719_s0 + $0x6c] sm:$0x3] }
 0x114   :  { %v495_v40 = vpop.permute.xlu1 %494  ;;  %v493_v41 = vpop.permute.xlu0 %492 }
 0x115   :  { %626 = vst.msk [vmem:[#allocation2 + $0x1e8] sm:$0x3] %vm564_vm1, %v495_v40  ;;  %v773_v42 = vpop.permute.xlu2 %772  ;;  %v6427_v40 = vld [vmem:[%s11719_s0 + $0x40] sm:$0x3] }
 0x116   :  { %625 = vst.msk [vmem:[#allocation2 + $0x1e0] sm:$0x3] %vm564_vm1, %v493_v41  ;;  %v6429_v41 = vld [vmem:[%s11719_s0 + $0x70] sm:$0x3] }
 0x117   :  { %958 = vst.msk [vmem:[#allocation2 + $0x38] sm:$0x3] %vm950_vm2, %v773_v42 }
 0x11a   :  { %842 = vrot.lane.b32.xlu1 %v6398_v43, %s7037_s16  ;;  %840 = vrot.lane.b32.xlu0 %v6397_v44, %s7037_s16 }
 0x11b   :  { %844 = vrot.lane.b32.xlu2 %v6399_v45, %s7037_s16  ;;  %v6431_v45 = vld [vmem:[%s11719_s0 + $0x78] sm:$0x3] }
 0x11c   :  { %v759_v46 = vpop.permute.xlu1 %758  ;;  %v499_v47 = vpop.permute.xlu0 %498 }
 0x11d   :  { %951 = vst.msk [vmem:[#allocation2] sm:$0x3] %vm950_vm2, %v759_v46  ;;  %v779_v48 = vpop.permute.xlu2 %778  ;;  %v6430_v46 = vld [vmem:[%s11719_s0 + $0x74] sm:$0x3] }
 0x11e   :  { %628 = vst.msk [vmem:[#allocation2 + $0x1f8] sm:$0x3] %vm564_vm1, %v499_v47  ;;  %v6432_v47 = vld [vmem:[%s11719_s0 + $0x7c] sm:$0x3] }
 0x11f   :  { %961 = vst.msk [vmem:[#allocation2 + $0x50] sm:$0x3] %vm950_vm2, %v779_v48 }
 0x122   :  { %848 = vrot.lane.b32.xlu1 %v6401_v49, %s7037_s16  ;;  %846 = vrot.lane.b32.xlu0 %v6400_v50, %s7037_s16 }
 0x123   :  { %850 = vrot.lane.b32.xlu2 %v6402_v51, %s7037_s16  ;;  %v6434_v51 = vld [vmem:[%s11719_s0 + $0x84] sm:$0x3] }
 0x124   :  { %v765_v52 = vpop.permute.xlu1 %764  ;;  %v763_v53 = vpop.permute.xlu0 %762 }
 0x125   :  { %954 = vst.msk [vmem:[#allocation2 + $0x18] sm:$0x3] %vm950_vm2, %v765_v52  ;;  %v785_v54 = vpop.permute.xlu2 %784  ;;  %v6433_v52 = vld [vmem:[%s11719_s0 + $0x80] sm:$0x3] }
 0x126   :  { %953 = vst.msk [vmem:[#allocation2 + $0x10] sm:$0x3] %vm950_vm2, %v763_v53  ;;  %v6435_v53 = vld [vmem:[%s11719_s0 + $0x88] sm:$0x3] }
 0x127   :  { %964 = vst.msk [vmem:[#allocation2 + $0x68] sm:$0x3] %vm950_vm2, %v785_v54 }
 0x12a   :  { %854 = vrot.lane.b32.xlu1 %v6404_v55, %s7037_s16  ;;  %852 = vrot.lane.b32.xlu0 %v6403_v56, %s7037_s16 }
 0x12b   :  { %856 = vrot.lane.b32.xlu2 %v6405_v57, %s7037_s16  ;;  %v6437_v57 = vld [vmem:[%s11719_s0 + $0xb8] sm:$0x3] }
 0x12c   :  { %v771_v58 = vpop.permute.xlu1 %770  ;;  %v769_v59 = vpop.permute.xlu0 %768 }
 0x12d   :  { %957 = vst.msk [vmem:[#allocation2 + $0x30] sm:$0x3] %vm950_vm2, %v771_v58  ;;  %v791_v60 = vpop.permute.xlu2 %790  ;;  %v6436_v58 = vld [vmem:[%s11719_s0 + $0xb4] sm:$0x3] }
 0x12e   :  { %956 = vst.msk [vmem:[#allocation2 + $0x28] sm:$0x3] %vm950_vm2, %v769_v59  ;;  %v6484_v59 = vld [vmem:[%s11719_s0 + $0x26] sm:$0x3] }
 0x12f   :  { %967 = vst.msk [vmem:[#allocation2 + $0x80] sm:$0x3] %vm950_vm2, %v791_v60 }
 0x132   :  { %860 = vrot.lane.b32.xlu1 %v6407_v61, %s7037_s16  ;;  %858 = vrot.lane.b32.xlu0 %v6406_v62, %s7037_s16 }
 0x133   :  { %862 = vrot.lane.b32.xlu2 %v6408_v63, %s7037_s16  ;;  %v6548_v63 = vld [vmem:[%s11719_s0 + $0x28] sm:$0x3] }
 0x134   :  { %v777_v0 = vpop.permute.xlu1 %776  ;;  %v775_v1 = vpop.permute.xlu0 %774 }
 0x135   :  { %960 = vst.msk [vmem:[#allocation2 + $0x48] sm:$0x3] %vm950_vm2, %v777_v0  ;;  %v797_v2 = vpop.permute.xlu2 %796  ;;  %v6485_v0 = vld [vmem:[%s11719_s0 + $0x2a] sm:$0x3] }
 0x136   :  { %959 = vst.msk [vmem:[#allocation2 + $0x40] sm:$0x3] %vm950_vm2, %v775_v1  ;;  %v6549_v1 = vld [vmem:[%s11719_s0 + $0x2c] sm:$0x3] }
 0x137   :  { %970 = vst.msk [vmem:[#allocation2 + $0x98] sm:$0x3] %vm950_vm2, %v797_v2 }
 0x13a   :  { %866 = vrot.lane.b32.xlu1 %v6410_v3, %s7037_s16  ;;  %864 = vrot.lane.b32.xlu0 %v6409_v4, %s7037_s16 }
 0x13b   :  { %868 = vrot.lane.b32.xlu2 %v6411_v5, %s7037_s16  ;;  %v6613_v5 = vld [vmem:[%s11719_s0 + $0x4c] sm:$0x3] }
 0x13c   :  { %v783_v6 = vpop.permute.xlu1 %782  ;;  %v781_v7 = vpop.permute.xlu0 %780 }
 0x13d   :  { %963 = vst.msk [vmem:[#allocation2 + $0x60] sm:$0x3] %vm950_vm2, %v783_v6  ;;  %v803_v8 = vpop.permute.xlu2 %802  ;;  %v6612_v6 = vld [vmem:[%s11719_s0 + $0x48] sm:$0x3] }
 0x13e   :  { %962 = vst.msk [vmem:[#allocation2 + $0x58] sm:$0x3] %vm950_vm2, %v781_v7  ;;  %v6676_v7 = vld [vmem:[%s11719_s0 + $0x4a] sm:$0x3] }
 0x13f   :  { %973 = vst.msk [vmem:[#allocation2 + $0xb0] sm:$0x3] %vm950_vm2, %v803_v8 }
 0x142   :  { %872 = vrot.lane.b32.xlu1 %v6413_v9, %s7037_s16  ;;  %870 = vrot.lane.b32.xlu0 %v6412_v10, %s7037_s16 }
 0x143   :  { %874 = vrot.lane.b32.xlu2 %v6414_v11, %s7037_s16  ;;  %v6740_v11 = vld [vmem:[%s11719_s0 + $0x4c] sm:$0x3] }
 0x144   :  { %v789_v12 = vpop.permute.xlu1 %788  ;;  %v787_v13 = vpop.permute.xlu0 %786 }
 0x145   :  { %966 = vst.msk [vmem:[#allocation2 + $0x78] sm:$0x3] %vm950_vm2, %v789_v12  ;;  %v809_v14 = vpop.permute.xlu2 %808  ;;  %v6677_v12 = vld [vmem:[%s11719_s0 + $0x4e] sm:$0x3] }
 0x146   :  { %965 = vst.msk [vmem:[#allocation2 + $0x70] sm:$0x3] %vm950_vm2, %v787_v13  ;;  %v6741_v13 = vld [vmem:[%s11719_s0 + $0x50] sm:$0x3] }
 0x147   :  { %976 = vst.msk [vmem:[#allocation2 + $0xc8] sm:$0x3] %vm950_vm2, %v809_v14 }
 0x14a   :  { %878 = vrot.lane.b32.xlu1 %v6416_v15, %s7037_s16  ;;  %876 = vrot.lane.b32.xlu0 %v6415_v16, %s7037_s16 }
 0x14b   :  { %880 = vrot.lane.b32.xlu2 %v6417_v17, %s7037_s16  ;;  %v6487_v17 = vld [vmem:[%s11719_s0 + $0x32] sm:$0x3] }
 0x14c   :  { %v795_v18 = vpop.permute.xlu1 %794  ;;  %v793_v19 = vpop.permute.xlu0 %792 }
 0x14d   :  { %969 = vst.msk [vmem:[#allocation2 + $0x90] sm:$0x3] %vm950_vm2, %v795_v18  ;;  %v815_v20 = vpop.permute.xlu2 %814  ;;  %v6486_v18 = vld [vmem:[%s11719_s0 + $0x2e] sm:$0x3] }
 0x14e   :  { %968 = vst.msk [vmem:[#allocation2 + $0x88] sm:$0x3] %vm950_vm2, %v793_v19  ;;  %v6550_v19 = vld [vmem:[%s11719_s0 + $0x30] sm:$0x3] }
 0x14f   :  { %979 = vst.msk [vmem:[#allocation2 + $0xe0] sm:$0x3] %vm950_vm2, %v815_v20 }
 0x152   :  { %884 = vrot.lane.b32.xlu1 %v6419_v21, %s7037_s16  ;;  %882 = vrot.lane.b32.xlu0 %v6418_v22, %s7037_s16 }
 0x153   :  { %1144 = vrot.lane.b32.xlu2 %v6420_v23, %s7038_s25  ;;  %v6614_v23 = vld [vmem:[%s11719_s0 + $0x50] sm:$0x3] }
 0x154   :  { %v801_v24 = vpop.permute.xlu1 %800  ;;  %v799_v25 = vpop.permute.xlu0 %798 }
 0x155   :  { %972 = vst.msk [vmem:[#allocation2 + $0xa8] sm:$0x3] %vm950_vm2, %v801_v24  ;;  %v821_v26 = vpop.permute.xlu2 %820  ;;  %v6551_v24 = vld [vmem:[%s11719_s0 + $0x34] sm:$0x3] }
 0x156   :  { %971 = vst.msk [vmem:[#allocation2 + $0xa0] sm:$0x3] %vm950_vm2, %v799_v25  ;;  %v6615_v25 = vld [vmem:[%s11719_s0 + $0x54] sm:$0x3] }
 0x157   :  { %982 = vst.msk [vmem:[#allocation2 + $0xf8] sm:$0x3] %vm950_vm2, %v821_v26 }
 0x15a   :  { %1148 = vrot.lane.b32.xlu1 %v6422_v27, %s7038_s25  ;;  %1146 = vrot.lane.b32.xlu0 %v6421_v28, %s7038_s25 }
 0x15b   :  { %1150 = vrot.lane.b32.xlu2 %v6423_v29, %s7038_s25  ;;  %v6679_v29 = vld [vmem:[%s11719_s0 + $0x56] sm:$0x3] }
 0x15c   :  { %v807_v30 = vpop.permute.xlu1 %806  ;;  %v805_v31 = vpop.permute.xlu0 %804 }
 0x15d   :  { %975 = vst.msk [vmem:[#allocation2 + $0xc0] sm:$0x3] %vm950_vm2, %v807_v30  ;;  %v827_v32 = vpop.permute.xlu2 %826  ;;  %v6678_v30 = vld [vmem:[%s11719_s0 + $0x52] sm:$0x3] }
 0x15e   :  { %974 = vst.msk [vmem:[#allocation2 + $0xb8] sm:$0x3] %vm950_vm2, %v805_v31  ;;  %v6742_v31 = vld [vmem:[%s11719_s0 + $0x54] sm:$0x3] }
 0x15f   :  { %985 = vst.msk [vmem:[#allocation2 + $0x110] sm:$0x3] %vm950_vm2, %v827_v32 }
 0x162   :  { %1154 = vrot.lane.b32.xlu1 %v6425_v33, %s7038_s25  ;;  %1152 = vrot.lane.b32.xlu0 %v6424_v34, %s7038_s25 }
 0x163   :  { %1156 = vrot.lane.b32.xlu2 %v6426_v35, %s7038_s25  ;;  %v6488_v35 = vld [vmem:[%s11719_s0 + $0x36] sm:$0x3] }
 0x164   :  { %v813_v36 = vpop.permute.xlu1 %812  ;;  %v811_v37 = vpop.permute.xlu0 %810 }
 0x165   :  { %978 = vst.msk [vmem:[#allocation2 + $0xd8] sm:$0x3] %vm950_vm2, %v813_v36  ;;  %v833_v38 = vpop.permute.xlu2 %832  ;;  %v6743_v36 = vld [vmem:[%s11719_s0 + $0x58] sm:$0x3] }
 0x166   :  { %977 = vst.msk [vmem:[#allocation2 + $0xd0] sm:$0x3] %vm950_vm2, %v811_v37  ;;  %v6489_v37 = vld [vmem:[%s11719_s0 + $0x3a] sm:$0x3] }
 0x167   :  { %988 = vst.msk [vmem:[#allocation2 + $0x128] sm:$0x3] %vm950_vm2, %v833_v38 }
 0x16a   :  { %1160 = vrot.lane.b32.xlu1 %v6428_v39, %s7038_s25  ;;  %1158 = vrot.lane.b32.xlu0 %v6427_v40, %s7038_s25 }
 0x16b   :  { %1162 = vrot.lane.b32.xlu2 %v6429_v41, %s7038_s25  ;;  %v6553_v41 = vld [vmem:[%s11719_s0 + $0x3c] sm:$0x3] }
 0x16c   :  { %v819_v42 = vpop.permute.xlu1 %818  ;;  %v817_v43 = vpop.permute.xlu0 %816 }
 0x16d   :  { %981 = vst.msk [vmem:[#allocation2 + $0xf0] sm:$0x3] %vm950_vm2, %v819_v42  ;;  %v839_v44 = vpop.permute.xlu2 %838  ;;  %v6552_v42 = vld [vmem:[%s11719_s0 + $0x38] sm:$0x3] }
 0x16e   :  { %980 = vst.msk [vmem:[#allocation2 + $0xe8] sm:$0x3] %vm950_vm2, %v817_v43  ;;  %v6616_v43 = vld [vmem:[%s11719_s0 + $0x58] sm:$0x3] }
 0x16f   :  { %991 = vst.msk [vmem:[#allocation2 + $0x140] sm:$0x3] %vm950_vm2, %v839_v44 }
 0x172   :  { %1166 = vrot.lane.b32.xlu1 %v6431_v45, %s7038_s25  ;;  %1164 = vrot.lane.b32.xlu0 %v6430_v46, %s7038_s25 }
 0x173   :  { %1168 = vrot.lane.b32.xlu2 %v6432_v47, %s7038_s25  ;;  %v6680_v47 = vld [vmem:[%s11719_s0 + $0x5a] sm:$0x3] }
 0x174   :  { %v825_v48 = vpop.permute.xlu1 %824  ;;  %v823_v49 = vpop.permute.xlu0 %822 }
 0x175   :  { %984 = vst.msk [vmem:[#allocation2 + $0x108] sm:$0x3] %vm950_vm2, %v825_v48  ;;  %v845_v50 = vpop.permute.xlu2 %844  ;;  %v6617_v48 = vld [vmem:[%s11719_s0 + $0x5c] sm:$0x3] }
 0x176   :  { %983 = vst.msk [vmem:[#allocation2 + $0x100] sm:$0x3] %vm950_vm2, %v823_v49  ;;  %v6681_v49 = vld [vmem:[%s11719_s0 + $0x5e] sm:$0x3] }
 0x177   :  { %994 = vst.msk [vmem:[#allocation2 + $0x158] sm:$0x3] %vm950_vm2, %v845_v50 }
 0x17a   :  { %1172 = vrot.lane.b32.xlu1 %v6434_v51, %s7038_s25  ;;  %1170 = vrot.lane.b32.xlu0 %v6433_v52, %s7038_s25 }
 0x17b   :  { %1174 = vrot.lane.b32.xlu2 %v6435_v53, %s7038_s25  ;;  %v6745_v53 = vld [vmem:[%s11719_s0 + $0x60] sm:$0x3] }
 0x17c   :  { %v831_v54 = vpop.permute.xlu1 %830  ;;  %v829_v55 = vpop.permute.xlu0 %828 }
 0x17d   :  { %987 = vst.msk [vmem:[#allocation2 + $0x120] sm:$0x3] %vm950_vm2, %v831_v54  ;;  %v851_v56 = vpop.permute.xlu2 %850  ;;  %v6744_v54 = vld [vmem:[%s11719_s0 + $0x5c] sm:$0x3] }
 0x17e   :  { %986 = vst.msk [vmem:[#allocation2 + $0x118] sm:$0x3] %vm950_vm2, %v829_v55  ;;  %v6490_v55 = vld [vmem:[%s11719_s0 + $0x3e] sm:$0x3] }
 0x17f   :  { %997 = vst.msk [vmem:[#allocation2 + $0x170] sm:$0x3] %vm950_vm2, %v851_v56 }
 0x182   :  { %1178 = vrot.lane.b32.xlu1 %v6437_v57, %s7038_s25  ;;  %1176 = vrot.lane.b32.xlu0 %v6436_v58, %s7038_s25 }
 0x183   :  { %1530 = vrot.lane.b32.xlu2 %v6484_v59, %s7039_s15  ;;  %v6554_v59 = vld [vmem:[%s11719_s0 + $0x40] sm:$0x3] }
 0x184   :  { %v837_v60 = vpop.permute.xlu1 %836  ;;  %v835_v61 = vpop.permute.xlu0 %834 }
 0x185   :  { %990 = vst.msk [vmem:[#allocation2 + $0x138] sm:$0x3] %vm950_vm2, %v837_v60  ;;  %v857_v62 = vpop.permute.xlu2 %856  ;;  %v6491_v60 = vld [vmem:[%s11719_s0 + $0x42] sm:$0x3] }
 0x186   :  { %989 = vst.msk [vmem:[#allocation2 + $0x130] sm:$0x3] %vm950_vm2, %v835_v61  ;;  %v6555_v61 = vld [vmem:[%s11719_s0 + $0x44] sm:$0x3] }
 0x187   :  { %1000 = vst.msk [vmem:[#allocation2 + $0x188] sm:$0x3] %vm950_vm2, %v857_v62 }
 0x18a   :  { %1916 = vrot.lane.b32.xlu1 %v6548_v63, %s7040_s23  ;;  %1532 = vrot.lane.b32.xlu0 %v6485_v0, %s7039_s15 }
 0x18b   :  { %1918 = vrot.lane.b32.xlu2 %v6549_v1, %s7040_s23  ;;  %v6619_v1 = vld [vmem:[%s11719_s0 + $0x64] sm:$0x3] }
 0x18c   :  { %v843_v2 = vpop.permute.xlu1 %842  ;;  %v841_v3 = vpop.permute.xlu0 %840 }
 0x18d   :  { %993 = vst.msk [vmem:[#allocation2 + $0x150] sm:$0x3] %vm950_vm2, %v843_v2  ;;  %v863_v4 = vpop.permute.xlu2 %862  ;;  %v6618_v2 = vld [vmem:[%s11719_s0 + $0x60] sm:$0x3] }
 0x18e   :  { %992 = vst.msk [vmem:[#allocation2 + $0x148] sm:$0x3] %vm950_vm2, %v841_v3  ;;  %v6682_v3 = vld [vmem:[%s11719_s0 + $0x62] sm:$0x3] }
 0x18f   :  { %1003 = vst.msk [vmem:[#allocation2 + $0x1a0] sm:$0x3] %vm950_vm2, %v863_v4 }
 0x192   :  { %2304 = vrot.lane.b32.xlu1 %v6613_v5, %s7041_s30  ;;  %2302 = vrot.lane.b32.xlu0 %v6612_v6, %s7041_s30  ;;  %v6746_v6 = vld [vmem:[%s11719_s0 + $0x64] sm:$0x3] }
 0x193   :  { %2688 = vrot.lane.b32.xlu2 %v6676_v7, %s7042_s18  ;;  %v6683_v7 = vld [vmem:[%s11719_s0 + $0x66] sm:$0x3] }
 0x194   :  { %v849_v8 = vpop.permute.xlu1 %848  ;;  %v847_v9 = vpop.permute.xlu0 %846 }
 0x195   :  { %996 = vst.msk [vmem:[#allocation2 + $0x168] sm:$0x3] %vm950_vm2, %v849_v8  ;;  %v869_v10 = vpop.permute.xlu2 %868  ;;  %v6747_v8 = vld [vmem:[%s11719_s0 + $0x68] sm:$0x3] }
 0x196   :  { %995 = vst.msk [vmem:[#allocation2 + $0x160] sm:$0x3] %vm950_vm2, %v847_v9 }
 0x197   :  { %1006 = vst.msk [vmem:[#allocation2 + $0x1b8] sm:$0x3] %vm950_vm2, %v869_v10 }
 0x19a   :  { %3074 = vrot.lane.b32.xlu1 %v6740_v11, %s7043_s26  ;;  %2690 = vrot.lane.b32.xlu0 %v6677_v12, %s7042_s18  ;;  %v6493_v12 = vld [vmem:[%s11719_s0 + $0x72] sm:$0x3] }
 0x19b   :  { %3076 = vrot.lane.b32.xlu2 %v6741_v13, %s7043_s26  ;;  %v6492_v13 = vld [vmem:[%s11719_s0 + $0x6e] sm:$0x3] }
 0x19c   :  { %v855_v14 = vpop.permute.xlu1 %854  ;;  %v853_v15 = vpop.permute.xlu0 %852 }
 0x19d   :  { %999 = vst.msk [vmem:[#allocation2 + $0x180] sm:$0x3] %vm950_vm2, %v855_v14  ;;  %v875_v16 = vpop.permute.xlu2 %874  ;;  %v11734_v14 = vmov 0.0  }
 0x19e   :  { %998 = vst.msk [vmem:[#allocation2 + $0x178] sm:$0x3] %vm950_vm2, %v853_v15  ;;  %v6556_v15 = vld [vmem:[%s11719_s0 + $0x70] sm:$0x3] }
 0x19f   :  { %1009 = vst.msk [vmem:[#allocation2 + $0x1d0] sm:$0x3] %vm950_vm2, %v875_v16  ;;  %v6806_v16 = vld [vmem:[%s11720_s1] sm:$0xf] }
 0x1a0   :  { %50 = vst.msk [vmem:[#allocation2 + $0x2] sm:$0x3f] %vm49_vm5, %v11734_v14 }
 0x1a1   :  { %51 = vst.msk [vmem:[#allocation2 + $0xa] sm:$0x3f] %vm49_vm5, %v11734_v14 }
 0x1a2   :  { %1536 = vrot.lane.b32.xlu1 %v6487_v17, %s7039_s15  ;;  %1534 = vrot.lane.b32.xlu0 %v6486_v18, %s7039_s15  ;;  %v6935_v17 = vld [vmem:[%s11720_s1] sm:$0x10]  ;;  %52 = vst.msk [vmem:[#allocation2 + $0x12] sm:$0x3f] %vm49_vm5, %v11734_v14 }
 0x1a3   :  { %1920 = vrot.lane.b32.xlu2 %v6550_v19, %s7040_s23  ;;  %v6807_v18 = vor.u32 %v6935_v17, %v6806_v16  ;;  %v7045_v19 = vmov 65535   ;;  %53 = vst.msk [vmem:[#allocation2 + $0x1a] sm:$0x3f] %vm49_vm5, %v11734_v14  ;;  %v6499_v16 = vld [vmem:[%s11719_s0 + $0x8a] sm:$0x3] }
 0x1a4   :  { %v861_v20 = vpop.permute.xlu1 %860  ;;  %v859_v21 = vpop.permute.xlu0 %858  ;;  %54 = vst.msk [vmem:[#allocation2 + $0x22] sm:$0x3f] %vm49_vm5, %v11734_v14  ;;  %v6498_v17 = vld [vmem:[%s11719_s0 + $0x86] sm:$0x3] }
 0x1a5   :  { %1002 = vst.msk [vmem:[#allocation2 + $0x198] sm:$0x3] %vm950_vm2, %v861_v20  ;;  %v881_v22 = vpop.permute.xlu2 %880  ;;  %v3533_v20 = vsel %vm3531_vm6, 4294967295, %v7045_v19 }
 0x1a6   :  { %1001 = vst.msk [vmem:[#allocation2 + $0x190] sm:$0x3] %vm950_vm2, %v859_v21  ;;  %v3534_v21 = vsel %vm3532_vm7, %v3533_v20, 0  ;;  %vm4794_vm7 = vcmask 320768  }
 0x1a7   :  { %1012 = vst.msk [vmem:[#allocation2 + $0x1e8] sm:$0x3] %vm950_vm2, %v881_v22 }
 0x1a8   :  { %55 = vst.msk [vmem:[#allocation2 + $0x2a] sm:$0x3f] %vm49_vm5, %v11734_v14 }
 0x1a9   :  { %56 = vst.msk [vmem:[#allocation2 + $0x32] sm:$0x3f] %vm49_vm5, %v11734_v14 }
 0x1aa   :  { %2306 = vrot.lane.b32.xlu1 %v6614_v23, %s7041_s30  ;;  %1922 = vrot.lane.b32.xlu0 %v6551_v24, %s7040_s23  ;;  %v3536_v24 = vand.u32 %v6807_v18, %v3534_v21  ;;  %57 = vst.msk [vmem:[#allocation2 + $0x3a] sm:$0x3f] %vm49_vm5, %v11734_v14  ;;  %v6688_v21 = vld [vmem:[%s11719_s0 + $0xa2] sm:$0x3] }
 0x1ab   :  { %2308 = vrot.lane.b32.xlu2 %v6615_v25, %s7041_s30  ;;  %v6620_v25 = vld [vmem:[%s11719_s0 + $0x90] sm:$0x3]  ;;  %58 = vst.msk [vmem:[#allocation2 + $0x42] sm:$0x3f] %vm49_vm5, %v11734_v14 }
 0x1ac   :  { %v867_v26 = vpop.permute.xlu1 %866  ;;  %v865_v27 = vpop.permute.xlu0 %864  ;;  %3545 = vmatpush.bf16.msra.mxu0 %v3536_v24  ;;  %6954 = vmatpush.bf16.msra.mxu2 %v3536_v24  ;;  %59 = vst.msk [vmem:[#allocation2 + $0x4a] sm:$0x3f] %vm49_vm5, %v11734_v14 }
 0x1ad   :  { %1005 = vst.msk [vmem:[#allocation2 + $0x1b0] sm:$0x3] %vm950_vm2, %v867_v26  ;;  %v1145_v28 = vpop.permute.xlu2 %1144  ;;  %v6557_v26 = vld [vmem:[%s11719_s0 + $0x74] sm:$0x3]  ;;  %6953 = vmatpush.bf16.msra.mxu1 %v3536_v24  ;;  %6955 = vmatpush.bf16.msra.mxu3 %v3536_v24 }
 0x1ae   :  { %1004 = vst.msk [vmem:[#allocation2 + $0x1a8] sm:$0x3] %vm950_vm2, %v865_v27 }
 0x1af   :  { %1337 = vst.msk [vmem:[#allocation2] sm:$0x3] %vm1336_vm3, %v1145_v28  ;;  %v6621_v28 = vld [vmem:[%s11719_s0 + $0x94] sm:$0x3] }
 0x1b0   :  { %60 = vst.msk [vmem:[#allocation2 + $0x52] sm:$0x3f] %vm49_vm5, %v11734_v14 }
 0x1b1   :  { %61 = vst.msk [vmem:[#allocation2 + $0x5a] sm:$0x3f] %vm49_vm5, %v11734_v14 }
 0x1b2   :  { %2694 = vrot.lane.b32.xlu1 %v6679_v29, %s7042_s18  ;;  %2692 = vrot.lane.b32.xlu0 %v6678_v30, %s7042_s18  ;;  %62 = vst.msk [vmem:[#allocation2 + $0x62] sm:$0x3f] %vm49_vm5, %v11734_v14 }
 0x1b3   :  { %3078 = vrot.lane.b32.xlu2 %v6742_v31, %s7043_s26  ;;  %v6685_v31 = vld [vmem:[%s11719_s0 + $0x96] sm:$0x3]  ;;  %63 = vst.msk [vmem:[#allocation2 + $0x6a] sm:$0x3f] %vm49_vm5, %v11734_v14 }
 0x1b4   :  { %v873_v32 = vpop.permute.xlu1 %872  ;;  %v871_v33 = vpop.permute.xlu0 %870  ;;  %64 = vst.msk [vmem:[#allocation2 + $0x72] sm:$0x3f] %vm49_vm5, %v11734_v14 }
 0x1b5   :  { %1008 = vst.msk [vmem:[#allocation2 + $0x1c8] sm:$0x3] %vm950_vm2, %v873_v32  ;;  %v1151_v34 = vpop.permute.xlu2 %1150  ;;  %v6684_v32 = vld [vmem:[%s11719_s0 + $0x92] sm:$0x3] }
 0x1b6   :  { %1007 = vst.msk [vmem:[#allocation2 + $0x1c0] sm:$0x3] %vm950_vm2, %v871_v33 }
 0x1b7   :  { %1340 = vst.msk [vmem:[#allocation2 + $0x18] sm:$0x3] %vm1336_vm3, %v1151_v34  ;;  %v6748_v34 = vld [vmem:[%s11719_s0 + $0x94] sm:$0x3] }
 0x1b8   :  { %65 = vst.msk [vmem:[#allocation2 + $0x7a] sm:$0x3f] %vm49_vm5, %v11734_v14 }
 0x1b9   :  { %66 = vst.msk [vmem:[#allocation2 + $0x82] sm:$0x3f] %vm49_vm5, %v11734_v14 }
 0x1ba   :  { %1538 = vrot.lane.b32.xlu1 %v6488_v35, %s7039_s15  ;;  %3080 = vrot.lane.b32.xlu0 %v6743_v36, %s7043_s26  ;;  %67 = vst.msk [vmem:[#allocation2 + $0x8a] sm:$0x3f] %vm49_vm5, %v11734_v14 }
 0x1bb   :  { %1540 = vrot.lane.b32.xlu2 %v6489_v37, %s7039_s15  ;;  %v6494_v37 = vld [vmem:[%s11719_s0 + $0x76] sm:$0x3]  ;;  %68 = vst.msk [vmem:[#allocation2 + $0x92] sm:$0x3f] %vm49_vm5, %v11734_v14 }
 0x1bc   :  { %v879_v38 = vpop.permute.xlu1 %878  ;;  %v877_v39 = vpop.permute.xlu0 %876  ;;  %69 = vst.msk [vmem:[#allocation2 + $0x9a] sm:$0x3f] %vm49_vm5, %v11734_v14 }
 0x1bd   :  { %1011 = vst.msk [vmem:[#allocation2 + $0x1e0] sm:$0x3] %vm950_vm2, %v879_v38  ;;  %v1157_v40 = vpop.permute.xlu2 %1156  ;;  %v6749_v38 = vld [vmem:[%s11719_s0 + $0x98] sm:$0x3] }
 0x1be   :  { %1010 = vst.msk [vmem:[#allocation2 + $0x1d8] sm:$0x3] %vm950_vm2, %v877_v39 }
 0x1bf   :  { %1343 = vst.msk [vmem:[#allocation2 + $0x30] sm:$0x3] %vm1336_vm3, %v1157_v40 }
 0x1c0   :  { %70 = vst.msk [vmem:[#allocation2 + $0xa2] sm:$0x3f] %vm49_vm5, %v11734_v14 }
 0x1c1   :  { %71 = vst.msk [vmem:[#allocation2 + $0xaa] sm:$0x3f] %vm49_vm5, %v11734_v14 }
 0x1c2   :  { %1926 = vrot.lane.b32.xlu1 %v6553_v41, %s7040_s23  ;;  %1924 = vrot.lane.b32.xlu0 %v6552_v42, %s7040_s23  ;;  %v6559_v42 = vld [vmem:[%s11719_s0 + $0x7c] sm:$0x3]  ;;  %72 = vst.msk [vmem:[#allocation2 + $0xb2] sm:$0x3f] %vm49_vm5, %v11734_v14 }
 0x1c3   :  { %2310 = vrot.lane.b32.xlu2 %v6616_v43, %s7041_s30  ;;  %v6558_v43 = vld [vmem:[%s11719_s0 + $0x78] sm:$0x3]  ;;  %73 = vst.msk [vmem:[#allocation2 + $0xba] sm:$0x3f] %vm49_vm5, %v11734_v14 }
 0x1c4   :  { %v885_v44 = vpop.permute.xlu1 %884  ;;  %v883_v45 = vpop.permute.xlu0 %882  ;;  %74 = vst.msk [vmem:[#allocation2 + $0xc2] sm:$0x3f] %vm49_vm5, %v11734_v14 }
 0x1c5   :  { %1014 = vst.msk [vmem:[#allocation2 + $0x1f8] sm:$0x3] %vm950_vm2, %v885_v44  ;;  %v1163_v46 = vpop.permute.xlu2 %1162 }
 0x1c6   :  { %1013 = vst.msk [vmem:[#allocation2 + $0x1f0] sm:$0x3] %vm950_vm2, %v883_v45 }
 0x1c7   :  { %1346 = vst.msk [vmem:[#allocation2 + $0x48] sm:$0x3] %vm1336_vm3, %v1163_v46 }
 0x1c8   :  { %75 = vst.msk [vmem:[#allocation2 + $0xca] sm:$0x3f] %vm49_vm5, %v11734_v14 }
 0x1c9   :  { %76 = vst.msk [vmem:[#allocation2 + $0xd2] sm:$0x3f] %vm49_vm5, %v11734_v14 }
 0x1ca   :  { %2696 = vrot.lane.b32.xlu1 %v6680_v47, %s7042_s18  ;;  %2312 = vrot.lane.b32.xlu0 %v6617_v48, %s7041_s30  ;;  %77 = vst.msk [vmem:[#allocation2 + $0xda] sm:$0x3f] %vm49_vm5, %v11734_v14 }
 0x1cb   :  { %2698 = vrot.lane.b32.xlu2 %v6681_v49, %s7042_s18  ;;  %78 = vst.msk [vmem:[#allocation2 + $0xe2] sm:$0x3f] %vm49_vm5, %v11734_v14 }
 0x1cc   :  { %v1149_v50 = vpop.permute.xlu1 %1148  ;;  %v1147_v51 = vpop.permute.xlu0 %1146  ;;  %79 = vst.msk [vmem:[#allocation2 + $0xea] sm:$0x3f] %vm49_vm5, %v11734_v14 }
 0x1cd   :  { %1339 = vst.msk [vmem:[#allocation2 + $0x10] sm:$0x3] %vm1336_vm3, %v1149_v50  ;;  %v1169_v52 = vpop.permute.xlu2 %1168  ;;  %v6686_v50 = vld [vmem:[%s11719_s0 + $0x9a] sm:$0x3] }
 0x1ce   :  { %1338 = vst.msk [vmem:[#allocation2 + $0x8] sm:$0x3] %vm1336_vm3, %v1147_v51  ;;  %v6623_v51 = vld [vmem:[%s11719_s0 + $0x9c] sm:$0x3] }
 0x1cf   :  { %1349 = vst.msk [vmem:[#allocation2 + $0x60] sm:$0x3] %vm1336_vm3, %v1169_v52 }
 0x1d0   :  { %80 = vst.msk [vmem:[#allocation2 + $0xf2] sm:$0x3f] %vm49_vm5, %v11734_v14 }
 0x1d1   :  { %81 = vst.msk [vmem:[#allocation2 + $0xfa] sm:$0x3f] %vm49_vm5, %v11734_v14 }
 0x1d2   :  { %3084 = vrot.lane.b32.xlu1 %v6745_v53, %s7043_s26  ;;  %3082 = vrot.lane.b32.xlu0 %v6744_v54, %s7043_s26  ;;  %82 = vst.msk [vmem:[#allocation2 + $0x102] sm:$0x3f] %vm49_vm5, %v11734_v14  ;;  %v6495_v54 = vld [vmem:[%s11719_s0 + $0x7a] sm:$0x3] }
 0x1d3   :  { %1542 = vrot.lane.b32.xlu2 %v6490_v55, %s7039_s15  ;;  %83 = vst.msk [vmem:[#allocation2 + $0x10a] sm:$0x3f] %vm49_vm5, %v11734_v14  ;;  %v6751_v55 = vld [vmem:[%s11719_s0 + $0xa0] sm:$0x3] }
 0x1d4   :  { %v1155_v56 = vpop.permute.xlu1 %1154  ;;  %v1153_v57 = vpop.permute.xlu0 %1152  ;;  %84 = vst.msk [vmem:[#allocation2 + $0x112] sm:$0x3f] %vm49_vm5, %v11734_v14 }
 0x1d5   :  { %1342 = vst.msk [vmem:[#allocation2 + $0x28] sm:$0x3] %vm1336_vm3, %v1155_v56  ;;  %v1175_v58 = vpop.permute.xlu2 %1174 }
 0x1d6   :  { %1341 = vst.msk [vmem:[#allocation2 + $0x20] sm:$0x3] %vm1336_vm3, %v1153_v57  ;;  %v6750_v57 = vld [vmem:[%s11719_s0 + $0x9c] sm:$0x3] }
 0x1d7   :  { %1352 = vst.msk [vmem:[#allocation2 + $0x78] sm:$0x3] %vm1336_vm3, %v1175_v58 }
 0x1d8   :  { %85 = vst.msk [vmem:[#allocation2 + $0x11a] sm:$0x3f] %vm49_vm5, %v11734_v14 }
 0x1d9   :  { %86 = vst.msk [vmem:[#allocation2 + $0x122] sm:$0x3f] %vm49_vm5, %v11734_v14 }
 0x1da   :  { %1928 = vrot.lane.b32.xlu1 %v6554_v59, %s7040_s23  ;;  %1544 = vrot.lane.b32.xlu0 %v6491_v60, %s7039_s15  ;;  %87 = vst.msk [vmem:[#allocation2 + $0x12a] sm:$0x3f] %vm49_vm5, %v11734_v14  ;;  %v6622_v60 = vld [vmem:[%s11719_s0 + $0x98] sm:$0x3] }
 0x1db   :  { %1930 = vrot.lane.b32.xlu2 %v6555_v61, %s7040_s23  ;;  %88 = vst.msk [vmem:[#allocation2 + $0x132] sm:$0x3f] %vm49_vm5, %v11734_v14  ;;  %v6560_v61 = vld [vmem:[%s11719_s0 + $0x80] sm:$0x3] }
 0x1dc   :  { %v1161_v62 = vpop.permute.xlu1 %1160  ;;  %v1159_v63 = vpop.permute.xlu0 %1158  ;;  %89 = vst.msk [vmem:[#allocation2 + $0x13a] sm:$0x3f] %vm49_vm5, %v11734_v14 }
 0x1dd   :  { %1345 = vst.msk [vmem:[#allocation2 + $0x40] sm:$0x3] %vm1336_vm3, %v1161_v62  ;;  %v1531_v0 = vpop.permute.xlu2 %1530  ;;  %v6497_v62 = vld [vmem:[%s11719_s0 + $0x82] sm:$0x3] }
 0x1de   :  { %1344 = vst.msk [vmem:[#allocation2 + $0x38] sm:$0x3] %vm1336_vm3, %v1159_v63 }
 0x1df   :  { %1723 = vst.msk [vmem:[#allocation2] sm:$0x3] %vm1722_vm4, %v1531_v0 }
 0x1e0   :  { %90 = vst.msk [vmem:[#allocation2 + $0x142] sm:$0x3f] %vm49_vm5, %v11734_v14 }
 0x1e1   :  { %91 = vst.msk [vmem:[#allocation2 + $0x14a] sm:$0x3f] %vm49_vm5, %v11734_v14 }
 0x1e2   :  { %2316 = vrot.lane.b32.xlu1 %v6619_v1, %s7041_s30  ;;  %2314 = vrot.lane.b32.xlu0 %v6618_v2, %s7041_s30  ;;  %92 = vst.msk [vmem:[#allocation2 + $0x152] sm:$0x3f] %vm49_vm5, %v11734_v14  ;;  %v6687_v2 = vld [vmem:[%s11719_s0 + $0x9e] sm:$0x3] }
 0x1e3   :  { %2700 = vrot.lane.b32.xlu2 %v6682_v3, %s7042_s18  ;;  %93 = vst.msk [vmem:[#allocation2 + $0x15a] sm:$0x3f] %vm49_vm5, %v11734_v14  ;;  %v6625_v3 = vld [vmem:[%s11719_s0 + $0xa4] sm:$0x3] }
 0x1e4   :  { %v1167_v4 = vpop.permute.xlu1 %1166  ;;  %v1165_v5 = vpop.permute.xlu0 %1164  ;;  %94 = vst.msk [vmem:[#allocation2 + $0x162] sm:$0x3f] %vm49_vm5, %v11734_v14 }
 0x1e5   :  { %1348 = vst.msk [vmem:[#allocation2 + $0x58] sm:$0x3] %vm1336_vm3, %v1167_v4  ;;  %v1919_v11 = vpop.permute.xlu2 %1918  ;;  %v6624_v4 = vld [vmem:[%s11719_s0 + $0xa0] sm:$0x3] }
 0x1e6   :  { %1347 = vst.msk [vmem:[#allocation2 + $0x50] sm:$0x3] %vm1336_vm3, %v1165_v5 }
 0x1e7   :  { %95 = vst.msk [vmem:[#allocation2 + $0x16a] sm:$0x3f] %vm49_vm5, %v11734_v14 }
 0x1e8   :  { %96 = vst.msk [vmem:[#allocation2 + $0x172] sm:$0x3f] %vm49_vm5, %v11734_v14 }
 0x1e9   :  { %97 = vst.msk [vmem:[#allocation2 + $0x17a] sm:$0x3f] %vm49_vm5, %v11734_v14 }
 0x1ea   :  { %3086 = vrot.lane.b32.xlu1 %v6746_v6, %s7043_s26  ;;  %2702 = vrot.lane.b32.xlu0 %v6683_v7, %s7042_s18  ;;  %98 = vst.msk [vmem:[#allocation2 + $0x182] sm:$0x3f] %vm49_vm5, %v11734_v14 }
 0x1eb   :  { %3088 = vrot.lane.b32.xlu2 %v6747_v8, %s7043_s26  ;;  %99 = vst.msk [vmem:[#allocation2 + $0x18a] sm:$0x3f] %vm49_vm5, %v11734_v14  ;;  %v6496_v8 = vld [vmem:[%s11719_s0 + $0x7e] sm:$0x3] }
 0x1ec   :  { %v1173_v9 = vpop.permute.xlu1 %1172  ;;  %v1171_v10 = vpop.permute.xlu0 %1170  ;;  %100 = vst.msk [vmem:[#allocation2 + $0x192] sm:$0x3f] %vm49_vm5, %v11734_v14 }
 0x1ed   :  { %1351 = vst.msk [vmem:[#allocation2 + $0x70] sm:$0x3] %vm1336_vm3, %v1173_v9  ;;  %v2689_v27 = vpop.permute.xlu2 %2688  ;;  %v6752_v9 = vld [vmem:[%s11719_s0 + $0xa4] sm:$0x3] }
 0x1ee   :  { %1350 = vst.msk [vmem:[#allocation2 + $0x68] sm:$0x3] %vm1336_vm3, %v1171_v10  ;;  %v6689_v10 = vld [vmem:[%s11719_s0 + $0xa6] sm:$0x3] }
 0x1ef   :  { %101 = vst.msk [vmem:[#allocation2 + $0x19a] sm:$0x3f] %vm49_vm5, %v11734_v14 }
 0x1f0   :  { %102 = vst.msk [vmem:[#allocation2 + $0x1a2] sm:$0x3f] %vm49_vm5, %v11734_v14 }
 0x1f1   :  { %103 = vst.msk [vmem:[#allocation2 + $0x1aa] sm:$0x3f] %vm49_vm5, %v11734_v14 }
 0x1f2   :  { %1548 = vrot.lane.b32.xlu1 %v6493_v12, %s7039_s15  ;;  %1546 = vrot.lane.b32.xlu0 %v6492_v13, %s7039_s15  ;;  %104 = vst.msk [vmem:[#allocation2 + $0x1b2] sm:$0x3f] %vm49_vm5, %v11734_v14 }
 0x1f3   :  { %1932 = vrot.lane.b32.xlu2 %v6556_v15, %s7040_s23  ;;  %105 = vst.msk [vmem:[#allocation2 + $0x1ba] sm:$0x3f] %vm49_vm5, %v11734_v14  ;;  %v6561_v15 = vld [vmem:[%s11719_s0 + $0x84] sm:$0x3] }
 0x1f4   :  { %v1179_v22 = vpop.permute.xlu1 %1178  ;;  %v1177_v23 = vpop.permute.xlu0 %1176  ;;  %106 = vst.msk [vmem:[#allocation2 + $0x1c2] sm:$0x3f] %vm49_vm5, %v11734_v14 }
 0x1f5   :  { %1354 = vst.msk [vmem:[#allocation2 + $0x88] sm:$0x3] %vm1336_vm3, %v1179_v22  ;;  %v3077_v33 = vpop.permute.xlu2 %3076  ;;  %v6626_v22 = vld [vmem:[%s11719_s0 + $0xa8] sm:$0x3] }
 0x1f6   :  { %1353 = vst.msk [vmem:[#allocation2 + $0x80] sm:$0x3] %vm1336_vm3, %v1177_v23  ;;  %v6563_v23 = vld [vmem:[%s11719_s0 + $0x8c] sm:$0x3] }
 0x1f7   :  { %107 = vst.msk [vmem:[#allocation2 + $0x1ca] sm:$0x3f] %vm49_vm5, %v11734_v14 }
 0x1f8   :  { %108 = vst.msk [vmem:[#allocation2 + $0x1d2] sm:$0x3f] %vm49_vm5, %v11734_v14 }
 0x1f9   :  { %109 = vst.msk [vmem:[#allocation2 + $0x1da] sm:$0x3f] %vm49_vm5, %v11734_v14 }
 0x1fa   :  { %2318 = vrot.lane.b32.xlu1 %v6620_v25, %s7041_s30  ;;  %1934 = vrot.lane.b32.xlu0 %v6557_v26, %s7040_s23  ;;  %110 = vst.msk [vmem:[#allocation2 + $0x1e2] sm:$0x3f] %vm49_vm5, %v11734_v14 }
 0x1fb   :  { %2320 = vrot.lane.b32.xlu2 %v6621_v28, %s7041_s30  ;;  %111 = vst.msk [vmem:[#allocation2 + $0x1ea] sm:$0x3f] %vm49_vm5, %v11734_v14 }
 0x1fc   :  { %v1917_v29 = vpop.permute.xlu1 %1916  ;;  %v1533_v30 = vpop.permute.xlu0 %1532  ;;  %112 = vst.msk [vmem:[#allocation2 + $0x1f2] sm:$0x3f] %vm49_vm5, %v11734_v14 }
 0x1fd   :  { %2109 = vst.msk [vmem:[#allocation2] sm:$0x3] %vm2108_vm8, %v1917_v29  ;;  %v1921_v39 = vpop.permute.xlu2 %1920 }
 0x1fe   :  { %1724 = vst.msk [vmem:[#allocation2 + $0x8] sm:$0x3] %vm1722_vm4, %v1533_v30  ;;  %v6753_v30 = vld [vmem:[%s11719_s0 + $0xa8] sm:$0x3] }
 0x1ff   :  { %2110 = vst.msk [vmem:[#allocation2 + $0x8] sm:$0x3] %vm2108_vm8, %v1919_v11 }
 0x200   :  { %113 = vst.msk [vmem:[#allocation2 + $0x1fa] sm:$0x3f] %vm49_vm5, %v11734_v14  ;;  %vm4697_vm5 = vcmask 255168  }
 0x201   :  { %4264 = vst.msk [vmem:[#allocation3] sm:$0x3] %vm4263_vm13, %v11734_v14 }
 0x202   :  { %2706 = vrot.lane.b32.xlu1 %v6685_v31, %s7042_s18  ;;  %2704 = vrot.lane.b32.xlu0 %v6684_v32, %s7042_s18  ;;  %v6691_v31 = vld [vmem:[%s11719_s0 + $0xae] sm:$0x3]  ;;  %v6690_v32 = vld [vmem:[%s11719_s0 + $0xaa] sm:$0x3]  ;;  %4265 = vst.msk [vmem:[#allocation3 + $0x2] sm:$0x3] %vm4263_vm13, %v11734_v14 }
 0x203   :  { %3090 = vrot.lane.b32.xlu2 %v6748_v34, %s7043_s26  ;;  %4266 = vst.msk [vmem:[#allocation3 + $0x4] sm:$0x3] %vm4263_vm13, %v11734_v14 }
 0x204   :  { %v2305_v35 = vpop.permute.xlu1 %2304  ;;  %v2303_v36 = vpop.permute.xlu0 %2302  ;;  %4267 = vst.msk [vmem:[#allocation3 + $0x6] sm:$0x3] %vm4263_vm13, %v11734_v14 }
 0x205   :  { %2496 = vst.msk [vmem:[#allocation2 + $0x8] sm:$0x3] %vm2494_vm9, %v2305_v35  ;;  %v8402_v48 = vpop.permute.xlu2 %2308 }
 0x206   :  { %2495 = vst.msk [vmem:[#allocation2] sm:$0x3] %vm2494_vm9, %v2303_v36  ;;  %v6562_v36 = vld [vmem:[%s11719_s0 + $0x88] sm:$0x3] }
 0x207   :  { %2881 = vst.msk [vmem:[#allocation2] sm:$0x3] %vm2880_vm10, %v2689_v27 }
 0x208   :  { %4268 = vst.msk [vmem:[#allocation3 + $0x8] sm:$0x3] %vm4263_vm13, %v11734_v14 }
 0x209   :  { %4269 = vst.msk [vmem:[#allocation3 + $0xa] sm:$0x3] %vm4263_vm13, %v11734_v14 }
 0x20a   :  { %1550 = vrot.lane.b32.xlu1 %v6494_v37, %s7039_s15  ;;  %3092 = vrot.lane.b32.xlu0 %v6749_v38, %s7043_s26  ;;  %v6500_v37 = vld [vmem:[%s11719_s0 + $0xb6] sm:$0x3]  ;;  %v6755_v38 = vld [vmem:[%s11719_s0 + $0xb0] sm:$0x3]  ;;  %4270 = vst.msk [vmem:[#allocation3 + $0xc] sm:$0x3] %vm4263_vm13, %v11734_v14 }
 0x20b   :  { %1552 = vrot.lane.b32.xlu2 %v6495_v54, %s7039_s15  ;;  %4271 = vst.msk [vmem:[#allocation3 + $0xe] sm:$0x3] %vm4263_vm13, %v11734_v14 }
 0x20c   :  { %v3075_v40 = vpop.permute.xlu1 %3074  ;;  %v2691_v41 = vpop.permute.xlu0 %2690  ;;  %4272 = vst.msk [vmem:[#allocation3 + $0x10] sm:$0x3] %vm4263_vm13, %v11734_v14 }
 0x20d   :  { %3267 = vst.msk [vmem:[#allocation2] sm:$0x3] %vm3266_vm11, %v3075_v40  ;;  %v8442_v56 = vpop.permute.xlu2 %3078 }
 0x20e   :  { %2882 = vst.msk [vmem:[#allocation2 + $0x8] sm:$0x3] %vm2880_vm10, %v2691_v41 }
 0x20f   :  { %3268 = vst.msk [vmem:[#allocation2 + $0x8] sm:$0x3] %vm3266_vm11, %v3077_v33 }
 0x210   :  { %4286 = vst.msk [vmem:[#allocation3 + $0x14] sm:$0x3] %vm4263_vm13, %v11734_v14 }
 0x211   :  { %4287 = vst.msk [vmem:[#allocation3 + $0x28] sm:$0x3] %vm4263_vm13, %v11734_v14 }
 0x212   :  { %1938 = vrot.lane.b32.xlu1 %v6559_v42, %s7040_s23  ;;  %1936 = vrot.lane.b32.xlu0 %v6558_v43, %s7040_s23  ;;  %4288 = vst.msk [vmem:[#allocation3 + $0x3c] sm:$0x3] %vm4263_vm13, %v11734_v14 }
 0x213   :  { %2322 = vrot.lane.b32.xlu2 %v6622_v60, %s7041_s30  ;;  %v6501_v60 = vld [vmem:[%s11719_s0 + $0xba] sm:$0x3]  ;;  %4289 = vst.msk [vmem:[#allocation3 + $0x50] sm:$0x3] %vm4263_vm13, %v11734_v14 }
 0x214   :  { %v1537_v44 = vpop.permute.xlu1 %1536  ;;  %v1535_v45 = vpop.permute.xlu0 %1534  ;;  %v3331_v46 = vld [vmem:[#allocation2] sm:$0xff]  ;;  %4290 = vst.msk [vmem:[#allocation3 + $0x64] sm:$0x3] %vm4263_vm13, %v11734_v14 }
 0x215   :  { %1726 = vst.msk [vmem:[#allocation2 + $0x18] sm:$0x3] %vm1722_vm4, %v1537_v44  ;;  %v1541_v63 = vpop.permute.xlu2 %1540 }
 0x216   :  { %1725 = vst.msk [vmem:[#allocation2 + $0x10] sm:$0x3] %vm1722_vm4, %v1535_v45  ;;  %v3332_v47 = vld [vmem:[#allocation2 + $0x8] sm:$0xff] }
 0x217   :  { %2111 = vst.msk [vmem:[#allocation2 + $0x10] sm:$0x3] %vm2108_vm8, %v1921_v39  ;;  %v3395_v49 = vpack.c.bf16 %v3332_v47, %v3331_v46  ;;  %v6627_v45 = vld [vmem:[%s11719_s0 + $0xac] sm:$0x3]  ;;  %v6565_v46 = vld [vmem:[%s11719_s0 + $0xbc] sm:$0x3] }
 0x218   :  { %1728 = vst.msk [vmem:[#allocation2 + $0x28] sm:$0x3] %vm1722_vm4, %v1541_v63  ;;  %v6564_v47 = vld [vmem:[%s11719_s0 + $0xb8] sm:$0x3] }
 0x219   :  { %6808 = vmatmul.msk.bf16.vlgmr.msra.gmra.mxu0 %vm3434_vm12, %v3395_v49  ;;  %4291 = vst.msk [vmem:[#allocation3 + $0x78] sm:$0x3] %vm4263_vm13, %v11734_v14 }
 0x21a   :  { %2708 = vrot.lane.b32.xlu1 %v6686_v50, %s7042_s18  ;;  %2324 = vrot.lane.b32.xlu0 %v6623_v51, %s7041_s30  ;;  %v6754_v51 = vld [vmem:[%s11719_s0 + $0xac] sm:$0x3]  ;;  %4292 = vst.msk [vmem:[#allocation3 + $0x8c] sm:$0x3] %vm4263_vm13, %v11734_v14 }
 0x21b   :  { %2710 = vrot.lane.b32.xlu2 %v6687_v2, %s7042_s18  ;;  %v6628_v2 = vld [vmem:[%s11719_s0 + $0xd8] sm:$0x3]  ;;  %4293 = vst.msk [vmem:[#allocation3 + $0xa0] sm:$0x3] %vm4263_vm13, %v11734_v14 }
 0x21c   :  { %v8424_v52 = vpop.permute.xlu1 %2306  ;;  %v8428_v53 = vpop.permute.xlu0 %1922  ;;  %5511 = vst.msk [vmem:[#allocation5] sm:$0x3] %vm4263_vm13, %v11734_v14 }
 0x21d   :  { %v2311_v5 = vpop.permute.xlu2 %2310  ;;  %2497 = vst.msk [vmem:[#allocation2 + $0x10] sm:$0x3] %vm2494_vm9, %v8424_v52  ;;  %v6692_v52 = vld [vmem:[%s11719_s0 + $0xda] sm:$0x3] }
 0x21e   :  { %2112 = vst.msk [vmem:[#allocation2 + $0x18] sm:$0x3] %vm2108_vm8, %v8428_v53  ;;  %v6629_v53 = vld [vmem:[%s11719_s0 + $0xdc] sm:$0x3] }
 0x21f   :  { %2498 = vst.msk [vmem:[#allocation2 + $0x18] sm:$0x3] %vm2494_vm9, %v8402_v48 }
 0x220   :  { %5512 = vst.msk [vmem:[#allocation5 + $0x2] sm:$0x3] %vm4263_vm13, %v11734_v14 }
 0x221   :  { %5513 = vst.msk [vmem:[#allocation5 + $0x4] sm:$0x3] %vm4263_vm13, %v11734_v14 }
 0x222   :  { %3096 = vrot.lane.b32.xlu1 %v6751_v55, %s7043_s26  ;;  %3094 = vrot.lane.b32.xlu0 %v6750_v57, %s7043_s26  ;;  %5514 = vst.msk [vmem:[#allocation5 + $0x6] sm:$0x3] %vm4263_vm13, %v11734_v14 }
 0x223   :  { %1554 = vrot.lane.b32.xlu2 %v6496_v8, %s7039_s15  ;;  %v6693_v8 = vld [vmem:[%s11719_s0 + $0xde] sm:$0x3]  ;;  %5515 = vst.msk [vmem:[#allocation5 + $0x8] sm:$0x3] %vm4263_vm13, %v11734_v14 }
 0x224   :  { %v2695_v58 = vpop.permute.xlu1 %2694  ;;  %v2693_v59 = vpop.permute.xlu0 %2692  ;;  %5525 = vst.msk [vmem:[#allocation5 + $0xc] sm:$0x3] %vm4263_vm13, %v11734_v14 }
 0x225   :  { %v2699_v11 = vpop.permute.xlu2 %2698  ;;  %2884 = vst.msk [vmem:[#allocation2 + $0x18] sm:$0x3] %vm2880_vm10, %v2695_v58 }
 0x226   :  { %2883 = vst.msk [vmem:[#allocation2 + $0x10] sm:$0x3] %vm2880_vm10, %v2693_v59 }
 0x227   :  { %3269 = vst.msk [vmem:[#allocation2 + $0x10] sm:$0x3] %vm3266_vm11, %v8442_v56 }
 0x228   :  { %5526 = vst.msk [vmem:[#allocation5 + $0x18] sm:$0x3] %vm4263_vm13, %v11734_v14 }
 0x229   :  { %5527 = vst.msk [vmem:[#allocation5 + $0x24] sm:$0x3] %vm4263_vm13, %v11734_v14 }
 0x22a   :  { %1940 = vrot.lane.b32.xlu1 %v6560_v61, %s7040_s23  ;;  %1556 = vrot.lane.b32.xlu0 %v6497_v62, %s7039_s15  ;;  %v6757_v61 = vld [vmem:[%s11719_s0 + $0xe0] sm:$0x3]  ;;  %v6756_v62 = vld [vmem:[%s11719_s0 + $0xdc] sm:$0x3]  ;;  %5528 = vst.msk [vmem:[#allocation5 + $0x30] sm:$0x3] %vm4263_vm13, %v11734_v14 }
 0x22b   :  { %1942 = vrot.lane.b32.xlu2 %v6561_v15, %s7040_s23  ;;  %4285 = vst.msk [vmem:[#allocation3] sm:$0x3] %vm4263_vm13, %v11734_v14 }
 0x22c   :  { %v1539_v0 = vpop.permute.xlu1 %1538  ;;  %v3081_v1 = vpop.permute.xlu0 %3080  ;;  %5524 = vst.msk [vmem:[#allocation5] sm:$0x3] %vm4263_vm13, %v11734_v14 }
 0x22d   :  { %v1543_v18 = vpop.permute.xlu2 %1542  ;;  %1727 = vst.msk [vmem:[#allocation2 + $0x20] sm:$0x3] %vm1722_vm4, %v1539_v0 }
 0x22e   :  { %3270 = vst.msk [vmem:[#allocation2 + $0x18] sm:$0x3] %vm3266_vm11, %v3081_v1  ;;  %v3333_v25 = vld [vmem:[#allocation2 + $0x10] sm:$0xff] }
 0x22f   :  { %1729 = vst.msk [vmem:[#allocation2 + $0x30] sm:$0x3] %vm1722_vm4, %v1543_v18  ;;  %v6438_v18 = vld [vmem:[%s11719_s0 + $0xbc] sm:$0x3] }
 0x232   :  { %2328 = vrot.lane.b32.xlu1 %v6625_v3, %s7041_s30  ;;  %2326 = vrot.lane.b32.xlu0 %v6624_v4, %s7041_s30  ;;  %v6502_v3 = vld [vmem:[%s11719_s0 + $0xbe] sm:$0x3]  ;;  %v6439_v4 = vld [vmem:[%s11719_s0 + $0xc0] sm:$0x3] }
 0x233   :  { %2712 = vrot.lane.b32.xlu2 %v6688_v21, %s7042_s18 }
 0x234   :  { %v1927_v6 = vpop.permute.xlu1 %1926  ;;  %v1925_v7 = vpop.permute.xlu0 %1924 }
 0x235   :  { %2114 = vst.msk [vmem:[#allocation2 + $0x28] sm:$0x3] %vm2108_vm8, %v1927_v6  ;;  %v1931_v24 = vpop.permute.xlu2 %1930  ;;  %v3334_v27 = vld [vmem:[#allocation2 + $0x18] sm:$0xff] }
 0x236   :  { %2113 = vst.msk [vmem:[#allocation2 + $0x20] sm:$0x3] %vm2108_vm8, %v1925_v7  ;;  %v3396_v29 = vpack.c.bf16 %v3334_v27, %v3333_v25  ;;  %v6759_v25 = vld [vmem:[%s11719_s0 + $0xe8] sm:$0x3] }
 0x237   :  { %2499 = vst.msk [vmem:[#allocation2 + $0x20] sm:$0x3] %vm2494_vm9, %v2311_v5 }
 0x238   :  { %6809 = vmatmul.msk.bf16.gmra.mxu0 %vm3434_vm12, %v3396_v29 }
 0x23a   :  { %3098 = vrot.lane.b32.xlu1 %v6752_v9, %s7043_s26  ;;  %2714 = vrot.lane.b32.xlu0 %v6689_v10, %s7042_s18  ;;  %v6567_v9 = vld [vmem:[%s11719_s0 + $0xc4] sm:$0x3]  ;;  %v6566_v10 = vld [vmem:[%s11719_s0 + $0xc0] sm:$0x3] }
 0x23b   :  { %3100 = vrot.lane.b32.xlu2 %v6753_v30, %s7043_s26  ;;  %v6630_v30 = vld [vmem:[%s11719_s0 + $0xe0] sm:$0x3] }
 0x23c   :  { %v2697_v12 = vpop.permute.xlu1 %2696  ;;  %v2313_v13 = vpop.permute.xlu0 %2312 }
 0x23d   :  { %2885 = vst.msk [vmem:[#allocation2 + $0x20] sm:$0x3] %vm2880_vm10, %v2697_v12  ;;  %v2701_v33 = vpop.permute.xlu2 %2700 }
 0x23e   :  { %2500 = vst.msk [vmem:[#allocation2 + $0x28] sm:$0x3] %vm2494_vm9, %v2313_v13 }
 0x23f   :  { %2886 = vst.msk [vmem:[#allocation2 + $0x28] sm:$0x3] %vm2880_vm10, %v2699_v11 }
 0x242   :  { %1560 = vrot.lane.b32.xlu1 %v6499_v16, %s7039_s15  ;;  %1558 = vrot.lane.b32.xlu0 %v6498_v17, %s7039_s15 }
 0x243   :  { %1944 = vrot.lane.b32.xlu2 %v6562_v36, %s7040_s23 }
 0x244   :  { %v3085_v19 = vpop.permute.xlu1 %3084  ;;  %v3083_v20 = vpop.permute.xlu0 %3082 }
 0x245   :  { %3272 = vst.msk [vmem:[#allocation2 + $0x28] sm:$0x3] %vm3266_vm11, %v3085_v19  ;;  %v3089_v39 = vpop.permute.xlu2 %3088  ;;  %v6694_v19 = vld [vmem:[%s11719_s0 + $0xe2] sm:$0x3] }
 0x246   :  { %3271 = vst.msk [vmem:[#allocation2 + $0x20] sm:$0x3] %vm3266_vm11, %v3083_v20  ;;  %v6631_v20 = vld [vmem:[%s11719_s0 + $0xe4] sm:$0x3] }
 0x24a   :  { %2330 = vrot.lane.b32.xlu1 %v6626_v22, %s7041_s30  ;;  %1946 = vrot.lane.b32.xlu0 %v6563_v23, %s7040_s23 }
 0x24b   :  { %2332 = vrot.lane.b32.xlu2 %v6627_v45, %s7041_s30  ;;  %v6456_v45 = vld [vmem:[%s11719_s0 + $0x154] sm:$0x3] }
 0x24c   :  { %v1929_v26 = vpop.permute.xlu1 %1928  ;;  %v1545_v28 = vpop.permute.xlu0 %1544  ;;  %v3336_v41 = vld [vmem:[#allocation2 + $0x28] sm:$0xff] }
 0x24d   :  { %2115 = vst.msk [vmem:[#allocation2 + $0x30] sm:$0x3] %vm2108_vm8, %v1929_v26  ;;  %v3335_v40 = vld [vmem:[#allocation2 + $0x20] sm:$0xff]  ;;  %v1933_v48 = vpop.permute.xlu2 %1932 }
 0x24e   :  { %1730 = vst.msk [vmem:[#allocation2 + $0x38] sm:$0x3] %vm1722_vm4, %v1545_v28  ;;  %v3397_v42 = vpack.c.bf16 %v3336_v41, %v3335_v40  ;;  %v6758_v26 = vld [vmem:[%s11719_s0 + $0xe4] sm:$0x3] }
 0x24f   :  { %2116 = vst.msk [vmem:[#allocation2 + $0x38] sm:$0x3] %vm2108_vm8, %v1931_v24  ;;  %v6503_v24 = vld [vmem:[%s11719_s0 + $0xc2] sm:$0x3] }
 0x250   :  { %6810 = vmatmul.msk.bf16.gmra.mxu0 %vm3434_vm12, %v3397_v42  ;;  %v6585_v42 = vld [vmem:[%s11719_s0 + $0x15c] sm:$0x3] }
 0x252   :  { %2718 = vrot.lane.b32.xlu1 %v6691_v31, %s7042_s18  ;;  %2716 = vrot.lane.b32.xlu0 %v6690_v32, %s7042_s18  ;;  %v6520_v31 = vld [vmem:[%s11719_s0 + $0x156] sm:$0x3]  ;;  %v6457_v32 = vld [vmem:[%s11719_s0 + $0x158] sm:$0x3] }
 0x253   :  { %3102 = vrot.lane.b32.xlu2 %v6754_v51, %s7043_s26  ;;  %v6521_v51 = vld [vmem:[%s11719_s0 + $0x15a] sm:$0x3] }
 0x254   :  { %v2317_v34 = vpop.permute.xlu1 %2316  ;;  %v2315_v35 = vpop.permute.xlu0 %2314 }
 0x255   :  { %2502 = vst.msk [vmem:[#allocation2 + $0x38] sm:$0x3] %vm2494_vm9, %v2317_v34  ;;  %v2321_v54 = vpop.permute.xlu2 %2320 }
 0x256   :  { %2501 = vst.msk [vmem:[#allocation2 + $0x30] sm:$0x3] %vm2494_vm9, %v2315_v35 }
 0x257   :  { %2887 = vst.msk [vmem:[#allocation2 + $0x30] sm:$0x3] %vm2880_vm10, %v2701_v33 }
 0x25a   :  { %1562 = vrot.lane.b32.xlu1 %v6500_v37, %s7039_s15  ;;  %3104 = vrot.lane.b32.xlu0 %v6755_v38, %s7043_s26 }
 0x25b   :  { %1564 = vrot.lane.b32.xlu2 %v6501_v60, %s7039_s15 }
 0x25c   :  { %v3087_v43 = vpop.permute.xlu1 %3086  ;;  %v2703_v44 = vpop.permute.xlu0 %2702 }
 0x25d   :  { %3273 = vst.msk [vmem:[#allocation2 + $0x30] sm:$0x3] %vm3266_vm11, %v3087_v43  ;;  %v3091_v63 = vpop.permute.xlu2 %3090  ;;  %v6584_v43 = vld [vmem:[%s11719_s0 + $0x158] sm:$0x3] }
 0x25e   :  { %2888 = vst.msk [vmem:[#allocation2 + $0x38] sm:$0x3] %vm2880_vm10, %v2703_v44 }
 0x25f   :  { %3274 = vst.msk [vmem:[#allocation2 + $0x38] sm:$0x3] %vm3266_vm11, %v3089_v39  ;;  %v6695_v39 = vld [vmem:[%s11719_s0 + $0xe6] sm:$0x3] }
 0x262   :  { %1950 = vrot.lane.b32.xlu1 %v6565_v46, %s7040_s23  ;;  %1948 = vrot.lane.b32.xlu0 %v6564_v47, %s7040_s23  ;;  %v6712_v46 = vld [vmem:[%s11719_s0 + $0x17a] sm:$0x3]  ;;  %v6649_v47 = vld [vmem:[%s11719_s0 + $0x17c] sm:$0x3] }
 0x263   :  { %2334 = vrot.lane.b32.xlu2 %v6628_v2, %s7041_s30 }
 0x264   :  { %v1549_v49 = vpop.permute.xlu1 %1548  ;;  %v1547_v50 = vpop.permute.xlu0 %1546  ;;  %v3337_v55 = vld [vmem:[#allocation2 + $0x30] sm:$0xff] }
 0x265   :  { %1732 = vst.msk [vmem:[#allocation2 + $0x48] sm:$0x3] %vm1722_vm4, %v1549_v49  ;;  %v1553_v5 = vpop.permute.xlu2 %1552 }
 0x266   :  { %1731 = vst.msk [vmem:[#allocation2 + $0x40] sm:$0x3] %vm1722_vm4, %v1547_v50  ;;  %v3338_v56 = vld [vmem:[#allocation2 + $0x38] sm:$0xff] }
 0x267   :  { %2117 = vst.msk [vmem:[#allocation2 + $0x40] sm:$0x3] %vm2108_vm8, %v1933_v48  ;;  %v3398_v57 = vpack.c.bf16 %v3338_v56, %v3337_v55 }
 0x268   :  { %1734 = vst.msk [vmem:[#allocation2 + $0x58] sm:$0x3] %vm1722_vm4, %v1553_v5  ;;  %v6440_v5 = vld [vmem:[%s11719_s0 + $0xc4] sm:$0x3] }
 0x269   :  { %6811 = vmatmul.msk.bf16.gmra.mxu0 %vm3434_vm12, %v3398_v57  ;;  %v6648_v57 = vld [vmem:[%s11719_s0 + $0x178] sm:$0x3] }
 0x26a   :  { %2720 = vrot.lane.b32.xlu1 %v6692_v52, %s7042_s18  ;;  %2336 = vrot.lane.b32.xlu0 %v6629_v53, %s7041_s30  ;;  %v6777_v52 = vld [vmem:[%s11719_s0 + $0x180] sm:$0x3]  ;;  %v6776_v53 = vld [vmem:[%s11719_s0 + $0x17c] sm:$0x3] }
 0x26b   :  { %2722 = vrot.lane.b32.xlu2 %v6693_v8, %s7042_s18 }
 0x26c   :  { %v2319_v58 = vpop.permute.xlu1 %2318  ;;  %v1935_v59 = vpop.permute.xlu0 %1934 }
 0x26d   :  { %2503 = vst.msk [vmem:[#allocation2 + $0x40] sm:$0x3] %vm2494_vm9, %v2319_v58  ;;  %v2323_v11 = vpop.permute.xlu2 %2322  ;;  %v6504_v58 = vld [vmem:[%s11719_s0 + $0xc6] sm:$0x3] }
 0x26e   :  { %2118 = vst.msk [vmem:[#allocation2 + $0x48] sm:$0x3] %vm2108_vm8, %v1935_v59  ;;  %v6441_v59 = vld [vmem:[%s11719_s0 + $0xc8] sm:$0x3] }
 0x26f   :  { %2504 = vst.msk [vmem:[#allocation2 + $0x48] sm:$0x3] %vm2494_vm9, %v2321_v54 }
 0x272   :  { %3108 = vrot.lane.b32.xlu1 %v6757_v61, %s7043_s26  ;;  %3106 = vrot.lane.b32.xlu0 %v6756_v62, %s7043_s26 }
 0x273   :  { %1180 = vrot.lane.b32.xlu2 %v6438_v18, %s7038_s25 }
 0x274   :  { %v2707_v0 = vpop.permute.xlu1 %2706  ;;  %v2705_v1 = vpop.permute.xlu0 %2704 }
 0x275   :  { %2890 = vst.msk [vmem:[#allocation2 + $0x48] sm:$0x3] %vm2880_vm10, %v2707_v0  ;;  %v2711_v21 = vpop.permute.xlu2 %2710  ;;  %v6569_v0 = vld [vmem:[%s11719_s0 + $0xcc] sm:$0x3] }
 0x276   :  { %2889 = vst.msk [vmem:[#allocation2 + $0x40] sm:$0x3] %vm2880_vm10, %v2705_v1  ;;  %v6568_v1 = vld [vmem:[%s11719_s0 + $0xc8] sm:$0x3] }
 0x277   :  { %3275 = vst.msk [vmem:[#allocation2 + $0x40] sm:$0x3] %vm3266_vm11, %v3091_v63  ;;  %v6713_v63 = vld [vmem:[%s11719_s0 + $0x17e] sm:$0x3] }
 0x27a   :  { %1566 = vrot.lane.b32.xlu1 %v6502_v3, %s7039_s15  ;;  %1182 = vrot.lane.b32.xlu0 %v6439_v4, %s7038_s25 }
 0x27b   :  { %1568 = vrot.lane.b32.xlu2 %v6503_v24, %s7039_s15 }
 0x27c   :  { %v1551_v6 = vpop.permute.xlu1 %1550  ;;  %v3093_v7 = vpop.permute.xlu0 %3092 }
 0x27d   :  { %1733 = vst.msk [vmem:[#allocation2 + $0x50] sm:$0x3] %vm1722_vm4, %v1551_v6  ;;  %v1555_v27 = vpop.permute.xlu2 %1554  ;;  %v6696_v6 = vld [vmem:[%s11719_s0 + $0xea] sm:$0x3] }
 0x27e   :  { %3276 = vst.msk [vmem:[#allocation2 + $0x48] sm:$0x3] %vm3266_vm11, %v3093_v7  ;;  %v3339_v12 = vld [vmem:[#allocation2 + $0x40] sm:$0xff]  ;;  %v6633_v7 = vld [vmem:[%s11719_s0 + $0xec] sm:$0x3] }
 0x27f   :  { %1735 = vst.msk [vmem:[#allocation2 + $0x60] sm:$0x3] %vm1722_vm4, %v1555_v27 }
 0x282   :  { %1954 = vrot.lane.b32.xlu1 %v6567_v9, %s7040_s23  ;;  %1952 = vrot.lane.b32.xlu0 %v6566_v10, %s7040_s23 }
 0x283   :  { %2338 = vrot.lane.b32.xlu2 %v6630_v30, %s7041_s30  ;;  %v6697_v30 = vld [vmem:[%s11719_s0 + $0xee] sm:$0x3] }
 0x284   :  { %v1939_v13 = vpop.permute.xlu1 %1938  ;;  %v1937_v15 = vpop.permute.xlu0 %1936 }
 0x285   :  { %2120 = vst.msk [vmem:[#allocation2 + $0x58] sm:$0x3] %vm2108_vm8, %v1939_v13  ;;  %v3340_v16 = vld [vmem:[#allocation2 + $0x48] sm:$0xff]  ;;  %v1943_v33 = vpop.permute.xlu2 %1942 }
 0x286   :  { %2119 = vst.msk [vmem:[#allocation2 + $0x50] sm:$0x3] %vm2108_vm8, %v1937_v15  ;;  %v3399_v17 = vpack.c.bf16 %v3340_v16, %v3339_v12  ;;  %v6505_v15 = vld [vmem:[%s11719_s0 + $0xca] sm:$0x3]  ;;  %v6761_v16 = vld [vmem:[%s11719_s0 + $0xf0] sm:$0x3] }
 0x287   :  { %2505 = vst.msk [vmem:[#allocation2 + $0x50] sm:$0x3] %vm2494_vm9, %v2323_v11 }
 0x288   :  { %6812 = vmatmul.msk.bf16.gmra.mxu0 %vm3434_vm12, %v3399_v17  ;;  %v6760_v17 = vld [vmem:[%s11719_s0 + $0xec] sm:$0x3] }
 0x28a   :  { %2724 = vrot.lane.b32.xlu1 %v6694_v19, %s7042_s18  ;;  %2340 = vrot.lane.b32.xlu0 %v6631_v20, %s7041_s30 }
 0x28b   :  { %2726 = vrot.lane.b32.xlu2 %v6695_v39, %s7042_s18 }
 0x28c   :  { %v2709_v22 = vpop.permute.xlu1 %2708  ;;  %v2325_v23 = vpop.permute.xlu0 %2324 }
 0x28d   :  { %2891 = vst.msk [vmem:[#allocation2 + $0x50] sm:$0x3] %vm2880_vm10, %v2709_v22  ;;  %v2713_v40 = vpop.permute.xlu2 %2712  ;;  %v6522_v22 = vld [vmem:[%s11719_s0 + $0x15e] sm:$0x3] }
 0x28e   :  { %2506 = vst.msk [vmem:[#allocation2 + $0x58] sm:$0x3] %vm2494_vm9, %v2325_v23  ;;  %v6459_v23 = vld [vmem:[%s11719_s0 + $0x160] sm:$0x3] }
 0x28f   :  { %2892 = vst.msk [vmem:[#allocation2 + $0x58] sm:$0x3] %vm2880_vm10, %v2711_v21  ;;  %v6632_v21 = vld [vmem:[%s11719_s0 + $0xe8] sm:$0x3] }
 0x292   :  { %3112 = vrot.lane.b32.xlu1 %v6759_v25, %s7043_s26  ;;  %3110 = vrot.lane.b32.xlu0 %v6758_v26, %s7043_s26 }
 0x293   :  { %1216 = vrot.lane.b32.xlu2 %v6456_v45, %s7038_s25  ;;  %v6523_v45 = vld [vmem:[%s11719_s0 + $0x162] sm:$0x3] }
 0x294   :  { %v3097_v28 = vpop.permute.xlu1 %3096  ;;  %v3095_v29 = vpop.permute.xlu0 %3094 }
 0x295   :  { %3278 = vst.msk [vmem:[#allocation2 + $0x58] sm:$0x3] %vm3266_vm11, %v3097_v28  ;;  %v3101_v48 = vpop.permute.xlu2 %3100 }
 0x296   :  { %3277 = vst.msk [vmem:[#allocation2 + $0x50] sm:$0x3] %vm3266_vm11, %v3095_v29 }
 0x29a   :  { %1602 = vrot.lane.b32.xlu1 %v6520_v31, %s7039_s15  ;;  %1218 = vrot.lane.b32.xlu0 %v6457_v32, %s7038_s25  ;;  %v6587_v31 = vld [vmem:[%s11719_s0 + $0x164] sm:$0x3]  ;;  %v6586_v32 = vld [vmem:[%s11719_s0 + $0x160] sm:$0x3] }
 0x29b   :  { %1604 = vrot.lane.b32.xlu2 %v6521_v51, %s7039_s15  ;;  %v6650_v51 = vld [vmem:[%s11719_s0 + $0x180] sm:$0x3] }
 0x29c   :  { %v1941_v34 = vpop.permute.xlu1 %1940  ;;  %v1557_v35 = vpop.permute.xlu0 %1556  ;;  %v3342_v37 = vld [vmem:[#allocation2 + $0x58] sm:$0xff] }
 0x29d   :  { %v3341_v36 = vld [vmem:[#allocation2 + $0x50] sm:$0xff]  ;;  %v1945_v54 = vpop.permute.xlu2 %1944  ;;  %2121 = vst.msk [vmem:[#allocation2 + $0x60] sm:$0x3] %vm2108_vm8, %v1941_v34 }
 0x29e   :  { %v3400_v38 = vpack.c.bf16 %v3342_v37, %v3341_v36  ;;  %1736 = vst.msk [vmem:[#allocation2 + $0x68] sm:$0x3] %vm1722_vm4, %v1557_v35  ;;  %v6458_v36 = vld [vmem:[%s11719_s0 + $0x15c] sm:$0x3]  ;;  %v6714_v37 = vld [vmem:[%s11719_s0 + $0x182] sm:$0x3] }
 0x29f   :  { %2122 = vst.msk [vmem:[#allocation2 + $0x68] sm:$0x3] %vm2108_vm8, %v1943_v33 }
 0x2a0   :  { %6813 = vmatmul.msk.bf16.gmra.mxu0 %vm3434_vm12, %v3400_v38  ;;  %v6651_v38 = vld [vmem:[%s11719_s0 + $0x184] sm:$0x3] }
 0x2a2   :  { %1990 = vrot.lane.b32.xlu1 %v6585_v42, %s7040_s23  ;;  %1988 = vrot.lane.b32.xlu0 %v6584_v43, %s7040_s23 }
 0x2a3   :  { %2374 = vrot.lane.b32.xlu2 %v6648_v57, %s7041_s30  ;;  %v6715_v57 = vld [vmem:[%s11719_s0 + $0x186] sm:$0x3] }
 0x2a4   :  { %v2329_v41 = vpop.permute.xlu1 %2328  ;;  %v2327_v44 = vpop.permute.xlu0 %2326 }
 0x2a5   :  { %v2333_v60 = vpop.permute.xlu2 %2332  ;;  %2508 = vst.msk [vmem:[#allocation2 + $0x68] sm:$0x3] %vm2494_vm9, %v2329_v41 }
 0x2a6   :  { %2507 = vst.msk [vmem:[#allocation2 + $0x60] sm:$0x3] %vm2494_vm9, %v2327_v44 }
 0x2a7   :  { %2893 = vst.msk [vmem:[#allocation2 + $0x60] sm:$0x3] %vm2880_vm10, %v2713_v40 }
 0x2aa   :  { %2760 = vrot.lane.b32.xlu1 %v6712_v46, %s7042_s18  ;;  %2376 = vrot.lane.b32.xlu0 %v6649_v47, %s7041_s30  ;;  %v6779_v46 = vld [vmem:[%s11719_s0 + $0x188] sm:$0x3]  ;;  %v6778_v47 = vld [vmem:[%s11719_s0 + $0x184] sm:$0x3] }
 0x2ab   :  { %2762 = vrot.lane.b32.xlu2 %v6713_v63, %s7042_s18  ;;  %v6442_v63 = vld [vmem:[%s11719_s0 + $0xcc] sm:$0x3] }
 0x2ac   :  { %v3099_v49 = vpop.permute.xlu1 %3098  ;;  %v2715_v50 = vpop.permute.xlu0 %2714 }
 0x2ad   :  { %v3103_v2 = vpop.permute.xlu2 %3102  ;;  %3279 = vst.msk [vmem:[#allocation2 + $0x60] sm:$0x3] %vm3266_vm11, %v3099_v49 }
 0x2ae   :  { %2894 = vst.msk [vmem:[#allocation2 + $0x68] sm:$0x3] %vm2880_vm10, %v2715_v50 }
 0x2af   :  { %3280 = vst.msk [vmem:[#allocation2 + $0x68] sm:$0x3] %vm3266_vm11, %v3101_v48 }
 0x2b2   :  { %3148 = vrot.lane.b32.xlu1 %v6777_v52, %s7043_s26  ;;  %3146 = vrot.lane.b32.xlu0 %v6776_v53, %s7043_s26  ;;  %v6448_v52 = vld [vmem:[%s11719_s0 + $0x10c] sm:$0x3]  ;;  %v6443_v53 = vld [vmem:[%s11719_s0 + $0xd0] sm:$0x3] }
 0x2b3   :  { %1184 = vrot.lane.b32.xlu2 %v6440_v5, %s7038_s25 }
 0x2b4   :  { %v1561_v55 = vpop.permute.xlu1 %1560  ;;  %v1559_v56 = vpop.permute.xlu0 %1558  ;;  %v3343_v10 = vld [vmem:[#allocation2 + $0x60] sm:$0xff] }
 0x2b5   :  { %1738 = vst.msk [vmem:[#allocation2 + $0x78] sm:$0x3] %vm1722_vm4, %v1561_v55  ;;  %v1565_v8 = vpop.permute.xlu2 %1564 }
 0x2b6   :  { %1737 = vst.msk [vmem:[#allocation2 + $0x70] sm:$0x3] %vm1722_vm4, %v1559_v56  ;;  %v3344_v11 = vld [vmem:[#allocation2 + $0x68] sm:$0xff] }
 0x2b7   :  { %2123 = vst.msk [vmem:[#allocation2 + $0x70] sm:$0x3] %vm2108_vm8, %v1945_v54  ;;  %v3401_v13 = vpack.c.bf16 %v3344_v11, %v3343_v10  ;;  %v6570_v10 = vld [vmem:[%s11719_s0 + $0xd0] sm:$0x3] }
 0x2b8   :  { %1740 = vst.msk [vmem:[#allocation2 + $0x88] sm:$0x3] %vm1722_vm4, %v1565_v8  ;;  %v6449_v8 = vld [vmem:[%s11719_s0 + $0x110] sm:$0x3] }
 0x2b9   :  { %6814 = vmatmul.msk.bf16.gmra.mxu0 %vm3434_vm12, %v3401_v13 }
 0x2ba   :  { %1570 = vrot.lane.b32.xlu1 %v6504_v58, %s7039_s15  ;;  %1186 = vrot.lane.b32.xlu0 %v6441_v59, %s7038_s25  ;;  %v6507_v58 = vld [vmem:[%s11719_s0 + $0xd2] sm:$0x3]  ;;  %v6506_v59 = vld [vmem:[%s11719_s0 + $0xce] sm:$0x3] }
 0x2bb   :  { %1572 = vrot.lane.b32.xlu2 %v6505_v15, %s7039_s15  ;;  %v6512_v15 = vld [vmem:[%s11719_s0 + $0x10e] sm:$0x3] }
 0x2bc   :  { %v2331_v61 = vpop.permute.xlu1 %2330  ;;  %v1947_v62 = vpop.permute.xlu0 %1946 }
 0x2bd   :  { %2509 = vst.msk [vmem:[#allocation2 + $0x70] sm:$0x3] %vm2494_vm9, %v2331_v61  ;;  %v2335_v18 = vpop.permute.xlu2 %2334 }
 0x2be   :  { %2124 = vst.msk [vmem:[#allocation2 + $0x78] sm:$0x3] %vm2108_vm8, %v1947_v62 }
 0x2bf   :  { %2510 = vst.msk [vmem:[#allocation2 + $0x78] sm:$0x3] %vm2494_vm9, %v2333_v60 }
 0x2c2   :  { %1958 = vrot.lane.b32.xlu1 %v6569_v0, %s7040_s23  ;;  %1956 = vrot.lane.b32.xlu0 %v6568_v1, %s7040_s23  ;;  %v6470_v0 = vld [vmem:[%s11719_s0 + $0x1dc] sm:$0x3]  ;;  %v6513_v1 = vld [vmem:[%s11719_s0 + $0x112] sm:$0x3] }
 0x2c3   :  { %2342 = vrot.lane.b32.xlu2 %v6632_v21, %s7041_s30  ;;  %v6471_v21 = vld [vmem:[%s11719_s0 + $0x1e0] sm:$0x3] }
 0x2c4   :  { %v2719_v3 = vpop.permute.xlu1 %2718  ;;  %v2717_v4 = vpop.permute.xlu0 %2716 }
 0x2c5   :  { %2896 = vst.msk [vmem:[#allocation2 + $0x78] sm:$0x3] %vm2880_vm10, %v2719_v3  ;;  %v2723_v24 = vpop.permute.xlu2 %2722 }
 0x2c6   :  { %2895 = vst.msk [vmem:[#allocation2 + $0x70] sm:$0x3] %vm2880_vm10, %v2717_v4 }
 0x2c7   :  { %3281 = vst.msk [vmem:[#allocation2 + $0x70] sm:$0x3] %vm3266_vm11, %v3103_v2 }
 0x2ca   :  { %2728 = vrot.lane.b32.xlu1 %v6696_v6, %s7042_s18  ;;  %2344 = vrot.lane.b32.xlu0 %v6633_v7, %s7041_s30 }
 0x2cb   :  { %2730 = vrot.lane.b32.xlu2 %v6697_v30, %s7042_s18 }
 0x2cc   :  { %v1563_v9 = vpop.permute.xlu1 %1562  ;;  %v3105_v12 = vpop.permute.xlu0 %3104 }
 0x2cd   :  { %1739 = vst.msk [vmem:[#allocation2 + $0x80] sm:$0x3] %vm1722_vm4, %v1563_v9  ;;  %v1181_v33 = vpop.permute.xlu2 %1180  ;;  %v6571_v9 = vld [vmem:[%s11719_s0 + $0xd4] sm:$0x3] }
 0x2ce   :  { %3282 = vst.msk [vmem:[#allocation2 + $0x78] sm:$0x3] %vm3266_vm11, %v3105_v12  ;;  %v3345_v26 = vld [vmem:[#allocation2 + $0x70] sm:$0xff] }
 0x2cf   :  { %1355 = vst.msk [vmem:[#allocation2 + $0x90] sm:$0x3] %vm1336_vm3, %v1181_v33 }
 0x2d2   :  { %3116 = vrot.lane.b32.xlu1 %v6761_v16, %s7043_s26  ;;  %3114 = vrot.lane.b32.xlu0 %v6760_v17, %s7043_s26  ;;  %v6534_v16 = vld [vmem:[%s11719_s0 + $0x1de] sm:$0x3]  ;;  %v6577_v17 = vld [vmem:[%s11719_s0 + $0x114] sm:$0x3] }
 0x2d3   :  { %1220 = vrot.lane.b32.xlu2 %v6458_v36, %s7038_s25  ;;  %v6535_v36 = vld [vmem:[%s11719_s0 + $0x1e2] sm:$0x3] }
 0x2d4   :  { %v1951_v19 = vpop.permute.xlu1 %1950  ;;  %v1949_v20 = vpop.permute.xlu0 %1948 }
 0x2d5   :  { %2126 = vst.msk [vmem:[#allocation2 + $0x88] sm:$0x3] %vm2108_vm8, %v1951_v19  ;;  %v3346_v27 = vld [vmem:[#allocation2 + $0x78] sm:$0xff]  ;;  %v1569_v39 = vpop.permute.xlu2 %1568 }
 0x2d6   :  { %2125 = vst.msk [vmem:[#allocation2 + $0x80] sm:$0x3] %vm2108_vm8, %v1949_v20  ;;  %v3402_v28 = vpack.c.bf16 %v3346_v27, %v3345_v26  ;;  %v6576_v27 = vld [vmem:[%s11719_s0 + $0x110] sm:$0x3] }
 0x2d7   :  { %2511 = vst.msk [vmem:[#allocation2 + $0x80] sm:$0x3] %vm2494_vm9, %v2335_v18 }
 0x2d8   :  { %6815 = vmatmul.msk.bf16.gmra.mxu0 %vm3434_vm12, %v3402_v28  ;;  %v6598_v28 = vld [vmem:[%s11719_s0 + $0x1e0] sm:$0x3] }
 0x2da   :  { %1606 = vrot.lane.b32.xlu1 %v6522_v22, %s7039_s15  ;;  %1222 = vrot.lane.b32.xlu0 %v6459_v23, %s7038_s25  ;;  %v6635_v22 = vld [vmem:[%s11719_s0 + $0xf4] sm:$0x3]  ;;  %v6634_v23 = vld [vmem:[%s11719_s0 + $0xf0] sm:$0x3] }
 0x2db   :  { %1608 = vrot.lane.b32.xlu2 %v6523_v45, %s7039_s15 }
 0x2dc   :  { %v2721_v25 = vpop.permute.xlu1 %2720  ;;  %v2337_v29 = vpop.permute.xlu0 %2336 }
 0x2dd   :  { %2897 = vst.msk [vmem:[#allocation2 + $0x80] sm:$0x3] %vm2880_vm10, %v2721_v25  ;;  %v2339_v49 = vpop.permute.xlu2 %2338 }
 0x2de   :  { %2512 = vst.msk [vmem:[#allocation2 + $0x88] sm:$0x3] %vm2494_vm9, %v2337_v29  ;;  %v6641_v29 = vld [vmem:[%s11719_s0 + $0x134] sm:$0x3] }
 0x2df   :  { %2898 = vst.msk [vmem:[#allocation2 + $0x88] sm:$0x3] %vm2880_vm10, %v2723_v24 }
 0x2e2   :  { %1994 = vrot.lane.b32.xlu1 %v6587_v31, %s7040_s23  ;;  %1992 = vrot.lane.b32.xlu0 %v6586_v32, %s7040_s23 }
 0x2e3   :  { %2378 = vrot.lane.b32.xlu2 %v6650_v51, %s7041_s30 }
 0x2e4   :  { %v3109_v34 = vpop.permute.xlu1 %3108  ;;  %v3107_v35 = vpop.permute.xlu0 %3106 }
 0x2e5   :  { %3284 = vst.msk [vmem:[#allocation2 + $0x88] sm:$0x3] %vm3266_vm11, %v3109_v34  ;;  %v2727_v55 = vpop.permute.xlu2 %2726 }
 0x2e6   :  { %3283 = vst.msk [vmem:[#allocation2 + $0x80] sm:$0x3] %vm3266_vm11, %v3107_v35 }
 0x2ea   :  { %2764 = vrot.lane.b32.xlu1 %v6714_v37, %s7042_s18  ;;  %2380 = vrot.lane.b32.xlu0 %v6651_v38, %s7041_s30  ;;  %v6699_v37 = vld [vmem:[%s11719_s0 + $0xf6] sm:$0x3]  ;;  %v6698_v38 = vld [vmem:[%s11719_s0 + $0xf2] sm:$0x3] }
 0x2eb   :  { %2766 = vrot.lane.b32.xlu2 %v6715_v57, %s7042_s18 }
 0x2ec   :  { %v1567_v40 = vpop.permute.xlu1 %1566  ;;  %v3348_v41 = vld [vmem:[#allocation2 + $0x88] sm:$0xff]  ;;  %v1183_v42 = vpop.permute.xlu0 %1182 }
 0x2ed   :  { %1741 = vst.msk [vmem:[#allocation2 + $0x90] sm:$0x3] %vm1722_vm4, %v1567_v40  ;;  %v3347_v43 = vld [vmem:[#allocation2 + $0x80] sm:$0xff]  ;;  %v1217_v61 = vpop.permute.xlu2 %1216 }
 0x2ee   :  { %1356 = vst.msk [vmem:[#allocation2 + $0x98] sm:$0x3] %vm1336_vm3, %v1183_v42  ;;  %v3403_v44 = vpack.c.bf16 %v3348_v41, %v3347_v43  ;;  %v6640_v42 = vld [vmem:[%s11719_s0 + $0x130] sm:$0x3]  ;;  %v6662_v43 = vld [vmem:[%s11719_s0 + $0x200] sm:$0x3] }
 0x2ef   :  { %1742 = vst.msk [vmem:[#allocation2 + $0x98] sm:$0x3] %vm1722_vm4, %v1569_v39 }
 0x2f0   :  { %6816 = vmatmul.msk.bf16.gmra.mxu0 %vm3434_vm12, %v3403_v44  ;;  %1373 = vst.msk [vmem:[#allocation2 + $0x120] sm:$0x3] %vm1336_vm3, %v1217_v61  ;;  %v6705_v44 = vld [vmem:[%s11719_s0 + $0x136] sm:$0x3] }
 0x2f2   :  { %3152 = vrot.lane.b32.xlu1 %v6779_v46, %s7043_s26  ;;  %3150 = vrot.lane.b32.xlu0 %v6778_v47, %s7043_s26 }
 0x2f3   :  { %1188 = vrot.lane.b32.xlu2 %v6442_v63, %s7038_s25  ;;  %v6663_v63 = vld [vmem:[%s11719_s0 + $0x204] sm:$0x3] }
 0x2f4   :  { %v1955_v48 = vpop.permute.xlu1 %1954  ;;  %v1953_v50 = vpop.permute.xlu0 %1952 }
 0x2f5   :  { %2128 = vst.msk [vmem:[#allocation2 + $0x98] sm:$0x3] %vm2108_vm8, %v1955_v48  ;;  %v1605_v3 = vpop.permute.xlu2 %1604  ;;  %v6599_v48 = vld [vmem:[%s11719_s0 + $0x1e4] sm:$0x3] }
 0x2f6   :  { %2127 = vst.msk [vmem:[#allocation2 + $0x90] sm:$0x3] %vm2108_vm8, %v1953_v50  ;;  %v6762_v50 = vld [vmem:[%s11719_s0 + $0xf4] sm:$0x3] }
 0x2f7   :  { %2513 = vst.msk [vmem:[#allocation2 + $0x90] sm:$0x3] %vm2494_vm9, %v2339_v49  ;;  %v6763_v49 = vld [vmem:[%s11719_s0 + $0xf8] sm:$0x3] }
 0x2fa   :  { %1200 = vrot.lane.b32.xlu1 %v6448_v52, %s7038_s25  ;;  %1190 = vrot.lane.b32.xlu0 %v6443_v53, %s7038_s25 }
 0x2fb   :  { %1202 = vrot.lane.b32.xlu2 %v6449_v8, %s7038_s25 }
 0x2fc   :  { %v2725_v54 = vpop.permute.xlu1 %2724  ;;  %v2341_v56 = vpop.permute.xlu0 %2340 }
 0x2fd   :  { %2899 = vst.msk [vmem:[#allocation2 + $0x90] sm:$0x3] %vm2880_vm10, %v2725_v54  ;;  %v2375_v11 = vpop.permute.xlu2 %2374  ;;  %v6704_v54 = vld [vmem:[%s11719_s0 + $0x132] sm:$0x3] }
 0x2fe   :  { %2514 = vst.msk [vmem:[#allocation2 + $0x98] sm:$0x3] %vm2494_vm9, %v2341_v56  ;;  %v6769_v56 = vld [vmem:[%s11719_s0 + $0x138] sm:$0x3] }
 0x2ff   :  { %2900 = vst.msk [vmem:[#allocation2 + $0x98] sm:$0x3] %vm2880_vm10, %v2727_v55  ;;  %v6460_v55 = vld [vmem:[%s11719_s0 + $0x18c] sm:$0x3] }
 0x302   :  { %1576 = vrot.lane.b32.xlu1 %v6507_v58, %s7039_s15  ;;  %1574 = vrot.lane.b32.xlu0 %v6506_v59, %s7039_s15 }
 0x303   :  { %1586 = vrot.lane.b32.xlu2 %v6512_v15, %s7039_s15 }
 0x304   :  { %v3113_v60 = vpop.permute.xlu1 %3112  ;;  %v3111_v62 = vpop.permute.xlu0 %3110 }
 0x305   :  { %3286 = vst.msk [vmem:[#allocation2 + $0x98] sm:$0x3] %vm3266_vm11, %v3113_v60  ;;  %v2763_v18 = vpop.permute.xlu2 %2762 }
 0x306   :  { %3285 = vst.msk [vmem:[#allocation2 + $0x90] sm:$0x3] %vm3266_vm11, %v3111_v62 }
 0x30a   :  { %1244 = vrot.lane.b32.xlu1 %v6470_v0, %s7038_s25  ;;  %1588 = vrot.lane.b32.xlu0 %v6513_v1, %s7039_s15  ;;  %v6727_v0 = vld [vmem:[%s11719_s0 + $0x206] sm:$0x3]  ;;  %v6726_v1 = vld [vmem:[%s11719_s0 + $0x202] sm:$0x3] }
 0x30b   :  { %1246 = vrot.lane.b32.xlu2 %v6471_v21, %s7038_s25 }
 0x30c   :  { %v1603_v2 = vpop.permute.xlu1 %1602  ;;  %v3350_v4 = vld [vmem:[#allocation2 + $0x98] sm:$0xff]  ;;  %v1219_v5 = vpop.permute.xlu0 %1218 }
 0x30d   :  { %1759 = vst.msk [vmem:[#allocation2 + $0x120] sm:$0x3] %vm1722_vm4, %v1603_v2  ;;  %v3349_v6 = vld [vmem:[#allocation2 + $0x90] sm:$0xff]  ;;  %v1185_v24 = vpop.permute.xlu2 %1184 }
 0x30e   :  { %1374 = vst.msk [vmem:[#allocation2 + $0x128] sm:$0x3] %vm1336_vm3, %v1219_v5  ;;  %v3404_v7 = vpack.c.bf16 %v3350_v4, %v3349_v6  ;;  %v6768_v5 = vld [vmem:[%s11719_s0 + $0x134] sm:$0x3]  ;;  %v6790_v6 = vld [vmem:[%s11719_s0 + $0x204] sm:$0x3] }
 0x30f   :  { %1760 = vst.msk [vmem:[#allocation2 + $0x128] sm:$0x3] %vm1722_vm4, %v1605_v3 }
 0x310   :  { %6817 = vmatmul.msk.bf16.gmra.mxu0 %vm3434_vm12, %v3404_v7  ;;  %1357 = vst.msk [vmem:[#allocation2 + $0xa0] sm:$0x3] %vm1336_vm3, %v1185_v24  ;;  %v6525_v7 = vld [vmem:[%s11719_s0 + $0x192] sm:$0x3] }
 0x312   :  { %1962 = vrot.lane.b32.xlu1 %v6571_v9, %s7040_s23  ;;  %1960 = vrot.lane.b32.xlu0 %v6570_v10, %s7040_s23 }
 0x313   :  { %1972 = vrot.lane.b32.xlu2 %v6576_v27, %s7040_s23  ;;  %v6791_v27 = vld [vmem:[%s11719_s0 + $0x208] sm:$0x3] }
 0x314   :  { %v1991_v12 = vpop.permute.xlu1 %1990  ;;  %v1989_v13 = vpop.permute.xlu0 %1988 }
 0x315   :  { %2146 = vst.msk [vmem:[#allocation2 + $0x128] sm:$0x3] %vm2108_vm8, %v1991_v12  ;;  %v1573_v30 = vpop.permute.xlu2 %1572  ;;  %v6589_v12 = vld [vmem:[%s11719_s0 + $0x194] sm:$0x3] }
 0x316   :  { %2145 = vst.msk [vmem:[#allocation2 + $0x120] sm:$0x3] %vm2108_vm8, %v1989_v13  ;;  %v6588_v13 = vld [vmem:[%s11719_s0 + $0x190] sm:$0x3] }
 0x317   :  { %2531 = vst.msk [vmem:[#allocation2 + $0x120] sm:$0x3] %vm2494_vm9, %v2375_v11  ;;  %v6461_v11 = vld [vmem:[%s11719_s0 + $0x190] sm:$0x3] }
 0x31a   :  { %1630 = vrot.lane.b32.xlu1 %v6534_v16, %s7039_s15  ;;  %1974 = vrot.lane.b32.xlu0 %v6577_v17, %s7040_s23 }
 0x31b   :  { %1632 = vrot.lane.b32.xlu2 %v6535_v36, %s7039_s15 }
 0x31c   :  { %v2761_v19 = vpop.permute.xlu1 %2760  ;;  %v2377_v20 = vpop.permute.xlu0 %2376 }
 0x31d   :  { %2917 = vst.msk [vmem:[#allocation2 + $0x120] sm:$0x3] %vm2880_vm10, %v2761_v19  ;;  %v2343_v39 = vpop.permute.xlu2 %2342  ;;  %v6716_v19 = vld [vmem:[%s11719_s0 + $0x1b2] sm:$0x3] }
 0x31e   :  { %2532 = vst.msk [vmem:[#allocation2 + $0x128] sm:$0x3] %vm2494_vm9, %v2377_v20  ;;  %v6653_v20 = vld [vmem:[%s11719_s0 + $0x1b4] sm:$0x3] }
 0x31f   :  { %2918 = vst.msk [vmem:[#allocation2 + $0x128] sm:$0x3] %vm2880_vm10, %v2763_v18  ;;  %v6524_v18 = vld [vmem:[%s11719_s0 + $0x18e] sm:$0x3] }
 0x322   :  { %2348 = vrot.lane.b32.xlu1 %v6635_v22, %s7041_s30  ;;  %2346 = vrot.lane.b32.xlu0 %v6634_v23, %s7041_s30 }
 0x323   :  { %2358 = vrot.lane.b32.xlu2 %v6640_v42, %s7041_s30 }
 0x324   :  { %v3149_v25 = vpop.permute.xlu1 %3148  ;;  %v3147_v26 = vpop.permute.xlu0 %3146 }
 0x325   :  { %3304 = vst.msk [vmem:[#allocation2 + $0x128] sm:$0x3] %vm3266_vm11, %v3149_v25  ;;  %v2731_v45 = vpop.permute.xlu2 %2730 }
 0x326   :  { %3303 = vst.msk [vmem:[#allocation2 + $0x120] sm:$0x3] %vm3266_vm11, %v3147_v26 }
 0x32a   :  { %2016 = vrot.lane.b32.xlu1 %v6598_v28, %s7040_s23  ;;  %2360 = vrot.lane.b32.xlu0 %v6641_v29, %s7041_s30  ;;  %v6781_v28 = vld [vmem:[%s11719_s0 + $0x1b8] sm:$0x3]  ;;  %v6780_v29 = vld [vmem:[%s11719_s0 + $0x1b4] sm:$0x3] }
 0x32b   :  { %2018 = vrot.lane.b32.xlu2 %v6599_v48, %s7040_s23 }
 0x32c   :  { %v1571_v31 = vpop.permute.xlu1 %1570  ;;  %v3368_v32 = vld [vmem:[#allocation2 + $0x128] sm:$0xff]  ;;  %v1187_v33 = vpop.permute.xlu0 %1186 }
 0x32d   :  { %1743 = vst.msk [vmem:[#allocation2 + $0xa0] sm:$0x3] %vm1722_vm4, %v1571_v31  ;;  %v3367_v34 = vld [vmem:[#allocation2 + $0x120] sm:$0xff]  ;;  %v1221_v51 = vpop.permute.xlu2 %1220 }
 0x32e   :  { %1358 = vst.msk [vmem:[#allocation2 + $0xa8] sm:$0x3] %vm1336_vm3, %v1187_v33  ;;  %v3413_v35 = vpack.c.bf16 %v3368_v32, %v3367_v34  ;;  %v6652_v33 = vld [vmem:[%s11719_s0 + $0x1b0] sm:$0x3]  ;;  %v6450_v34 = vld [vmem:[%s11719_s0 + $0x114] sm:$0x3] }
 0x32f   :  { %1744 = vst.msk [vmem:[#allocation2 + $0xa8] sm:$0x3] %vm1722_vm4, %v1573_v30 }
 0x330   :  { %6826 = vmatmul.msk.bf16.vlgmr.msra.gmra.mxu2 %vm3434_vm12, %v3413_v35  ;;  %1375 = vst.msk [vmem:[#allocation2 + $0x130] sm:$0x3] %vm1336_vm3, %v1221_v51  ;;  %v6445_v35 = vld [vmem:[%s11719_s0 + $0x100] sm:$0x3]  ;;  %v6451_v51 = vld [vmem:[%s11719_s0 + $0x118] sm:$0x3] }
 0x332   :  { %2734 = vrot.lane.b32.xlu1 %v6699_v37, %s7042_s18  ;;  %2732 = vrot.lane.b32.xlu0 %v6698_v38, %s7042_s18 }
 0x333   :  { %2744 = vrot.lane.b32.xlu2 %v6704_v54, %s7042_s18 }
 0x334   :  { %v1959_v40 = vpop.permute.xlu1 %1958  ;;  %v1957_v41 = vpop.permute.xlu0 %1956 }
 0x335   :  { %2130 = vst.msk [vmem:[#allocation2 + $0xa8] sm:$0x3] %vm2108_vm8, %v1959_v40  ;;  %v1609_v57 = vpop.permute.xlu2 %1608  ;;  %v6509_v40 = vld [vmem:[%s11719_s0 + $0x102] sm:$0x3] }
 0x336   :  { %2129 = vst.msk [vmem:[#allocation2 + $0xa0] sm:$0x3] %vm2108_vm8, %v1957_v41  ;;  %v6508_v41 = vld [vmem:[%s11719_s0 + $0xfe] sm:$0x3] }
 0x337   :  { %2515 = vst.msk [vmem:[#allocation2 + $0xa0] sm:$0x3] %vm2494_vm9, %v2343_v39  ;;  %v6717_v39 = vld [vmem:[%s11719_s0 + $0x1b6] sm:$0x3] }
 0x33a   :  { %2402 = vrot.lane.b32.xlu1 %v6662_v43, %s7041_s30  ;;  %2746 = vrot.lane.b32.xlu0 %v6705_v44, %s7042_s18 }
 0x33b   :  { %2404 = vrot.lane.b32.xlu2 %v6663_v63, %s7041_s30  ;;  %v6473_v63 = vld [vmem:[%s11719_s0 + $0x1e8] sm:$0x3] }
 0x33c   :  { %v2729_v46 = vpop.permute.xlu1 %2728  ;;  %v2345_v47 = vpop.permute.xlu0 %2344 }
 0x33d   :  { %2901 = vst.msk [vmem:[#allocation2 + $0xa0] sm:$0x3] %vm2880_vm10, %v2729_v46  ;;  %v2379_v2 = vpop.permute.xlu2 %2378  ;;  %v6472_v46 = vld [vmem:[%s11719_s0 + $0x1e4] sm:$0x3] }
 0x33e   :  { %2516 = vst.msk [vmem:[#allocation2 + $0xa8] sm:$0x3] %vm2494_vm9, %v2345_v47  ;;  %v6515_v47 = vld [vmem:[%s11719_s0 + $0x11a] sm:$0x3] }
 0x33f   :  { %2902 = vst.msk [vmem:[#allocation2 + $0xa8] sm:$0x3] %vm2880_vm10, %v2731_v45  ;;  %v6444_v45 = vld [vmem:[%s11719_s0 + $0xfc] sm:$0x3] }
 0x342   :  { %3120 = vrot.lane.b32.xlu1 %v6763_v49, %s7043_s26  ;;  %3118 = vrot.lane.b32.xlu0 %v6762_v50, %s7043_s26 }
 0x343   :  { %3130 = vrot.lane.b32.xlu2 %v6768_v5, %s7043_s26  ;;  %v6578_v5 = vld [vmem:[%s11719_s0 + $0x118] sm:$0x3] }
 0x344   :  { %v3117_v52 = vpop.permute.xlu1 %3116  ;;  %v3115_v53 = vpop.permute.xlu0 %3114 }
 0x345   :  { %3288 = vst.msk [vmem:[#allocation2 + $0xa8] sm:$0x3] %vm3266_vm11, %v3117_v52  ;;  %v2767_v8 = vpop.permute.xlu2 %2766  ;;  %v6573_v52 = vld [vmem:[%s11719_s0 + $0x104] sm:$0x3] }
 0x346   :  { %3287 = vst.msk [vmem:[#allocation2 + $0xa0] sm:$0x3] %vm3266_vm11, %v3115_v53  ;;  %v6572_v53 = vld [vmem:[%s11719_s0 + $0x100] sm:$0x3] }
 0x34a   :  { %1224 = vrot.lane.b32.xlu1 %v6460_v55, %s7038_s25  ;;  %3132 = vrot.lane.b32.xlu0 %v6769_v56, %s7043_s26 }
 0x34b   :  { %1226 = vrot.lane.b32.xlu2 %v6461_v11, %s7038_s25  ;;  %v6537_v11 = vld [vmem:[%s11719_s0 + $0x1ea] sm:$0x3] }
 0x34c   :  { %v1607_v58 = vpop.permute.xlu1 %1606  ;;  %v3352_v59 = vld [vmem:[#allocation2 + $0xa8] sm:$0xff]  ;;  %v1223_v60 = vpop.permute.xlu0 %1222 }
 0x34d   :  { %1761 = vst.msk [vmem:[#allocation2 + $0x130] sm:$0x3] %vm1722_vm4, %v1607_v58  ;;  %v3351_v61 = vld [vmem:[#allocation2 + $0xa0] sm:$0xff]  ;;  %v1189_v15 = vpop.permute.xlu2 %1188 }
 0x34e   :  { %1376 = vst.msk [vmem:[#allocation2 + $0x138] sm:$0x3] %vm1336_vm3, %v1223_v60  ;;  %v3405_v62 = vpack.c.bf16 %v3352_v59, %v3351_v61  ;;  %v6536_v58 = vld [vmem:[%s11719_s0 + $0x1e6] sm:$0x3]  ;;  %v6579_v59 = vld [vmem:[%s11719_s0 + $0x11c] sm:$0x3] }
 0x34f   :  { %1762 = vst.msk [vmem:[#allocation2 + $0x138] sm:$0x3] %vm1722_vm4, %v1609_v57  ;;  %v6514_v57 = vld [vmem:[%s11719_s0 + $0x116] sm:$0x3] }
 0x350   :  { %6818 = vmatmul.msk.bf16.gmra.mxu0 %vm3434_vm12, %v3405_v62  ;;  %1359 = vst.msk [vmem:[#allocation2 + $0xb0] sm:$0x3] %vm1336_vm3, %v1189_v15 }
 0x352   :  { %2790 = vrot.lane.b32.xlu1 %v6727_v0, %s7042_s18  ;;  %2788 = vrot.lane.b32.xlu0 %v6726_v1, %s7042_s18  ;;  %v6637_v0 = vld [vmem:[%s11719_s0 + $0x124] sm:$0x3]  ;;  %v6636_v1 = vld [vmem:[%s11719_s0 + $0x120] sm:$0x3] }
 0x353   :  { %1610 = vrot.lane.b32.xlu2 %v6524_v18, %s7039_s15  ;;  %v6642_v18 = vld [vmem:[%s11719_s0 + $0x138] sm:$0x3] }
 0x354   :  { %v1995_v3 = vpop.permute.xlu1 %1994  ;;  %v1993_v4 = vpop.permute.xlu0 %1992 }
 0x355   :  { %2148 = vst.msk [vmem:[#allocation2 + $0x138] sm:$0x3] %vm2108_vm8, %v1995_v3  ;;  %v1203_v21 = vpop.permute.xlu2 %1202 }
 0x356   :  { %2147 = vst.msk [vmem:[#allocation2 + $0x130] sm:$0x3] %vm2108_vm8, %v1993_v4 }
 0x357   :  { %2533 = vst.msk [vmem:[#allocation2 + $0x130] sm:$0x3] %vm2494_vm9, %v2379_v2 }
 0x358   :  { %1366 = vst.msk [vmem:[#allocation2 + $0xe8] sm:$0x3] %vm1336_vm3, %v1203_v21 }
 0x35a   :  { %3174 = vrot.lane.b32.xlu1 %v6790_v6, %s7043_s26  ;;  %1612 = vrot.lane.b32.xlu0 %v6525_v7, %s7039_s15  ;;  %v6600_v6 = vld [vmem:[%s11719_s0 + $0x1e8] sm:$0x3]  ;;  %v6643_v7 = vld [vmem:[%s11719_s0 + $0x13c] sm:$0x3] }
 0x35b   :  { %3176 = vrot.lane.b32.xlu2 %v6791_v27, %s7043_s26  ;;  %v6601_v27 = vld [vmem:[%s11719_s0 + $0x1ec] sm:$0x3] }
 0x35c   :  { %v2765_v9 = vpop.permute.xlu1 %2764  ;;  %v2381_v10 = vpop.permute.xlu0 %2380 }
 0x35d   :  { %2919 = vst.msk [vmem:[#allocation2 + $0x130] sm:$0x3] %vm2880_vm10, %v2765_v9  ;;  %v1587_v30 = vpop.permute.xlu2 %1586 }
 0x35e   :  { %2534 = vst.msk [vmem:[#allocation2 + $0x138] sm:$0x3] %vm2494_vm9, %v2381_v10 }
 0x35f   :  { %2920 = vst.msk [vmem:[#allocation2 + $0x138] sm:$0x3] %vm2880_vm10, %v2767_v8 }
 0x362   :  { %1998 = vrot.lane.b32.xlu1 %v6589_v12, %s7040_s23  ;;  %1996 = vrot.lane.b32.xlu0 %v6588_v13, %s7040_s23  ;;  %v6701_v12 = vld [vmem:[%s11719_s0 + $0x126] sm:$0x3]  ;;  %v6700_v13 = vld [vmem:[%s11719_s0 + $0x122] sm:$0x3] }
 0x363   :  { %2382 = vrot.lane.b32.xlu2 %v6652_v33, %s7041_s30 }
 0x364   :  { %v3153_v16 = vpop.permute.xlu1 %3152  ;;  %v3151_v17 = vpop.permute.xlu0 %3150 }
 0x365   :  { %3306 = vst.msk [vmem:[#allocation2 + $0x138] sm:$0x3] %vm3266_vm11, %v3153_v16  ;;  %v1247_v36 = vpop.permute.xlu2 %1246 }
 0x366   :  { %3305 = vst.msk [vmem:[#allocation2 + $0x130] sm:$0x3] %vm3266_vm11, %v3151_v17 }
 0x367   :  { %1388 = vst.msk [vmem:[#allocation2 + $0x198] sm:$0x3] %vm1336_vm3, %v1247_v36  ;;  %v6706_v36 = vld [vmem:[%s11719_s0 + $0x13a] sm:$0x3] }
 0x36a   :  { %2768 = vrot.lane.b32.xlu1 %v6716_v19, %s7042_s18  ;;  %2384 = vrot.lane.b32.xlu0 %v6653_v20, %s7041_s30  ;;  %v6664_v19 = vld [vmem:[%s11719_s0 + $0x208] sm:$0x3]  ;;  %v6707_v20 = vld [vmem:[%s11719_s0 + $0x13e] sm:$0x3] }
 0x36b   :  { %2770 = vrot.lane.b32.xlu2 %v6717_v39, %s7042_s18 }
 0x36c   :  { %v1201_v22 = vpop.permute.xlu1 %1200  ;;  %v3370_v23 = vld [vmem:[#allocation2 + $0x138] sm:$0xff]  ;;  %v1191_v24 = vpop.permute.xlu0 %1190 }
 0x36d   :  { %1365 = vst.msk [vmem:[#allocation2 + $0xe0] sm:$0x3] %vm1336_vm3, %v1201_v22  ;;  %v3369_v25 = vld [vmem:[#allocation2 + $0x130] sm:$0xff]  ;;  %v1973_v42 = vpop.permute.xlu2 %1972 }
 0x36e   :  { %1360 = vst.msk [vmem:[#allocation2 + $0xb8] sm:$0x3] %vm1336_vm3, %v1191_v24  ;;  %v3414_v26 = vpack.c.bf16 %v3370_v23, %v3369_v25 }
 0x36f   :  { %1751 = vst.msk [vmem:[#allocation2 + $0xe0] sm:$0x3] %vm1722_vm4, %v1587_v30 }
 0x370   :  { %6827 = vmatmul.msk.bf16.gmra.mxu2 %vm3434_vm12, %v3414_v26  ;;  %2137 = vst.msk [vmem:[#allocation2 + $0xe0] sm:$0x3] %vm2108_vm8, %v1973_v42  ;;  %v6665_v42 = vld [vmem:[%s11719_s0 + $0x20c] sm:$0x3] }
 0x372   :  { %3156 = vrot.lane.b32.xlu1 %v6781_v28, %s7043_s26  ;;  %3154 = vrot.lane.b32.xlu0 %v6780_v29, %s7043_s26  ;;  %v6765_v28 = vld [vmem:[%s11719_s0 + $0x128] sm:$0x3]  ;;  %v6764_v29 = vld [vmem:[%s11719_s0 + $0x124] sm:$0x3] }
 0x373   :  { %1192 = vrot.lane.b32.xlu2 %v6444_v45, %s7038_s25 }
 0x374   :  { %v1577_v31 = vpop.permute.xlu1 %1576  ;;  %v1575_v32 = vpop.permute.xlu0 %1574 }
 0x375   :  { %1746 = vst.msk [vmem:[#allocation2 + $0xb8] sm:$0x3] %vm1722_vm4, %v1577_v31  ;;  %v1633_v48 = vpop.permute.xlu2 %1632 }
 0x376   :  { %1745 = vst.msk [vmem:[#allocation2 + $0xb0] sm:$0x3] %vm1722_vm4, %v1575_v32 }
 0x377   :  { %1774 = vst.msk [vmem:[#allocation2 + $0x198] sm:$0x3] %vm1722_vm4, %v1633_v48 }
 0x37a   :  { %1204 = vrot.lane.b32.xlu1 %v6450_v34, %s7038_s25  ;;  %1194 = vrot.lane.b32.xlu0 %v6445_v35, %s7038_s25 }
 0x37b   :  { %1206 = vrot.lane.b32.xlu2 %v6451_v51, %s7038_s25  ;;  %v6770_v51 = vld [vmem:[%s11719_s0 + $0x13c] sm:$0x3] }
 0x37c   :  { %v1245_v37 = vpop.permute.xlu1 %1244  ;;  %v1589_v38 = vpop.permute.xlu0 %1588 }
 0x37d   :  { %1387 = vst.msk [vmem:[#allocation2 + $0x190] sm:$0x3] %vm1336_vm3, %v1245_v37  ;;  %v2359_v54 = vpop.permute.xlu2 %2358  ;;  %v6462_v37 = vld [vmem:[%s11719_s0 + $0x194] sm:$0x3] }
 0x37e   :  { %1752 = vst.msk [vmem:[#allocation2 + $0xe8] sm:$0x3] %vm1722_vm4, %v1589_v38  ;;  %v6771_v38 = vld [vmem:[%s11719_s0 + $0x140] sm:$0x3] }
 0x37f   :  { %2523 = vst.msk [vmem:[#allocation2 + $0xe0] sm:$0x3] %vm2494_vm9, %v2359_v54 }
 0x382   :  { %1580 = vrot.lane.b32.xlu1 %v6509_v40, %s7039_s15  ;;  %1578 = vrot.lane.b32.xlu0 %v6508_v41, %s7039_s15 }
 0x383   :  { %1590 = vrot.lane.b32.xlu2 %v6514_v57, %s7039_s15  ;;  %v6463_v57 = vld [vmem:[%s11719_s0 + $0x198] sm:$0x3] }
 0x384   :  { %v1963_v43 = vpop.permute.xlu1 %1962  ;;  %v1961_v44 = vpop.permute.xlu0 %1960 }
 0x385   :  { %2132 = vst.msk [vmem:[#allocation2 + $0xb8] sm:$0x3] %vm2108_vm8, %v1963_v43  ;;  %v2019_v60 = vpop.permute.xlu2 %2018  ;;  %v6729_v43 = vld [vmem:[%s11719_s0 + $0x20e] sm:$0x3] }
 0x386   :  { %2131 = vst.msk [vmem:[#allocation2 + $0xb0] sm:$0x3] %vm2108_vm8, %v1961_v44  ;;  %v6728_v44 = vld [vmem:[%s11719_s0 + $0x20a] sm:$0x3] }
 0x387   :  { %2160 = vst.msk [vmem:[#allocation2 + $0x198] sm:$0x3] %vm2108_vm8, %v2019_v60 }
 0x38a   :  { %1248 = vrot.lane.b32.xlu1 %v6472_v46, %s7038_s25  ;;  %1592 = vrot.lane.b32.xlu0 %v6515_v47, %s7039_s15 }
 0x38b   :  { %1250 = vrot.lane.b32.xlu2 %v6473_v63, %s7038_s25  ;;  %v6526_v63 = vld [vmem:[%s11719_s0 + $0x196] sm:$0x3] }
 0x38c   :  { %v1631_v49 = vpop.permute.xlu1 %1630  ;;  %v1975_v50 = vpop.permute.xlu0 %1974 }
 0x38d   :  { %1773 = vst.msk [vmem:[#allocation2 + $0x190] sm:$0x3] %vm1722_vm4, %v1631_v49  ;;  %v2745_v2 = vpop.permute.xlu2 %2744 }
 0x38e   :  { %2138 = vst.msk [vmem:[#allocation2 + $0xe8] sm:$0x3] %vm2108_vm8, %v1975_v50 }
 0x38f   :  { %2909 = vst.msk [vmem:[#allocation2 + $0xe0] sm:$0x3] %vm2880_vm10, %v2745_v2 }
 0x392   :  { %1966 = vrot.lane.b32.xlu1 %v6573_v52, %s7040_s23  ;;  %1964 = vrot.lane.b32.xlu0 %v6572_v53, %s7040_s23  ;;  %v6792_v52 = vld [vmem:[%s11719_s0 + $0x20c] sm:$0x3]  ;;  %v6527_v53 = vld [vmem:[%s11719_s0 + $0x19a] sm:$0x3] }
 0x393   :  { %1976 = vrot.lane.b32.xlu2 %v6578_v5, %s7040_s23 }
 0x394   :  { %v2349_v55 = vpop.permute.xlu1 %2348  ;;  %v2347_v56 = vpop.permute.xlu0 %2346 }
 0x395   :  { %2518 = vst.msk [vmem:[#allocation2 + $0xb8] sm:$0x3] %vm2494_vm9, %v2349_v55  ;;  %v2405_v8 = vpop.permute.xlu2 %2404 }
 0x396   :  { %2517 = vst.msk [vmem:[#allocation2 + $0xb0] sm:$0x3] %vm2494_vm9, %v2347_v56 }
 0x397   :  { %2546 = vst.msk [vmem:[#allocation2 + $0x198] sm:$0x3] %vm2494_vm9, %v2405_v8  ;;  %v6793_v8 = vld [vmem:[%s11719_s0 + $0x210] sm:$0x3] }
 0x39a   :  { %1634 = vrot.lane.b32.xlu1 %v6536_v58, %s7039_s15  ;;  %1978 = vrot.lane.b32.xlu0 %v6579_v59, %s7040_s23  ;;  %v6591_v58 = vld [vmem:[%s11719_s0 + $0x19c] sm:$0x3]  ;;  %v6590_v59 = vld [vmem:[%s11719_s0 + $0x198] sm:$0x3] }
 0x39b   :  { %1636 = vrot.lane.b32.xlu2 %v6537_v11, %s7039_s15 }
 0x39c   :  { %v2017_v61 = vpop.permute.xlu1 %2016  ;;  %v2361_v62 = vpop.permute.xlu0 %2360 }
 0x39d   :  { %2159 = vst.msk [vmem:[#allocation2 + $0x190] sm:$0x3] %vm2108_vm8, %v2017_v61  ;;  %v3131_v15 = vpop.permute.xlu2 %3130 }
 0x39e   :  { %2524 = vst.msk [vmem:[#allocation2 + $0xe8] sm:$0x3] %vm2494_vm9, %v2361_v62 }
 0x39f   :  { %3295 = vst.msk [vmem:[#allocation2 + $0xe0] sm:$0x3] %vm3266_vm11, %v3131_v15  ;;  %v6654_v15 = vld [vmem:[%s11719_s0 + $0x1b8] sm:$0x3] }
 0x3a2   :  { %2352 = vrot.lane.b32.xlu1 %v6637_v0, %s7041_s30  ;;  %2350 = vrot.lane.b32.xlu0 %v6636_v1, %s7041_s30  ;;  %v6718_v0 = vld [vmem:[%s11719_s0 + $0x1ba] sm:$0x3]  ;;  %v6655_v1 = vld [vmem:[%s11719_s0 + $0x1bc] sm:$0x3] }
 0x3a3   :  { %2362 = vrot.lane.b32.xlu2 %v6642_v18, %s7041_s30 }
 0x3a4   :  { %v2735_v3 = vpop.permute.xlu1 %2734  ;;  %v2733_v4 = vpop.permute.xlu0 %2732 }
 0x3a5   :  { %2904 = vst.msk [vmem:[#allocation2 + $0xb8] sm:$0x3] %vm2880_vm10, %v2735_v3  ;;  %v1227_v21 = vpop.permute.xlu2 %1226 }
 0x3a6   :  { %2903 = vst.msk [vmem:[#allocation2 + $0xb0] sm:$0x3] %vm2880_vm10, %v2733_v4  ;;  %v3359_v31 = vld [vmem:[#allocation2 + $0xe0] sm:$0xff] }
 0x3a7   :  { %1378 = vst.msk [vmem:[#allocation2 + $0x148] sm:$0x3] %vm1336_vm3, %v1227_v21  ;;  %v6719_v21 = vld [vmem:[%s11719_s0 + $0x1be] sm:$0x3] }
 0x3aa   :  { %2020 = vrot.lane.b32.xlu1 %v6600_v6, %s7040_s23  ;;  %2364 = vrot.lane.b32.xlu0 %v6643_v7, %s7041_s30 }
 0x3ab   :  { %2022 = vrot.lane.b32.xlu2 %v6601_v27, %s7040_s23  ;;  %v6446_v27 = vld [vmem:[%s11719_s0 + $0x104] sm:$0x3] }
 0x3ac   :  { %v2403_v9 = vpop.permute.xlu1 %2402  ;;  %v2747_v10 = vpop.permute.xlu0 %2746 }
 0x3ad   :  { %2545 = vst.msk [vmem:[#allocation2 + $0x190] sm:$0x3] %vm2494_vm9, %v2403_v9  ;;  %v1611_v30 = vpop.permute.xlu2 %1610  ;;  %v6783_v9 = vld [vmem:[%s11719_s0 + $0x1c0] sm:$0x3] }
 0x3ae   :  { %2910 = vst.msk [vmem:[#allocation2 + $0xe8] sm:$0x3] %vm2880_vm10, %v2747_v10  ;;  %v6782_v10 = vld [vmem:[%s11719_s0 + $0x1bc] sm:$0x3] }
 0x3b2   :  { %2738 = vrot.lane.b32.xlu1 %v6701_v12, %s7042_s18  ;;  %2736 = vrot.lane.b32.xlu0 %v6700_v13, %s7042_s18 }
 0x3b3   :  { %2748 = vrot.lane.b32.xlu2 %v6706_v36, %s7042_s18 }
 0x3b4   :  { %v3121_v16 = vpop.permute.xlu1 %3120  ;;  %v3119_v17 = vpop.permute.xlu0 %3118 }
 0x3b5   :  { %3290 = vst.msk [vmem:[#allocation2 + $0xb8] sm:$0x3] %vm3266_vm11, %v3121_v16  ;;  %v3177_v39 = vpop.permute.xlu2 %3176  ;;  %v6452_v16 = vld [vmem:[%s11719_s0 + $0x144] sm:$0x3] }
 0x3b6   :  { %3289 = vst.msk [vmem:[#allocation2 + $0xb0] sm:$0x3] %vm3266_vm11, %v3119_v17  ;;  %v6447_v17 = vld [vmem:[%s11719_s0 + $0x108] sm:$0x3] }
 0x3ba   :  { %2406 = vrot.lane.b32.xlu1 %v6664_v19, %s7041_s30  ;;  %2750 = vrot.lane.b32.xlu0 %v6707_v20, %s7042_s18 }
 0x3bb   :  { %2408 = vrot.lane.b32.xlu2 %v6665_v42, %s7041_s30 }
 0x3bc   :  { %v1225_v22 = vpop.permute.xlu1 %1224  ;;  %v3354_v23 = vld [vmem:[#allocation2 + $0xb8] sm:$0xff]  ;;  %v3133_v24 = vpop.permute.xlu0 %3132 }
 0x3bd   :  { %1377 = vst.msk [vmem:[#allocation2 + $0x140] sm:$0x3] %vm1336_vm3, %v1225_v22  ;;  %v3353_v25 = vld [vmem:[#allocation2 + $0xb0] sm:$0xff]  ;;  %v2383_v45 = vpop.permute.xlu2 %2382  ;;  %v6511_v22 = vld [vmem:[%s11719_s0 + $0x10a] sm:$0x3] }
 0x3be   :  { %3296 = vst.msk [vmem:[#allocation2 + $0xe8] sm:$0x3] %vm3266_vm11, %v3133_v24  ;;  %v3406_v26 = vpack.c.bf16 %v3354_v23, %v3353_v25  ;;  %v6510_v23 = vld [vmem:[%s11719_s0 + $0x106] sm:$0x3] }
 0x3bf   :  { %1763 = vst.msk [vmem:[#allocation2 + $0x140] sm:$0x3] %vm1722_vm4, %v1611_v30 }
 0x3c0   :  { %6819 = vmatmul.msk.bf16.gmra.mxu0 %vm3434_vm12, %v3406_v26 }
 0x3c2   :  { %3124 = vrot.lane.b32.xlu1 %v6765_v28, %s7043_s26  ;;  %3122 = vrot.lane.b32.xlu0 %v6764_v29, %s7043_s26  ;;  %v6474_v28 = vld [vmem:[%s11719_s0 + $0x1ec] sm:$0x3]  ;;  %v6517_v29 = vld [vmem:[%s11719_s0 + $0x14a] sm:$0x3] }
 0x3c3   :  { %3134 = vrot.lane.b32.xlu2 %v6770_v51, %s7043_s26  ;;  %v6580_v51 = vld [vmem:[%s11719_s0 + $0x148] sm:$0x3] }
 0x3c4   :  { %v2791_v32 = vpop.permute.xlu1 %2790  ;;  %v2789_v33 = vpop.permute.xlu0 %2788 }
 0x3c5   :  { %2932 = vst.msk [vmem:[#allocation2 + $0x198] sm:$0x3] %vm2880_vm10, %v2791_v32  ;;  %v3360_v34 = vld [vmem:[#allocation2 + $0xe8] sm:$0xff]  ;;  %v2771_v54 = vpop.permute.xlu2 %2770 }
 0x3c6   :  { %2931 = vst.msk [vmem:[#allocation2 + $0x190] sm:$0x3] %vm2880_vm10, %v2789_v33  ;;  %v3409_v35 = vpack.c.bf16 %v3360_v34, %v3359_v31  ;;  %v6453_v33 = vld [vmem:[%s11719_s0 + $0x148] sm:$0x3]  ;;  %v6575_v34 = vld [vmem:[%s11719_s0 + $0x10c] sm:$0x3] }
 0x3c7   :  { %3318 = vst.msk [vmem:[#allocation2 + $0x198] sm:$0x3] %vm3266_vm11, %v3177_v39  ;;  %v6516_v39 = vld [vmem:[%s11719_s0 + $0x146] sm:$0x3] }
 0x3c8   :  { %6822 = vmatmul.msk.bf16.vlgmr.msra.gmra.mxu1 %vm3434_vm12, %v3409_v35  ;;  %v6574_v35 = vld [vmem:[%s11719_s0 + $0x108] sm:$0x3] }
 0x3ca   :  { %1228 = vrot.lane.b32.xlu1 %v6462_v37, %s7038_s25  ;;  %3136 = vrot.lane.b32.xlu0 %v6771_v38, %s7043_s26 }
 0x3cb   :  { %1230 = vrot.lane.b32.xlu2 %v6463_v57, %s7038_s25  ;;  %v6539_v57 = vld [vmem:[%s11719_s0 + $0x1f2] sm:$0x3] }
 0x3cc   :  { %v3175_v40 = vpop.permute.xlu1 %3174  ;;  %v1613_v41 = vpop.permute.xlu0 %1612 }
 0x3cd   :  { %3317 = vst.msk [vmem:[#allocation2 + $0x190] sm:$0x3] %vm3266_vm11, %v3175_v40  ;;  %v1193_v60 = vpop.permute.xlu2 %1192  ;;  %v6538_v40 = vld [vmem:[%s11719_s0 + $0x1ee] sm:$0x3] }
 0x3ce   :  { %1764 = vst.msk [vmem:[#allocation2 + $0x148] sm:$0x3] %vm1722_vm4, %v1613_v41  ;;  %v3382_v46 = vld [vmem:[#allocation2 + $0x198] sm:$0xff]  ;;  %v6581_v41 = vld [vmem:[%s11719_s0 + $0x14c] sm:$0x3] }
 0x3cf   :  { %1361 = vst.msk [vmem:[#allocation2 + $0xc0] sm:$0x3] %vm1336_vm3, %v1193_v60 }
 0x3d2   :  { %2794 = vrot.lane.b32.xlu1 %v6729_v43, %s7042_s18  ;;  %2792 = vrot.lane.b32.xlu0 %v6728_v44, %s7042_s18 }
 0x3d3   :  { %1614 = vrot.lane.b32.xlu2 %v6526_v63, %s7039_s15  ;;  %v9579_v63 = vpop.f32.mrf.mxu0 }
 0x3d4   :  { %v1999_v47 = vpop.permute.xlu1 %1998  ;;  %v3381_v48 = vld [vmem:[#allocation2 + $0x190] sm:$0xff]  ;;  %v1997_v49 = vpop.permute.xlu0 %1996 }
 0x3d5   :  { %2150 = vst.msk [vmem:[#allocation2 + $0x148] sm:$0x3] %vm2108_vm8, %v1999_v47  ;;  %v3420_v50 = vpack.c.bf16 %v3382_v46, %v3381_v48  ;;  %v1207_v2 = vpop.permute.xlu2 %1206  ;;  %v6639_v46 = vld [vmem:[%s11719_s0 + $0x12c] sm:$0x3]  ;;  %v6638_v47 = vld [vmem:[%s11719_s0 + $0x128] sm:$0x3] }
 0x3d6   :  { %2149 = vst.msk [vmem:[#allocation2 + $0x140] sm:$0x3] %vm2108_vm8, %v1997_v49 }
 0x3d7   :  { %2535 = vst.msk [vmem:[#allocation2 + $0x140] sm:$0x3] %vm2494_vm9, %v2383_v45  ;;  %6833 = vmatmul.msk.bf16.vlgmr.msra.gmra.mxu3 %vm3434_vm12, %v3420_v50  ;;  %v6475_v45 = vld [vmem:[%s11719_s0 + $0x1f0] sm:$0x3] }
 0x3d8   :  { %1368 = vst.msk [vmem:[#allocation2 + $0xf8] sm:$0x3] %vm1336_vm3, %v1207_v2  ;;  %v6709_v2 = vld [vmem:[%s11719_s0 + $0x16e] sm:$0x3] }
 0x3da   :  { %3178 = vrot.lane.b32.xlu1 %v6792_v52, %s7043_s26  ;;  %1616 = vrot.lane.b32.xlu0 %v6527_v53, %s7039_s15  ;;  %v6602_v52 = vld [vmem:[%s11719_s0 + $0x1f0] sm:$0x3]  ;;  %v6645_v53 = vld [vmem:[%s11719_s0 + $0x16c] sm:$0x3] }
 0x3db   :  { %3180 = vrot.lane.b32.xlu2 %v6793_v8, %s7043_s26 }
 0x3dc   :  { %v2769_v55 = vpop.permute.xlu1 %2768  ;;  %v2385_v56 = vpop.permute.xlu0 %2384 }
 0x3dd   :  { %2921 = vst.msk [vmem:[#allocation2 + $0x140] sm:$0x3] %vm2880_vm10, %v2769_v55  ;;  %v1591_v11 = vpop.permute.xlu2 %1590 }
 0x3de   :  { %2536 = vst.msk [vmem:[#allocation2 + $0x148] sm:$0x3] %vm2494_vm9, %v2385_v56 }
 0x3df   :  { %2922 = vst.msk [vmem:[#allocation2 + $0x148] sm:$0x3] %vm2880_vm10, %v2771_v54 }
 0x3e2   :  { %2002 = vrot.lane.b32.xlu1 %v6591_v58, %s7040_s23  ;;  %2000 = vrot.lane.b32.xlu0 %v6590_v59, %s7040_s23  ;;  %v6703_v58 = vld [vmem:[%s11719_s0 + $0x12e] sm:$0x3]  ;;  %v6702_v59 = vld [vmem:[%s11719_s0 + $0x12a] sm:$0x3] }
 0x3e3   :  { %2386 = vrot.lane.b32.xlu2 %v6654_v15, %s7041_s30 }
 0x3e4   :  { %v3157_v61 = vpop.permute.xlu1 %3156  ;;  %v3155_v62 = vpop.permute.xlu0 %3154 }
 0x3e5   :  { %3308 = vst.msk [vmem:[#allocation2 + $0x148] sm:$0x3] %vm3266_vm11, %v3157_v61  ;;  %v1251_v18 = vpop.permute.xlu2 %1250 }
 0x3e6   :  { %3307 = vst.msk [vmem:[#allocation2 + $0x140] sm:$0x3] %vm3266_vm11, %v3155_v62 }
 0x3e7   :  { %1390 = vst.msk [vmem:[#allocation2 + $0x1a8] sm:$0x3] %vm1336_vm3, %v1251_v18 }
 0x3ea   :  { %2772 = vrot.lane.b32.xlu1 %v6718_v0, %s7042_s18  ;;  %2388 = vrot.lane.b32.xlu0 %v6655_v1, %s7041_s30  ;;  %v6644_v0 = vld [vmem:[%s11719_s0 + $0x168] sm:$0x3]  ;;  %v6666_v1 = vld [vmem:[%s11719_s0 + $0x210] sm:$0x3] }
 0x3eb   :  { %2774 = vrot.lane.b32.xlu2 %v6719_v21, %s7042_s18  ;;  %v6464_v21 = vld [vmem:[%s11719_s0 + $0x19c] sm:$0x3] }
 0x3ec   :  { %v1205_v3 = vpop.permute.xlu1 %1204  ;;  %v3372_v4 = vld [vmem:[#allocation2 + $0x148] sm:$0xff]  ;;  %v1195_v5 = vpop.permute.xlu0 %1194 }
 0x3ed   :  { %1367 = vst.msk [vmem:[#allocation2 + $0xf0] sm:$0x3] %vm1336_vm3, %v1205_v3  ;;  %v3371_v6 = vld [vmem:[#allocation2 + $0x140] sm:$0xff]  ;;  %v1977_v24 = vpop.permute.xlu2 %1976 }
 0x3ee   :  { %1362 = vst.msk [vmem:[#allocation2 + $0xc8] sm:$0x3] %vm1336_vm3, %v1195_v5  ;;  %v3415_v7 = vpack.c.bf16 %v3372_v4, %v3371_v6 }
 0x3ef   :  { %1753 = vst.msk [vmem:[#allocation2 + $0xf0] sm:$0x3] %vm1722_vm4, %v1591_v11  ;;  %v6766_v11 = vld [vmem:[%s11719_s0 + $0x12c] sm:$0x3] }
 0x3f0   :  { %6828 = vmatmul.msk.bf16.gmra.mxu2 %vm3434_vm12, %v3415_v7  ;;  %2139 = vst.msk [vmem:[#allocation2 + $0xf0] sm:$0x3] %vm2108_vm8, %v1977_v24 }
 0x3f2   :  { %3160 = vrot.lane.b32.xlu1 %v6783_v9, %s7043_s26  ;;  %3158 = vrot.lane.b32.xlu0 %v6782_v10, %s7043_s26  ;;  %v6603_v9 = vld [vmem:[%s11719_s0 + $0x1f4] sm:$0x3]  ;;  %v6767_v10 = vld [vmem:[%s11719_s0 + $0x130] sm:$0x3] }
 0x3f3   :  { %1196 = vrot.lane.b32.xlu2 %v6446_v27, %s7038_s25  ;;  %v6731_v27 = vld [vmem:[%s11719_s0 + $0x216] sm:$0x3] }
 0x3f4   :  { %v1581_v12 = vpop.permute.xlu1 %1580  ;;  %v1579_v13 = vpop.permute.xlu0 %1578 }
 0x3f5   :  { %1748 = vst.msk [vmem:[#allocation2 + $0xc8] sm:$0x3] %vm1722_vm4, %v1581_v12  ;;  %v1637_v30 = vpop.permute.xlu2 %1636  ;;  %v9606_v12 = vpop.f32.mrf.mxu0 }
 0x3f6   :  { %1747 = vst.msk [vmem:[#allocation2 + $0xc0] sm:$0x3] %vm1722_vm4, %v1579_v13 }
 0x3f7   :  { %1776 = vst.msk [vmem:[#allocation2 + $0x1a8] sm:$0x3] %vm1722_vm4, %v1637_v30 }
 0x3fa   :  { %1208 = vrot.lane.b32.xlu1 %v6452_v16, %s7038_s25  ;;  %1198 = vrot.lane.b32.xlu0 %v6447_v17, %s7038_s25 }
 0x3fb   :  { %1210 = vrot.lane.b32.xlu2 %v6453_v33, %s7038_s25 }
 0x3fc   :  { %v1249_v19 = vpop.permute.xlu1 %1248  ;;  %v1593_v20 = vpop.permute.xlu0 %1592 }
 0x3fd   :  { %1389 = vst.msk [vmem:[#allocation2 + $0x1a0] sm:$0x3] %vm1336_vm3, %v1249_v19  ;;  %v2363_v36 = vpop.permute.xlu2 %2362 }
 0x3fe   :  { %1754 = vst.msk [vmem:[#allocation2 + $0xf8] sm:$0x3] %vm1722_vm4, %v1593_v20  ;;  %v6708_v20 = vld [vmem:[%s11719_s0 + $0x16a] sm:$0x3] }
 0x3ff   :  { %2525 = vst.msk [vmem:[#allocation2 + $0xf0] sm:$0x3] %vm2494_vm9, %v2363_v36  ;;  %v6794_v36 = vld [vmem:[%s11719_s0 + $0x214] sm:$0x3] }
 0x402   :  { %1584 = vrot.lane.b32.xlu1 %v6511_v22, %s7039_s15  ;;  %1582 = vrot.lane.b32.xlu0 %v6510_v23, %s7039_s15  ;;  %v6773_v22 = vld [vmem:[%s11719_s0 + $0x170] sm:$0x3] }
 0x403   :  { %1594 = vrot.lane.b32.xlu2 %v6516_v39, %s7039_s15 }
 0x404   :  { %v1967_v25 = vpop.permute.xlu1 %1966  ;;  %v1965_v26 = vpop.permute.xlu0 %1964 }
 0x405   :  { %2134 = vst.msk [vmem:[#allocation2 + $0xc8] sm:$0x3] %vm2108_vm8, %v1967_v25  ;;  %v2023_v42 = vpop.permute.xlu2 %2022 }
 0x406   :  { %2133 = vst.msk [vmem:[#allocation2 + $0xc0] sm:$0x3] %vm2108_vm8, %v1965_v26  ;;  %v6667_v26 = vld [vmem:[%s11719_s0 + $0x214] sm:$0x3] }
 0x407   :  { %2162 = vst.msk [vmem:[#allocation2 + $0x1a8] sm:$0x3] %vm2108_vm8, %v2023_v42  ;;  %v6593_v42 = vld [vmem:[%s11719_s0 + $0x1a4] sm:$0x3] }
 0x40a   :  { %1252 = vrot.lane.b32.xlu1 %v6474_v28, %s7038_s25  ;;  %1596 = vrot.lane.b32.xlu0 %v6517_v29, %s7039_s15  ;;  %v6730_v28 = vld [vmem:[%s11719_s0 + $0x212] sm:$0x3] }
 0x40b   :  { %1254 = vrot.lane.b32.xlu2 %v6475_v45, %s7038_s25 }
 0x40c   :  { %v1635_v31 = vpop.permute.xlu1 %1634  ;;  %v1979_v32 = vpop.permute.xlu0 %1978 }
 0x40d   :  { %1775 = vst.msk [vmem:[#allocation2 + $0x1a0] sm:$0x3] %vm1722_vm4, %v1635_v31  ;;  %v2749_v48 = vpop.permute.xlu2 %2748 }
 0x40e   :  { %2140 = vst.msk [vmem:[#allocation2 + $0xf8] sm:$0x3] %vm2108_vm8, %v1979_v32 }
 0x40f   :  { %2911 = vst.msk [vmem:[#allocation2 + $0xf0] sm:$0x3] %vm2880_vm10, %v2749_v48  ;;  %v6720_v48 = vld [vmem:[%s11719_s0 + $0x1c2] sm:$0x3] }
 0x412   :  { %1970 = vrot.lane.b32.xlu1 %v6575_v34, %s7040_s23  ;;  %1968 = vrot.lane.b32.xlu0 %v6574_v35, %s7040_s23  ;;  %v6772_v35 = vld [vmem:[%s11719_s0 + $0x16c] sm:$0x3] }
 0x413   :  { %1980 = vrot.lane.b32.xlu2 %v6580_v51, %s7040_s23 }
 0x414   :  { %v2353_v37 = vpop.permute.xlu1 %2352  ;;  %v2351_v38 = vpop.permute.xlu0 %2350 }
 0x415   :  { %2520 = vst.msk [vmem:[#allocation2 + $0xc8] sm:$0x3] %vm2494_vm9, %v2353_v37  ;;  %v2409_v54 = vpop.permute.xlu2 %2408  ;;  %v6529_v37 = vld [vmem:[%s11719_s0 + $0x1a2] sm:$0x3] }
 0x416   :  { %2519 = vst.msk [vmem:[#allocation2 + $0xc0] sm:$0x3] %vm2494_vm9, %v2351_v38 }
 0x417   :  { %2548 = vst.msk [vmem:[#allocation2 + $0x1a8] sm:$0x3] %vm2494_vm9, %v2409_v54 }
 0x41a   :  { %1638 = vrot.lane.b32.xlu1 %v6538_v40, %s7039_s15  ;;  %1982 = vrot.lane.b32.xlu0 %v6581_v41, %s7040_s23  ;;  %v6465_v41 = vld [vmem:[%s11719_s0 + $0x1a0] sm:$0x3] }
 0x41b   :  { %1640 = vrot.lane.b32.xlu2 %v6539_v57, %s7039_s15  ;;  %v6785_v57 = vld [vmem:[%s11719_s0 + $0x1c8] sm:$0x3] }
 0x41c   :  { %v2021_v43 = vpop.permute.xlu1 %2020  ;;  %v2365_v44 = vpop.permute.xlu0 %2364 }
 0x41d   :  { %2161 = vst.msk [vmem:[#allocation2 + $0x1a0] sm:$0x3] %vm2108_vm8, %v2021_v43  ;;  %v3135_v60 = vpop.permute.xlu2 %3134  ;;  %v6592_v43 = vld [vmem:[%s11719_s0 + $0x1a0] sm:$0x3] }
 0x41e   :  { %2526 = vst.msk [vmem:[#allocation2 + $0xf8] sm:$0x3] %vm2494_vm9, %v2365_v44 }
 0x41f   :  { %3297 = vst.msk [vmem:[#allocation2 + $0xf0] sm:$0x3] %vm3266_vm11, %v3135_v60 }
 0x422   :  { %2356 = vrot.lane.b32.xlu1 %v6639_v46, %s7041_s30  ;;  %2354 = vrot.lane.b32.xlu0 %v6638_v47, %s7041_s30  ;;  %v6528_v47 = vld [vmem:[%s11719_s0 + $0x19e] sm:$0x3] }
 0x423   :  { %2366 = vrot.lane.b32.xlu2 %v6644_v0, %s7041_s30  ;;  %v6518_v0 = vld [vmem:[%s11719_s0 + $0x14e] sm:$0x3] }
 0x424   :  { %v2739_v49 = vpop.permute.xlu1 %2738  ;;  %v2737_v50 = vpop.permute.xlu0 %2736 }
 0x425   :  { %2906 = vst.msk [vmem:[#allocation2 + $0xc8] sm:$0x3] %vm2880_vm10, %v2739_v49  ;;  %v1231_v3 = vpop.permute.xlu2 %1230  ;;  %v6657_v49 = vld [vmem:[%s11719_s0 + $0x1c4] sm:$0x3] }
 0x426   :  { %2905 = vst.msk [vmem:[#allocation2 + $0xc0] sm:$0x3] %vm2880_vm10, %v2737_v50  ;;  %v3361_v15 = vld [vmem:[#allocation2 + $0xf0] sm:$0xff] }
 0x427   :  { %1380 = vst.msk [vmem:[#allocation2 + $0x158] sm:$0x3] %vm1336_vm3, %v1231_v3 }
 0x42a   :  { %2024 = vrot.lane.b32.xlu1 %v6602_v52, %s7040_s23  ;;  %2368 = vrot.lane.b32.xlu0 %v6645_v53, %s7041_s30 }
 0x42b   :  { %2026 = vrot.lane.b32.xlu2 %v6603_v9, %s7040_s23 }
 0x42c   :  { %v2407_v55 = vpop.permute.xlu1 %2406  ;;  %v2751_v56 = vpop.permute.xlu0 %2750 }
 0x42d   :  { %2547 = vst.msk [vmem:[#allocation2 + $0x1a0] sm:$0x3] %vm2494_vm9, %v2407_v55  ;;  %v1615_v13 = vpop.permute.xlu2 %1614 }
 0x42e   :  { %2912 = vst.msk [vmem:[#allocation2 + $0xf8] sm:$0x3] %vm2880_vm10, %v2751_v56  ;;  %v6795_v56 = vld [vmem:[%s11719_s0 + $0x218] sm:$0x3] }
 0x432   :  { %2742 = vrot.lane.b32.xlu1 %v6703_v58, %s7042_s18  ;;  %2740 = vrot.lane.b32.xlu0 %v6702_v59, %s7042_s18  ;;  %v6784_v58 = vld [vmem:[%s11719_s0 + $0x1c4] sm:$0x3] }
 0x433   :  { %2752 = vrot.lane.b32.xlu2 %v6708_v20, %s7042_s18  ;;  %v6647_v20 = vld [vmem:[%s11719_s0 + $0x174] sm:$0x3] }
 0x434   :  { %v3125_v61 = vpop.permute.xlu1 %3124  ;;  %v3123_v62 = vpop.permute.xlu0 %3122 }
 0x435   :  { %3292 = vst.msk [vmem:[#allocation2 + $0xc8] sm:$0x3] %vm3266_vm11, %v3125_v61  ;;  %v3181_v23 = vpop.permute.xlu2 %3180 }
 0x436   :  { %3291 = vst.msk [vmem:[#allocation2 + $0xc0] sm:$0x3] %vm3266_vm11, %v3123_v62  ;;  %v6656_v62 = vld [vmem:[%s11719_s0 + $0x1c0] sm:$0x3] }
 0x43a   :  { %2410 = vrot.lane.b32.xlu1 %v6666_v1, %s7041_s30  ;;  %2754 = vrot.lane.b32.xlu0 %v6709_v2, %s7042_s18  ;;  %v6455_v1 = vld [vmem:[%s11719_s0 + $0x150] sm:$0x3] }
 0x43b   :  { %2412 = vrot.lane.b32.xlu2 %v6667_v26, %s7041_s30  ;;  %v6710_v26 = vld [vmem:[%s11719_s0 + $0x172] sm:$0x3] }
 0x43c   :  { %v1229_v4 = vpop.permute.xlu1 %1228  ;;  %v3356_v5 = vld [vmem:[#allocation2 + $0xc8] sm:$0xff]  ;;  %v3137_v6 = vpop.permute.xlu0 %3136 }
 0x43d   :  { %1379 = vst.msk [vmem:[#allocation2 + $0x150] sm:$0x3] %vm1336_vm3, %v1229_v4  ;;  %v3355_v7 = vld [vmem:[#allocation2 + $0xc0] sm:$0xff]  ;;  %v2387_v29 = vpop.permute.xlu2 %2386 }
 0x43e   :  { %3298 = vst.msk [vmem:[#allocation2 + $0xf8] sm:$0x3] %vm3266_vm11, %v3137_v6  ;;  %v3407_v8 = vpack.c.bf16 %v3356_v5, %v3355_v7  ;;  %v6721_v5 = vld [vmem:[%s11719_s0 + $0x1c6] sm:$0x3]  ;;  %v6477_v6 = vld [vmem:[%s11719_s0 + $0x220] sm:$0x3] }
 0x43f   :  { %1765 = vst.msk [vmem:[#allocation2 + $0x150] sm:$0x3] %vm1722_vm4, %v1615_v13  ;;  %v6476_v7 = vld [vmem:[%s11719_s0 + $0x21c] sm:$0x3]  ;;  %v6540_v13 = vld [vmem:[%s11719_s0 + $0x21e] sm:$0x3] }
 0x440   :  { %6820 = vmatmul.msk.bf16.gmra.mxu0 %vm3434_vm12, %v3407_v8 }
 0x442   :  { %3128 = vrot.lane.b32.xlu1 %v6767_v10, %s7043_s26  ;;  %3126 = vrot.lane.b32.xlu0 %v6766_v11, %s7043_s26  ;;  %v6454_v11 = vld [vmem:[%s11719_s0 + $0x14c] sm:$0x3] }
 0x443   :  { %3138 = vrot.lane.b32.xlu2 %v6772_v35, %s7043_s26 }
 0x444   :  { %v2795_v16 = vpop.permute.xlu1 %2794  ;;  %v2793_v17 = vpop.permute.xlu0 %2792 }
 0x445   :  { %2934 = vst.msk [vmem:[#allocation2 + $0x1a8] sm:$0x3] %vm2880_vm10, %v2795_v16  ;;  %v3362_v18 = vld [vmem:[#allocation2 + $0xf8] sm:$0xff]  ;;  %v2775_v38 = vpop.permute.xlu2 %2774 }
 0x446   :  { %2933 = vst.msk [vmem:[#allocation2 + $0x1a0] sm:$0x3] %vm2880_vm10, %v2793_v17  ;;  %v3410_v19 = vpack.c.bf16 %v3362_v18, %v3361_v15  ;;  %v6583_v15 = vld [vmem:[%s11719_s0 + $0x154] sm:$0x3] }
 0x447   :  { %3320 = vst.msk [vmem:[#allocation2 + $0x1a8] sm:$0x3] %vm3266_vm11, %v3181_v23 }
 0x448   :  { %6823 = vmatmul.msk.bf16.gmra.mxu1 %vm3434_vm12, %v3410_v19  ;;  %v6519_v19 = vld [vmem:[%s11719_s0 + $0x152] sm:$0x3] }
 0x44a   :  { %1232 = vrot.lane.b32.xlu1 %v6464_v21, %s7038_s25  ;;  %3140 = vrot.lane.b32.xlu0 %v6773_v22, %s7043_s26  ;;  %v6646_v21 = vld [vmem:[%s11719_s0 + $0x170] sm:$0x3] }
 0x44b   :  { %1234 = vrot.lane.b32.xlu2 %v6465_v41, %s7038_s25 }
 0x44c   :  { %v3179_v24 = vpop.permute.xlu1 %3178  ;;  %v1617_v25 = vpop.permute.xlu0 %1616 }
 0x44d   :  { %3319 = vst.msk [vmem:[#allocation2 + $0x1a0] sm:$0x3] %vm3266_vm11, %v3179_v24  ;;  %v1197_v44 = vpop.permute.xlu2 %1196 }
 0x44e   :  { %1766 = vst.msk [vmem:[#allocation2 + $0x158] sm:$0x3] %vm1722_vm4, %v1617_v25  ;;  %v3384_v30 = vld [vmem:[#allocation2 + $0x1a8] sm:$0xff]  ;;  %v6582_v25 = vld [vmem:[%s11719_s0 + $0x150] sm:$0x3] }
 0x44f   :  { %1363 = vst.msk [vmem:[#allocation2 + $0xd0] sm:$0x3] %vm1336_vm3, %v1197_v44  ;;  %v6733_v44 = vld [vmem:[%s11719_s0 + $0x246] sm:$0x3] }
 0x452   :  { %2798 = vrot.lane.b32.xlu1 %v6731_v27, %s7042_s18  ;;  %2796 = vrot.lane.b32.xlu0 %v6730_v28, %s7042_s18  ;;  %v6605_v27 = vld [vmem:[%s11719_s0 + $0x224] sm:$0x3] }
 0x453   :  { %1618 = vrot.lane.b32.xlu2 %v6528_v47, %s7039_s15 }
 0x454   :  { %v2003_v31 = vpop.permute.xlu1 %2002  ;;  %v3383_v32 = vld [vmem:[#allocation2 + $0x1a0] sm:$0xff]  ;;  %v2001_v33 = vpop.permute.xlu0 %2000 }
 0x455   :  { %2152 = vst.msk [vmem:[#allocation2 + $0x158] sm:$0x3] %vm2108_vm8, %v2003_v31  ;;  %v3421_v34 = vpack.c.bf16 %v3384_v30, %v3383_v32  ;;  %v1211_v50 = vpop.permute.xlu2 %1210  ;;  %v6541_v31 = vld [vmem:[%s11719_s0 + $0x222] sm:$0x3]  ;;  %v6669_v32 = vld [vmem:[%s11719_s0 + $0x244] sm:$0x3] }
 0x456   :  { %2151 = vst.msk [vmem:[#allocation2 + $0x150] sm:$0x3] %vm2108_vm8, %v2001_v33  ;;  %v6668_v33 = vld [vmem:[%s11719_s0 + $0x240] sm:$0x3] }
 0x457   :  { %2537 = vst.msk [vmem:[#allocation2 + $0x150] sm:$0x3] %vm2494_vm9, %v2387_v29  ;;  %6834 = vmatmul.msk.bf16.gmra.mxu3 %vm3434_vm12, %v3421_v34 }
 0x458   :  { %1370 = vst.msk [vmem:[#allocation2 + $0x108] sm:$0x3] %vm1336_vm3, %v1211_v50  ;;  %v6774_v50 = vld [vmem:[%s11719_s0 + $0x174] sm:$0x3] }
 0x45a   :  { %3182 = vrot.lane.b32.xlu1 %v6794_v36, %s7043_s26  ;;  %1620 = vrot.lane.b32.xlu0 %v6529_v37, %s7039_s15  ;;  %v6604_v37 = vld [vmem:[%s11719_s0 + $0x220] sm:$0x3] }
 0x45b   :  { %3184 = vrot.lane.b32.xlu2 %v6795_v56, %s7043_s26 }
 0x45c   :  { %v2773_v39 = vpop.permute.xlu1 %2772  ;;  %v2389_v40 = vpop.permute.xlu0 %2388 }
 0x45d   :  { %2923 = vst.msk [vmem:[#allocation2 + $0x150] sm:$0x3] %vm2880_vm10, %v2773_v39  ;;  %v1595_v59 = vpop.permute.xlu2 %1594  ;;  %v6775_v39 = vld [vmem:[%s11719_s0 + $0x178] sm:$0x3] }
 0x45e   :  { %2538 = vst.msk [vmem:[#allocation2 + $0x158] sm:$0x3] %vm2494_vm9, %v2389_v40 }
 0x45f   :  { %2924 = vst.msk [vmem:[#allocation2 + $0x158] sm:$0x3] %vm2880_vm10, %v2775_v38  ;;  %v6466_v38 = vld [vmem:[%s11719_s0 + $0x1a4] sm:$0x3] }
 0x462   :  { %2006 = vrot.lane.b32.xlu1 %v6593_v42, %s7040_s23  ;;  %2004 = vrot.lane.b32.xlu0 %v6592_v43, %s7040_s23  ;;  %v6711_v43 = vld [vmem:[%s11719_s0 + $0x176] sm:$0x3] }
 0x463   :  { %2390 = vrot.lane.b32.xlu2 %v6656_v62, %s7041_s30 }
 0x464   :  { %v3161_v45 = vpop.permute.xlu1 %3160  ;;  %v3159_v46 = vpop.permute.xlu0 %3158 }
 0x465   :  { %3310 = vst.msk [vmem:[#allocation2 + $0x158] sm:$0x3] %vm3266_vm11, %v3161_v45  ;;  %v1255_v2 = vpop.permute.xlu2 %1254  ;;  %v6732_v45 = vld [vmem:[%s11719_s0 + $0x242] sm:$0x3] }
 0x466   :  { %3309 = vst.msk [vmem:[#allocation2 + $0x150] sm:$0x3] %vm3266_vm11, %v3159_v46 }
 0x467   :  { %1392 = vst.msk [vmem:[#allocation2 + $0x1b8] sm:$0x3] %vm1336_vm3, %v1255_v2 }
 0x46a   :  { %2776 = vrot.lane.b32.xlu1 %v6720_v48, %s7042_s18  ;;  %2392 = vrot.lane.b32.xlu0 %v6657_v49, %s7041_s30  ;;  %v9827_v49 = vpop.f32.mrf.mxu0 }
 0x46b   :  { %2778 = vrot.lane.b32.xlu2 %v6721_v5, %s7042_s18 }
 0x46c   :  { %v1209_v51 = vpop.permute.xlu1 %1208  ;;  %v3374_v52 = vld [vmem:[#allocation2 + $0x158] sm:$0xff]  ;;  %v1199_v53 = vpop.permute.xlu0 %1198 }
 0x46d   :  { %1369 = vst.msk [vmem:[#allocation2 + $0x100] sm:$0x3] %vm1336_vm3, %v1209_v51  ;;  %v3373_v54 = vld [vmem:[#allocation2 + $0x150] sm:$0xff]  ;;  %v1981_v8 = vpop.permute.xlu2 %1980  ;;  %v6796_v51 = vld [vmem:[%s11719_s0 + $0x244] sm:$0x3] }
 0x46e   :  { %1364 = vst.msk [vmem:[#allocation2 + $0xd8] sm:$0x3] %vm1336_vm3, %v1199_v53  ;;  %v3416_v55 = vpack.c.bf16 %v3374_v52, %v3373_v54  ;;  %v6531_v52 = vld [vmem:[%s11719_s0 + $0x1aa] sm:$0x3] }
 0x46f   :  { %1755 = vst.msk [vmem:[#allocation2 + $0x100] sm:$0x3] %vm1722_vm4, %v1595_v59  ;;  %v6467_v59 = vld [vmem:[%s11719_s0 + $0x1a8] sm:$0x3] }
 0x470   :  { %6829 = vmatmul.msk.bf16.gmra.mxu2 %vm3434_vm12, %v3416_v55  ;;  %2141 = vst.msk [vmem:[#allocation2 + $0x100] sm:$0x3] %vm2108_vm8, %v1981_v8  ;;  %v6659_v8 = vld [vmem:[%s11719_s0 + $0x1cc] sm:$0x3] }
 0x472   :  { %3164 = vrot.lane.b32.xlu1 %v6785_v57, %s7043_s26  ;;  %3162 = vrot.lane.b32.xlu0 %v6784_v58, %s7043_s26  ;;  %v9854_v62 = vpop.f32.mrf.mxu0 }
 0x473   :  { %1212 = vrot.lane.b32.xlu2 %v6454_v11, %s7038_s25 }
 0x474   :  { %v1585_v60 = vpop.permute.xlu1 %1584  ;;  %v1583_v61 = vpop.permute.xlu0 %1582 }
 0x475   :  { %1750 = vst.msk [vmem:[#allocation2 + $0xd8] sm:$0x3] %vm1722_vm4, %v1585_v60  ;;  %v1641_v16 = vpop.permute.xlu2 %1640  ;;  %v6595_v60 = vld [vmem:[%s11719_s0 + $0x1ac] sm:$0x3] }
 0x476   :  { %1749 = vst.msk [vmem:[#allocation2 + $0xd0] sm:$0x3] %vm1722_vm4, %v1583_v61  ;;  %v6594_v61 = vld [vmem:[%s11719_s0 + $0x1a8] sm:$0x3] }
 0x477   :  { %1778 = vst.msk [vmem:[#allocation2 + $0x1b8] sm:$0x3] %vm1722_vm4, %v1641_v16  ;;  %v6786_v16 = vld [vmem:[%s11719_s0 + $0x1cc] sm:$0x3] }
 0x47a   :  { %1598 = vrot.lane.b32.xlu1 %v6518_v0, %s7039_s15  ;;  %1214 = vrot.lane.b32.xlu0 %v6455_v1, %s7038_s25 }
 0x47b   :  { %1600 = vrot.lane.b32.xlu2 %v6519_v19, %s7039_s15 }
 0x47c   :  { %v1253_v3 = vpop.permute.xlu1 %1252  ;;  %v1597_v4 = vpop.permute.xlu0 %1596 }
 0x47d   :  { %1391 = vst.msk [vmem:[#allocation2 + $0x1b0] sm:$0x3] %vm1336_vm3, %v1253_v3  ;;  %v2367_v22 = vpop.permute.xlu2 %2366 }
 0x47e   :  { %1756 = vst.msk [vmem:[#allocation2 + $0x108] sm:$0x3] %vm1722_vm4, %v1597_v4 }
 0x47f   :  { %2527 = vst.msk [vmem:[#allocation2 + $0x100] sm:$0x3] %vm2494_vm9, %v2367_v22 }
 0x482   :  { %1258 = vrot.lane.b32.xlu1 %v6477_v6, %s7038_s25  ;;  %1256 = vrot.lane.b32.xlu0 %v6476_v7, %s7038_s25  ;;  %v6530_v6 = vld [vmem:[%s11719_s0 + $0x1a6] sm:$0x3]  ;;  %v6722_v7 = vld [vmem:[%s11719_s0 + $0x1ca] sm:$0x3] }
 0x483   :  { %1984 = vrot.lane.b32.xlu2 %v6582_v25, %s7040_s23  ;;  %v6479_v25 = vld [vmem:[%s11719_s0 + $0x228] sm:$0x3] }
 0x484   :  { %v1971_v9 = vpop.permute.xlu1 %1970  ;;  %v1969_v10 = vpop.permute.xlu0 %1968 }
 0x485   :  { %2136 = vst.msk [vmem:[#allocation2 + $0xd8] sm:$0x3] %vm2108_vm8, %v1971_v9  ;;  %v2027_v28 = vpop.permute.xlu2 %2026 }
 0x486   :  { %2135 = vst.msk [vmem:[#allocation2 + $0xd0] sm:$0x3] %vm2108_vm8, %v1969_v10 }
 0x487   :  { %2164 = vst.msk [vmem:[#allocation2 + $0x1b8] sm:$0x3] %vm2108_vm8, %v2027_v28 }
 0x48a   :  { %1642 = vrot.lane.b32.xlu1 %v6540_v13, %s7039_s15  ;;  %1986 = vrot.lane.b32.xlu0 %v6583_v15, %s7040_s23  ;;  %v6797_v13 = vld [vmem:[%s11719_s0 + $0x248] sm:$0x3]  ;;  %v6787_v15 = vld [vmem:[%s11719_s0 + $0x1d0] sm:$0x3] }
 0x48b   :  { %1644 = vrot.lane.b32.xlu2 %v6541_v31, %s7039_s15  ;;  %v6606_v31 = vld [vmem:[%s11719_s0 + $0x228] sm:$0x3] }
 0x48c   :  { %v1639_v17 = vpop.permute.xlu1 %1638  ;;  %v1983_v18 = vpop.permute.xlu0 %1982 }
 0x48d   :  { %1777 = vst.msk [vmem:[#allocation2 + $0x1b0] sm:$0x3] %vm1722_vm4, %v1639_v17  ;;  %v2753_v34 = vpop.permute.xlu2 %2752 }
 0x48e   :  { %2142 = vst.msk [vmem:[#allocation2 + $0x108] sm:$0x3] %vm2108_vm8, %v1983_v18 }
 0x48f   :  { %2913 = vst.msk [vmem:[#allocation2 + $0x100] sm:$0x3] %vm2880_vm10, %v2753_v34 }
 0x492   :  { %2372 = vrot.lane.b32.xlu1 %v6647_v20, %s7041_s30  ;;  %2370 = vrot.lane.b32.xlu0 %v6646_v21, %s7041_s30 }
 0x493   :  { %2028 = vrot.lane.b32.xlu2 %v6604_v37, %s7040_s23  ;;  %v6671_v37 = vld [vmem:[%s11719_s0 + $0x24c] sm:$0x3] }
 0x494   :  { %v2357_v23 = vpop.permute.xlu1 %2356  ;;  %v2355_v24 = vpop.permute.xlu0 %2354 }
 0x495   :  { %2522 = vst.msk [vmem:[#allocation2 + $0xd8] sm:$0x3] %vm2494_vm9, %v2357_v23  ;;  %v2413_v40 = vpop.permute.xlu2 %2412  ;;  %v6658_v23 = vld [vmem:[%s11719_s0 + $0x1c8] sm:$0x3] }
 0x496   :  { %2521 = vst.msk [vmem:[#allocation2 + $0xd0] sm:$0x3] %vm2494_vm9, %v2355_v24  ;;  %v6542_v24 = vld [vmem:[%s11719_s0 + $0x226] sm:$0x3] }
 0x497   :  { %2550 = vst.msk [vmem:[#allocation2 + $0x1b8] sm:$0x3] %vm2494_vm9, %v2413_v40 }
 0x49a   :  { %2756 = vrot.lane.b32.xlu1 %v6710_v26, %s7042_s18  ;;  %2030 = vrot.lane.b32.xlu0 %v6605_v27, %s7040_s23 }
 0x49b   :  { %2758 = vrot.lane.b32.xlu2 %v6711_v43, %s7042_s18 }
 0x49c   :  { %v2025_v29 = vpop.permute.xlu1 %2024  ;;  %v2369_v30 = vpop.permute.xlu0 %2368 }
 0x49d   :  { %2163 = vst.msk [vmem:[#allocation2 + $0x1b0] sm:$0x3] %vm2108_vm8, %v2025_v29  ;;  %v3139_v46 = vpop.permute.xlu2 %3138  ;;  %v6723_v29 = vld [vmem:[%s11719_s0 + $0x1ce] sm:$0x3] }
 0x49e   :  { %2528 = vst.msk [vmem:[#allocation2 + $0x108] sm:$0x3] %vm2494_vm9, %v2369_v30  ;;  %v6607_v30 = vld [vmem:[%s11719_s0 + $0x22c] sm:$0x3] }
 0x49f   :  { %3299 = vst.msk [vmem:[#allocation2 + $0x100] sm:$0x3] %vm3266_vm11, %v3139_v46  ;;  %v6734_v46 = vld [vmem:[%s11719_s0 + $0x24a] sm:$0x3] }
 0x4a2   :  { %2416 = vrot.lane.b32.xlu1 %v6669_v32, %s7041_s30  ;;  %2414 = vrot.lane.b32.xlu0 %v6668_v33, %s7041_s30 }
 0x4a3   :  { %3142 = vrot.lane.b32.xlu2 %v6774_v50, %s7043_s26 }
 0x4a4   :  { %v2743_v35 = vpop.permute.xlu1 %2742  ;;  %v2741_v36 = vpop.permute.xlu0 %2740 }
 0x4a5   :  { %2908 = vst.msk [vmem:[#allocation2 + $0xd8] sm:$0x3] %vm2880_vm10, %v2743_v35  ;;  %v1235_v53 = vpop.permute.xlu2 %1234  ;;  %v6478_v35 = vld [vmem:[%s11719_s0 + $0x224] sm:$0x3] }
 0x4a6   :  { %2907 = vst.msk [vmem:[#allocation2 + $0xd0] sm:$0x3] %vm2880_vm10, %v2741_v36  ;;  %v3363_v1 = vld [vmem:[#allocation2 + $0x100] sm:$0xff]  ;;  %v6468_v36 = vld [vmem:[%s11719_s0 + $0x1d4] sm:$0x3] }
 0x4a7   :  { %1382 = vst.msk [vmem:[#allocation2 + $0x168] sm:$0x3] %vm1336_vm3, %v1235_v53  ;;  %v6533_v53 = vld [vmem:[%s11719_s0 + $0x1da] sm:$0x3] }
 0x4aa   :  { %1236 = vrot.lane.b32.xlu1 %v6466_v38, %s7038_s25  ;;  %3144 = vrot.lane.b32.xlu0 %v6775_v39, %s7043_s26 }
 0x4ab   :  { %1238 = vrot.lane.b32.xlu2 %v6467_v59, %s7038_s25  ;;  %v6596_v59 = vld [vmem:[%s11719_s0 + $0x1d8] sm:$0x3] }
 0x4ac   :  { %v2411_v41 = vpop.permute.xlu1 %2410  ;;  %v2755_v42 = vpop.permute.xlu0 %2754 }
 0x4ad   :  { %2549 = vst.msk [vmem:[#allocation2 + $0x1b0] sm:$0x3] %vm2494_vm9, %v2411_v41  ;;  %v1619_v0 = vpop.permute.xlu2 %1618 }
 0x4ae   :  { %2914 = vst.msk [vmem:[#allocation2 + $0x108] sm:$0x3] %vm2880_vm10, %v2755_v42 }
 0x4b2   :  { %2802 = vrot.lane.b32.xlu1 %v6733_v44, %s7042_s18  ;;  %2800 = vrot.lane.b32.xlu0 %v6732_v45, %s7042_s18  ;;  %v6543_v44 = vld [vmem:[%s11719_s0 + $0x22a] sm:$0x3]  ;;  %v6735_v45 = vld [vmem:[%s11719_s0 + $0x24e] sm:$0x3] }
 0x4b3   :  { %1622 = vrot.lane.b32.xlu2 %v6530_v6, %s7039_s15 }
 0x4b4   :  { %v3129_v47 = vpop.permute.xlu1 %3128  ;;  %v3127_v48 = vpop.permute.xlu0 %3126 }
 0x4b5   :  { %3294 = vst.msk [vmem:[#allocation2 + $0xd8] sm:$0x3] %vm3266_vm11, %v3129_v47  ;;  %v3185_v9 = vpop.permute.xlu2 %3184 }
 0x4b6   :  { %3293 = vst.msk [vmem:[#allocation2 + $0xd0] sm:$0x3] %vm3266_vm11, %v3127_v48 }
 0x4ba   :  { %3186 = vrot.lane.b32.xlu1 %v6796_v51, %s7043_s26  ;;  %1624 = vrot.lane.b32.xlu0 %v6531_v52, %s7039_s15  ;;  %v6670_v51 = vld [vmem:[%s11719_s0 + $0x248] sm:$0x3]  ;;  %v6798_v52 = vld [vmem:[%s11719_s0 + $0x24c] sm:$0x3] }
 0x4bb   :  { %3188 = vrot.lane.b32.xlu2 %v6797_v13, %s7043_s26 }
 0x4bc   :  { %v1233_v54 = vpop.permute.xlu1 %1232  ;;  %v3358_v55 = vld [vmem:[#allocation2 + $0xd8] sm:$0xff]  ;;  %v3141_v56 = vpop.permute.xlu0 %3140 }
 0x4bd   :  { %1381 = vst.msk [vmem:[#allocation2 + $0x160] sm:$0x3] %vm1336_vm3, %v1233_v54  ;;  %v3357_v57 = vld [vmem:[#allocation2 + $0xd0] sm:$0xff]  ;;  %v2391_v17 = vpop.permute.xlu2 %2390 }
 0x4be   :  { %3300 = vst.msk [vmem:[#allocation2 + $0x108] sm:$0x3] %vm3266_vm11, %v3141_v56  ;;  %v3408_v58 = vpack.c.bf16 %v3358_v55, %v3357_v57  ;;  %v6469_v57 = vld [vmem:[%s11719_s0 + $0x1d8] sm:$0x3] }
 0x4bf   :  { %1767 = vst.msk [vmem:[#allocation2 + $0x160] sm:$0x3] %vm1722_vm4, %v1619_v0 }
 0x4c0   :  { %6821 = vmatmul.msk.bf16.gmra.mxu0 %vm3434_vm12, %v3408_v58  ;;  %v6597_v58 = vld [vmem:[%s11719_s0 + $0x1dc] sm:$0x3] }
 0x4c2   :  { %2010 = vrot.lane.b32.xlu1 %v6595_v60, %s7040_s23  ;;  %2008 = vrot.lane.b32.xlu0 %v6594_v61, %s7040_s23 }
 0x4c3   :  { %2394 = vrot.lane.b32.xlu2 %v6658_v23, %s7041_s30 }
 0x4c4   :  { %v2799_v2 = vpop.permute.xlu1 %2798  ;;  %v2797_v3 = vpop.permute.xlu0 %2796 }
 0x4c5   :  { %2936 = vst.msk [vmem:[#allocation2 + $0x1b8] sm:$0x3] %vm2880_vm10, %v2799_v2  ;;  %v3364_v4 = vld [vmem:[#allocation2 + $0x108] sm:$0xff]  ;;  %v2779_v26 = vpop.permute.xlu2 %2778  ;;  %v6724_v2 = vld [vmem:[%s11719_s0 + $0x1fa] sm:$0x3] }
 0x4c6   :  { %2935 = vst.msk [vmem:[#allocation2 + $0x1b0] sm:$0x3] %vm2880_vm10, %v2797_v3  ;;  %v3411_v5 = vpack.c.bf16 %v3364_v4, %v3363_v1  ;;  %v6532_v1 = vld [vmem:[%s11719_s0 + $0x1d6] sm:$0x3]  ;;  %v6661_v3 = vld [vmem:[%s11719_s0 + $0x1fc] sm:$0x3]  ;;  %v9995_v4 = vpop.f32.mrf.mxu0 }
 0x4c7   :  { %3322 = vst.msk [vmem:[#allocation2 + $0x1b8] sm:$0x3] %vm3266_vm11, %v3185_v9  ;;  %v6789_v9 = vld [vmem:[%s11719_s0 + $0x200] sm:$0x3] }
 0x4c8   :  { %6824 = vmatmul.msk.bf16.gmra.mxu1 %vm3434_vm12, %v3411_v5 }
 0x4ca   :  { %2780 = vrot.lane.b32.xlu1 %v6722_v7, %s7042_s18  ;;  %2396 = vrot.lane.b32.xlu0 %v6659_v8, %s7041_s30  ;;  %v6799_v8 = vld [vmem:[%s11719_s0 + $0x250] sm:$0x3] }
 0x4cb   :  { %2782 = vrot.lane.b32.xlu2 %v6723_v29, %s7042_s18 }
 0x4cc   :  { %v3183_v10 = vpop.permute.xlu1 %3182  ;;  %v1621_v11 = vpop.permute.xlu0 %1620 }
 0x4cd   :  { %3321 = vst.msk [vmem:[#allocation2 + $0x1b0] sm:$0x3] %vm3266_vm11, %v3183_v10  ;;  %v1213_v32 = vpop.permute.xlu2 %1212  ;;  %v6788_v10 = vld [vmem:[%s11719_s0 + $0x1fc] sm:$0x3] }
 0x4ce   :  { %1768 = vst.msk [vmem:[#allocation2 + $0x168] sm:$0x3] %vm1722_vm4, %v1621_v11  ;;  %v3386_v18 = vld [vmem:[#allocation2 + $0x1b8] sm:$0xff]  ;;  %v10013_v11 = vpop.f32.mrf.mxu0 }
 0x4cf   :  { %1371 = vst.msk [vmem:[#allocation2 + $0x110] sm:$0x3] %vm1336_vm3, %v1213_v32 }
 0x4d2   :  { %3168 = vrot.lane.b32.xlu1 %v6787_v15, %s7043_s26  ;;  %3166 = vrot.lane.b32.xlu0 %v6786_v16, %s7043_s26 }
 0x4d3   :  { %1260 = vrot.lane.b32.xlu2 %v6478_v35, %s7038_s25  ;;  %v6736_v35 = vld [vmem:[%s11719_s0 + $0x252] sm:$0x3] }
 0x4d4   :  { %v2007_v19 = vpop.permute.xlu1 %2006  ;;  %v3385_v20 = vld [vmem:[#allocation2 + $0x1b0] sm:$0xff]  ;;  %v2005_v21 = vpop.permute.xlu0 %2004 }
 0x4d5   :  { %2154 = vst.msk [vmem:[#allocation2 + $0x168] sm:$0x3] %vm2108_vm8, %v2007_v19  ;;  %v3422_v22 = vpack.c.bf16 %v3386_v18, %v3385_v20  ;;  %v1601_v38 = vpop.permute.xlu2 %1600  ;;  %v6544_v18 = vld [vmem:[%s11719_s0 + $0x22e] sm:$0x3]  ;;  %v6481_v19 = vld [vmem:[%s11719_s0 + $0x230] sm:$0x3] }
 0x4d6   :  { %2153 = vst.msk [vmem:[#allocation2 + $0x160] sm:$0x3] %vm2108_vm8, %v2005_v21  ;;  %v10030_v20 = vpop.f32.mrf.mxu0 }
 0x4d7   :  { %2539 = vst.msk [vmem:[#allocation2 + $0x160] sm:$0x3] %vm2494_vm9, %v2391_v17  ;;  %6835 = vmatmul.msk.bf16.gmra.mxu3 %vm3434_vm12, %v3422_v22  ;;  %v6660_v17 = vld [vmem:[%s11719_s0 + $0x1f8] sm:$0x3] }
 0x4da   :  { %1646 = vrot.lane.b32.xlu1 %v6542_v24, %s7039_s15  ;;  %1262 = vrot.lane.b32.xlu0 %v6479_v25, %s7038_s25  ;;  %v6725_v24 = vld [vmem:[%s11719_s0 + $0x1fe] sm:$0x3]  ;;  %v6609_v25 = vld [vmem:[%s11719_s0 + $0x234] sm:$0x3] }
 0x4db   :  { %1648 = vrot.lane.b32.xlu2 %v6543_v44, %s7039_s15 }
 0x4dc   :  { %v2777_v27 = vpop.permute.xlu1 %2776  ;;  %v2393_v28 = vpop.permute.xlu0 %2392 }
 0x4dd   :  { %2925 = vst.msk [vmem:[#allocation2 + $0x160] sm:$0x3] %vm2880_vm10, %v2777_v27  ;;  %v1985_v47 = vpop.permute.xlu2 %1984 }
 0x4de   :  { %2540 = vst.msk [vmem:[#allocation2 + $0x168] sm:$0x3] %vm2494_vm9, %v2393_v28  ;;  %v10049_v29 = vpop.f32.mrf.mxu0 }
 0x4df   :  { %2926 = vst.msk [vmem:[#allocation2 + $0x168] sm:$0x3] %vm2880_vm10, %v2779_v26  ;;  %v6608_v26 = vld [vmem:[%s11719_s0 + $0x230] sm:$0x3] }
 0x4e2   :  { %2034 = vrot.lane.b32.xlu1 %v6607_v30, %s7040_s23  ;;  %2032 = vrot.lane.b32.xlu0 %v6606_v31, %s7040_s23 }
 0x4e3   :  { %2418 = vrot.lane.b32.xlu2 %v6670_v51, %s7041_s30 }
 0x4e4   :  { %v3165_v33 = vpop.permute.xlu1 %3164  ;;  %v3163_v34 = vpop.permute.xlu0 %3162 }
 0x4e5   :  { %3312 = vst.msk [vmem:[#allocation2 + $0x168] sm:$0x3] %vm3266_vm11, %v3165_v33  ;;  %v1645_v54 = vpop.permute.xlu2 %1644 }
 0x4e6   :  { %3311 = vst.msk [vmem:[#allocation2 + $0x160] sm:$0x3] %vm3266_vm11, %v3163_v34  ;;  %v6480_v34 = vld [vmem:[%s11719_s0 + $0x22c] sm:$0x3] }
 0x4ea   :  { %1240 = vrot.lane.b32.xlu1 %v6468_v36, %s7038_s25  ;;  %2420 = vrot.lane.b32.xlu0 %v6671_v37, %s7041_s30  ;;  %v6673_v36 = vld [vmem:[%s11719_s0 + $0x254] sm:$0x3] }
 0x4eb   :  { %1242 = vrot.lane.b32.xlu2 %v6469_v57, %s7038_s25 }
 0x4ec   :  { %v1599_v39 = vpop.permute.xlu1 %1598  ;;  %v3376_v40 = vld [vmem:[#allocation2 + $0x168] sm:$0xff]  ;;  %v1215_v41 = vpop.permute.xlu0 %1214 }
 0x4ed   :  { %1757 = vst.msk [vmem:[#allocation2 + $0x110] sm:$0x3] %vm1722_vm4, %v1599_v39  ;;  %v3375_v42 = vld [vmem:[#allocation2 + $0x160] sm:$0xff]  ;;  %v2029_v60 = vpop.permute.xlu2 %2028 }
 0x4ee   :  { %1372 = vst.msk [vmem:[#allocation2 + $0x118] sm:$0x3] %vm1336_vm3, %v1215_v41  ;;  %v3417_v43 = vpack.c.bf16 %v3376_v40, %v3375_v42  ;;  %v6545_v41 = vld [vmem:[%s11719_s0 + $0x232] sm:$0x3]  ;;  %v6801_v42 = vld [vmem:[%s11719_s0 + $0x258] sm:$0x3] }
 0x4ef   :  { %1758 = vst.msk [vmem:[#allocation2 + $0x118] sm:$0x3] %vm1722_vm4, %v1601_v38  ;;  %v10067_v38 = vpop.f32.mrf.mxu0 }
 0x4f0   :  { %6830 = vmatmul.msk.bf16.gmra.mxu2 %vm3434_vm12, %v3417_v43  ;;  %2143 = vst.msk [vmem:[#allocation2 + $0x110] sm:$0x3] %vm2108_vm8, %v1985_v47  ;;  %v6800_v43 = vld [vmem:[%s11719_s0 + $0x254] sm:$0x3] }
 0x4f2   :  { %2806 = vrot.lane.b32.xlu1 %v6735_v45, %s7042_s18  ;;  %2804 = vrot.lane.b32.xlu0 %v6734_v46, %s7042_s18 }
 0x4f3   :  { %1626 = vrot.lane.b32.xlu2 %v6532_v1, %s7039_s15 }
 0x4f4   :  { %v1259_v48 = vpop.permute.xlu1 %1258  ;;  %v1257_v50 = vpop.permute.xlu0 %1256 }
 0x4f5   :  { %1394 = vst.msk [vmem:[#allocation2 + $0x1c8] sm:$0x3] %vm1336_vm3, %v1259_v48  ;;  %v2759_v5 = vpop.permute.xlu2 %2758 }
 0x4f6   :  { %1393 = vst.msk [vmem:[#allocation2 + $0x1c0] sm:$0x3] %vm1336_vm3, %v1257_v50 }
 0x4f7   :  { %1780 = vst.msk [vmem:[#allocation2 + $0x1c8] sm:$0x3] %vm1722_vm4, %v1645_v54  ;;  %v10085_v51 = vpop.f32.mrf.mxu0  ;;  %v6483_v54 = vld [vmem:[%s11719_s0 + $0x238] sm:$0x3] }
 0x4fa   :  { %3190 = vrot.lane.b32.xlu1 %v6798_v52, %s7043_s26  ;;  %1628 = vrot.lane.b32.xlu0 %v6533_v53, %s7039_s15  ;;  %v6672_v52 = vld [vmem:[%s11719_s0 + $0x250] sm:$0x3]  ;;  %v6546_v53 = vld [vmem:[%s11719_s0 + $0x236] sm:$0x3] }
 0x4fb   :  { %3192 = vrot.lane.b32.xlu2 %v6799_v8, %s7043_s26 }
 0x4fc   :  { %v1643_v55 = vpop.permute.xlu1 %1642  ;;  %v1987_v56 = vpop.permute.xlu0 %1986 }
 0x4fd   :  { %1779 = vst.msk [vmem:[#allocation2 + $0x1c0] sm:$0x3] %vm1722_vm4, %v1643_v55  ;;  %v3143_v13 = vpop.permute.xlu2 %3142 }
 0x4fe   :  { %2144 = vst.msk [vmem:[#allocation2 + $0x118] sm:$0x3] %vm2108_vm8, %v1987_v56 }
 0x4ff   :  { %2165 = vst.msk [vmem:[#allocation2 + $0x1c0] sm:$0x3] %vm2108_vm8, %v2029_v60  ;;  %v6611_v60 = vld [vmem:[%s11719_s0 + $0x23c] sm:$0x3] }
 0x502   :  { %2014 = vrot.lane.b32.xlu1 %v6597_v58, %s7040_s23  ;;  %2012 = vrot.lane.b32.xlu0 %v6596_v59, %s7040_s23  ;;  %v10103_v58 = vpop.f32.mrf.mxu0  ;;  %v6737_v59 = vld [vmem:[%s11719_s0 + $0x256] sm:$0x3] }
 0x503   :  { %2398 = vrot.lane.b32.xlu2 %v6660_v17, %s7041_s30  ;;  %v6547_v17 = vld [vmem:[%s11719_s0 + $0x23a] sm:$0x3] }
 0x504   :  { %v2373_v61 = vpop.permute.xlu1 %2372  ;;  %v2371_v0 = vpop.permute.xlu0 %2370 }
 0x505   :  { %2530 = vst.msk [vmem:[#allocation2 + $0x118] sm:$0x3] %vm2494_vm9, %v2373_v61  ;;  %v1239_v21 = vpop.permute.xlu2 %1238  ;;  %v6610_v61 = vld [vmem:[%s11719_s0 + $0x238] sm:$0x3] }
 0x506   :  { %2529 = vst.msk [vmem:[#allocation2 + $0x110] sm:$0x3] %vm2494_vm9, %v2371_v0 }
 0x507   :  { %2916 = vst.msk [vmem:[#allocation2 + $0x118] sm:$0x3] %vm2880_vm10, %v2759_v5  ;;  %v6738_v5 = vld [vmem:[%s11719_s0 + $0x25a] sm:$0x3] }
 0x508   :  { %1384 = vst.msk [vmem:[#allocation2 + $0x178] sm:$0x3] %vm1336_vm3, %v1239_v21 }
 0x50a   :  { %2784 = vrot.lane.b32.xlu1 %v6724_v2, %s7042_s18  ;;  %2400 = vrot.lane.b32.xlu0 %v6661_v3, %s7041_s30  ;;  %v6482_v3 = vld [vmem:[%s11719_s0 + $0x234] sm:$0x3] }
 0x50b   :  { %2786 = vrot.lane.b32.xlu2 %v6725_v24, %s7042_s18 }
 0x50c   :  { %v2757_v6 = vpop.permute.xlu1 %2756  ;;  %v2031_v7 = vpop.permute.xlu0 %2030 }
 0x50d   :  { %2915 = vst.msk [vmem:[#allocation2 + $0x110] sm:$0x3] %vm2880_vm10, %v2757_v6  ;;  %v1623_v27 = vpop.permute.xlu2 %1622  ;;  %v6675_v6 = vld [vmem:[%s11719_s0 + $0x25c] sm:$0x3] }
 0x50e   :  { %2166 = vst.msk [vmem:[#allocation2 + $0x1c8] sm:$0x3] %vm2108_vm8, %v2031_v7  ;;  %v10131_v7 = vpop.f32.mrf.mxu0 }
 0x50f   :  { %3301 = vst.msk [vmem:[#allocation2 + $0x110] sm:$0x3] %vm3266_vm11, %v3143_v13 }
 0x512   :  { %3172 = vrot.lane.b32.xlu1 %v6789_v9, %s7043_s26  ;;  %3170 = vrot.lane.b32.xlu0 %v6788_v10, %s7043_s26 }
 0x513   :  { %1264 = vrot.lane.b32.xlu2 %v6480_v34, %s7038_s25 }
 0x514   :  { %v2417_v15 = vpop.permute.xlu1 %2416  ;;  %v2415_v16 = vpop.permute.xlu0 %2414 }
 0x515   :  { %2552 = vst.msk [vmem:[#allocation2 + $0x1c8] sm:$0x3] %vm2494_vm9, %v2417_v15  ;;  %v3189_v37 = vpop.permute.xlu2 %3188 }
 0x516   :  { %2551 = vst.msk [vmem:[#allocation2 + $0x1c0] sm:$0x3] %vm2494_vm9, %v2415_v16  ;;  %v3365_v28 = vld [vmem:[#allocation2 + $0x110] sm:$0xff]  ;;  %v10148_v21 = vpop.f32.mrf.mxu0 }
 0x517   :  { %11761 = vst [vmem:[#allocation10_spill] sm:$0xff] %v10148_v21 }
 0x51a   :  { %1650 = vrot.lane.b32.xlu1 %v6544_v18, %s7039_s15  ;;  %1266 = vrot.lane.b32.xlu0 %v6481_v19, %s7038_s25  ;;  %v6803_v18 = vld [vmem:[%s11719_s0 + $0x260] sm:$0x3]  ;;  %v6802_v19 = vld [vmem:[%s11719_s0 + $0x25c] sm:$0x3] }
 0x51b   :  { %1652 = vrot.lane.b32.xlu2 %v6545_v41, %s7039_s15 }
 0x51c   :  { %v1237_v22 = vpop.permute.xlu1 %1236  ;;  %v3145_v23 = vpop.permute.xlu0 %3144 }
 0x51d   :  { %1383 = vst.msk [vmem:[#allocation2 + $0x170] sm:$0x3] %vm1336_vm3, %v1237_v22  ;;  %v2395_v44 = vpop.permute.xlu2 %2394 }
 0x51e   :  { %3302 = vst.msk [vmem:[#allocation2 + $0x118] sm:$0x3] %vm3266_vm11, %v3145_v23 }
 0x51f   :  { %1769 = vst.msk [vmem:[#allocation2 + $0x170] sm:$0x3] %vm1722_vm4, %v1623_v27 }
 0x522   :  { %2038 = vrot.lane.b32.xlu1 %v6609_v25, %s7040_s23  ;;  %2036 = vrot.lane.b32.xlu0 %v6608_v26, %s7040_s23  ;;  %v6674_v25 = vld [vmem:[%s11719_s0 + $0x258] sm:$0x3]  ;;  %v10161_v26 = vpop.f32.mrf.mxu0 }
 0x523   :  { %2422 = vrot.lane.b32.xlu2 %v6672_v52, %s7041_s30  ;;  %11762 = vst [vmem:[#allocation11_spill] sm:$0xff] %v10161_v26 }
 0x524   :  { %v2803_v30 = vpop.permute.xlu1 %2802  ;;  %v2801_v31 = vpop.permute.xlu0 %2800 }
 0x525   :  { %2938 = vst.msk [vmem:[#allocation2 + $0x1c8] sm:$0x3] %vm2880_vm10, %v2803_v30  ;;  %v3366_v32 = vld [vmem:[#allocation2 + $0x118] sm:$0xff]  ;;  %v2783_v55 = vpop.permute.xlu2 %2782 }
 0x526   :  { %2937 = vst.msk [vmem:[#allocation2 + $0x1c0] sm:$0x3] %vm2880_vm10, %v2801_v31  ;;  %v3412_v33 = vpack.c.bf16 %v3366_v32, %v3365_v28  ;;  %v6739_v31 = vld [vmem:[%s11719_s0 + $0x25e] sm:$0x3]  ;;  %s7047_s0 = smov 16  }
 0x527   :  { %3324 = vst.msk [vmem:[#allocation2 + $0x1c8] sm:$0x3] %vm3266_vm11, %v3189_v37 }
 0x528   :  { %6825 = vmatmul.msk.bf16.gmra.mxu1 %vm3434_vm12, %v3412_v33 }
 0x52a   :  { %2808 = vrot.lane.b32.xlu1 %v6736_v35, %s7042_s18  ;;  %2424 = vrot.lane.b32.xlu0 %v6673_v36, %s7041_s30  ;;  %v10170_v32 = vpop.f32.mrf.mxu0 }
 0x52b   :  { %2810 = vrot.lane.b32.xlu2 %v6737_v59, %s7042_s18  ;;  %11763 = vst [vmem:[#allocation12_spill] sm:$0xff] %v10170_v32 }
 0x52c   :  { %v3187_v39 = vpop.permute.xlu1 %3186  ;;  %v1625_v40 = vpop.permute.xlu0 %1624 }
 0x52d   :  { %3323 = vst.msk [vmem:[#allocation2 + $0x1c0] sm:$0x3] %vm3266_vm11, %v3187_v39  ;;  %v1261_v0 = vpop.permute.xlu2 %1260 }
 0x52e   :  { %1770 = vst.msk [vmem:[#allocation2 + $0x178] sm:$0x3] %vm1722_vm4, %v1625_v40  ;;  %v3388_v45 = vld [vmem:[#allocation2 + $0x1c8] sm:$0xff] }
 0x52f   :  { %1395 = vst.msk [vmem:[#allocation2 + $0x1d0] sm:$0x3] %vm1336_vm3, %v1261_v0 }
 0x532   :  { %3196 = vrot.lane.b32.xlu1 %v6801_v42, %s7043_s26  ;;  %3194 = vrot.lane.b32.xlu0 %v6800_v43, %s7043_s26  ;;  %v10175_v37 = vpop.f32.mrf.mxu0 }
 0x533   :  { %1268 = vrot.lane.b32.xlu2 %v6482_v3, %s7038_s25  ;;  %11764 = vst [vmem:[#allocation13_spill] sm:$0xff] %v10175_v37 }
 0x534   :  { %v2011_v46 = vpop.permute.xlu1 %2010  ;;  %v3387_v47 = vld [vmem:[#allocation2 + $0x1c0] sm:$0xff]  ;;  %v2009_v48 = vpop.permute.xlu0 %2008 }
 0x535   :  { %2156 = vst.msk [vmem:[#allocation2 + $0x178] sm:$0x3] %vm2108_vm8, %v2011_v46  ;;  %v3423_v50 = vpack.c.bf16 %v3388_v45, %v3387_v47  ;;  %v1649_v8 = vpop.permute.xlu2 %1648 }
 0x536   :  { %2155 = vst.msk [vmem:[#allocation2 + $0x170] sm:$0x3] %vm2108_vm8, %v2009_v48 }
 0x537   :  { %2541 = vst.msk [vmem:[#allocation2 + $0x170] sm:$0x3] %vm2494_vm9, %v2395_v44  ;;  %6836 = vmatmul.msk.bf16.gmra.mxu3 %vm3434_vm12, %v3423_v50 }
 0x53a   :  { %1654 = vrot.lane.b32.xlu1 %v6546_v53, %s7039_s15  ;;  %1270 = vrot.lane.b32.xlu0 %v6483_v54, %s7038_s25  ;;  %v10180_v43 = vpop.f32.mrf.mxu0 }
 0x53b   :  { %1656 = vrot.lane.b32.xlu2 %v6547_v17, %s7039_s15  ;;  %11765 = vst [vmem:[#allocation14_spill] sm:$0xff] %v10180_v43 }
 0x53c   :  { %v2781_v56 = vpop.permute.xlu1 %2780  ;;  %v2397_v57 = vpop.permute.xlu0 %2396 }
 0x53d   :  { %2927 = vst.msk [vmem:[#allocation2 + $0x170] sm:$0x3] %vm2880_vm10, %v2781_v56  ;;  %v2419_v22 = vpop.permute.xlu2 %2418 }
 0x53e   :  { %2542 = vst.msk [vmem:[#allocation2 + $0x178] sm:$0x3] %vm2494_vm9, %v2397_v57 }
 0x53f   :  { %2928 = vst.msk [vmem:[#allocation2 + $0x178] sm:$0x3] %vm2880_vm10, %v2783_v55 }
 0x542   :  { %2042 = vrot.lane.b32.xlu1 %v6611_v60, %s7040_s23  ;;  %2040 = vrot.lane.b32.xlu0 %v6610_v61, %s7040_s23  ;;  %v10187_v53 = vpop.f32.mrf.mxu0  ;;  %s7052_s23 = smov 56  }
 0x543   :  { %2426 = vrot.lane.b32.xlu2 %v6674_v25, %s7041_s30  ;;  %11766 = vst [vmem:[#allocation15_spill] sm:$0xff] %v10187_v53  ;;  %v3851_v25 = vmul.f32 %v9827_v49, %v9827_v49 }
 0x544   :  { %v3169_v1 = vpop.permute.xlu1 %3168  ;;  %v3167_v2 = vpop.permute.xlu0 %3166 }
 0x545   :  { %3314 = vst.msk [vmem:[#allocation2 + $0x178] sm:$0x3] %vm3266_vm11, %v3169_v1  ;;  %v1243_v27 = vpop.permute.xlu2 %1242 }
 0x546   :  { %3313 = vst.msk [vmem:[#allocation2 + $0x170] sm:$0x3] %vm3266_vm11, %v3167_v2 }
 0x547   :  { %1386 = vst.msk [vmem:[#allocation2 + $0x188] sm:$0x3] %vm1336_vm3, %v1243_v27 }
 0x54a   :  { %2812 = vrot.lane.b32.xlu1 %v6738_v5, %s7042_s18  ;;  %2428 = vrot.lane.b32.xlu0 %v6675_v6, %s7041_s30  ;;  %v10193_v57 = vpop.f32.mrf.mxu0 }
 0x54b   :  { %2814 = vrot.lane.b32.xlu2 %v6739_v31, %s7042_s18  ;;  %11767 = vst [vmem:[#allocation16_spill] sm:$0xff] %v10193_v57 }
 0x54c   :  { %v1647_v9 = vpop.permute.xlu1 %1646  ;;  %v3378_v10 = vld [vmem:[#allocation2 + $0x178] sm:$0xff]  ;;  %v1263_v13 = vpop.permute.xlu0 %1262 }
 0x54d   :  { %1781 = vst.msk [vmem:[#allocation2 + $0x1d0] sm:$0x3] %vm1722_vm4, %v1647_v9  ;;  %v3377_v15 = vld [vmem:[#allocation2 + $0x170] sm:$0xff]  ;;  %v1627_v33 = vpop.permute.xlu2 %1626 }
 0x54e   :  { %1396 = vst.msk [vmem:[#allocation2 + $0x1d8] sm:$0x3] %vm1336_vm3, %v1263_v13  ;;  %v3418_v16 = vpack.c.bf16 %v3378_v10, %v3377_v15 }
 0x54f   :  { %1782 = vst.msk [vmem:[#allocation2 + $0x1d8] sm:$0x3] %vm1722_vm4, %v1649_v8 }
 0x550   :  { %6831 = vmatmul.msk.bf16.gmra.mxu2 %vm3434_vm12, %v3418_v16 }
 0x552   :  { %3200 = vrot.lane.b32.xlu1 %v6803_v18, %s7043_s26  ;;  %3198 = vrot.lane.b32.xlu0 %v6802_v19, %s7043_s26  ;;  %v10199_v3 = vpop.f32.mrf.mxu0 }
 0x553   :  { %11768 = vst [vmem:[#allocation17_spill] sm:$0xff] %v10199_v3 }
 0x554   :  { %v2035_v23 = vpop.permute.xlu1 %2034  ;;  %v2033_v24 = vpop.permute.xlu0 %2032 }
 0x555   :  { %2168 = vst.msk [vmem:[#allocation2 + $0x1d8] sm:$0x3] %vm2108_vm8, %v2035_v23  ;;  %v3193_v36 = vpop.permute.xlu2 %3192  ;;  %v3849_v23 = vmul.f32 %v9579_v63, %v9579_v63 }
 0x556   :  { %2167 = vst.msk [vmem:[#allocation2 + $0x1d0] sm:$0x3] %vm2108_vm8, %v2033_v24  ;;  %v3709_v24 = vsel %vm3707_vm14, %v9606_v12, 0.0 }
 0x557   :  { %2553 = vst.msk [vmem:[#allocation2 + $0x1d0] sm:$0x3] %vm2494_vm9, %v2419_v22  ;;  %v3850_v22 = vmul.f32 %v9606_v12, %v9606_v12 }
 0x559   :  { %v3914_v31 = vsel %vm3707_vm14, %v3850_v22, 0.0  ;;  %v10261_v22 = vpop.f32.mrf.mxu1 }
 0x55a   :  { %v10205_v9 = vpop.f32.mrf.mxu0  ;;  %11774 = vst [vmem:[#allocation23_spill] sm:$0xff] %v10261_v22 }
 0x55b   :  { %11769 = vst [vmem:[#allocation18_spill] sm:$0xff] %v10205_v9 }
 0x55c   :  { %v1241_v28 = vpop.permute.xlu1 %1240  ;;  %v2421_v30 = vpop.permute.xlu0 %2420 }
 0x55d   :  { %1385 = vst.msk [vmem:[#allocation2 + $0x180] sm:$0x3] %vm1336_vm3, %v1241_v28  ;;  %v2399_v42 = vpop.permute.xlu2 %2398 }
 0x55e   :  { %2554 = vst.msk [vmem:[#allocation2 + $0x1d8] sm:$0x3] %vm2494_vm9, %v2421_v30  ;;  %v3708_v30 = vsel %vm3707_vm14, %v9579_v63, 0.0 }
 0x55f   :  { %1771 = vst.msk [vmem:[#allocation2 + $0x180] sm:$0x3] %vm1722_vm4, %v1627_v33  ;;  %v3711_v33 = vsel %vm3707_vm14, %v9827_v49, 0.0 }
 0x562   :  { %v10210_v16 = vpop.f32.mrf.mxu0 }
 0x563   :  { %11770 = vst [vmem:[#allocation19_spill] sm:$0xff] %v10210_v16 }
 0x564   :  { %v2807_v34 = vpop.permute.xlu1 %2806  ;;  %v2805_v35 = vpop.permute.xlu0 %2804 }
 0x565   :  { %2940 = vst.msk [vmem:[#allocation2 + $0x1d8] sm:$0x3] %vm2880_vm10, %v2807_v34  ;;  %v2787_v48 = vpop.permute.xlu2 %2786  ;;  %v3852_v34 = vmul.f32 %v9854_v62, %v9854_v62 }
 0x566   :  { %2939 = vst.msk [vmem:[#allocation2 + $0x1d0] sm:$0x3] %vm2880_vm10, %v2805_v35 }
 0x567   :  { %3326 = vst.msk [vmem:[#allocation2 + $0x1d8] sm:$0x3] %vm3266_vm11, %v3193_v36 }
 0x56a   :  { %v10223_v27 = vpop.f32.mrf.mxu0 }
 0x56b   :  { %11771 = vst [vmem:[#allocation20_spill] sm:$0xff] %v10223_v27 }
 0x56c   :  { %v3191_v39 = vpop.permute.xlu1 %3190  ;;  %v1629_v40 = vpop.permute.xlu0 %1628 }
 0x56d   :  { %3325 = vst.msk [vmem:[#allocation2 + $0x1d0] sm:$0x3] %vm3266_vm11, %v3191_v39  ;;  %v1265_v54 = vpop.permute.xlu2 %1264  ;;  %v3913_v39 = vsel %vm3707_vm14, %v3849_v23, 0.0 }
 0x56e   :  { %1772 = vst.msk [vmem:[#allocation2 + $0x188] sm:$0x3] %vm1722_vm4, %v1629_v40  ;;  %v3390_v41 = vld [vmem:[#allocation2 + $0x1d8] sm:$0xff]  ;;  %v3710_v40 = vadd.f32 %v3709_v24, %v3708_v30 }
 0x56f   :  { %1397 = vst.msk [vmem:[#allocation2 + $0x1e0] sm:$0x3] %vm1336_vm3, %v1265_v54  ;;  %v3918_v54 = vsel %vm3707_vm14, %v3852_v34, 0.0  ;;  %v3723_v34 = vsel %vm3707_vm14, %v10067_v38, 0.0 }
 0x574   :  { %v2015_v44 = vpop.permute.xlu1 %2014  ;;  %v3389_v45 = vld [vmem:[#allocation2 + $0x1d0] sm:$0xff]  ;;  %v2013_v46 = vpop.permute.xlu0 %2012 }
 0x575   :  { %2158 = vst.msk [vmem:[#allocation2 + $0x188] sm:$0x3] %vm2108_vm8, %v2015_v44  ;;  %v3424_v47 = vpack.c.bf16 %v3390_v41, %v3389_v45  ;;  %v1653_v59 = vpop.permute.xlu2 %1652  ;;  %v3916_v44 = vsel %vm3707_vm14, %v3851_v25, 0.0  ;;  %v3713_v45 = vsel %vm3707_vm14, %v9854_v62, 0.0  ;;  %v3721_v25 = vsel %vm3707_vm14, %v10049_v29, 0.0 }
 0x576   :  { %2157 = vst.msk [vmem:[#allocation2 + $0x180] sm:$0x3] %vm2108_vm8, %v2013_v46  ;;  %v3853_v46 = vmul.f32 %v9995_v4, %v9995_v4 }
 0x577   :  { %6837 = vmatmul.msk.bf16.gmra.mxu3 %vm3434_vm12, %v3424_v47  ;;  %2543 = vst.msk [vmem:[#allocation2 + $0x180] sm:$0x3] %vm2494_vm9, %v2399_v42 }
 0x57c   :  { %v2785_v50 = vpop.permute.xlu1 %2784  ;;  %v2401_v52 = vpop.permute.xlu0 %2400 }
 0x57d   :  { %2929 = vst.msk [vmem:[#allocation2 + $0x180] sm:$0x3] %vm2880_vm10, %v2785_v50  ;;  %v2423_v5 = vpop.permute.xlu2 %2422  ;;  %v3915_v50 = vadd.f32 %v3914_v31, %v3913_v39 }
 0x57e   :  { %2544 = vst.msk [vmem:[#allocation2 + $0x188] sm:$0x3] %vm2494_vm9, %v2401_v52  ;;  %v10240_v52 = vpop.f32.mrf.mxu2 }
 0x57f   :  { %2930 = vst.msk [vmem:[#allocation2 + $0x188] sm:$0x3] %vm2880_vm10, %v2787_v48  ;;  %v3712_v48 = vadd.f32 %v3711_v33, %v3710_v40 }
 0x580   :  { %11772 = vst [vmem:[#allocation21_spill] sm:$0xff] %v10240_v52 }
 0x584   :  { %v3173_v55 = vpop.permute.xlu1 %3172  ;;  %v3171_v56 = vpop.permute.xlu0 %3170 }
 0x585   :  { %3316 = vst.msk [vmem:[#allocation2 + $0x188] sm:$0x3] %vm3266_vm11, %v3173_v55  ;;  %v2811_v10 = vpop.permute.xlu2 %2810  ;;  %v3715_v55 = vsel %vm3707_vm14, %v9995_v4, 0.0 }
 0x586   :  { %3315 = vst.msk [vmem:[#allocation2 + $0x180] sm:$0x3] %vm3266_vm11, %v3171_v56  ;;  %v3854_v56 = vmul.f32 %v10013_v11, %v10013_v11  ;;  %v10276_v40 = vpop.f32.mrf.mxu2 }
 0x58c   :  { %v1651_v60 = vpop.permute.xlu1 %1650  ;;  %v3380_v61 = vld [vmem:[#allocation2 + $0x188] sm:$0xff]  ;;  %v1267_v0 = vpop.permute.xlu0 %1266 }
 0x58d   :  { %1783 = vst.msk [vmem:[#allocation2 + $0x1e0] sm:$0x3] %vm1722_vm4, %v1651_v60  ;;  %v3379_v1 = vld [vmem:[#allocation2 + $0x180] sm:$0xff]  ;;  %v1269_v17 = vpop.permute.xlu2 %1268  ;;  %v3714_v60 = vadd.f32 %v3713_v45, %v3712_v48  ;;  %v3727_v48 = vsel %vm3707_vm14, %v10103_v58, 0.0 }
 0x58e   :  { %1398 = vst.msk [vmem:[#allocation2 + $0x1e8] sm:$0x3] %vm1336_vm3, %v1267_v0  ;;  %v3419_v2 = vpack.c.bf16 %v3380_v61, %v3379_v1  ;;  %v3920_v61 = vsel %vm3707_vm14, %v3853_v46, 0.0  ;;  %v3717_v0 = vsel %vm3707_vm14, %v10013_v11, 0.0  ;;  %v3855_v1 = vmul.f32 %v10030_v20, %v10030_v20 }
 0x58f   :  { %1784 = vst.msk [vmem:[#allocation2 + $0x1e8] sm:$0x3] %vm1722_vm4, %v1653_v59  ;;  %v3917_v59 = vadd.f32 %v3916_v44, %v3915_v50  ;;  %v3859_v44 = vmul.f32 %v10103_v58, %v10103_v58  ;;  %v3860_v50 = vmul.f32 %v10131_v7, %v10131_v7 }
 0x590   :  { %6832 = vmatmul.msk.bf16.gmra.mxu2 %vm3434_vm12, %v3419_v2  ;;  %1399 = vst.msk [vmem:[#allocation2 + $0x1f0] sm:$0x3] %vm1336_vm3, %v1269_v17  ;;  %v3716_v2 = vadd.f32 %v3715_v55, %v3714_v60  ;;  %v3924_v24 = vsel %vm3707_vm14, %v3855_v1, 0.0  ;;  %v3729_v1 = vsel %vm3707_vm14, %v10131_v7, 0.0 }
 0x594   :  { %v2039_v6 = vpop.permute.xlu1 %2038  ;;  %v2037_v8 = vpop.permute.xlu0 %2036 }
 0x595   :  { %2170 = vst.msk [vmem:[#allocation2 + $0x1e8] sm:$0x3] %vm2108_vm8, %v2039_v6  ;;  %v1657_v28 = vpop.permute.xlu2 %1656 }
 0x596   :  { %2169 = vst.msk [vmem:[#allocation2 + $0x1e0] sm:$0x3] %vm2108_vm8, %v2037_v8  ;;  %v3922_v8 = vsel %vm3707_vm14, %v3854_v56, 0.0 }
 0x597   :  { %2555 = vst.msk [vmem:[#allocation2 + $0x1e0] sm:$0x3] %vm2494_vm9, %v2423_v5  ;;  %v3919_v5 = vadd.f32 %v3918_v54, %v3917_v59 }
 0x59c   :  { %v2809_v13 = vpop.permute.xlu1 %2808  ;;  %v2425_v15 = vpop.permute.xlu0 %2424 }
 0x59d   :  { %2941 = vst.msk [vmem:[#allocation2 + $0x1e0] sm:$0x3] %vm2880_vm10, %v2809_v13  ;;  %v2427_v6 = vpop.permute.xlu2 %2426  ;;  %v3856_v13 = vmul.f32 %v10049_v29, %v10049_v29 }
 0x59e   :  { %2556 = vst.msk [vmem:[#allocation2 + $0x1e8] sm:$0x3] %vm2494_vm9, %v2425_v15  ;;  %v10259_v15 = vpop.f32.mrf.mxu0 }
 0x59f   :  { %2942 = vst.msk [vmem:[#allocation2 + $0x1e8] sm:$0x3] %vm2880_vm10, %v2811_v10  ;;  %v3719_v10 = vsel %vm3707_vm14, %v10030_v20, 0.0  ;;  %v3926_v33 = vsel %vm3707_vm14, %v3856_v13, 0.0  ;;  %v3731_v13 = vsel %vm3707_vm14, %v10148_v21, 0.0 }
 0x5a0   :  { %11773 = vst [vmem:[#allocation22_spill] sm:$0xff] %v10259_v15 }
 0x5a4   :  { %v3197_v18 = vpop.permute.xlu1 %3196  ;;  %v3195_v19 = vpop.permute.xlu0 %3194 }
 0x5a5   :  { %3328 = vst.msk [vmem:[#allocation2 + $0x1e8] sm:$0x3] %vm3266_vm11, %v3197_v18  ;;  %v3921_v18 = vadd.f32 %v3920_v61, %v3919_v5  ;;  %v2815_v55 = vpop.permute.xlu2 %2814 }
 0x5a6   :  { %3327 = vst.msk [vmem:[#allocation2 + $0x1e0] sm:$0x3] %vm3266_vm11, %v3195_v19  ;;  %v3718_v19 = vadd.f32 %v3717_v0, %v3716_v2  ;;  %v10288_v60 = vpop.f32.mrf.mxu0  ;;  %v3932_v0 = vsel %vm3707_vm14, %v3859_v44, 0.0  ;;  %v3861_v2 = vmul.f32 %v10148_v21, %v10148_v21 }
 0x5a7   :  { %v3923_v30 = vadd.f32 %v3922_v8, %v3921_v18  ;;  %11775 = vst [vmem:[#allocation24_spill] sm:$0xff] %v10288_v60  ;;  %v10297_v8 = vpop.f32.mrf.mxu1 }
 0x5a8   :  { %v3720_v31 = vadd.f32 %v3719_v10, %v3718_v19  ;;  %11776 = vst [vmem:[#allocation25_spill] sm:$0xff] %v10297_v8  ;;  %v3934_v10 = vsel %vm3707_vm14, %v3860_v50, 0.0 }
 0x5aa   :  { %v3722_v39 = vadd.f32 %v3721_v25, %v3720_v31  ;;  %v3733_v25 = vsel %vm3707_vm14, %v10161_v26, 0.0 }
 0x5ac   :  { %v1655_v35 = vpop.permute.xlu1 %1654  ;;  %v3392_v36 = vld [vmem:[#allocation2 + $0x1e8] sm:$0xff]  ;;  %v1271_v41 = vpop.permute.xlu0 %1270  ;;  %v3724_v46 = vadd.f32 %v3723_v34, %v3722_v39  ;;  %v3735_v34 = vsel %vm3707_vm14, %v10170_v32, 0.0 }
 0x5ad   :  { %1785 = vst.msk [vmem:[#allocation2 + $0x1f0] sm:$0x3] %vm1722_vm4, %v1655_v35  ;;  %v3391_v42 = vld [vmem:[#allocation2 + $0x1e0] sm:$0xff]  ;;  %v3858_v35 = vmul.f32 %v10085_v51, %v10085_v51 }
 0x5ae   :  { %1400 = vst.msk [vmem:[#allocation2 + $0x1f8] sm:$0x3] %vm1336_vm3, %v1271_v41  ;;  %v3425_v47 = vpack.c.bf16 %v3392_v36, %v3391_v42  ;;  %v3925_v36 = vadd.f32 %v3924_v24, %v3923_v30  ;;  %v3725_v42 = vsel %vm3707_vm14, %v10085_v51, 0.0  ;;  %v3936_v24 = vsel %vm3707_vm14, %v3861_v2, 0.0  ;;  %v10324_v50 = vpop.f32.mrf.mxu0 }
 0x5af   :  { %1786 = vst.msk [vmem:[#allocation2 + $0x1f8] sm:$0x3] %vm1722_vm4, %v1657_v28  ;;  %v3857_v28 = vmul.f32 %v10067_v38, %v10067_v38  ;;  %v3726_v59 = vadd.f32 %v3725_v42, %v3724_v46  ;;  %v3865_v46 = vmul.f32 %v10180_v43, %v10180_v43  ;;  %v3741_v2 = vsel %vm3707_vm14, %v10187_v53, 0.0 }
 0x5b0   :  { %6838 = vmatmul.msk.bf16.gmra.mxu3 %vm3434_vm12, %v3425_v47  ;;  %v3927_v45 = vadd.f32 %v3926_v33, %v3925_v36  ;;  %v3930_v47 = vsel %vm3707_vm14, %v3858_v35, 0.0  ;;  %v3864_v35 = vmul.f32 %v10175_v37, %v10175_v37  ;;  %11777 = vst [vmem:[#allocation26_spill] sm:$0xff] %v10324_v50  ;;  %vm4501_vm3 = vcmask 123968  }
 0x5b1   :  { %v3928_v41 = vsel %vm3707_vm14, %v3857_v28, 0.0  ;;  %v3863_v28 = vmul.f32 %v10170_v32, %v10170_v32  ;;  %vm4599_vm4 = vcmask 189568  }
 0x5b2   :  { %v3929_v56 = vadd.f32 %v3928_v41, %v3927_v45  ;;  %v3737_v45 = vsel %vm3707_vm14, %v10175_v37, 0.0 }
 0x5b3   :  { %v3940_v44 = vsel %vm3707_vm14, %v3863_v28, 0.0 }
 0x5b4   :  { %v2043_v17 = vpop.permute.xlu1 %2042  ;;  %v2041_v23 = vpop.permute.xlu0 %2040  ;;  %v3931_v5 = vadd.f32 %v3930_v47, %v3929_v56  ;;  %v3739_v56 = vsel %vm3707_vm14, %v10180_v43, 0.0 }
 0x5b5   :  { %2172 = vst.msk [vmem:[#allocation2 + $0x1f8] sm:$0x3] %vm2108_vm8, %v2043_v17  ;;  %v3862_v17 = vmul.f32 %v10161_v26, %v10161_v26 }
 0x5b6   :  { %2171 = vst.msk [vmem:[#allocation2 + $0x1f0] sm:$0x3] %vm2108_vm8, %v2041_v23  ;;  %v3933_v18 = vadd.f32 %v3932_v0, %v3931_v5  ;;  %v10305_v23 = vpop.f32.mrf.mxu2  ;;  %v3867_v5 = vmul.f32 %v10193_v57, %v10193_v57  ;;  %vm4892_vm8 = vcmask 386368  }
 0x5b7   :  { %2557 = vst.msk [vmem:[#allocation2 + $0x1f0] sm:$0x3] %vm2494_vm9, %v2427_v6  ;;  %v3728_v6 = vadd.f32 %v3727_v48, %v3726_v59  ;;  %v3938_v33 = vsel %vm3707_vm14, %v3862_v17, 0.0  ;;  %v3866_v59 = vmul.f32 %v10187_v53, %v10187_v53 }
 0x5b8   :  { %v3935_v30 = vadd.f32 %v3934_v10, %v3933_v18  ;;  %v3743_v18 = vsel %vm3707_vm14, %v10193_v57, 0.0 }
 0x5b9   :  { %v3730_v19 = vadd.f32 %v3729_v1, %v3728_v6  ;;  %v3944_v1 = vsel %vm3707_vm14, %v3865_v46, 0.0  ;;  %v3946_v17 = vsel %vm3707_vm14, %v3866_v59, 0.0  ;;  %v3871_v59 = vmul.f32 %v10223_v27, %v10223_v27 }
 0x5ba   :  { %v3937_v39 = vadd.f32 %v3936_v24, %v3935_v30 }
 0x5bb   :  { %v3732_v31 = vadd.f32 %v3731_v13, %v3730_v19  ;;  %v3868_v19 = vmul.f32 %v10199_v3, %v10199_v3 }
 0x5bc   :  { %v2813_v54 = vpop.permute.xlu1 %2812  ;;  %v2429_v61 = vpop.permute.xlu0 %2428  ;;  %v3939_v47 = vadd.f32 %v3938_v33, %v3937_v39  ;;  %v3745_v33 = vsel %vm3707_vm14, %v10199_v3, 0.0 }
 0x5bd   :  { %2943 = vst.msk [vmem:[#allocation2 + $0x1f0] sm:$0x3] %vm2880_vm10, %v2813_v54  ;;  %v3734_v41 = vadd.f32 %v3733_v25, %v3732_v31  ;;  %v10326_v54 = vpop.f32.mrf.mxu1  ;;  %v3948_v31 = vsel %vm3707_vm14, %v3867_v5, 0.0  ;;  %v3751_v5 = vsel %vm3707_vm14, %v10223_v27, 0.0 }
 0x5be   :  { %2558 = vst.msk [vmem:[#allocation2 + $0x1f8] sm:$0x3] %vm2494_vm9, %v2429_v61  ;;  %v3941_v61 = vadd.f32 %v3940_v44, %v3939_v47  ;;  %v10338_v13 = vpop.f32.mrf.mxu2  ;;  %v3747_v44 = vsel %vm3707_vm14, %v10205_v9, 0.0  ;;  %vm4990_vm9 = vcmask 451968  }
 0x5bf   :  { %2944 = vst.msk [vmem:[#allocation2 + $0x1f8] sm:$0x3] %vm2880_vm10, %v2815_v55  ;;  %v3736_v48 = vadd.f32 %v3735_v34, %v3734_v41  ;;  %v3942_v55 = vsel %vm3707_vm14, %v3864_v35, 0.0  ;;  %v3869_v34 = vmul.f32 %v10205_v9, %v10205_v9  ;;  %v10350_v41 = vpop.f32.mrf.mxu0  ;;  %vm4371_vm10 = vcmask 586752  }
 0x5c0   :  { %11778 = vst [vmem:[#allocation27_spill] sm:$0xff] %v10326_v54  ;;  %v3943_v6 = vadd.f32 %v3942_v55, %v3941_v61 }
 0x5c1   :  { %v3738_v0 = vadd.f32 %v3737_v45, %v3736_v48  ;;  %11779 = vst [vmem:[#allocation28_spill] sm:$0xff] %v10350_v41  ;;  %v3870_v45 = vmul.f32 %v10210_v16, %v10210_v16  ;;  %v3952_v55 = vsel %vm3707_vm14, %v3869_v34, 0.0 }
 0x5c2   :  { %v3945_v25 = vadd.f32 %v3944_v1, %v3943_v6  ;;  %v3872_v6 = vmul.f32 %v10259_v15, %v10259_v15 }
 0x5c3   :  { %v3740_v10 = vadd.f32 %v3739_v56, %v3738_v0  ;;  %v3749_v56 = vsel %vm3707_vm14, %v10210_v16, 0.0 }
 0x5c4   :  { %v3201_v36 = vpop.permute.xlu1 %3200  ;;  %v3199_v42 = vpop.permute.xlu0 %3198 }
 0x5c5   :  { %3330 = vst.msk [vmem:[#allocation2 + $0x1f8] sm:$0x3] %vm3266_vm11, %v3201_v36  ;;  %v3742_v28 = vadd.f32 %v3741_v2, %v3740_v10  ;;  %v3947_v36 = vadd.f32 %v3946_v17, %v3945_v25  ;;  %v10358_v48 = vpop.f32.mrf.mxu1  ;;  %v3954_v2 = vsel %vm3707_vm14, %v3870_v45, 0.0  ;;  %v3875_v45 = vmul.f32 %v10350_v41, %v10350_v41 }
 0x5c6   :  { %3329 = vst.msk [vmem:[#allocation2 + $0x1f0] sm:$0x3] %vm3266_vm11, %v3199_v42  ;;  %v3950_v42 = vsel %vm3707_vm14, %v3868_v19, 0.0  ;;  %v10365_v1 = vpop.f32.mrf.mxu2  ;;  %v3753_v19 = vsel %vm3707_vm14, %v10259_v15, 0.0  ;;  %vm5088_vm11 = vcmask 517568  }
 0x5c7   :  { %v3744_v39 = vadd.f32 %v3743_v18, %v3742_v28  ;;  %v3949_v46 = vadd.f32 %v3948_v31, %v3947_v36  ;;  %11780 = vst [vmem:[#allocation29_spill] sm:$0xff] %v10358_v48  ;;  %v3956_v18 = vsel %vm3707_vm14, %v3871_v59, 0.0  ;;  %v3755_v31 = vsel %vm3707_vm14, %v10288_v60, 0.0  ;;  %v10382_v36 = vpop.f32.mrf.mxu0 }
 0x5c8   :  { %11781 = vst [vmem:[#allocation30_spill] sm:$0xff] %v10382_v36  ;;  %v3876_v59 = vmul.f32 %v10382_v36, %v10382_v36 }
 0x5c9   :  { %v3746_v47 = vadd.f32 %v3745_v33, %v3744_v39  ;;  %v3951_v61 = vadd.f32 %v3950_v42, %v3949_v46  ;;  %v3874_v33 = vmul.f32 %v10324_v50, %v10324_v50 }
 0x5cb   :  { %v3748_v0 = vadd.f32 %v3747_v44, %v3746_v47  ;;  %v3953_v10 = vadd.f32 %v3952_v55, %v3951_v61  ;;  %v3757_v44 = vsel %vm3707_vm14, %v10324_v50, 0.0  ;;  %v3962_v55 = vsel %vm3707_vm14, %v3874_v33, 0.0 }
 0x5cc   :  { %v3394_v24 = vld [vmem:[#allocation2 + $0x1f8] sm:$0xff] }
 0x5cd   :  { %v3393_v30 = vld [vmem:[#allocation2 + $0x1f0] sm:$0xff]  ;;  %v3750_v17 = vadd.f32 %v3749_v56, %v3748_v0  ;;  %v3955_v25 = vadd.f32 %v3954_v2, %v3953_v10  ;;  %v10384_v39 = vpop.f32.mrf.mxu1  ;;  %v3759_v56 = vsel %vm3707_vm14, %v10350_v41, 0.0 }
 0x5ce   :  { %v3426_v35 = vpack.c.bf16 %v3394_v24, %v3393_v30  ;;  %v3873_v24 = vmul.f32 %v10288_v60, %v10288_v60  ;;  %v3958_v30 = vsel %vm3707_vm14, %v3872_v6, 0.0  ;;  %11782 = vst [vmem:[#allocation31_spill] sm:$0xff] %v10384_v39  ;;  %v10396_v61 = vpop.f32.mrf.mxu2  ;;  %v3761_v6 = vsel %vm3707_vm14, %v10382_v36, 0.0 }
 0x5cf   :  { %v3752_v28 = vadd.f32 %v3751_v5, %v3750_v17  ;;  %v3957_v34 = vadd.f32 %v3956_v18, %v3955_v25  ;;  %v3964_v5 = vsel %vm3707_vm14, %v3875_v45, 0.0  ;;  %v3966_v18 = vsel %vm3707_vm14, %v3876_v59, 0.0 }
 0x5d0   :  { %6839 = vmatmul.msk.bf16.gmra.mxu3 %vm3434_vm12, %v3426_v35  ;;  %v3960_v42 = vsel %vm3707_vm14, %v3873_v24, 0.0  ;;  %v3877_v25 = vmul.f32 %v10261_v22, %v10261_v22  ;;  %vm5186_vm12 = vcmask 583168  }
 0x5d1   :  { %v3754_v35 = vadd.f32 %v3753_v19, %v3752_v28  ;;  %v3959_v46 = vadd.f32 %v3958_v30, %v3957_v34 }
 0x5d3   :  { %v3756_v47 = vadd.f32 %v3755_v31, %v3754_v35  ;;  %v3961_v0 = vadd.f32 %v3960_v42, %v3959_v46  ;;  %v3763_v31 = vsel %vm3707_vm14, %v10261_v22, 0.0  ;;  %v3968_v35 = vsel %vm3707_vm14, %v3877_v25, 0.0 }
 0x5d4   :  { %v3878_v42 = vmul.f32 %v10297_v8, %v10297_v8  ;;  %v3765_v46 = vsel %vm3707_vm14, %v10297_v8, 0.0 }
 0x5d5   :  { %v3758_v2 = vadd.f32 %v3757_v44, %v3756_v47  ;;  %v3963_v10 = vadd.f32 %v3962_v55, %v3961_v0  ;;  %v10404_v30 = vpop.f32.mrf.mxu1  ;;  %v10413_v44 = vpop.f32.mrf.mxu3 }
 0x5d6   :  { %11783 = vst [vmem:[#allocation32_spill] sm:$0xff] %v10404_v30  ;;  %v10408_v33 = vpop.f32.mrf.mxu2  ;;  %v3970_v55 = vsel %vm3707_vm14, %v3878_v42, 0.0 }
 0x5d7   :  { %v3760_v17 = vadd.f32 %v3759_v56, %v3758_v2  ;;  %v3965_v19 = vadd.f32 %v3964_v5, %v3963_v10  ;;  %v3879_v56 = vmul.f32 %v10326_v54, %v10326_v54  ;;  %v3767_v2 = vsel %vm3707_vm14, %v10326_v54, 0.0 }
 0x5d8   :  { %v3880_v10 = vmul.f32 %v10358_v48, %v10358_v48 }
 0x5d9   :  { %v3762_v24 = vadd.f32 %v3761_v6, %v3760_v17  ;;  %v3967_v28 = vadd.f32 %v3966_v18, %v3965_v19  ;;  %v3972_v6 = vsel %vm3707_vm14, %v3879_v56, 0.0  ;;  %v3769_v19 = vsel %vm3707_vm14, %v10358_v48, 0.0 }
 0x5db   :  { %v3764_v34 = vadd.f32 %v3763_v31, %v3762_v24  ;;  %v3969_v45 = vadd.f32 %v3968_v35, %v3967_v28  ;;  %v3974_v28 = vsel %vm3707_vm14, %v3880_v10, 0.0  ;;  %v3881_v31 = vmul.f32 %v10384_v39, %v10384_v39 }
 0x5dc   :  { %v3771_v35 = vsel %vm3707_vm14, %v10384_v39, 0.0 }
 0x5dd   :  { %v3766_v47 = vadd.f32 %v3765_v46, %v3764_v34  ;;  %v3971_v59 = vadd.f32 %v3970_v55, %v3969_v45  ;;  %v10420_v0 = vpop.f32.mrf.mxu1  ;;  %v10431_v24 = vpop.f32.mrf.mxu3  ;;  %v3976_v46 = vsel %vm3707_vm14, %v3881_v31, 0.0 }
 0x5de   :  { %11784 = vst [vmem:[#allocation33_spill] sm:$0xff] %v10420_v0  ;;  %v10427_v17 = vpop.f32.mrf.mxu2  ;;  %v3883_v55 = vmul.f32 %v10420_v0, %v10420_v0 }
 0x5df   :  { %v3768_v5 = vadd.f32 %v3767_v2, %v3766_v47  ;;  %v3973_v18 = vadd.f32 %v3972_v6, %v3971_v59  ;;  %v3882_v47 = vmul.f32 %v10404_v30, %v10404_v30  ;;  %v3773_v2 = vsel %vm3707_vm14, %v10404_v30, 0.0 }
 0x5e1   :  { %v3770_v25 = vadd.f32 %v3769_v19, %v3768_v5  ;;  %v3975_v34 = vadd.f32 %v3974_v28, %v3973_v18  ;;  %v3775_v5 = vsel %vm3707_vm14, %v10420_v0, 0.0  ;;  %v3978_v19 = vsel %vm3707_vm14, %v3882_v47, 0.0 }
 0x5e2   :  { %v3885_v0 = vmul.f32 %v10240_v52, %v10240_v52 }
 0x5e3   :  { %v3772_v42 = vadd.f32 %v3771_v35, %v3770_v25  ;;  %v3977_v56 = vadd.f32 %v3976_v46, %v3975_v34  ;;  %v3980_v25 = vsel %vm3707_vm14, %v3883_v55, 0.0 }
 0x5e4   :  { %v3984_v55 = vsel %vm3707_vm14, %v3885_v0, 0.0 }
 0x5e5   :  { %v10438_v45 = vpop.f32.mrf.mxu1  ;;  %v10453_v10 = vpop.f32.mrf.mxu3  ;;  %v3774_v18 = vadd.f32 %v3773_v2, %v3772_v42  ;;  %v3979_v31 = vadd.f32 %v3978_v19, %v3977_v56  ;;  %v3779_v42 = vsel %vm3707_vm14, %v10240_v52, 0.0  ;;  %v3886_v56 = vmul.f32 %v10276_v40, %v10276_v40 }
 0x5e6   :  { %11785 = vst [vmem:[#allocation34_spill] sm:$0xff] %v10438_v45  ;;  %v10445_v59 = vpop.f32.mrf.mxu2  ;;  %v3884_v6 = vmul.f32 %v10438_v45, %v10438_v45  ;;  %v3777_v28 = vsel %vm3707_vm14, %v10438_v45, 0.0 }
 0x5e7   :  { %v3776_v34 = vadd.f32 %v3775_v5, %v3774_v18  ;;  %v3981_v46 = vadd.f32 %v3980_v25, %v3979_v31  ;;  %v3781_v18 = vsel %vm3707_vm14, %v10276_v40, 0.0  ;;  %v3986_v25 = vsel %vm3707_vm14, %v3886_v56, 0.0 }
 0x5e8   :  { %v3982_v35 = vsel %vm3707_vm14, %v3884_v6, 0.0 }
 0x5e9   :  { %v3778_v14 = vadd.f32 %v3777_v28, %v3776_v34  ;;  %v3983_v30 = vadd.f32 %v3982_v35, %v3981_v46  ;;  %v3887_v28 = vmul.f32 %v10305_v23, %v10305_v23 }
 0x5eb   :  { %v3780_v47 = vadd.f32 %v3779_v42, %v3778_v14  ;;  %v3985_v6 = vadd.f32 %v3984_v55, %v3983_v30  ;;  %v3783_v14 = vsel %vm3707_vm14, %v10305_v23, 0.0  ;;  %v3988_v35 = vsel %vm3707_vm14, %v3887_v28, 0.0 }
 0x5ec   :  { %v3888_v30 = vmul.f32 %v10338_v13, %v10338_v13 }
 0x5ed   :  { %v10469_v5 = vpop.f32.mrf.mxu3  ;;  %v3782_v19 = vadd.f32 %v3781_v18, %v3780_v47  ;;  %v3987_v31 = vadd.f32 %v3986_v25, %v3985_v6  ;;  %v3785_v47 = vsel %vm3707_vm14, %v10338_v13, 0.0  ;;  %v3889_v6 = vmul.f32 %v10365_v1, %v10365_v1 }
 0x5ee   :  { %v10464_v2 = vpop.f32.mrf.mxu2  ;;  %v3990_v56 = vsel %vm3707_vm14, %v3888_v30, 0.0 }
 0x5ef   :  { %v3784_v0 = vadd.f32 %v3783_v14, %v3782_v19  ;;  %v3989_v42 = vadd.f32 %v3988_v35, %v3987_v31  ;;  %v3787_v19 = vsel %vm3707_vm14, %v10365_v1, 0.0  ;;  %v3992_v28 = vsel %vm3707_vm14, %v3889_v6, 0.0 }
 0x5f0   :  { %v3890_v14 = vmul.f32 %v10396_v61, %v10396_v61  ;;  %v3791_v6 = vsel %vm3707_vm14, %v10408_v33, 0.0 }
 0x5f1   :  { %v3786_v55 = vadd.f32 %v3785_v47, %v3784_v0  ;;  %v3991_v18 = vadd.f32 %v3990_v56, %v3989_v42  ;;  %v3789_v0 = vsel %vm3707_vm14, %v10396_v61, 0.0  ;;  %v3891_v56 = vmul.f32 %v10408_v33, %v10408_v33 }
 0x5f2   :  { %v3994_v42 = vsel %vm3707_vm14, %v3890_v14, 0.0 }
 0x5f3   :  { %v3788_v25 = vadd.f32 %v3787_v19, %v3786_v55  ;;  %v3993_v31 = vadd.f32 %v3992_v28, %v3991_v18  ;;  %v3996_v18 = vsel %vm3707_vm14, %v3891_v56, 0.0  ;;  %v3892_v28 = vmul.f32 %v10427_v17, %v10427_v17 }
 0x5f4   :  { %v3795_v56 = vsel %vm3707_vm14, %v10445_v59, 0.0 }
 0x5f5   :  { %v10483_v46 = vpop.f32.mrf.mxu3  ;;  %v3790_v47 = vadd.f32 %v3789_v0, %v3788_v25  ;;  %v3995_v55 = vadd.f32 %v3994_v42, %v3993_v31  ;;  %v3793_v25 = vsel %vm3707_vm14, %v10427_v17, 0.0  ;;  %v3998_v31 = vsel %vm3707_vm14, %v3892_v28, 0.0 }
 0x5f6   :  { %v10478_v34 = vpop.f32.mrf.mxu2  ;;  %v3893_v42 = vmul.f32 %v10445_v59, %v10445_v59 }
 0x5f7   :  { %v3792_v19 = vadd.f32 %v3791_v6, %v3790_v47  ;;  %v3997_v52 = vadd.f32 %v3996_v18, %v3995_v55  ;;  %v3894_v18 = vmul.f32 %v10464_v2, %v10464_v2  ;;  %v3895_v39 = vmul.f32 %v10478_v34, %v10478_v34 }
 0x5f8   :  { %v4000_v55 = vsel %vm3707_vm14, %v3893_v42, 0.0  ;;  %v3799_v28 = vsel %vm3707_vm14, %v10478_v34, 0.0 }
 0x5f9   :  { %v3794_v0 = vadd.f32 %v3793_v25, %v3792_v19  ;;  %v3999_v47 = vadd.f32 %v3998_v31, %v3997_v52  ;;  %v3797_v19 = vsel %vm3707_vm14, %v10464_v2, 0.0  ;;  %v4002_v31 = vsel %vm3707_vm14, %v3894_v18, 0.0 }
 0x5fa   :  { %v4004_v42 = vsel %vm3707_vm14, %v3895_v39, 0.0 }
 0x5fb   :  { %v3796_v6 = vadd.f32 %v3795_v56, %v3794_v0  ;;  %v4001_v48 = vadd.f32 %v4000_v55, %v3999_v47 }
 0x5fd   :  { %v10499_v30 = vpop.f32.mrf.mxu3  ;;  %v3798_v25 = vadd.f32 %v3797_v19, %v3796_v6  ;;  %v4003_v8 = vadd.f32 %v4002_v31, %v4001_v48 }
 0x5fe   :  { %v10495_v35 = vpop.f32.mrf.mxu2 }
 0x5ff   :  { %v3896_v52 = vmul.f32 %v10495_v35, %v10495_v35  ;;  %v3801_v56 = vsel %vm3707_vm14, %v10495_v35, 0.0  ;;  %v3800_v54 = vadd.f32 %v3799_v28, %v3798_v25  ;;  %v4005_v19 = vadd.f32 %v4004_v42, %v4003_v8 }
 0x600   :  { %v3807_v8 = vsel %vm3707_vm14, %v10413_v44, 0.0 }
 0x601   :  { %v4006_v22 = vsel %vm3707_vm14, %v3896_v52, 0.0  ;;  %v3802_v39 = vadd.f32 %v3801_v56, %v3800_v54  ;;  %v3899_v52 = vmul.f32 %v10413_v44, %v10413_v44 }
 0x602   :  { %v4007_v50 = vadd.f32 %v4006_v22, %v4005_v19  ;;  %v3900_v22 = vmul.f32 %v10431_v24, %v10431_v24 }
 0x603   :  { %v4012_v42 = vsel %vm3707_vm14, %v3899_v52, 0.0 }
 0x605   :  { %v10513_v14 = vpop.f32.mrf.mxu3 }
 0x60d   :  { %v10539_v55 = vpop.f32.mrf.mxu3 }
 0x613   :  { %v10509_v45 = vpop.f32.mrf.mxu2 }
 0x614   :  { %v3897_v47 = vmul.f32 %v10509_v45, %v10509_v45  ;;  %v3803_v6 = vsel %vm3707_vm14, %v10509_v45, 0.0 }
 0x615   :  { %v3804_v60 = vadd.f32 %v3803_v6, %v3802_v39  ;;  %v10552_v31 = vpop.f32.mrf.mxu3  ;;  %v3811_v6 = vsel %vm3707_vm14, %v10453_v10, 0.0 }
 0x616   :  { %v4008_v36 = vsel %vm3707_vm14, %v3897_v47, 0.0 }
 0x617   :  { %v4009_v48 = vadd.f32 %v4008_v36, %v4007_v50  ;;  %v3809_v50 = vsel %vm3707_vm14, %v10431_v24, 0.0  ;;  %v3901_v36 = vmul.f32 %v10453_v10, %v10453_v10 }
 0x619   :  { %v4016_v39 = vsel %vm3707_vm14, %v3901_v36, 0.0  ;;  %v3817_v36 = vsel %vm3707_vm14, %v10499_v30, 0.0 }
 0x61b   :  { %v10531_v0 = vpop.f32.mrf.mxu2 }
 0x61c   :  { %v3898_v18 = vmul.f32 %v10531_v0, %v10531_v0  ;;  %v3805_v41 = vsel %vm3707_vm14, %v10531_v0, 0.0 }
 0x61d   :  { %v3806_v25 = vadd.f32 %v3805_v41, %v3804_v60  ;;  %v4014_v41 = vsel %vm3707_vm14, %v3900_v22, 0.0 }
 0x61e   :  { %v4010_v28 = vsel %vm3707_vm14, %v3898_v18, 0.0  ;;  %v10566_v18 = vpop.f32.mrf.mxu3 }
 0x61f   :  { %v4011_v15 = vadd.f32 %v4010_v28, %v4009_v48  ;;  %v3808_v54 = vadd.f32 %v3807_v8, %v3806_v25  ;;  %v3813_v48 = vsel %vm3707_vm14, %v10469_v5, 0.0  ;;  %v3903_v8 = vmul.f32 %v10483_v46, %v10483_v46 }
 0x621   :  { %v4013_v56 = vadd.f32 %v4012_v42, %v4011_v15  ;;  %v3810_v60 = vadd.f32 %v3809_v50, %v3808_v54  ;;  %v3902_v15 = vmul.f32 %v10469_v5, %v10469_v5  ;;  %v3815_v42 = vsel %vm3707_vm14, %v10483_v46, 0.0 }
 0x622   :  { %v4020_v50 = vsel %vm3707_vm14, %v3903_v8, 0.0 }
 0x623   :  { %v4015_v47 = vadd.f32 %v4014_v41, %v4013_v56  ;;  %v3812_v19 = vadd.f32 %v3811_v6, %v3810_v60  ;;  %v4018_v52 = vsel %vm3707_vm14, %v3902_v15, 0.0  ;;  %v3904_v60 = vmul.f32 %v10499_v30, %v10499_v30 }
 0x624   :  { %v3819_v15 = vsel %vm3707_vm14, %v10513_v14, 0.0 }
 0x625   :  { %v4017_v28 = vadd.f32 %v4016_v39, %v4015_v47  ;;  %v3814_v25 = vadd.f32 %v3813_v48, %v3812_v19  ;;  %v4022_v6 = vsel %vm3707_vm14, %v3904_v60, 0.0  ;;  %v3905_v19 = vmul.f32 %v10513_v14, %v10513_v14 }
 0x627   :  { %v4019_v54 = vadd.f32 %v4018_v52, %v4017_v28  ;;  %v3816_v22 = vadd.f32 %v3815_v42, %v3814_v25  ;;  %v4024_v48 = vsel %vm3707_vm14, %v3905_v19, 0.0  ;;  %v3906_v25 = vmul.f32 %v10539_v55, %v10539_v55 }
 0x628   :  { %v3908_v19 = vmul.f32 %v10566_v18, %v10566_v18 }
 0x629   :  { %v4021_v41 = vadd.f32 %v4020_v50, %v4019_v54  ;;  %v3818_v47 = vadd.f32 %v3817_v36, %v3816_v22  ;;  %v3821_v54 = vsel %vm3707_vm14, %v10539_v55, 0.0  ;;  %v4026_v22 = vsel %vm3707_vm14, %v3906_v25, 0.0 }
 0x62a   :  { %v3907_v50 = vmul.f32 %v10552_v31, %v10552_v31  ;;  %v3823_v36 = vsel %vm3707_vm14, %v10552_v31, 0.0 }
 0x62b   :  { %v4023_v39 = vadd.f32 %v4022_v6, %v4021_v41  ;;  %v3820_v28 = vadd.f32 %v3819_v15, %v3818_v47  ;;  %v7046_v41 = vmov 128.0  }
 0x62c   :  { %6978 = vrcp.f32 %v7046_v41  ;;  %v4028_v6 = vsel %vm3707_vm14, %v3907_v50, 0.0 }
 0x62d   :  { %v4025_v52 = vadd.f32 %v4024_v48, %v4023_v39  ;;  %v3822_v42 = vadd.f32 %v3821_v54, %v3820_v28  ;;  %v3825_v48 = vsel %vm3707_vm14, %v10566_v18, 0.0 }
 0x62f   :  { %v4027_v60 = vadd.f32 %v4026_v22, %v4025_v52  ;;  %v3824_v47 = vadd.f32 %v3823_v36, %v3822_v42  ;;  %v4030_v22 = vsel %vm3707_vm14, %v3908_v19, 0.0 }
 0x631   :  { %v4029_v15 = vadd.f32 %v4028_v6, %v4027_v60  ;;  %v3826_v42 = vadd.f32 %v3825_v48, %v3824_v47 }
 0x632   :  { %v6979_v54 = vpop.eup %6978 }
 0x633   :  { %v10578_v56 = vpop.f32.mrf.mxu3  ;;  %v4031_v6 = vadd.f32 %v4030_v22, %v4029_v15  ;;  %v3842_v9 = vmul.f32 128.0, %v6979_v54  ;;  %vm3846_vm15 = vweird.f32 %v6979_v54 }
 0x634   :  { %v3909_v39 = vmul.f32 %v10578_v56, %v10578_v56  ;;  %v3827_v25 = vsel %vm3707_vm14, %v10578_v56, 0.0 }
 0x635   :  { %v3828_v36 = vadd.f32 %v3827_v25, %v3826_v42  ;;  %v3843_v43 = vsub.f32 1.0, %v3842_v9 }
 0x636   :  { %v4032_v50 = vsel %vm3707_vm14, %v3909_v39, 0.0 }
 0x637   :  { %v4033_v3 = vadd.f32 %v4032_v50, %v4031_v6  ;;  %v3844_v22 = vmul.f32 %v6979_v54, %v3843_v43  ;;  %v4422_v43 = vld [vmem:[#allocation3 + $0x6] sm:$0x3] }
 0x638   :  { %4455 = vrot.lane.b32.xlu0 %v4422_v43, %s7043_s26 }
 0x63b   :  { %v10593_v8 = vpop.f32.mrf.mxu3 }
 0x63c   :  { %v3910_v52 = vmul.f32 %v10593_v8, %v10593_v8  ;;  %v3829_v60 = vsel %vm3707_vm14, %v10593_v8, 0.0 }
 0x63d   :  { %v3830_v47 = vadd.f32 %v3829_v60, %v3828_v36  ;;  %v3845_v36 = vadd.f32 %v6979_v54, %v3844_v22 }
 0x63e   :  { %v4034_v27 = vsel %vm3707_vm14, %v3910_v52, 0.0 }
 0x63f   :  { %v4035_v48 = vadd.f32 %v4034_v27, %v4033_v3  ;;  %v3847_v6 = vsel %vm3846_vm15, %v6979_v54, %v3845_v36  ;;  %v4049_v54 = vld [vmem:[%s11721_s2] sm:$0x1]  ;;  %s7049_s2 = smov 32   ;;  %vm5263_vm15 = vcmask 588800  }
 0x640   :  { %v4062_v36 = vld [vmem:[%s11722_s3] sm:$0x1]  ;;  %s7050_s3 = smov 48  }
 0x653   :  { %v10607_v28 = vpop.f32.mrf.mxu3 }
 0x654   :  { %v3911_v41 = vmul.f32 %v10607_v28, %v10607_v28  ;;  %v3831_v16 = vsel %vm3707_vm14, %v10607_v28, 0.0 }
 0x655   :  { %v3832_v39 = vadd.f32 %v3831_v16, %v3830_v47 }
 0x656   :  { %v4036_v19 = vsel %vm3707_vm14, %v3911_v41, 0.0 }
 0x657   :  { %v4037_v32 = vadd.f32 %v4036_v19, %v4035_v48 }
 0x65b   :  { %v3704_v57 = vpop.f32.mrf.mxu3 }
 0x65c   :  { %v3833_v53 = vsel %vm3707_vm14, %v3704_v57, 0.0  ;;  %v3912_v37 = vmul.f32 %v3704_v57, %v3704_v57 }
 0x65d   :  { %v3834_v25 = vadd.f32 %v3833_v53, %v3832_v39 }
 0x65e   :  { %v4038_v15 = vsel %vm3707_vm14, %v3912_v37, 0.0 }
 0x65f   :  { %v3835_v52 = vrot.slane %v3834_v25, 4  ;;  %v4039_v42 = vadd.f32 %v4038_v15, %v4037_v32 }
 0x661   :  { %v3836_v26 = vadd.f32 %v3835_v52, %v3834_v25  ;;  %v4040_v21 = vrot.slane %v4039_v42, 4  ;;  %v4519_v52 = vld [vmem:[#allocation3 + $0x4] sm:$0x3] }
 0x662   :  { %4551 = vrot.lane.b32.xlu1 %v4519_v52, %s7047_s0 }
 0x663   :  { %v3837_v50 = vrot.slane %v3836_v26, 2  ;;  %v4041_v60 = vadd.f32 %v4040_v21, %v4039_v42 }
 0x665   :  { %v3838_v41 = vadd.f32 %v3837_v50, %v3836_v26  ;;  %v4042_v3 = vrot.slane %v4041_v60, 2 }
 0x667   :  { %v3839_v16 = vrot.slane %v3838_v41, 1  ;;  %v4043_v27 = vadd.f32 %v4042_v3, %v4041_v60 }
 0x669   :  { %v3840_v9 = vadd.f32 %v3839_v16, %v3838_v41  ;;  %v4044_v47 = vrot.slane %v4043_v27, 1 }
 0x66b   :  { %v3848_v19 = vmul.f32 %v3847_v6, %v3840_v9  ;;  %v4045_v53 = vadd.f32 %v4044_v47, %v4043_v27  ;;  %v4617_v27 = vld [vmem:[#allocation3 + $0x14] sm:$0x3] }
 0x66c   :  { %4649 = vrot.lane.b32.xlu0 %v4617_v27, %s7048_s21 }
 0x66d   :  { %v4046_v48 = vmul.f32 %v4045_v53, %v3847_v6  ;;  %v4047_v37 = vmul.f32 %v3848_v19, %v3848_v19 }
 0x66f   :  { %v4048_v39 = vsub.f32 %v4046_v48, %v4047_v37 }
 0x671   :  { %v4050_v32 = vadd.f32 1e-05, %v4048_v39 }
 0x673   :  { %6980 = vrsqrt.f32 %v4050_v32  ;;  %vm4057_vm1 = vweird.f32 %v4050_v32 }
 0x679   :  { %v6981_v25 = vpop.eup %6980 }
 0x67a   :  { %v4052_v21 = vmul.f32 %v6981_v25, %v4050_v32  ;;  %vm4058_vm0 = vweird.f32 %v6981_v25 }
 0x67b   :  { %vm4059_vm2 = vmor %vm4057_vm1, %vm4058_vm0 }
 0x67c   :  { %v4053_v26 = vmul.f32 %v6981_v25, %v4052_v21 }
 0x67e   :  { %v4054_v15 = vmul.f32 0.5, %v4053_v26 }
 0x680   :  { %v4055_v42 = vsub.f32 1.5, %v4054_v15 }
 0x682   :  { %v4056_v22 = vmul.f32 %v6981_v25, %v4055_v42 }
 0x684   :  { %v4060_v50 = vsel %vm4059_vm2, %v6981_v25, %v4056_v22 }
 0x685   :  { %v4061_v60 = vmul.f32 %v4060_v50, %v4049_v54 }
 0x687   :  { %v4063_v41 = vmul.f32 %v4061_v60, %v3848_v19  ;;  %v10635_v3 = vperm.slane %v4061_v60, 0 }
 0x689   :  { %v4064_v16 = vsub.f32 %v4062_v36, %v4063_v41  ;;  %v4131_v6 = vmul.f32 %v10635_v3, %v3704_v57  ;;  %v4068_v48 = vmul.f32 %v10635_v3, %v9579_v63  ;;  %v4069_v19 = vmul.f32 %v10635_v3, %v9606_v12 }
 0x68a   :  { %v4070_v37 = vmul.f32 %v10635_v3, %v9827_v49  ;;  %v4071_v39 = vmul.f32 %v10635_v3, %v9854_v62  ;;  %v4072_v57 = vmul.f32 %v10635_v3, %v9995_v4  ;;  %v4073_v32 = vmul.f32 %v10635_v3, %v10013_v11 }
 0x68b   :  { %v10639_v9 = vperm.slane %v4064_v16, 0  ;;  %v4074_v43 = vmul.f32 %v10635_v3, %v10030_v20  ;;  %v10659_v63 = vmul.f32 %v10635_v3, %v10049_v29  ;;  %v10663_v12 = vmul.f32 %v10635_v3, %v10067_v38 }
 0x68c   :  { %v10667_v49 = vmul.f32 %v10635_v3, %v10085_v51  ;;  %v4105_v62 = vmul.f32 %v10635_v3, %v10276_v40  ;;  %v4106_v4 = vmul.f32 %v10635_v3, %v10305_v23  ;;  %v4107_v11 = vmul.f32 %v10635_v3, %v10338_v13 }
 0x68d   :  { %v4198_v47 = vadd.f32 %v10639_v9, %v4131_v6  ;;  %v4108_v20 = vmul.f32 %v10635_v3, %v10365_v1  ;;  %v4109_v29 = vmul.f32 %v10635_v3, %v10396_v61  ;;  %v4110_v38 = vmul.f32 %v10635_v3, %v10408_v33 }
 0x68e   :  { %v4111_v51 = vmul.f32 %v10635_v3, %v10427_v17  ;;  %v4112_v40 = vmul.f32 %v10635_v3, %v10445_v59  ;;  %v4113_v23 = vmul.f32 %v10635_v3, %v10464_v2  ;;  %v4114_v13 = vmul.f32 %v10635_v3, %v10478_v34 }
 0x68f   :  { %v4262_v53 = vmax.f32 %v4198_v47, 0.0  ;;  %v4115_v1 = vmul.f32 %v10635_v3, %v10495_v35  ;;  %v4116_v61 = vmul.f32 %v10635_v3, %v10509_v45  ;;  %v4117_v33 = vmul.f32 %v10635_v3, %v10531_v0 }
 0x690   :  { %v4118_v17 = vmul.f32 %v10635_v3, %v10413_v44  ;;  %v4119_v59 = vmul.f32 %v10635_v3, %v10431_v24  ;;  %v4120_v2 = vmul.f32 %v10635_v3, %v10453_v10  ;;  %v4121_v34 = vmul.f32 %v10635_v3, %v10469_v5 }
 0x691   :  { %4370 = vst.msk [vmem:[#allocation3 + $0xb0] sm:$0x3] %vm4263_vm13, %v4262_v53  ;;  %v4122_v35 = vmul.f32 %v10635_v3, %v10483_v46  ;;  %v4123_v45 = vmul.f32 %v10635_v3, %v10499_v30  ;;  %v4124_v0 = vmul.f32 %v10635_v3, %v10513_v14  ;;  %v4125_v44 = vmul.f32 %v10635_v3, %v10539_v55 }
 0x692   :  { %v4126_v24 = vmul.f32 %v10635_v3, %v10552_v31  ;;  %v4127_v10 = vmul.f32 %v10635_v3, %v10566_v18  ;;  %v4128_v5 = vmul.f32 %v10635_v3, %v10578_v56  ;;  %v4129_v46 = vmul.f32 %v10635_v3, %v10593_v8 }
 0x693   :  { %v4130_v30 = vmul.f32 %v10635_v3, %v10607_v28  ;;  %v4135_v14 = vadd.f32 %v10639_v9, %v4068_v48  ;;  %v4136_v25 = vadd.f32 %v10639_v9, %v4069_v19  ;;  %v4137_v55 = vadd.f32 %v10639_v9, %v4070_v37 }
 0x694   :  { %v4138_v31 = vadd.f32 %v10639_v9, %v4071_v39  ;;  %v4139_v21 = vadd.f32 %v10639_v9, %v4072_v57  ;;  %v4140_v18 = vadd.f32 %v10639_v9, %v4073_v32  ;;  %v4141_v56 = vadd.f32 %v10639_v9, %v4074_v43 }
 0x695   :  { %v10729_v26 = vadd.f32 %v10639_v9, %v4105_v62  ;;  %v10732_v8 = vadd.f32 %v10639_v9, %v4106_v4  ;;  %v10735_v28 = vadd.f32 %v10639_v9, %v4107_v11  ;;  %v10738_v15 = vadd.f32 %v10639_v9, %v4108_v20 }
 0x696   :  { %v10741_v52 = vadd.f32 %v10639_v9, %v4109_v29  ;;  %v10744_v42 = vadd.f32 %v10639_v9, %v4110_v38  ;;  %v10747_v54 = vadd.f32 %v10639_v9, %v4111_v51  ;;  %v10750_v22 = vadd.f32 %v10639_v9, %v4112_v40 }
 0x697   :  { %v10753_v50 = vadd.f32 %v10639_v9, %v4113_v23  ;;  %v10756_v60 = vadd.f32 %v10639_v9, %v4114_v13  ;;  %v10759_v36 = vadd.f32 %v10639_v9, %v4115_v1  ;;  %v10762_v41 = vadd.f32 %v10639_v9, %v4116_v61 }
 0x698   :  { %v10765_v16 = vadd.f32 %v10639_v9, %v4117_v33  ;;  %v10768_v27 = vadd.f32 %v10639_v9, %v4118_v17  ;;  %v10771_v6 = vadd.f32 %v10639_v9, %v4119_v59  ;;  %v10774_v47 = vadd.f32 %v10639_v9, %v4120_v2 }
 0x699   :  { %v10777_v53 = vadd.f32 %v10639_v9, %v4121_v34  ;;  %v10780_v48 = vadd.f32 %v10639_v9, %v4122_v35  ;;  %v10783_v19 = vadd.f32 %v10639_v9, %v4123_v45  ;;  %v10786_v37 = vadd.f32 %v10639_v9, %v4124_v0 }
 0x69a   :  { %v10789_v39 = vadd.f32 %v10639_v9, %v4125_v44  ;;  %v10792_v57 = vadd.f32 %v10639_v9, %v4126_v24  ;;  %v10795_v32 = vadd.f32 %v10639_v9, %v4127_v10  ;;  %v10798_v43 = vadd.f32 %v10639_v9, %v4128_v5  ;;  %v11789_v44 = vld [vmem:[#allocation13_spill] sm:$0xff] }
 0x69b   :  { %v10801_v62 = vadd.f32 %v10639_v9, %v4129_v46  ;;  %v10804_v4 = vadd.f32 %v10639_v9, %v4130_v30  ;;  %v4199_v11 = vmax.f32 %v4135_v14, 0.0  ;;  %v4142_v20 = vadd.f32 %v10639_v9, %v10659_v63  ;;  %v11786_v63 = vld [vmem:[#allocation10_spill] sm:$0xff] }
 0x69c   :  { %v4200_v29 = vmax.f32 %v4136_v25, 0.0  ;;  %v4201_v38 = vmax.f32 %v4137_v55, 0.0  ;;  %v4202_v51 = vmax.f32 %v4138_v31, 0.0  ;;  %v4078_v40 = vmul.f32 %v10635_v3, %v10103_v58  ;;  %v11790_v46 = vld [vmem:[#allocation14_spill] sm:$0xff]  ;;  %v11791_v55 = vld [vmem:[#allocation15_spill] sm:$0xff] }
 0x69d   :  { %v4143_v23 = vadd.f32 %v10639_v9, %v10663_v12  ;;  %v4203_v13 = vmax.f32 %v4139_v21, 0.0  ;;  %4307 = vst.msk [vmem:[#allocation3 + $0x16] sm:$0x3] %vm4263_vm13, %v4199_v11  ;;  %v4079_v1 = vmul.f32 %v10635_v3, %v10131_v7  ;;  %v4144_v61 = vadd.f32 %v10639_v9, %v10667_v49  ;;  %v11787_v12 = vld [vmem:[#allocation11_spill] sm:$0xff]  ;;  %v11788_v49 = vld [vmem:[#allocation12_spill] sm:$0xff] }
 0x69e   :  { %v4204_v33 = vmax.f32 %v4140_v18, 0.0  ;;  %4308 = vst.msk [vmem:[#allocation3 + $0x18] sm:$0x3] %vm4263_vm13, %v4200_v29  ;;  %v4080_v17 = vmul.f32 %v10635_v3, %v11786_v63  ;;  %v4145_v58 = vadd.f32 %v10639_v9, %v4078_v40  ;;  %v4205_v59 = vmax.f32 %v4141_v56, 0.0  ;;  %v11792_v56 = vld [vmem:[#allocation16_spill] sm:$0xff]  ;;  %v11795_v63 = vld [vmem:[#allocation19_spill] sm:$0xff] }
 0x69f   :  { %4309 = vst.msk [vmem:[#allocation3 + $0x1a] sm:$0x3] %vm4263_vm13, %v4201_v38  ;;  %v4081_v2 = vmul.f32 %v10635_v3, %v11787_v12  ;;  %v4146_v34 = vadd.f32 %v10639_v9, %v4079_v1  ;;  %v4206_v7 = vmax.f32 %v4142_v20, 0.0  ;;  %v4082_v35 = vmul.f32 %v10635_v3, %v11788_v49  ;;  %v11793_v38 = vld [vmem:[#allocation17_spill] sm:$0xff]  ;;  %v11796_v12 = vld [vmem:[#allocation20_spill] sm:$0xff]  ;;  %v11797_v49 = vld [vmem:[#allocation22_spill] sm:$0xff] }
 0x6a0   :  { %4310 = vst.msk [vmem:[#allocation3 + $0x1c] sm:$0x3] %vm4263_vm13, %v4202_v51  ;;  %v4147_v45 = vadd.f32 %v10639_v9, %v4080_v17  ;;  %v4207_v0 = vmax.f32 %v4143_v23, 0.0  ;;  %v4083_v24 = vmul.f32 %v10635_v3, %v11789_v44  ;;  %v4208_v5 = vmax.f32 %v4144_v61, 0.0  ;;  %v11798_v44 = vld [vmem:[#allocation24_spill] sm:$0xff] }
 0x6a1   :  { %4311 = vst.msk [vmem:[#allocation3 + $0x1e] sm:$0x3] %vm4263_vm13, %v4203_v13  ;;  %v4148_v10 = vadd.f32 %v10639_v9, %v4081_v2  ;;  %v4084_v30 = vmul.f32 %v10635_v3, %v11790_v46  ;;  %v4149_v14 = vadd.f32 %v10639_v9, %v4082_v35  ;;  %v4209_v25 = vmax.f32 %v4145_v58, 0.0  ;;  %v11794_v13 = vld [vmem:[#allocation18_spill] sm:$0xff] }
 0x6a2   :  { %4312 = vst.msk [vmem:[#allocation3 + $0x20] sm:$0x3] %vm4263_vm13, %v4204_v33  ;;  %v4085_v31 = vmul.f32 %v10635_v3, %v11791_v55  ;;  %v4150_v21 = vadd.f32 %v10639_v9, %v4083_v24  ;;  %v4210_v18 = vmax.f32 %v4146_v34, 0.0  ;;  %v4086_v11 = vmul.f32 %v10635_v3, %v11792_v56  ;;  %v11799_v46 = vld [vmem:[#allocation26_spill] sm:$0xff]  ;;  %v11800_v55 = vld [vmem:[#allocation28_spill] sm:$0xff] }
 0x6a3   :  { %4313 = vst.msk [vmem:[#allocation3 + $0x22] sm:$0x3] %vm4263_vm13, %v4205_v59  ;;  %v4151_v20 = vadd.f32 %v10639_v9, %v4084_v30  ;;  %v4211_v29 = vmax.f32 %v4147_v45, 0.0  ;;  %v4087_v51 = vmul.f32 %v10635_v3, %v11793_v38  ;;  %v4212_v23 = vmax.f32 %v4148_v10, 0.0  ;;  %v11801_v56 = vld [vmem:[#allocation30_spill] sm:$0xff]  ;;  %v11802_v38 = vld [vmem:[#allocation23_spill] sm:$0xff] }
 0x6a4   :  { %4314 = vst.msk [vmem:[#allocation3 + $0x24] sm:$0x3] %vm4263_vm13, %v4206_v7  ;;  %v4152_v40 = vadd.f32 %v10639_v9, %v4085_v31  ;;  %v4088_v1 = vmul.f32 %v10635_v3, %v11794_v13  ;;  %v4153_v61 = vadd.f32 %v10639_v9, %v4086_v11  ;;  %v4213_v33 = vmax.f32 %v4149_v14, 0.0  ;;  %v11803_v13 = vld [vmem:[#allocation25_spill] sm:$0xff] }
 0x6a5   :  { %4315 = vst.msk [vmem:[#allocation3 + $0x2a] sm:$0x3] %vm4263_vm13, %v4207_v0  ;;  %v4089_v17 = vmul.f32 %v10635_v3, %v11795_v63  ;;  %v4154_v58 = vadd.f32 %v10639_v9, %v4087_v51  ;;  %v4214_v59 = vmax.f32 %v4150_v21, 0.0  ;;  %v4090_v2 = vmul.f32 %v10635_v3, %v11796_v12  ;;  %v11804_v63 = vld [vmem:[#allocation27_spill] sm:$0xff]  ;;  %v11805_v12 = vld [vmem:[#allocation29_spill] sm:$0xff] }
 0x6a6   :  { %4316 = vst.msk [vmem:[#allocation3 + $0x2c] sm:$0x3] %vm4263_vm13, %v4208_v5  ;;  %v4155_v34 = vadd.f32 %v10639_v9, %v4088_v1  ;;  %v4215_v7 = vmax.f32 %v4151_v20, 0.0  ;;  %v4091_v35 = vmul.f32 %v10635_v3, %v11797_v49  ;;  %v4216_v0 = vmax.f32 %v4152_v40, 0.0  ;;  %v4421_v49 = vld [vmem:[#allocation3 + $0x2] sm:$0x3] }
 0x6a7   :  { %4317 = vst.msk [vmem:[#allocation3 + $0x2e] sm:$0x3] %vm4263_vm13, %v4209_v25  ;;  %v4156_v45 = vadd.f32 %v10639_v9, %v4089_v17  ;;  %v4092_v24 = vmul.f32 %v10635_v3, %v11798_v44  ;;  %v4157_v10 = vadd.f32 %v10639_v9, %v4090_v2  ;;  %v4217_v5 = vmax.f32 %v4153_v61, 0.0  ;;  %4453 = vrot.lane.b32.xlu2 %v4421_v49, %s7043_s26 }
 0x6a8   :  { %4318 = vst.msk [vmem:[#allocation3 + $0x30] sm:$0x3] %vm4263_vm13, %v4210_v18  ;;  %v4093_v30 = vmul.f32 %v10635_v3, %v11799_v46  ;;  %v4158_v14 = vadd.f32 %v10639_v9, %v4091_v35  ;;  %v4218_v25 = vmax.f32 %v4154_v58, 0.0  ;;  %v4094_v31 = vmul.f32 %v10635_v3, %v11800_v55  ;;  %v11806_v35 = vld [vmem:[#allocation31_spill] sm:$0xff] }
 0x6a9   :  { %4319 = vst.msk [vmem:[#allocation3 + $0x32] sm:$0x3] %vm4263_vm13, %v4211_v29  ;;  %v4159_v21 = vadd.f32 %v10639_v9, %v4092_v24  ;;  %v4219_v18 = vmax.f32 %v4155_v34, 0.0  ;;  %v4095_v11 = vmul.f32 %v10635_v3, %v11801_v56  ;;  %v4220_v29 = vmax.f32 %v4156_v45, 0.0  ;;  %v11807_v24 = vld [vmem:[#allocation32_spill] sm:$0xff] }
 0x6aa   :  { %4320 = vst.msk [vmem:[#allocation3 + $0x34] sm:$0x3] %vm4263_vm13, %v4212_v23  ;;  %v4160_v20 = vadd.f32 %v10639_v9, %v4093_v30  ;;  %v4096_v51 = vmul.f32 %v10635_v3, %v11802_v38  ;;  %v4161_v40 = vadd.f32 %v10639_v9, %v4094_v31  ;;  %v4221_v23 = vmax.f32 %v4157_v10, 0.0  ;;  %v11809_v31 = vld [vmem:[#allocation34_spill] sm:$0xff] }
 0x6ab   :  { %4321 = vst.msk [vmem:[#allocation3 + $0x36] sm:$0x3] %vm4263_vm13, %v4213_v33  ;;  %v4097_v1 = vmul.f32 %v10635_v3, %v11803_v13  ;;  %v4162_v61 = vadd.f32 %v10639_v9, %v4095_v11  ;;  %v4222_v33 = vmax.f32 %v4158_v14, 0.0  ;;  %v4098_v17 = vmul.f32 %v10635_v3, %v11804_v63  ;;  %v4618_v63 = vld [vmem:[#allocation3 + $0x18] sm:$0x3] }
 0x6ac   :  { %4322 = vst.msk [vmem:[#allocation3 + $0x38] sm:$0x3] %vm4263_vm13, %v4214_v59  ;;  %v4163_v58 = vadd.f32 %v10639_v9, %v4096_v51  ;;  %v4223_v59 = vmax.f32 %v4159_v21, 0.0  ;;  %v4099_v2 = vmul.f32 %v10635_v3, %v11805_v12  ;;  %v4100_v45 = vmul.f32 %v10635_v3, %v11806_v35  ;;  %4651 = vrot.lane.b32.xlu1 %v4618_v63, %s7048_s21 }
 0x6ad   :  { %4323 = vst.msk [vmem:[#allocation3 + $0x3e] sm:$0x3] %vm4263_vm13, %v4215_v7  ;;  %v4164_v34 = vadd.f32 %v10639_v9, %v4097_v1  ;;  %v4224_v7 = vmax.f32 %v4160_v20, 0.0  ;;  %v4225_v44 = vmax.f32 %v4161_v40, 0.0  ;;  %v4101_v10 = vmul.f32 %v10635_v3, %v11807_v24  ;;  %v11810_v20 = vld [vmem:[#allocation21_spill] sm:$0xff] }
 0x6ae   :  { %4324 = vst.msk [vmem:[#allocation3 + $0x40] sm:$0x3] %vm4263_vm13, %v4216_v0  ;;  %v4165_v0 = vadd.f32 %v10639_v9, %v4098_v17  ;;  %v4166_v30 = vadd.f32 %v10639_v9, %v4099_v2  ;;  %v4226_v14 = vmax.f32 %v4162_v61, 0.0  ;;  %v4227_v55 = vmax.f32 %v4163_v58, 0.0  ;;  %v4714_v2 = vld [vmem:[#allocation3 + $0x16] sm:$0x3] }
 0x6af   :  { %4325 = vst.msk [vmem:[#allocation3 + $0x42] sm:$0x3] %vm4263_vm13, %v4217_v5  ;;  %v11808_v5 = vld [vmem:[#allocation33_spill] sm:$0xff]  ;;  %v4103_v21 = vmul.f32 %v10635_v3, %v11809_v31  ;;  %v4228_v11 = vmax.f32 %v4164_v34, 0.0  ;;  %v4236_v58 = vmax.f32 %v10729_v26, 0.0  ;;  %v4238_v12 = vmax.f32 %v10735_v28, 0.0 }
 0x6b0   :  { %4326 = vst.msk [vmem:[#allocation3 + $0x44] sm:$0x3] %vm4263_vm13, %v4218_v25  ;;  %v4102_v46 = vmul.f32 %v10635_v3, %v11808_v5  ;;  %v4167_v25 = vadd.f32 %v10639_v9, %v4100_v45  ;;  %v4229_v38 = vmax.f32 %v4165_v0, 0.0  ;;  %v4230_v40 = vmax.f32 %v4166_v30, 0.0  ;;  %v4911_v0 = vld [vmem:[#allocation3 + $0x2c] sm:$0x3] }
 0x6b1   :  { %4327 = vst.msk [vmem:[#allocation3 + $0x46] sm:$0x3] %vm4263_vm13, %v4219_v18  ;;  %v4168_v18 = vadd.f32 %v10639_v9, %v4101_v10  ;;  %v4170_v51 = vadd.f32 %v10639_v9, %v4103_v21  ;;  %v4239_v34 = vmax.f32 %v10738_v15, 0.0  ;;  %v4240_v49 = vmax.f32 %v10741_v52, 0.0  ;;  %v4423_v24 = vld [vmem:[#allocation3 + $0xa] sm:$0x3] }
 0x6b2   :  { %4328 = vst.msk [vmem:[#allocation3 + $0x48] sm:$0x3] %vm4263_vm13, %v4220_v29  ;;  %v4169_v56 = vadd.f32 %v10639_v9, %v4102_v46  ;;  %v4104_v29 = vmul.f32 %v10635_v3, %v11810_v20  ;;  %v4231_v13 = vmax.f32 %v4167_v25, 0.0  ;;  %v4715_v3 = vld [vmem:[#allocation3 + $0x1a] sm:$0x3]  ;;  %v4241_v26 = vmax.f32 %v10744_v42, 0.0 }
 0x6b3   :  { %4329 = vst.msk [vmem:[#allocation3 + $0x4a] sm:$0x3] %vm4263_vm13, %v4221_v23  ;;  %v4232_v1 = vmax.f32 %v4168_v18, 0.0  ;;  %v4234_v17 = vmax.f32 %v4170_v51, 0.0  ;;  %4748 = vrot.lane.b32.xlu0 %v4715_v3, %s7049_s2  ;;  %v4242_v28 = vmax.f32 %v10747_v54, 0.0  ;;  %v4243_v15 = vmax.f32 %v10750_v22, 0.0 }
 0x6b4   :  { %4330 = vst.msk [vmem:[#allocation3 + $0x4c] sm:$0x3] %vm4263_vm13, %v4222_v33  ;;  %v4171_v23 = vadd.f32 %v10639_v9, %v4104_v29  ;;  %v4233_v61 = vmax.f32 %v4169_v56, 0.0  ;;  %v4520_v33 = vld [vmem:[#allocation3 + $0x8] sm:$0x3]  ;;  %v4244_v52 = vmax.f32 %v10753_v50, 0.0 }
 0x6b5   :  { %4331 = vst.msk [vmem:[#allocation3 + $0x52] sm:$0x3] %vm4263_vm13, %v4223_v59  ;;  %4553 = vrot.lane.b32.xlu2 %v4520_v33, %s7047_s0  ;;  %v4237_v59 = vmax.f32 %v10732_v8, 0.0  ;;  %v4812_v8 = vld [vmem:[#allocation3 + $0x18] sm:$0x3]  ;;  %v4245_v42 = vmax.f32 %v10756_v60, 0.0 }
 0x6b6   :  { %4332 = vst.msk [vmem:[#allocation3 + $0x54] sm:$0x3] %vm4263_vm13, %v4224_v7  ;;  %v4235_v9 = vmax.f32 %v4171_v23, 0.0  ;;  %v4910_v7 = vld [vmem:[#allocation3 + $0x28] sm:$0x3]  ;;  %4844 = vrot.lane.b32.xlu1 %v4812_v8, %s7051_s17  ;;  %v4246_v54 = vmax.f32 %v10759_v36, 0.0 }
 0x6b7   :  { %4333 = vst.msk [vmem:[#allocation3 + $0x56] sm:$0x3] %vm4263_vm13, %v4225_v44  ;;  %v4247_v35 = vmax.f32 %v10762_v41, 0.0  ;;  %v4248_v22 = vmax.f32 %v10765_v16, 0.0  ;;  %v4249_v45 = vmax.f32 %v10768_v27, 0.0  ;;  %v4250_v36 = vmax.f32 %v10771_v6, 0.0 }
 0x6b8   :  { %4334 = vst.msk [vmem:[#allocation3 + $0x58] sm:$0x3] %vm4263_vm13, %v4226_v14  ;;  %v4813_v50 = vld [vmem:[#allocation3 + $0x1c] sm:$0x3]  ;;  %v5009_v60 = vld [vmem:[#allocation3 + $0x2e] sm:$0x3] }
 0x6b9   :  { %4335 = vst.msk [vmem:[#allocation3 + $0x5a] sm:$0x3] %vm4263_vm13, %v4227_v55  ;;  %v4251_v41 = vmax.f32 %v10774_v47, 0.0  ;;  %v4252_v16 = vmax.f32 %v10777_v53, 0.0  ;;  %v4253_v27 = vmax.f32 %v10780_v48, 0.0  ;;  %v4254_v6 = vmax.f32 %v10783_v19, 0.0 }
 0x6ba   :  { %4336 = vst.msk [vmem:[#allocation3 + $0x5c] sm:$0x3] %vm4263_vm13, %v4228_v11  ;;  %v4255_v44 = vmax.f32 %v10786_v37, 0.0  ;;  %v4256_v47 = vmax.f32 %v10789_v39, 0.0  ;;  %v5008_v53 = vld [vmem:[#allocation3 + $0x2a] sm:$0x3] }
 0x6bb   :  { %4337 = vst.msk [vmem:[#allocation3 + $0x5e] sm:$0x3] %vm4263_vm13, %v4229_v38  ;;  %4942 = vrot.lane.b32.xlu0 %v4910_v7, %s7050_s3  ;;  %v4257_v10 = vmax.f32 %v10792_v57, 0.0  ;;  %v5106_v48 = vld [vmem:[#allocation3 + $0x2c] sm:$0x3]  ;;  %v4258_v19 = vmax.f32 %v10795_v32, 0.0 }
 0x6bc   :  { %4338 = vst.msk [vmem:[#allocation3 + $0x60] sm:$0x3] %vm4263_vm13, %v4230_v40  ;;  %v4259_v37 = vmax.f32 %v10798_v43, 0.0  ;;  %v4260_v39 = vmax.f32 %v10801_v62, 0.0  ;;  %v4261_v57 = vmax.f32 %v10804_v4, 0.0 }
 0x6bd   :  { %4339 = vst.msk [vmem:[#allocation3 + $0x66] sm:$0x3] %vm4263_vm13, %v4231_v13  ;;  %4746 = vrot.lane.b32.xlu2 %v4714_v2, %s7049_s2  ;;  %v4522_v32 = vld [vmem:[#allocation3 + $0x10] sm:$0x3]  ;;  %v4424_v5 = vld [vmem:[#allocation3 + $0xe] sm:$0x3] }
 0x6be   :  { %4340 = vst.msk [vmem:[#allocation3 + $0x68] sm:$0x3] %vm4263_vm13, %v4232_v1  ;;  %4944 = vrot.lane.b32.xlu1 %v4911_v0, %s7050_s3  ;;  %v4393_v46 = vld [vmem:[#allocation3 + $0x2c] sm:$0x3]  ;;  %v5107_v43 = vld [vmem:[#allocation3 + $0x30] sm:$0x3]  ;;  %v4456_v1 = vpop.permute.xlu0 %4455 }
 0x6bf   :  { %4341 = vst.msk [vmem:[#allocation3 + $0x6a] sm:$0x3] %vm4263_vm13, %v4233_v61  ;;  %v4394_v62 = vld [vmem:[#allocation3 + $0x30] sm:$0x3]  ;;  %v4521_v4 = vld [vmem:[#allocation3 + $0xc] sm:$0x3] }
 0x6c0   :  { %4342 = vst.msk [vmem:[#allocation3 + $0x6c] sm:$0x3] %vm4263_vm13, %v4234_v17  ;;  %v4716_v30 = vld [vmem:[#allocation3 + $0x1e] sm:$0x3]  ;;  %v4619_v14 = vld [vmem:[#allocation3 + $0x1c] sm:$0x3] }
 0x6c1   :  { %4343 = vst.msk [vmem:[#allocation3 + $0x6e] sm:$0x3] %vm4263_vm13, %v4235_v9  ;;  %v4395_v25 = vld [vmem:[#allocation3 + $0x34] sm:$0x3]  ;;  %v4620_v31 = vld [vmem:[#allocation3 + $0x20] sm:$0x3] }
 0x6c2   :  { %4344 = vst.msk [vmem:[#allocation3 + $0x70] sm:$0x3] %vm4263_vm13, %v4236_v58  ;;  %v4397_v55 = vld [vmem:[#allocation3 + $0x54] sm:$0x3]  ;;  %v4815_v21 = vld [vmem:[#allocation3 + $0x24] sm:$0x3] }
 0x6c3   :  { %4345 = vst.msk [vmem:[#allocation3 + $0x72] sm:$0x3] %vm4263_vm13, %v4237_v59  ;;  %5042 = vrot.lane.b32.xlu0 %v5009_v60, %s7052_s23  ;;  %v4717_v18 = vld [vmem:[#allocation3 + $0x22] sm:$0x3]  ;;  %v4399_v56 = vld [vmem:[#allocation3 + $0x5c] sm:$0x3] }
 0x6c4   :  { %4346 = vst.msk [vmem:[#allocation3 + $0x74] sm:$0x3] %vm4263_vm13, %v4238_v12  ;;  %v4388_v11 = vld [vmem:[#allocation3] sm:$0x3]  ;;  %v4398_v20 = vld [vmem:[#allocation3 + $0x58] sm:$0x3] }
 0x6c5   :  { %4347 = vst.msk [vmem:[#allocation3 + $0x7a] sm:$0x3] %vm4263_vm13, %v4239_v34  ;;  %4846 = vrot.lane.b32.xlu2 %v4813_v50, %s7051_s17  ;;  %v4814_v29 = vld [vmem:[#allocation3 + $0x20] sm:$0x3]  ;;  %v5010_v38 = vld [vmem:[#allocation3 + $0x32] sm:$0x3] }
 0x6c6   :  { %4348 = vst.msk [vmem:[#allocation3 + $0x7c] sm:$0x3] %vm4263_vm13, %v4240_v49  ;;  %5138 = vrot.lane.b32.xlu1 %v5106_v48, %s7053_s22  ;;  %v4912_v51 = vld [vmem:[#allocation3 + $0x30] sm:$0x3]  ;;  %v4389_v23 = vld [vmem:[#allocation3 + $0x4] sm:$0x3] }
 0x6c7   :  { %4349 = vst.msk [vmem:[#allocation3 + $0x7e] sm:$0x3] %vm4263_vm13, %v4241_v26  ;;  %v4913_v33 = vld [vmem:[#allocation3 + $0x34] sm:$0x3]  ;;  %v5109_v3 = vld [vmem:[#allocation3 + $0x38] sm:$0x3] }
 0x6c8   :  { %4350 = vst.msk [vmem:[#allocation3 + $0x80] sm:$0x3] %vm4263_vm13, %v4242_v28  ;;  %v5011_v63 = vld [vmem:[#allocation3 + $0x36] sm:$0x3]  ;;  %v5108_v17 = vld [vmem:[#allocation3 + $0x34] sm:$0x3] }
 0x6c9   :  { %4351 = vst.msk [vmem:[#allocation3 + $0x82] sm:$0x3] %vm4263_vm13, %v4243_v15  ;;  %v4523_v9 = vld [vmem:[#allocation3 + $0x2c] sm:$0x3]  ;;  %v4425_v58 = vld [vmem:[#allocation3 + $0x2a] sm:$0x3] }
 0x6ca   :  { %4352 = vst.msk [vmem:[#allocation3 + $0x84] sm:$0x3] %vm4263_vm13, %v4244_v52  ;;  %v4426_v59 = vld [vmem:[#allocation3 + $0x2e] sm:$0x3]  ;;  %v4622_v12 = vld [vmem:[#allocation3 + $0x40] sm:$0x3] }
 0x6cb   :  { %4353 = vst.msk [vmem:[#allocation3 + $0x86] sm:$0x3] %vm4263_vm13, %v4245_v42  ;;  %4457 = vrot.lane.b32.xlu0 %v4423_v24, %s7043_s26  ;;  %v4524_v2 = vld [vmem:[#allocation3 + $0x30] sm:$0x3]  ;;  %v4621_v26 = vld [vmem:[#allocation3 + $0x3c] sm:$0x3] }
 0x6cc   :  { %4354 = vst.msk [vmem:[#allocation3 + $0x88] sm:$0x3] %vm4263_vm13, %v4246_v54  ;;  %v4816_v8 = vld [vmem:[#allocation3 + $0x40] sm:$0x3]  ;;  %v4718_v28 = vld [vmem:[#allocation3 + $0x3e] sm:$0x3] }
 0x6cd   :  { %4355 = vst.msk [vmem:[#allocation3 + $0x8e] sm:$0x3] %vm4263_vm13, %v4247_v35  ;;  %5040 = vrot.lane.b32.xlu2 %v5008_v53, %s7052_s23  ;;  %v4401_v40 = vld [vmem:[#allocation3 + $0x7c] sm:$0x3]  ;;  %v4719_v52 = vld [vmem:[#allocation3 + $0x42] sm:$0x3] }
 0x6ce   :  { %4356 = vst.msk [vmem:[#allocation3 + $0x90] sm:$0x3] %vm4263_vm13, %v4248_v22  ;;  %4459 = vrot.lane.b32.xlu1 %v4424_v5, %s7043_s26  ;;  %v4915_v42 = vld [vmem:[#allocation3 + $0x54] sm:$0x3]  ;;  %v4817_v54 = vld [vmem:[#allocation3 + $0x44] sm:$0x3] }
 0x6cf   :  { %4357 = vst.msk [vmem:[#allocation3 + $0x92] sm:$0x3] %vm4263_vm13, %v4249_v45  ;;  %v4402_v13 = vld [vmem:[#allocation3 + $0x80] sm:$0x3]  ;;  %v4914_v22 = vld [vmem:[#allocation3 + $0x50] sm:$0x3] }
 0x6d0   :  { %4358 = vst.msk [vmem:[#allocation3 + $0x94] sm:$0x3] %vm4263_vm13, %v4250_v36  ;;  %v5110_v45 = vld [vmem:[#allocation3 + $0x54] sm:$0x3]  ;;  %v5012_v50 = vld [vmem:[#allocation3 + $0x52] sm:$0x3] }
 0x6d1   :  { %4359 = vst.msk [vmem:[#allocation3 + $0x96] sm:$0x3] %vm4263_vm13, %v4251_v41  ;;  %v4403_v61 = vld [vmem:[#allocation3 + $0x84] sm:$0x3]  ;;  %v5235_v60 = vld [vmem:[%s11723_s4 + $0x20] sm:$0xf] }
 0x6d2   :  { %4360 = vst.msk [vmem:[#allocation3 + $0x98] sm:$0x3] %vm4263_vm13, %v4252_v16  ;;  %v5253_v0 = vunpack.c.l.b16 %v5235_v60  ;;  %v5111_v24 = vld [vmem:[#allocation3 + $0x58] sm:$0x3]  ;;  %v4391_v5 = vld [vmem:[#allocation3 + $0xc] sm:$0x3] }
 0x6d3   :  { %4361 = vst.msk [vmem:[#allocation3 + $0x9a] sm:$0x3] %vm4263_vm13, %v4253_v27  ;;  %4557 = vrot.lane.b32.xlu0 %v4522_v32, %s7047_s0  ;;  %v6939_v27 = vld [vmem:[%s11723_s4 + $0x18] sm:$0xff]  ;;  %v4525_v32 = vld [vmem:[#allocation3 + $0x34] sm:$0x3] }
 0x6d4   :  { %4362 = vst.msk [vmem:[#allocation3 + $0x9c] sm:$0x3] %vm4263_vm13, %v4254_v6  ;;  %v4552_v34 = vpop.permute.xlu1 %4551  ;;  %v5258_v41 = vpack.c.b16 %v5253_v0, %v5253_v0  ;;  %v5013_v6 = vld [vmem:[#allocation3 + $0x56] sm:$0x3]  ;;  %v4626_v60 = vld [vmem:[#allocation3 + $0x68] sm:$0x3] }
 0x6d5   :  { %4363 = vst.msk [vmem:[#allocation3 + $0xa2] sm:$0x3] %vm4263_vm13, %v4255_v44  ;;  %5140 = vrot.lane.b32.xlu2 %v5107_v43, %s7053_s22  ;;  %v4428_v44 = vld [vmem:[#allocation3 + $0x36] sm:$0x3]  ;;  %v6936_v43 = vld [vmem:[%s11723_s4] sm:$0xff] }
 0x6d6   :  { %4364 = vst.msk [vmem:[#allocation3 + $0xa4] sm:$0x3] %vm4263_vm13, %v4256_v47  ;;  %4653 = vrot.lane.b32.xlu1 %v4619_v14, %s7048_s21  ;;  %v5289_v16 = vsel %vm3531_vm6, %v5258_v41, 0  ;;  %v4390_v47 = vld [vmem:[#allocation3 + $0x8] sm:$0x3] }
 0x6d7   :  { %4365 = vst.msk [vmem:[#allocation3 + $0xa6] sm:$0x3] %vm4263_vm13, %v4257_v10  ;;  %5294 = vmatpush.bf16.msrb.mxu1 %v5289_v16  ;;  %v6938_v10 = vld [vmem:[%s11723_s4 + $0x10] sm:$0xff]  ;;  %v4526_v14 = vld [vmem:[#allocation3 + $0x38] sm:$0x3] }
 0x6d8   :  { %4366 = vst.msk [vmem:[#allocation3 + $0xa8] sm:$0x3] %vm4263_vm13, %v4258_v19  ;;  %v4821_v0 = vld [vmem:[#allocation3 + $0x6c] sm:$0x3] }
 0x6d9   :  { %4367 = vst.msk [vmem:[#allocation3 + $0xaa] sm:$0x3] %vm4263_vm13, %v4259_v37  ;;  %v6937_v37 = vld [vmem:[%s11723_s4 + $0x8] sm:$0xff] }
 0x6da   :  { %4368 = vst.msk [vmem:[#allocation3 + $0xac] sm:$0x3] %vm4263_vm13, %v4260_v39  ;;  %v4427_v39 = vld [vmem:[#allocation3 + $0x32] sm:$0x3] }
 0x6db   :  { %4369 = vst.msk [vmem:[#allocation3 + $0xae] sm:$0x3] %vm4263_vm13, %v4261_v57  ;;  %4750 = vrot.lane.b32.xlu0 %v4716_v30, %s7049_s2  ;;  %5295 = vmatpush.bf16.msrb.mxu1 %v6939_v27  ;;  %v4623_v57 = vld [vmem:[#allocation3 + $0x44] sm:$0x3]  ;;  %v11811_v30 = vmov 0.0  }
 0x6dc   :  { %4409 = vst.msk [vmem:[#allocation4 + $0x28] sm:$0x3] %vm4263_vm13, %v4393_v46 }
 0x6dd   :  { %4410 = vst.msk [vmem:[#allocation4 + $0x30] sm:$0x3] %vm4263_vm13, %v4394_v62  ;;  %4555 = vrot.lane.b32.xlu2 %v4521_v4, %s7047_s0 }
 0x6de   :  { %4411 = vst.msk [vmem:[#allocation4 + $0x38] sm:$0x3] %vm4263_vm13, %v4395_v25  ;;  %4752 = vrot.lane.b32.xlu1 %v4717_v18, %s7049_s2  ;;  %v4650_v49 = vpop.permute.xlu0 %4649  ;;  %v4721_v25 = vld [vmem:[#allocation3 + $0x4a] sm:$0x3] }
 0x6df   :  { %4413 = vst.msk [vmem:[#allocation4 + $0x48] sm:$0x3] %vm4263_vm13, %v4397_v55  ;;  %5296 = vmatpush.bf16.msrb.mxu1 %v6938_v10  ;;  %v4624_v55 = vld [vmem:[#allocation3 + $0x48] sm:$0x3] }
 0x6e0   :  { %4415 = vst.msk [vmem:[#allocation4 + $0x58] sm:$0x3] %vm4263_vm13, %v4399_v56  ;;  %v4720_v56 = vld [vmem:[#allocation3 + $0x46] sm:$0x3] }
 0x6e1   :  { %4404 = vst.msk [vmem:[#allocation4] sm:$0x3] %vm4263_vm13, %v4388_v11  ;;  %v4916_v11 = vld [vmem:[#allocation3 + $0x58] sm:$0x3] }
 0x6e2   :  { %4414 = vst.msk [vmem:[#allocation4 + $0x50] sm:$0x3] %vm4263_vm13, %v4398_v20  ;;  %v4818_v20 = vld [vmem:[#allocation3 + $0x48] sm:$0x3] }
 0x6e3   :  { %4850 = vrot.lane.b32.xlu0 %v4815_v21, %s7051_s17  ;;  %4417 = vst.msk [vmem:[#allocation4 + $0x68] sm:$0x3] %vm4263_vm13, %v4401_v40  ;;  %5297 = vmatpush.bf16.msrb.mxu1 %v6937_v37  ;;  %v4819_v40 = vld [vmem:[#allocation3 + $0x4c] sm:$0x3] }
 0x6e4   :  { %4405 = vst.msk [vmem:[#allocation4 + $0x8] sm:$0x3] %vm4263_vm13, %v4389_v23  ;;  %v5015_v23 = vld [vmem:[#allocation3 + $0x5e] sm:$0x3] }
 0x6e5   :  { %4655 = vrot.lane.b32.xlu2 %v4620_v31, %s7048_s21  ;;  %4503 = vst.msk [vmem:[#allocation4 + $0x8] sm:$0x3] %vm4501_vm3, %v4456_v1 }
 0x6e6   :  { %4946 = vrot.lane.b32.xlu1 %v4912_v51, %s7050_s3  ;;  %4418 = vst.msk [vmem:[#allocation4 + $0x70] sm:$0x3] %vm4263_vm13, %v4402_v13  ;;  %v4917_v13 = vld [vmem:[#allocation3 + $0x5c] sm:$0x3] }
 0x6e7   :  { %4419 = vst.msk [vmem:[#allocation4 + $0x78] sm:$0x3] %vm4263_vm13, %v4403_v61  ;;  %5298 = vmatpush.bf16.msrb.mxu1 %v6936_v43 }
 0x6e8   :  { %4406 = vst.msk [vmem:[#allocation4 + $0x10] sm:$0x3] %vm4263_vm13, %v4390_v47 }
 0x6e9   :  { %4407 = vst.msk [vmem:[#allocation4 + $0x18] sm:$0x3] %vm4263_vm13, %v4391_v5 }
 0x6ea   :  { %4372 = vst.msk [vmem:[#allocation4 + $0x2] sm:$0x3f] %vm4371_vm10, %v11811_v30 }
 0x6eb   :  { %5044 = vrot.lane.b32.xlu0 %v5010_v38, %s7052_s23  ;;  %4373 = vst.msk [vmem:[#allocation4 + $0xa] sm:$0x3f] %vm4371_vm10, %v11811_v30 }
 0x6ec   :  { %4374 = vst.msk [vmem:[#allocation4 + $0x12] sm:$0x3f] %vm4371_vm10, %v11811_v30 }
 0x6ed   :  { %4848 = vrot.lane.b32.xlu2 %v4814_v29, %s7051_s17  ;;  %4375 = vst.msk [vmem:[#allocation4 + $0x1a] sm:$0x3f] %vm4371_vm10, %v11811_v30 }
 0x6ee   :  { %5046 = vrot.lane.b32.xlu1 %v5011_v63, %s7052_s23  ;;  %4376 = vst.msk [vmem:[#allocation4 + $0x22] sm:$0x3f] %vm4371_vm10, %v11811_v30 }
 0x6ef   :  { %4377 = vst.msk [vmem:[#allocation4 + $0x2a] sm:$0x3f] %vm4371_vm10, %v11811_v30 }
 0x6f0   :  { %4378 = vst.msk [vmem:[#allocation4 + $0x32] sm:$0x3f] %vm4371_vm10, %v11811_v30 }
 0x6f1   :  { %4379 = vst.msk [vmem:[#allocation4 + $0x3a] sm:$0x3f] %vm4371_vm10, %v11811_v30 }
 0x6f2   :  { %4380 = vst.msk [vmem:[#allocation4 + $0x42] sm:$0x3f] %vm4371_vm10, %v11811_v30 }
 0x6f3   :  { %5144 = vrot.lane.b32.xlu0 %v5109_v3, %s7053_s22  ;;  %4381 = vst.msk [vmem:[#allocation4 + $0x4a] sm:$0x3f] %vm4371_vm10, %v11811_v30 }
 0x6f4   :  { %4382 = vst.msk [vmem:[#allocation4 + $0x52] sm:$0x3f] %vm4371_vm10, %v11811_v30 }
 0x6f5   :  { %4948 = vrot.lane.b32.xlu2 %v4913_v33, %s7050_s3  ;;  %4383 = vst.msk [vmem:[#allocation4 + $0x5a] sm:$0x3f] %vm4371_vm10, %v11811_v30 }
 0x6f6   :  { %4461 = vrot.lane.b32.xlu1 %v4425_v58, %s7043_s26  ;;  %4384 = vst.msk [vmem:[#allocation4 + $0x62] sm:$0x3f] %vm4371_vm10, %v11811_v30  ;;  %v4429_v58 = vld [vmem:[#allocation3 + $0x52] sm:$0x3] }
 0x6f7   :  { %4385 = vst.msk [vmem:[#allocation4 + $0x6a] sm:$0x3f] %vm4371_vm10, %v11811_v30 }
 0x6f8   :  { %4386 = vst.msk [vmem:[#allocation4 + $0x72] sm:$0x3f] %vm4371_vm10, %v11811_v30 }
 0x6f9   :  { %4387 = vst.msk [vmem:[#allocation4 + $0x7a] sm:$0x3f] %vm4371_vm10, %v11811_v30 }
 0x6fa   :  { %5554 = vst.msk [vmem:[#allocation6 + $0x2] sm:$0x3f] %vm4371_vm10, %v11811_v30 }
 0x6fb   :  { %4559 = vrot.lane.b32.xlu0 %v4523_v9, %s7047_s0  ;;  %v5014_v9 = vld [vmem:[#allocation3 + $0x5a] sm:$0x3]  ;;  %5555 = vst.msk [vmem:[#allocation6 + $0xa] sm:$0x3f] %vm4371_vm10, %v11811_v30 }
 0x6fc   :  { %5556 = vst.msk [vmem:[#allocation6 + $0x12] sm:$0x3f] %vm4371_vm10, %v11811_v30 }
 0x6fd   :  { %5142 = vrot.lane.b32.xlu2 %v5108_v17, %s7053_s22  ;;  %5557 = vst.msk [vmem:[#allocation6 + $0x1a] sm:$0x3f] %vm4371_vm10, %v11811_v30  ;;  %v4431_v30 = vld [vmem:[#allocation3 + $0x5a] sm:$0x3] }
 0x6fe   :  { %4561 = vrot.lane.b32.xlu1 %v4524_v2, %s7047_s0 }
 0x701   :  { %v4454_v7 = vpop.permute.xlu2 %4453 }
 0x702   :  { %4502 = vst.msk [vmem:[#allocation4] sm:$0x3] %vm4501_vm3, %v4454_v7  ;;  %v5113_v7 = vld [vmem:[#allocation3 + $0x60] sm:$0x3] }
 0x703   :  { %4659 = vrot.lane.b32.xlu0 %v4622_v12, %s7048_s21  ;;  %4600 = vst.msk [vmem:[#allocation4] sm:$0x3] %vm4599_vm4, %v4552_v34 }
 0x704   :  { %4698 = vst.msk [vmem:[#allocation4] sm:$0x3] %vm4697_vm5, %v4650_v49  ;;  %v4528_v49 = vld [vmem:[#allocation3 + $0x58] sm:$0x3] }
 0x705   :  { %4463 = vrot.lane.b32.xlu2 %v4426_v59, %s7043_s26  ;;  %v5112_v59 = vld [vmem:[#allocation3 + $0x5c] sm:$0x3] }
 0x706   :  { %4754 = vrot.lane.b32.xlu1 %v4718_v28, %s7049_s2 }
 0x70b   :  { %4852 = vrot.lane.b32.xlu0 %v4816_v8, %s7051_s17  ;;  %v4392_v8 = vld [vmem:[#allocation3 + $0x28] sm:$0x3] }
 0x70c   :  { %4408 = vst.msk [vmem:[#allocation4 + $0x20] sm:$0x3] %vm4263_vm13, %v4392_v8  ;;  %v5019_v8 = vld [vmem:[#allocation3 + $0x86] sm:$0x3] }
 0x70d   :  { %4657 = vrot.lane.b32.xlu2 %v4621_v26, %s7048_s21  ;;  %v4430_v26 = vld [vmem:[#allocation3 + $0x56] sm:$0x3] }
 0x70e   :  { %4854 = vrot.lane.b32.xlu1 %v4817_v54, %s7051_s17  ;;  %v4527_v54 = vld [vmem:[#allocation3 + $0x54] sm:$0x3] }
 0x70f   :  { %v4554_v15 = vpop.permute.xlu2 %4553 }
 0x710   :  { %4601 = vst.msk [vmem:[#allocation4 + $0x8] sm:$0x3] %vm4599_vm4, %v4554_v15 }
 0x713   :  { %4952 = vrot.lane.b32.xlu0 %v4915_v42, %s7050_s3  ;;  %v4625_v42 = vld [vmem:[#allocation3 + $0x64] sm:$0x3] }
 0x715   :  { %4756 = vrot.lane.b32.xlu2 %v4719_v52, %s7049_s2 }
 0x716   :  { %5048 = vrot.lane.b32.xlu1 %v5012_v50, %s7052_s23 }
 0x717   :  { %v4747_v35 = vpop.permute.xlu2 %4746 }
 0x718   :  { %4795 = vst.msk [vmem:[#allocation4] sm:$0x3] %vm4794_vm7, %v4747_v35  ;;  %v4722_v35 = vld [vmem:[#allocation3 + $0x66] sm:$0x3] }
 0x71b   :  { %5146 = vrot.lane.b32.xlu0 %v5110_v45, %s7053_s22 }
 0x71d   :  { %4950 = vrot.lane.b32.xlu2 %v4914_v22, %s7050_s3 }
 0x71e   :  { %5148 = vrot.lane.b32.xlu1 %v5111_v24, %s7053_s22  ;;  %v4652_v19 = vpop.permute.xlu1 %4651  ;;  %v5016_v24 = vld [vmem:[#allocation3 + $0x7a] sm:$0x3] }
 0x71f   :  { %v4847_v36 = vpop.permute.xlu2 %4846  ;;  %4699 = vst.msk [vmem:[#allocation4 + $0x8] sm:$0x3] %vm4697_vm5, %v4652_v19 }
 0x723   :  { %4467 = vrot.lane.b32.xlu0 %v4428_v44, %s7043_s26  ;;  %v4820_v44 = vld [vmem:[#allocation3 + $0x68] sm:$0x3] }
 0x725   :  { %5050 = vrot.lane.b32.xlu2 %v5013_v6, %s7052_s23  ;;  %v4749_v48 = vpop.permute.xlu0 %4748  ;;  %v4918_v6 = vld [vmem:[#allocation3 + $0x78] sm:$0x3] }
 0x726   :  { %4796 = vst.msk [vmem:[#allocation4 + $0x8] sm:$0x3] %vm4794_vm7, %v4749_v48  ;;  %4563 = vrot.lane.b32.xlu1 %v4525_v32, %s7047_s0  ;;  %v5017_v32 = vld [vmem:[#allocation3 + $0x7e] sm:$0x3] }
 0x727   :  { %v5041_v53 = vpop.permute.xlu2 %5040  ;;  %4894 = vst.msk [vmem:[#allocation4 + $0x8] sm:$0x3] %vm4892_vm8, %v4847_v36  ;;  %v4723_v36 = vld [vmem:[#allocation3 + $0x6a] sm:$0x3] }
 0x728   :  { %v4845_v4 = vpop.permute.xlu1 %4844 }
 0x729   :  { %4893 = vst.msk [vmem:[#allocation4] sm:$0x3] %vm4892_vm8, %v4845_v4  ;;  %v4529_v4 = vld [vmem:[#allocation3 + $0x5c] sm:$0x3] }
 0x72b   :  { %4661 = vrot.lane.b32.xlu0 %v4623_v57, %s7048_s21  ;;  %v5115_v57 = vld [vmem:[#allocation3 + $0x80] sm:$0x3] }
 0x72d   :  { %4465 = vrot.lane.b32.xlu2 %v4427_v39, %s7043_s26  ;;  %v4943_v62 = vpop.permute.xlu0 %4942  ;;  %v4919_v39 = vld [vmem:[#allocation3 + $0x7c] sm:$0x3] }
 0x72e   :  { %4991 = vst.msk [vmem:[#allocation4] sm:$0x3] %vm4990_vm9, %v4943_v62  ;;  %4663 = vrot.lane.b32.xlu1 %v4624_v55, %s7048_s21  ;;  %v5114_v62 = vld [vmem:[#allocation3 + $0x7c] sm:$0x3] }
 0x72f   :  { %v5141_v46 = vpop.permute.xlu2 %5140  ;;  %5089 = vst.msk [vmem:[#allocation4] sm:$0x3] %vm5088_vm11, %v5041_v53 }
 0x730   :  { %v4945_v18 = vpop.permute.xlu1 %4944 }
 0x731   :  { %4992 = vst.msk [vmem:[#allocation4 + $0x8] sm:$0x3] %vm4990_vm9, %v4945_v18  ;;  %v4530_v18 = vld [vmem:[#allocation3 + $0x60] sm:$0x3] }
 0x733   :  { %4760 = vrot.lane.b32.xlu0 %v4721_v25, %s7049_s2 }
 0x735   :  { %4565 = vrot.lane.b32.xlu2 %v4526_v14, %s7047_s0  ;;  %v5043_v21 = vpop.permute.xlu0 %5042 }
 0x736   :  { %5090 = vst.msk [vmem:[#allocation4 + $0x8] sm:$0x3] %vm5088_vm11, %v5043_v21  ;;  %4856 = vrot.lane.b32.xlu1 %v4818_v20, %s7051_s17  ;;  %v4628_v21 = vld [vmem:[#allocation3 + $0x70] sm:$0x3] }
 0x737   :  { %v4556_v31 = vpop.permute.xlu2 %4555  ;;  %5188 = vst.msk [vmem:[#allocation4 + $0x8] sm:$0x3] %vm5186_vm12, %v5141_v46 }
 0x738   :  { %v5139_v51 = vpop.permute.xlu1 %5138 }
 0x739   :  { %5187 = vst.msk [vmem:[#allocation4] sm:$0x3] %vm5186_vm12, %v5139_v51  ;;  %v4724_v51 = vld [vmem:[#allocation3 + $0x6e] sm:$0x3] }
 0x73b   :  { %4954 = vrot.lane.b32.xlu0 %v4916_v11, %s7050_s3 }
 0x73d   :  { %4758 = vrot.lane.b32.xlu2 %v4720_v56, %s7049_s2  ;;  %v4458_v38 = vpop.permute.xlu0 %4457 }
 0x73e   :  { %4504 = vst.msk [vmem:[#allocation4 + $0x10] sm:$0x3] %vm4501_vm3, %v4458_v38  ;;  %4956 = vrot.lane.b32.xlu1 %v4917_v13, %s7050_s3  ;;  %v5204_v63 = vld [vmem:[#allocation4 + $0x8] sm:$0xff] }
 0x73f   :  { %v4656_v29 = vpop.permute.xlu2 %4655  ;;  %4602 = vst.msk [vmem:[#allocation4 + $0x10] sm:$0x3] %vm4599_vm4, %v4556_v31  ;;  %v4432_v31 = vld [vmem:[#allocation3 + $0x5e] sm:$0x3]  ;;  %v4822_v38 = vld [vmem:[#allocation3 + $0x70] sm:$0x3] }
 0x740   :  { %v4460_v33 = vpop.permute.xlu1 %4459  ;;  %v5203_v3 = vld [vmem:[#allocation4] sm:$0xff] }
 0x741   :  { %4505 = vst.msk [vmem:[#allocation4 + $0x18] sm:$0x3] %vm4501_vm3, %v4460_v33  ;;  %v5219_v17 = vpack.c.bf16 %v5204_v63, %v5203_v3  ;;  %v4823_v33 = vld [vmem:[#allocation3 + $0x74] sm:$0x3] }
 0x743   :  { %5054 = vrot.lane.b32.xlu0 %v5015_v23, %s7052_s23  ;;  %6856 = vmatmul.msk.bf16.vlgmr.msrb.gmra.mxu1 %vm5263_vm15, %v5219_v17 }
 0x745   :  { %4858 = vrot.lane.b32.xlu2 %v4819_v40, %s7051_s17  ;;  %v4558_v61 = vpop.permute.xlu0 %4557 }
 0x746   :  { %4603 = vst.msk [vmem:[#allocation4 + $0x18] sm:$0x3] %vm4599_vm4, %v4558_v61  ;;  %5150 = vrot.lane.b32.xlu1 %v5112_v59, %s7053_s22  ;;  %v4921_v61 = vld [vmem:[#allocation3 + $0x84] sm:$0x3]  ;;  %v5018_v59 = vld [vmem:[#allocation3 + $0x82] sm:$0x3] }
 0x747   :  { %v4849_v1 = vpop.permute.xlu2 %4848  ;;  %4701 = vst.msk [vmem:[#allocation4 + $0x18] sm:$0x3] %vm4697_vm5, %v4656_v29  ;;  %v4627_v29 = vld [vmem:[#allocation3 + $0x6c] sm:$0x3] }
 0x748   :  { %v4654_v34 = vpop.permute.xlu1 %4653 }
 0x749   :  { %4700 = vst.msk [vmem:[#allocation4 + $0x10] sm:$0x3] %vm4697_vm5, %v4654_v34 }
 0x74b   :  { %4469 = vrot.lane.b32.xlu0 %v4429_v58, %s7043_s26  ;;  %v5116_v58 = vld [vmem:[#allocation3 + $0x84] sm:$0x3] }
 0x74d   :  { %5052 = vrot.lane.b32.xlu2 %v5014_v9, %s7052_s23  ;;  %v4751_v2 = vpop.permute.xlu0 %4750  ;;  %v4920_v9 = vld [vmem:[#allocation3 + $0x80] sm:$0x3] }
 0x74e   :  { %4797 = vst.msk [vmem:[#allocation4 + $0x10] sm:$0x3] %vm4794_vm7, %v4751_v2  ;;  %4471 = vrot.lane.b32.xlu1 %v4430_v26, %s7043_s26 }
 0x74f   :  { %v4949_v12 = vpop.permute.xlu2 %4948  ;;  %4895 = vst.msk [vmem:[#allocation4 + $0x10] sm:$0x3] %vm4892_vm8, %v4849_v1  ;;  %v4725_v1 = vld [vmem:[#allocation3 + $0x72] sm:$0x3] }
 0x750   :  { %v4753_v52 = vpop.permute.xlu1 %4752 }
 0x751   :  { %4798 = vst.msk [vmem:[#allocation4 + $0x18] sm:$0x3] %vm4794_vm7, %v4753_v52  ;;  %v4396_v52 = vld [vmem:[#allocation3 + $0x50] sm:$0x3] }
 0x752   :  { %4412 = vst.msk [vmem:[#allocation4 + $0x40] sm:$0x3] %vm4263_vm13, %v4396_v52 }
 0x753   :  { %4569 = vrot.lane.b32.xlu0 %v4528_v49, %s7047_s0 }
 0x755   :  { %5152 = vrot.lane.b32.xlu2 %v5113_v7, %s7053_s22  ;;  %v4851_v15 = vpop.permute.xlu0 %4850 }
 0x756   :  { %4896 = vst.msk [vmem:[#allocation4 + $0x18] sm:$0x3] %vm4892_vm8, %v4851_v15  ;;  %4665 = vrot.lane.b32.xlu1 %v4625_v42, %s7048_s21  ;;  %v5117_v15 = vld [vmem:[#allocation3 + $0x88] sm:$0x3] }
 0x757   :  { %v5143_v28 = vpop.permute.xlu2 %5142  ;;  %4994 = vst.msk [vmem:[#allocation4 + $0x18] sm:$0x3] %vm4990_vm9, %v4949_v12 }
 0x758   :  { %v4947_v50 = vpop.permute.xlu1 %4946 }
 0x759   :  { %4993 = vst.msk [vmem:[#allocation4 + $0x10] sm:$0x3] %vm4990_vm9, %v4947_v50  ;;  %v4531_v50 = vld [vmem:[#allocation3 + $0x7c] sm:$0x3] }
 0x75b   :  { %4762 = vrot.lane.b32.xlu0 %v4722_v35, %s7049_s2 }
 0x75d   :  { %4567 = vrot.lane.b32.xlu2 %v4527_v54, %s7047_s0  ;;  %v5045_v45 = vpop.permute.xlu0 %5044 }
 0x75e   :  { %5091 = vst.msk [vmem:[#allocation4 + $0x10] sm:$0x3] %vm5088_vm11, %v5045_v45  ;;  %4764 = vrot.lane.b32.xlu1 %v4723_v36, %s7049_s2  ;;  %v4433_v45 = vld [vmem:[#allocation3 + $0x7a] sm:$0x3] }
 0x75f   :  { %v4464_v22 = vpop.permute.xlu2 %4463  ;;  %5189 = vst.msk [vmem:[#allocation4 + $0x10] sm:$0x3] %vm5186_vm12, %v5143_v28  ;;  %v4434_v28 = vld [vmem:[#allocation3 + $0x7e] sm:$0x3] }
 0x760   :  { %4507 = vst.msk [vmem:[#allocation4 + $0x28] sm:$0x3] %vm4501_vm3, %v4464_v22  ;;  %v5047_v27 = vpop.permute.xlu1 %5046  ;;  %v4629_v22 = vld [vmem:[#allocation3 + $0x8c] sm:$0x3] }
 0x761   :  { %5092 = vst.msk [vmem:[#allocation4 + $0x18] sm:$0x3] %vm5088_vm11, %v5047_v27  ;;  %v4630_v27 = vld [vmem:[#allocation3 + $0x90] sm:$0x3] }
 0x763   :  { %4862 = vrot.lane.b32.xlu0 %v4821_v0, %s7051_s17 }
 0x765   :  { %4667 = vrot.lane.b32.xlu2 %v4626_v60, %s7048_s21  ;;  %v5145_v16 = vpop.permute.xlu0 %5144 }
 0x766   :  { %5190 = vst.msk [vmem:[#allocation4 + $0x18] sm:$0x3] %vm5186_vm12, %v5145_v16  ;;  %4958 = vrot.lane.b32.xlu1 %v4918_v6, %s7050_s3  ;;  %v5205_v48 = vld [vmem:[#allocation4 + $0x10] sm:$0xff]  ;;  %v4727_v16 = vld [vmem:[#allocation3 + $0x92] sm:$0x3] }
 0x767   :  { %v4658_v41 = vpop.permute.xlu2 %4657 }
 0x768   :  { %v4462_v10 = vpop.permute.xlu1 %4461 }
 0x769   :  { %4506 = vst.msk [vmem:[#allocation4 + $0x20] sm:$0x3] %vm4501_vm3, %v4462_v10  ;;  %v4824_v10 = vld [vmem:[#allocation3 + $0x90] sm:$0x3] }
 0x76b   :  { %5056 = vrot.lane.b32.xlu0 %v5016_v24, %s7052_s23 }
 0x76d   :  { %4860 = vrot.lane.b32.xlu2 %v4820_v44, %s7051_s17  ;;  %v4560_v53 = vpop.permute.xlu0 %4559  ;;  %v5206_v19 = vld [vmem:[#allocation4 + $0x18] sm:$0xff] }
 0x76e   :  { %4604 = vst.msk [vmem:[#allocation4 + $0x20] sm:$0x3] %vm4599_vm4, %v4560_v53  ;;  %v5220_v37 = vpack.c.bf16 %v5206_v19, %v5205_v48  ;;  %5058 = vrot.lane.b32.xlu1 %v5017_v32, %s7052_s23  ;;  %v4726_v53 = vld [vmem:[#allocation3 + $0x8e] sm:$0x3]  ;;  %v4923_v32 = vld [vmem:[#allocation3 + $0xa4] sm:$0x3] }
 0x76f   :  { %v4757_v47 = vpop.permute.xlu2 %4756  ;;  %4702 = vst.msk [vmem:[#allocation4 + $0x20] sm:$0x3] %vm4697_vm5, %v4658_v41  ;;  %v4532_v41 = vld [vmem:[#allocation3 + $0x80] sm:$0x3] }
 0x770   :  { %6857 = vmatmul.msk.bf16.gmra.mxu1 %vm5263_vm15, %v5220_v37  ;;  %v4562_v43 = vpop.permute.xlu1 %4561 }
 0x771   :  { %4605 = vst.msk [vmem:[#allocation4 + $0x28] sm:$0x3] %vm4599_vm4, %v4562_v43 }
 0x773   :  { %5156 = vrot.lane.b32.xlu0 %v5115_v57, %s7053_s22  ;;  %v5021_v57 = vld [vmem:[#allocation3 + $0xa6] sm:$0x3] }
 0x775   :  { %4960 = vrot.lane.b32.xlu2 %v4919_v39, %s7050_s3  ;;  %v4660_v46 = vpop.permute.xlu0 %4659  ;;  %v4825_v39 = vld [vmem:[#allocation3 + $0x94] sm:$0x3] }
 0x776   :  { %4703 = vst.msk [vmem:[#allocation4 + $0x28] sm:$0x3] %vm4697_vm5, %v4660_v46  ;;  %4473 = vrot.lane.b32.xlu1 %v4431_v30, %s7043_s26 }
 0x777   :  { %v4951_v5 = vpop.permute.xlu2 %4950  ;;  %4800 = vst.msk [vmem:[#allocation4 + $0x28] sm:$0x3] %vm4794_vm7, %v4757_v47  ;;  %v4922_v47 = vld [vmem:[#allocation3 + $0xa0] sm:$0x3] }
 0x778   :  { %v4755_v55 = vpop.permute.xlu1 %4754 }
 0x779   :  { %4799 = vst.msk [vmem:[#allocation4 + $0x20] sm:$0x3] %vm4794_vm7, %v4755_v55  ;;  %v5118_v55 = vld [vmem:[#allocation3 + $0xa4] sm:$0x3] }
 0x77b   :  { %4571 = vrot.lane.b32.xlu0 %v4529_v4, %s7047_s0 }
 0x77d   :  { %5154 = vrot.lane.b32.xlu2 %v5114_v62, %s7053_s22  ;;  %v4853_v25 = vpop.permute.xlu0 %4852 }
 0x77e   :  { %4897 = vst.msk [vmem:[#allocation4 + $0x20] sm:$0x3] %vm4892_vm8, %v4853_v25  ;;  %4573 = vrot.lane.b32.xlu1 %v4530_v18, %s7047_s0  ;;  %v4435_v25 = vld [vmem:[#allocation3 + $0x82] sm:$0x3] }
 0x77f   :  { %v5051_v14 = vpop.permute.xlu2 %5050  ;;  %4995 = vst.msk [vmem:[#allocation4 + $0x20] sm:$0x3] %vm4990_vm9, %v4951_v5 }
 0x780   :  { %v4855_v20 = vpop.permute.xlu1 %4854 }
 0x781   :  { %4898 = vst.msk [vmem:[#allocation4 + $0x28] sm:$0x3] %vm4892_vm8, %v4855_v20  ;;  %v4436_v20 = vld [vmem:[#allocation3 + $0x86] sm:$0x3] }
 0x783   :  { %4671 = vrot.lane.b32.xlu0 %v4628_v21, %s7048_s21 }
 0x785   :  { %4475 = vrot.lane.b32.xlu2 %v4432_v31, %s7043_s26  ;;  %v4953_v11 = vpop.permute.xlu0 %4952 }
 0x786   :  { %4996 = vst.msk [vmem:[#allocation4 + $0x28] sm:$0x3] %vm4990_vm9, %v4953_v11  ;;  %4766 = vrot.lane.b32.xlu1 %v4724_v51, %s7049_s2  ;;  %v4534_v11 = vld [vmem:[#allocation3 + $0x88] sm:$0x3] }
 0x787   :  { %v4466_v56 = vpop.permute.xlu2 %4465  ;;  %5094 = vst.msk [vmem:[#allocation4 + $0x28] sm:$0x3] %vm5088_vm11, %v5051_v14  ;;  %v5020_v14 = vld [vmem:[#allocation3 + $0xa2] sm:$0x3] }
 0x788   :  { %4508 = vst.msk [vmem:[#allocation4 + $0x30] sm:$0x3] %vm4501_vm3, %v4466_v56  ;;  %v5049_v13 = vpop.permute.xlu1 %5048  ;;  %v5119_v56 = vld [vmem:[#allocation3 + $0xa8] sm:$0x3] }
 0x789   :  { %5093 = vst.msk [vmem:[#allocation4 + $0x20] sm:$0x3] %vm5088_vm11, %v5049_v13  ;;  %v4631_v13 = vld [vmem:[#allocation3 + $0x94] sm:$0x3] }
 0x78b   :  { %4864 = vrot.lane.b32.xlu0 %v4822_v38, %s7051_s17 }
 0x78d   :  { %4669 = vrot.lane.b32.xlu2 %v4627_v29, %s7048_s21  ;;  %v5147_v23 = vpop.permute.xlu0 %5146 }
 0x78e   :  { %5191 = vst.msk [vmem:[#allocation4 + $0x20] sm:$0x3] %vm5186_vm12, %v5147_v23  ;;  %4866 = vrot.lane.b32.xlu1 %v4823_v33, %s7051_s17  ;;  %v4728_v23 = vld [vmem:[#allocation3 + $0x96] sm:$0x3] }
 0x78f   :  { %v4566_v40 = vpop.permute.xlu2 %4565 }
 0x790   :  { %v5149_v17 = vpop.permute.xlu1 %5148 }
 0x791   :  { %5192 = vst.msk [vmem:[#allocation4 + $0x28] sm:$0x3] %vm5186_vm12, %v5149_v17  ;;  %v4827_v17 = vld [vmem:[#allocation3 + $0x9c] sm:$0x3] }
 0x793   :  { %4964 = vrot.lane.b32.xlu0 %v4921_v61, %s7050_s3 }
 0x795   :  { %4768 = vrot.lane.b32.xlu2 %v4725_v1, %s7049_s2  ;;  %v4468_v63 = vpop.permute.xlu0 %4467  ;;  %v5207_v7 = vld [vmem:[#allocation4 + $0x20] sm:$0xff] }
 0x796   :  { %4509 = vst.msk [vmem:[#allocation4 + $0x38] sm:$0x3] %vm4501_vm3, %v4468_v63  ;;  %5060 = vrot.lane.b32.xlu1 %v5018_v59, %s7052_s23  ;;  %v4632_v63 = vld [vmem:[#allocation3 + $0x98] sm:$0x3] }
 0x797   :  { %v4759_v3 = vpop.permute.xlu2 %4758  ;;  %4607 = vst.msk [vmem:[#allocation4 + $0x38] sm:$0x3] %vm4599_vm4, %v4566_v40  ;;  %v4533_v40 = vld [vmem:[#allocation3 + $0x84] sm:$0x3] }
 0x798   :  { %v4564_v34 = vpop.permute.xlu1 %4563  ;;  %v5208_v49 = vld [vmem:[#allocation4 + $0x28] sm:$0xff] }
 0x799   :  { %4606 = vst.msk [vmem:[#allocation4 + $0x30] sm:$0x3] %vm4599_vm4, %v4564_v34  ;;  %v5221_v26 = vpack.c.bf16 %v5208_v49, %v5207_v7  ;;  %v5022_v34 = vld [vmem:[#allocation3 + $0xaa] sm:$0x3]  ;;  %v4924_v7 = vld [vmem:[#allocation3 + $0xa8] sm:$0x3] }
 0x79b   :  { %5158 = vrot.lane.b32.xlu0 %v5116_v58, %s7053_s22  ;;  %6858 = vmatmul.msk.bf16.gmra.mxu1 %vm5263_vm15, %v5221_v26 }
 0x79d   :  { %4962 = vrot.lane.b32.xlu2 %v4920_v9, %s7050_s3  ;;  %v4662_v2 = vpop.permute.xlu0 %4661  ;;  %v4729_v9 = vld [vmem:[#allocation3 + $0x9a] sm:$0x3] }
 0x79e   :  { %4704 = vst.msk [vmem:[#allocation4 + $0x30] sm:$0x3] %vm4697_vm5, %v4662_v2  ;;  %5160 = vrot.lane.b32.xlu1 %v5117_v15, %s7053_s22  ;;  %v4826_v2 = vld [vmem:[#allocation3 + $0x98] sm:$0x3] }
 0x79f   :  { %v4859_v12 = vpop.permute.xlu2 %4858  ;;  %4801 = vst.msk [vmem:[#allocation4 + $0x30] sm:$0x3] %vm4794_vm7, %v4759_v3  ;;  %v4400_v3 = vld [vmem:[#allocation3 + $0x78] sm:$0x3] }
 0x7a0   :  { %v4664_v35 = vpop.permute.xlu1 %4663  ;;  %4416 = vst.msk [vmem:[#allocation4 + $0x60] sm:$0x3] %vm4263_vm13, %v4400_v3 }
 0x7a1   :  { %4705 = vst.msk [vmem:[#allocation4 + $0x38] sm:$0x3] %vm4697_vm5, %v4664_v35  ;;  %v5023_v35 = vld [vmem:[#allocation3 + $0xae] sm:$0x3] }
 0x7a3   :  { %4479 = vrot.lane.b32.xlu0 %v4434_v28, %s7043_s26 }
 0x7a5   :  { %5062 = vrot.lane.b32.xlu2 %v5019_v8, %s7052_s23  ;;  %v4761_v54 = vpop.permute.xlu0 %4760 }
 0x7a6   :  { %4802 = vst.msk [vmem:[#allocation4 + $0x38] sm:$0x3] %vm4794_vm7, %v4761_v54  ;;  %4575 = vrot.lane.b32.xlu1 %v4531_v50, %s7047_s0  ;;  %v5121_v54 = vld [vmem:[#allocation3 + $0xb0] sm:$0x3] }
 0x7a7   :  { %v5053_v42 = vpop.permute.xlu2 %5052  ;;  %4900 = vst.msk [vmem:[#allocation4 + $0x38] sm:$0x3] %vm4892_vm8, %v4859_v12 }
 0x7a8   :  { %v4857_v36 = vpop.permute.xlu1 %4856 }
 0x7a9   :  { %4899 = vst.msk [vmem:[#allocation4 + $0x30] sm:$0x3] %vm4892_vm8, %v4857_v36 }
 0x7ab   :  { %4673 = vrot.lane.b32.xlu0 %v4629_v22, %s7048_s21 }
 0x7ad   :  { %4477 = vrot.lane.b32.xlu2 %v4433_v45, %s7043_s26  ;;  %v4955_v0 = vpop.permute.xlu0 %4954 }
 0x7ae   :  { %4997 = vst.msk [vmem:[#allocation4 + $0x30] sm:$0x3] %vm4990_vm9, %v4955_v0  ;;  %4675 = vrot.lane.b32.xlu1 %v4630_v27, %s7048_s21 }
 0x7af   :  { %v5153_v60 = vpop.permute.xlu2 %5152  ;;  %5095 = vst.msk [vmem:[#allocation4 + $0x30] sm:$0x3] %vm5088_vm11, %v5053_v42  ;;  %v4925_v42 = vld [vmem:[#allocation3 + $0xac] sm:$0x3] }
 0x7b0   :  { %v4957_v24 = vpop.permute.xlu1 %4956 }
 0x7b1   :  { %4998 = vst.msk [vmem:[#allocation4 + $0x38] sm:$0x3] %vm4990_vm9, %v4957_v24 }
 0x7b3   :  { %4772 = vrot.lane.b32.xlu0 %v4727_v16, %s7049_s2 }
 0x7b5   :  { %4577 = vrot.lane.b32.xlu2 %v4532_v41, %s7047_s0  ;;  %v5055_v44 = vpop.permute.xlu0 %5054 }
 0x7b6   :  { %5096 = vst.msk [vmem:[#allocation4 + $0x38] sm:$0x3] %vm5088_vm11, %v5055_v44  ;;  %4868 = vrot.lane.b32.xlu1 %v4824_v10, %s7051_s17 }
 0x7b7   :  { %v4568_v6 = vpop.permute.xlu2 %4567  ;;  %5194 = vst.msk [vmem:[#allocation4 + $0x38] sm:$0x3] %vm5186_vm12, %v5153_v60  ;;  %v5120_v60 = vld [vmem:[#allocation3 + $0xac] sm:$0x3] }
 0x7b8   :  { %v5151_v37 = vpop.permute.xlu1 %5150 }
 0x7b9   :  { %5193 = vst.msk [vmem:[#allocation4 + $0x30] sm:$0x3] %vm5186_vm12, %v5151_v37 }
 0x7bb   :  { %4966 = vrot.lane.b32.xlu0 %v4922_v47, %s7050_s3 }
 0x7bd   :  { %4770 = vrot.lane.b32.xlu2 %v4726_v53, %s7049_s2  ;;  %v4470_v19 = vpop.permute.xlu0 %4469 }
 0x7be   :  { %4510 = vst.msk [vmem:[#allocation4 + $0x40] sm:$0x3] %vm4501_vm3, %v4470_v19  ;;  %4968 = vrot.lane.b32.xlu1 %v4923_v32, %s7050_s3  ;;  %v5210_v4 = vld [vmem:[#allocation4 + $0x38] sm:$0xff] }
 0x7bf   :  { %v4668_v48 = vpop.permute.xlu2 %4667  ;;  %4608 = vst.msk [vmem:[#allocation4 + $0x40] sm:$0x3] %vm4599_vm4, %v4568_v6 }
 0x7c0   :  { %v4472_v43 = vpop.permute.xlu1 %4471  ;;  %v5209_v62 = vld [vmem:[#allocation4 + $0x30] sm:$0xff] }
 0x7c1   :  { %4511 = vst.msk [vmem:[#allocation4 + $0x48] sm:$0x3] %vm4501_vm3, %v4472_v43  ;;  %v5222_v30 = vpack.c.bf16 %v5210_v4, %v5209_v62 }
 0x7c3   :  { %5066 = vrot.lane.b32.xlu0 %v5021_v57, %s7052_s23  ;;  %6859 = vmatmul.msk.bf16.gmra.mxu1 %vm5263_vm15, %v5222_v30 }
 0x7c5   :  { %4870 = vrot.lane.b32.xlu2 %v4825_v39, %s7051_s17  ;;  %v4570_v46 = vpop.permute.xlu0 %4569 }
 0x7c6   :  { %4609 = vst.msk [vmem:[#allocation4 + $0x48] sm:$0x3] %vm4599_vm4, %v4570_v46  ;;  %5162 = vrot.lane.b32.xlu1 %v5118_v55, %s7053_s22 }
 0x7c7   :  { %v4861_v5 = vpop.permute.xlu2 %4860  ;;  %4707 = vst.msk [vmem:[#allocation4 + $0x48] sm:$0x3] %vm4697_vm5, %v4668_v48 }
 0x7c8   :  { %v4666_v18 = vpop.permute.xlu1 %4665 }
 0x7c9   :  { %4706 = vst.msk [vmem:[#allocation4 + $0x40] sm:$0x3] %vm4697_vm5, %v4666_v18 }
 0x7cb   :  { %4481 = vrot.lane.b32.xlu0 %v4435_v25, %s7043_s26 }
 0x7cd   :  { %5064 = vrot.lane.b32.xlu2 %v5020_v14, %s7052_s23  ;;  %v4763_v21 = vpop.permute.xlu0 %4762 }
 0x7ce   :  { %4803 = vst.msk [vmem:[#allocation4 + $0x40] sm:$0x3] %vm4794_vm7, %v4763_v21  ;;  %4483 = vrot.lane.b32.xlu1 %v4436_v20, %s7043_s26 }
 0x7cf   :  { %v4961_v31 = vpop.permute.xlu2 %4960  ;;  %4901 = vst.msk [vmem:[#allocation4 + $0x40] sm:$0x3] %vm4892_vm8, %v4861_v5 }
 0x7d0   :  { %v4765_v51 = vpop.permute.xlu1 %4764 }
 0x7d1   :  { %4804 = vst.msk [vmem:[#allocation4 + $0x48] sm:$0x3] %vm4794_vm7, %v4765_v51 }
 0x7d3   :  { %4581 = vrot.lane.b32.xlu0 %v4534_v11, %s7047_s0 }
 0x7d5   :  { %5164 = vrot.lane.b32.xlu2 %v5119_v56, %s7053_s22  ;;  %v4863_v38 = vpop.permute.xlu0 %4862 }
 0x7d6   :  { %4902 = vst.msk [vmem:[#allocation4 + $0x48] sm:$0x3] %vm4892_vm8, %v4863_v38  ;;  %4677 = vrot.lane.b32.xlu1 %v4631_v13, %s7048_s21 }
 0x7d7   :  { %v5155_v29 = vpop.permute.xlu2 %5154  ;;  %5000 = vst.msk [vmem:[#allocation4 + $0x48] sm:$0x3] %vm4990_vm9, %v4961_v31 }
 0x7d8   :  { %v4959_v33 = vpop.permute.xlu1 %4958 }
 0x7d9   :  { %4999 = vst.msk [vmem:[#allocation4 + $0x40] sm:$0x3] %vm4990_vm9, %v4959_v33 }
 0x7db   :  { %4774 = vrot.lane.b32.xlu0 %v4728_v23, %s7049_s2 }
 0x7dd   :  { %4579 = vrot.lane.b32.xlu2 %v4533_v40, %s7047_s0  ;;  %v5057_v61 = vpop.permute.xlu0 %5056 }
 0x7de   :  { %5097 = vst.msk [vmem:[#allocation4 + $0x40] sm:$0x3] %vm5088_vm11, %v5057_v61  ;;  %4776 = vrot.lane.b32.xlu1 %v4729_v9, %s7049_s2 }
 0x7df   :  { %v4476_v1 = vpop.permute.xlu2 %4475  ;;  %5195 = vst.msk [vmem:[#allocation4 + $0x40] sm:$0x3] %vm5186_vm12, %v5155_v29 }
 0x7e0   :  { %4513 = vst.msk [vmem:[#allocation4 + $0x58] sm:$0x3] %vm4501_vm3, %v4476_v1  ;;  %v5059_v12 = vpop.permute.xlu1 %5058 }
 0x7e1   :  { %5098 = vst.msk [vmem:[#allocation4 + $0x48] sm:$0x3] %vm5088_vm11, %v5059_v12 }
 0x7e3   :  { %4874 = vrot.lane.b32.xlu0 %v4827_v17, %s7051_s17 }
 0x7e5   :  { %4679 = vrot.lane.b32.xlu2 %v4632_v63, %s7048_s21  ;;  %v5157_v59 = vpop.permute.xlu0 %5156 }
 0x7e6   :  { %5196 = vst.msk [vmem:[#allocation4 + $0x48] sm:$0x3] %vm5186_vm12, %v5157_v59  ;;  %4970 = vrot.lane.b32.xlu1 %v4924_v7, %s7050_s3  ;;  %v5211_v28 = vld [vmem:[#allocation4 + $0x40] sm:$0xff] }
 0x7e7   :  { %v4670_v58 = vpop.permute.xlu2 %4669 }
 0x7e8   :  { %v4474_v8 = vpop.permute.xlu1 %4473 }
 0x7e9   :  { %4512 = vst.msk [vmem:[#allocation4 + $0x50] sm:$0x3] %vm4501_vm3, %v4474_v8 }
 0x7eb   :  { %5068 = vrot.lane.b32.xlu0 %v5022_v34, %s7052_s23  ;;  %v11314_v34 = vpop.f32.mrf.mxu1 }
 0x7ed   :  { %4872 = vrot.lane.b32.xlu2 %v4826_v2, %s7051_s17  ;;  %v4572_v26 = vpop.permute.xlu0 %4571  ;;  %v5212_v15 = vld [vmem:[#allocation4 + $0x48] sm:$0xff] }
 0x7ee   :  { %4610 = vst.msk [vmem:[#allocation4 + $0x50] sm:$0x3] %vm4599_vm4, %v4572_v26  ;;  %v5223_v52 = vpack.c.bf16 %v5212_v15, %v5211_v28  ;;  %5070 = vrot.lane.b32.xlu1 %v5023_v35, %s7052_s23 }
 0x7ef   :  { %v4769_v49 = vpop.permute.xlu2 %4768  ;;  %4708 = vst.msk [vmem:[#allocation4 + $0x50] sm:$0x3] %vm4697_vm5, %v4670_v58 }
 0x7f0   :  { %6860 = vmatmul.msk.bf16.gmra.mxu1 %vm5263_vm15, %v5223_v52  ;;  %v4574_v50 = vpop.permute.xlu1 %4573 }
 0x7f1   :  { %4611 = vst.msk [vmem:[#allocation4 + $0x58] sm:$0x3] %vm4599_vm4, %v4574_v50  ;;  %v5385_v50 = vmul.f32 %v11314_v34, %v11314_v34 }
 0x7f3   :  { %5168 = vrot.lane.b32.xlu0 %v5121_v54, %s7053_s22  ;;  %v11317_v7 = vpop.f32.mrf.mxu1 }
 0x7f5   :  { %4972 = vrot.lane.b32.xlu2 %v4925_v42, %s7050_s3  ;;  %v4672_v45 = vpop.permute.xlu0 %4671 }
 0x7f6   :  { %4709 = vst.msk [vmem:[#allocation4 + $0x58] sm:$0x3] %vm4697_vm5, %v4672_v45  ;;  %v5386_v45 = vmul.f32 %v11317_v7, %v11317_v7 }
 0x7f7   :  { %v4963_v22 = vpop.permute.xlu2 %4962  ;;  %4806 = vst.msk [vmem:[#allocation4 + $0x58] sm:$0x3] %vm4794_vm7, %v4769_v49 }
 0x7f8   :  { %v4767_v41 = vpop.permute.xlu1 %4766 }
 0x7f9   :  { %4805 = vst.msk [vmem:[#allocation4 + $0x50] sm:$0x3] %vm4794_vm7, %v4767_v41  ;;  %v5402_v41 = vsel %vm3707_vm14, %v5386_v45, 0.0 }
 0x7fb   :  { %v11319_v49 = vpop.f32.mrf.mxu1 }
 0x7fd   :  { %5166 = vrot.lane.b32.xlu2 %v5120_v60, %s7053_s22  ;;  %v4865_v36 = vpop.permute.xlu0 %4864  ;;  %v5341_v60 = vsel %vm3707_vm14, %v11317_v7, 0.0 }
 0x7fe   :  { %4903 = vst.msk [vmem:[#allocation4 + $0x50] sm:$0x3] %vm4892_vm8, %v4865_v36  ;;  %v5340_v36 = vsel %vm3707_vm14, %v11314_v34, 0.0 }
 0x7ff   :  { %v5063_v0 = vpop.permute.xlu2 %5062  ;;  %5001 = vst.msk [vmem:[#allocation4 + $0x50] sm:$0x3] %vm4990_vm9, %v4963_v22 }
 0x800   :  { %v4867_v6 = vpop.permute.xlu1 %4866 }
 0x801   :  { %4904 = vst.msk [vmem:[#allocation4 + $0x58] sm:$0x3] %vm4892_vm8, %v4867_v6  ;;  %v5342_v6 = vadd.f32 %v5341_v60, %v5340_v36 }
 0x803   :  { %v11321_v26 = vpop.f32.mrf.mxu1 }
 0x805   :  { %v4965_v27 = vpop.permute.xlu0 %4964 }
 0x806   :  { %5002 = vst.msk [vmem:[#allocation4 + $0x58] sm:$0x3] %vm4990_vm9, %v4965_v27  ;;  %v5388_v27 = vmul.f32 %v11321_v26, %v11321_v26 }
 0x807   :  { %v4478_v16 = vpop.permute.xlu2 %4477  ;;  %5100 = vst.msk [vmem:[#allocation4 + $0x58] sm:$0x3] %vm5088_vm11, %v5063_v0  ;;  %v5387_v0 = vmul.f32 %v11319_v49, %v11319_v49 }
 0x808   :  { %4514 = vst.msk [vmem:[#allocation4 + $0x60] sm:$0x3] %vm4501_vm3, %v4478_v16  ;;  %v5061_v47 = vpop.permute.xlu1 %5060  ;;  %v5343_v16 = vsel %vm3707_vm14, %v11319_v49, 0.0 }
 0x809   :  { %5099 = vst.msk [vmem:[#allocation4 + $0x50] sm:$0x3] %vm5088_vm11, %v5061_v47  ;;  %v5404_v47 = vsel %vm3707_vm14, %v5387_v0, 0.0 }
 0x80d   :  { %v5159_v24 = vpop.permute.xlu0 %5158 }
 0x80e   :  { %5197 = vst.msk [vmem:[#allocation4 + $0x50] sm:$0x3] %vm5186_vm12, %v5159_v24  ;;  %v5401_v24 = vsel %vm3707_vm14, %v5385_v50, 0.0 }
 0x80f   :  { %v4578_v44 = vpop.permute.xlu2 %4577 }
 0x810   :  { %v5161_v48 = vpop.permute.xlu1 %5160 }
 0x811   :  { %5198 = vst.msk [vmem:[#allocation4 + $0x58] sm:$0x3] %vm5186_vm12, %v5161_v48  ;;  %v5403_v48 = vadd.f32 %v5402_v41, %v5401_v24 }
 0x815   :  { %v4480_v10 = vpop.permute.xlu0 %4479  ;;  %v5213_v57 = vld [vmem:[#allocation4 + $0x50] sm:$0xff] }
 0x816   :  { %4515 = vst.msk [vmem:[#allocation4 + $0x68] sm:$0x3] %vm4501_vm3, %v4480_v10 }
 0x817   :  { %v4771_v53 = vpop.permute.xlu2 %4770  ;;  %4613 = vst.msk [vmem:[#allocation4 + $0x68] sm:$0x3] %vm4599_vm4, %v4578_v44 }
 0x818   :  { %v4576_v39 = vpop.permute.xlu1 %4575  ;;  %v5214_v32 = vld [vmem:[#allocation4 + $0x58] sm:$0xff]  ;;  %v11323_v8 = vpop.f32.mrf.mxu1 }
 0x819   :  { %4612 = vst.msk [vmem:[#allocation4 + $0x60] sm:$0x3] %vm4599_vm4, %v4576_v39  ;;  %v5224_v5 = vpack.c.bf16 %v5214_v32, %v5213_v57  ;;  %v5389_v10 = vmul.f32 %v11323_v8, %v11323_v8  ;;  %v5347_v39 = vsel %vm3707_vm14, %v11323_v8, 0.0  ;;  %v5405_v32 = vadd.f32 %v5404_v47, %v5403_v48 }
 0x81b   :  { %6861 = vmatmul.msk.bf16.gmra.mxu1 %vm5263_vm15, %v5224_v5 }
 0x81d   :  { %v4674_v37 = vpop.permute.xlu0 %4673 }
 0x81e   :  { %4710 = vst.msk [vmem:[#allocation4 + $0x60] sm:$0x3] %vm4697_vm5, %v4674_v37  ;;  %v5406_v37 = vsel %vm3707_vm14, %v5388_v27, 0.0 }
 0x81f   :  { %v4871_v19 = vpop.permute.xlu2 %4870  ;;  %4807 = vst.msk [vmem:[#allocation4 + $0x60] sm:$0x3] %vm4794_vm7, %v4771_v53  ;;  %v5345_v53 = vsel %vm3707_vm14, %v11321_v26, 0.0 }
 0x820   :  { %v4676_v62 = vpop.permute.xlu1 %4675  ;;  %v11325_v28 = vpop.f32.mrf.mxu1 }
 0x821   :  { %4711 = vst.msk [vmem:[#allocation4 + $0x68] sm:$0x3] %vm4697_vm5, %v4676_v62  ;;  %v5390_v57 = vmul.f32 %v11325_v28, %v11325_v28 }
 0x825   :  { %v4773_v43 = vpop.permute.xlu0 %4772 }
 0x826   :  { %4808 = vst.msk [vmem:[#allocation4 + $0x68] sm:$0x3] %vm4794_vm7, %v4773_v43  ;;  %v5349_v43 = vsel %vm3707_vm14, %v11325_v28, 0.0 }
 0x827   :  { %v5065_v46 = vpop.permute.xlu2 %5064  ;;  %4906 = vst.msk [vmem:[#allocation4 + $0x68] sm:$0x3] %vm4892_vm8, %v4871_v19  ;;  %v5344_v19 = vadd.f32 %v5343_v16, %v5342_v6 }
 0x828   :  { %v4869_v14 = vpop.permute.xlu1 %4868 }
 0x829   :  { %4905 = vst.msk [vmem:[#allocation4 + $0x60] sm:$0x3] %vm4892_vm8, %v4869_v14  ;;  %v5346_v5 = vadd.f32 %v5345_v53, %v5344_v19  ;;  %v5410_v14 = vsel %vm3707_vm14, %v5390_v57, 0.0 }
 0x82d   :  { %v4967_v30 = vpop.permute.xlu0 %4966 }
 0x82e   :  { %5003 = vst.msk [vmem:[#allocation4 + $0x60] sm:$0x3] %vm4990_vm9, %v4967_v30  ;;  %v5348_v30 = vadd.f32 %v5347_v39, %v5346_v5 }
 0x82f   :  { %v5165_v4 = vpop.permute.xlu2 %5164  ;;  %5101 = vst.msk [vmem:[#allocation4 + $0x60] sm:$0x3] %vm5088_vm11, %v5065_v46  ;;  %v5408_v46 = vsel %vm3707_vm14, %v5389_v10, 0.0 }
 0x830   :  { %v4969_v55 = vpop.permute.xlu1 %4968 }
 0x831   :  { %5004 = vst.msk [vmem:[#allocation4 + $0x68] sm:$0x3] %vm4990_vm9, %v4969_v55 }
 0x835   :  { %v5067_v25 = vpop.permute.xlu0 %5066 }
 0x836   :  { %5102 = vst.msk [vmem:[#allocation4 + $0x68] sm:$0x3] %vm5088_vm11, %v5067_v25 }
 0x837   :  { %v4580_v31 = vpop.permute.xlu2 %4579  ;;  %5200 = vst.msk [vmem:[#allocation4 + $0x68] sm:$0x3] %vm5186_vm12, %v5165_v4  ;;  %v5407_v4 = vadd.f32 %v5406_v37, %v5405_v32 }
 0x838   :  { %v5163_v18 = vpop.permute.xlu1 %5162 }
 0x839   :  { %5199 = vst.msk [vmem:[#allocation4 + $0x60] sm:$0x3] %vm5186_vm12, %v5163_v18 }
 0x83d   :  { %v4482_v21 = vpop.permute.xlu0 %4481 }
 0x83e   :  { %4516 = vst.msk [vmem:[#allocation4 + $0x70] sm:$0x3] %vm4501_vm3, %v4482_v21  ;;  %v5216_v38 = vld [vmem:[#allocation4 + $0x68] sm:$0xff]  ;;  %v5350_v21 = vadd.f32 %v5349_v43, %v5348_v30 }
 0x83f   :  { %4614 = vst.msk [vmem:[#allocation4 + $0x70] sm:$0x3] %vm4599_vm4, %v4580_v31  ;;  %v4680_v56 = vpop.permute.xlu2 %4679  ;;  %v5409_v31 = vadd.f32 %v5408_v46, %v5407_v4 }
 0x840   :  { %v4484_v20 = vpop.permute.xlu1 %4483  ;;  %v5215_v29 = vld [vmem:[#allocation4 + $0x60] sm:$0xff]  ;;  %v11327_v15 = vpop.f32.mrf.mxu1 }
 0x841   :  { %4517 = vst.msk [vmem:[#allocation4 + $0x78] sm:$0x3] %vm4501_vm3, %v4484_v20  ;;  %v5225_v51 = vpack.c.bf16 %v5216_v38, %v5215_v29  ;;  %v5391_v62 = vmul.f32 %v11327_v15, %v11327_v15  ;;  %v5351_v25 = vsel %vm3707_vm14, %v11327_v15, 0.0  ;;  %v5411_v20 = vadd.f32 %v5410_v14, %v5409_v31 }
 0x842   :  { %v5352_v29 = vadd.f32 %v5351_v25, %v5350_v21 }
 0x843   :  { %6862 = vmatmul.msk.bf16.gmra.mxu1 %vm5263_vm15, %v5225_v51  ;;  %v5412_v18 = vsel %vm3707_vm14, %v5391_v62, 0.0 }
 0x845   :  { %v4582_v11 = vpop.permute.xlu0 %4581 }
 0x846   :  { %4615 = vst.msk [vmem:[#allocation4 + $0x78] sm:$0x3] %vm4599_vm4, %v4582_v11 }
 0x847   :  { %4713 = vst.msk [vmem:[#allocation4 + $0x78] sm:$0x3] %vm4697_vm5, %v4680_v56  ;;  %v4873_v40 = vpop.permute.xlu2 %4872 }
 0x848   :  { %v4678_v13 = vpop.permute.xlu1 %4677  ;;  %v11329_v52 = vpop.f32.mrf.mxu1 }
 0x849   :  { %4712 = vst.msk [vmem:[#allocation4 + $0x70] sm:$0x3] %vm4697_vm5, %v4678_v13  ;;  %v5392_v55 = vmul.f32 %v11329_v52, %v11329_v52  ;;  %v5353_v56 = vsel %vm3707_vm14, %v11329_v52, 0.0  ;;  %v5413_v13 = vadd.f32 %v5412_v18, %v5411_v20 }
 0x84b   :  { %v5414_v51 = vsel %vm3707_vm14, %v5392_v55, 0.0 }
 0x84d   :  { %v4775_v23 = vpop.permute.xlu0 %4774 }
 0x84e   :  { %4809 = vst.msk [vmem:[#allocation4 + $0x70] sm:$0x3] %vm4794_vm7, %v4775_v23 }
 0x84f   :  { %4907 = vst.msk [vmem:[#allocation4 + $0x70] sm:$0x3] %vm4892_vm8, %v4873_v40  ;;  %v4973_v1 = vpop.permute.xlu2 %4972 }
 0x850   :  { %v4777_v33 = vpop.permute.xlu1 %4776 }
 0x851   :  { %4810 = vst.msk [vmem:[#allocation4 + $0x78] sm:$0x3] %vm4794_vm7, %v4777_v33 }
 0x855   :  { %v4875_v61 = vpop.permute.xlu0 %4874 }
 0x856   :  { %4908 = vst.msk [vmem:[#allocation4 + $0x78] sm:$0x3] %vm4892_vm8, %v4875_v61 }
 0x857   :  { %5006 = vst.msk [vmem:[#allocation4 + $0x78] sm:$0x3] %vm4990_vm9, %v4973_v1  ;;  %v5167_v17 = vpop.permute.xlu2 %5166  ;;  %v5354_v1 = vadd.f32 %v5353_v56, %v5352_v29 }
 0x858   :  { %v4971_v63 = vpop.permute.xlu1 %4970 }
 0x859   :  { %5005 = vst.msk [vmem:[#allocation4 + $0x70] sm:$0x3] %vm4990_vm9, %v4971_v63  ;;  %v5415_v63 = vadd.f32 %v5414_v51, %v5413_v13 }
 0x85d   :  { %v5069_v3 = vpop.permute.xlu0 %5068 }
 0x85e   :  { %5103 = vst.msk [vmem:[#allocation4 + $0x70] sm:$0x3] %vm5088_vm11, %v5069_v3 }
 0x85f   :  { %5201 = vst.msk [vmem:[#allocation4 + $0x70] sm:$0x3] %vm5186_vm12, %v5167_v17 }
 0x860   :  { %v5071_v58 = vpop.permute.xlu1 %5070 }
 0x861   :  { %5104 = vst.msk [vmem:[#allocation4 + $0x78] sm:$0x3] %vm5088_vm11, %v5071_v58 }
 0x865   :  { %v5169_v9 = vpop.permute.xlu0 %5168 }
 0x866   :  { %5202 = vst.msk [vmem:[#allocation4 + $0x78] sm:$0x3] %vm5186_vm12, %v5169_v9  ;;  %v5217_v59 = vld [vmem:[#allocation4 + $0x70] sm:$0xff]  ;;  %v7054_v9 = vmov 32.0  }
 0x867   :  { %6982 = vrcp.f32 %v7054_v9 }
 0x86d   :  { %v5218_v12 = vld [vmem:[#allocation4 + $0x78] sm:$0xff]  ;;  %v11331_v42 = vpop.f32.mrf.mxu1  ;;  %v6983_v47 = vpop.eup %6982 }
 0x86e   :  { %v5226_v2 = vpack.c.bf16 %v5218_v12, %v5217_v59  ;;  %v5393_v11 = vmul.f32 %v11331_v42, %v11331_v42  ;;  %v5355_v40 = vsel %vm3707_vm14, %v11331_v42, 0.0  ;;  %v5378_v46 = vmul.f32 32.0, %v6983_v47 }
 0x86f   :  { %v5356_v17 = vadd.f32 %v5355_v40, %v5354_v1  ;;  %vm5382_vm0 = vweird.f32 %v6983_v47 }
 0x870   :  { %6863 = vmatmul.msk.bf16.gmra.mxu1 %vm5263_vm15, %v5226_v2  ;;  %v5416_v61 = vsel %vm3707_vm14, %v5393_v11, 0.0  ;;  %v5379_v31 = vsub.f32 1.0, %v5378_v46 }
 0x871   :  { %v5417_v2 = vadd.f32 %v5416_v61, %v5415_v63 }
 0x872   :  { %v5380_v51 = vmul.f32 %v6983_v47, %v5379_v31 }
 0x874   :  { %v5381_v61 = vadd.f32 %v6983_v47, %v5380_v51 }
 0x875   :  { %v11333_v54 = vpop.f32.mrf.mxu1 }
 0x876   :  { %v5394_v23 = vmul.f32 %v11333_v54, %v11333_v54  ;;  %v5357_v33 = vsel %vm3707_vm14, %v11333_v54, 0.0  ;;  %v5383_v9 = vsel %vm5382_vm0, %v6983_v47, %v5381_v61 }
 0x877   :  { %v5358_v45 = vadd.f32 %v5357_v33, %v5356_v17 }
 0x878   :  { %v5418_v58 = vsel %vm3707_vm14, %v5394_v23, 0.0 }
 0x879   :  { %v5419_v36 = vadd.f32 %v5418_v58, %v5417_v2 }
 0x898   :  { %v11335_v35 = vpop.f32.mrf.mxu1 }
 0x899   :  { %v5395_v3 = vmul.f32 %v11335_v35, %v11335_v35  ;;  %v5359_v59 = vsel %vm3707_vm14, %v11335_v35, 0.0 }
 0x89a   :  { %v5360_v41 = vadd.f32 %v5359_v59, %v5358_v45 }
 0x89b   :  { %v5420_v50 = vsel %vm3707_vm14, %v5395_v3, 0.0 }
 0x89c   :  { %v5421_v53 = vadd.f32 %v5420_v50, %v5419_v36  ;;  %v5567_v36 = vld [vmem:[#allocation5 + $0x2] sm:$0x3] }
 0x89d   :  { %5575 = vrot.lane.b32.xlu1 %v5567_v36, %s7043_s26 }
 0x8a0   :  { %v11337_v22 = vpop.f32.mrf.mxu1 }
 0x8a1   :  { %v5396_v12 = vmul.f32 %v11337_v22, %v11337_v22  ;;  %v5361_v60 = vsel %vm3707_vm14, %v11337_v22, 0.0 }
 0x8a2   :  { %v5362_v10 = vadd.f32 %v5361_v60, %v5360_v41  ;;  %v5568_v41 = vld [vmem:[#allocation5 + $0x6] sm:$0x3] }
 0x8a3   :  { %v5422_v27 = vsel %vm3707_vm14, %v5396_v12, 0.0  ;;  %5577 = vrot.lane.b32.xlu2 %v5568_v41, %s7043_s26 }
 0x8a4   :  { %v5423_v39 = vadd.f32 %v5422_v27, %v5421_v53  ;;  %v5592_v27 = vld [vmem:[#allocation5 + $0x4] sm:$0x3] }
 0x8a5   :  { %5600 = vrot.lane.b32.xlu0 %v5592_v27, %s7047_s0 }
 0x8c0   :  { %v11354_v44 = vpop.f32.mrf.mxu1 }
 0x8c1   :  { %v5397_v0 = vmul.f32 %v11354_v44, %v11354_v44  ;;  %v5363_v6 = vsel %vm3707_vm14, %v11354_v44, 0.0 }
 0x8c2   :  { %v5364_v57 = vadd.f32 %v5363_v6, %v5362_v10  ;;  %v5593_v6 = vld [vmem:[#allocation5 + $0x8] sm:$0x3] }
 0x8c3   :  { %v5424_v48 = vsel %vm3707_vm14, %v5397_v0, 0.0  ;;  %5602 = vrot.lane.b32.xlu1 %v5593_v6, %s7047_s0 }
 0x8c4   :  { %v5425_v43 = vadd.f32 %v5424_v48, %v5423_v39 }
 0x8c8   :  { %v11382_v38 = vpop.f32.mrf.mxu1 }
 0x8c9   :  { %v5398_v24 = vmul.f32 %v11382_v38, %v11382_v38  ;;  %v5365_v19 = vsel %vm3707_vm14, %v11382_v38, 0.0 }
 0x8ca   :  { %v5366_v62 = vadd.f32 %v5365_v19, %v5364_v57 }
 0x8cb   :  { %v5426_v32 = vsel %vm3707_vm14, %v5398_v24, 0.0  ;;  %v5617_v24 = vld [vmem:[#allocation5 + $0xc] sm:$0x3] }
 0x8cc   :  { %v5427_v30 = vadd.f32 %v5426_v32, %v5425_v43  ;;  %5625 = vrot.lane.b32.xlu2 %v5617_v24, %s7048_s21 }
 0x8ed   :  { %v11404_v16 = vpop.f32.mrf.mxu1 }
 0x8ee   :  { %v5399_v37 = vmul.f32 %v11404_v16, %v11404_v16  ;;  %v5367_v5 = vsel %vm3707_vm14, %v11404_v16, 0.0 }
 0x8ef   :  { %v5368_v14 = vadd.f32 %v5367_v5, %v5366_v62  ;;  %v5454_v5 = vld [vmem:[%s11725_s6] sm:$0x1] }
 0x8f0   :  { %v5428_v4 = vsel %vm3707_vm14, %v5399_v37, 0.0  ;;  %v5441_v37 = vld [vmem:[%s11724_s5] sm:$0x1] }
 0x8f1   :  { %v5429_v18 = vadd.f32 %v5428_v4, %v5427_v30 }
 0x8f5   :  { %v5337_v25 = vpop.f32.mrf.mxu1 }
 0x8f6   :  { %v5369_v55 = vsel %vm3707_vm14, %v5337_v25, 0.0  ;;  %v5400_v21 = vmul.f32 %v5337_v25, %v5337_v25 }
 0x8f7   :  { %v5370_v56 = vadd.f32 %v5369_v55, %v5368_v14 }
 0x8f8   :  { %v5430_v11 = vsel %vm3707_vm14, %v5400_v21, 0.0 }
 0x8f9   :  { %v5371_v20 = vrot.slane %v5370_v56, 4  ;;  %v5431_v29 = vadd.f32 %v5430_v11, %v5429_v18 }
 0x8fb   :  { %v5372_v40 = vadd.f32 %v5371_v20, %v5370_v56  ;;  %v5432_v23 = vrot.slane %v5431_v29, 4 }
 0x8fd   :  { %v5373_v13 = vrot.slane %v5372_v40, 2  ;;  %v5433_v1 = vadd.f32 %v5432_v23, %v5431_v29 }
 0x8ff   :  { %v5374_v33 = vadd.f32 %v5373_v13, %v5372_v40  ;;  %v5434_v3 = vrot.slane %v5433_v1, 2 }
 0x901   :  { %v5375_v63 = vrot.slane %v5374_v33, 1  ;;  %v5435_v17 = vadd.f32 %v5434_v3, %v5433_v1 }
 0x903   :  { %v5376_v58 = vadd.f32 %v5375_v63, %v5374_v33  ;;  %v5436_v59 = vrot.slane %v5435_v17, 1 }
 0x905   :  { %v5384_v12 = vmul.f32 %v5383_v9, %v5376_v58  ;;  %v5437_v2 = vadd.f32 %v5436_v59, %v5435_v17 }
 0x907   :  { %v5438_v45 = vmul.f32 %v5437_v2, %v5383_v9  ;;  %v5439_v50 = vmul.f32 %v5384_v12, %v5384_v12 }
 0x909   :  { %v5440_v60 = vsub.f32 %v5438_v45, %v5439_v50 }
 0x90b   :  { %v5442_v0 = vadd.f32 1e-05, %v5440_v60 }
 0x90d   :  { %6984 = vrsqrt.f32 %v5442_v0  ;;  %vm5449_vm1 = vweird.f32 %v5442_v0 }
 0x913   :  { %v6985_v47 = vpop.eup %6984 }
 0x914   :  { %v5444_v53 = vmul.f32 %v6985_v47, %v5442_v0  ;;  %vm5450_vm14 = vweird.f32 %v6985_v47 }
 0x915   :  { %vm5451_vm2 = vmor %vm5449_vm1, %vm5450_vm14 }
 0x916   :  { %v5445_v10 = vmul.f32 %v6985_v47, %v5444_v53 }
 0x918   :  { %v5446_v48 = vmul.f32 0.5, %v5445_v10 }
 0x91a   :  { %v5447_v19 = vsub.f32 1.5, %v5446_v48 }
 0x91c   :  { %v5448_v39 = vmul.f32 %v6985_v47, %v5447_v19 }
 0x91e   :  { %v5452_v57 = vsel %vm5451_vm2, %v6985_v47, %v5448_v39 }
 0x91f   :  { %v5453_v32 = vmul.f32 %v5452_v57, %v5441_v37 }
 0x921   :  { %v5455_v46 = vmul.f32 %v5453_v32, %v5384_v12  ;;  %v11433_v43 = vperm.slane %v5453_v32, 0  ;;  %v5691_v12 = vld [vmem:[#allocation5 + $0x18] sm:$0x3] }
 0x923   :  { %v5456_v62 = vsub.f32 %v5454_v5, %v5455_v46  ;;  %v5475_v4 = vmul.f32 %v11433_v43, %v5337_v25  ;;  %v5462_v14 = vmul.f32 %v11433_v43, %v11319_v49  ;;  %v5461_v55 = vmul.f32 %v11433_v43, %v11317_v7 }
 0x924   :  { %v5460_v31 = vmul.f32 %v11433_v43, %v11314_v34  ;;  %v5463_v21 = vmul.f32 %v11433_v43, %v11321_v26  ;;  %v5466_v18 = vmul.f32 %v11433_v43, %v11327_v15  ;;  %v5465_v25 = vmul.f32 %v11433_v43, %v11325_v28 }
 0x925   :  { %v11436_v30 = vperm.slane %v5456_v62, 0  ;;  %v5464_v26 = vmul.f32 %v11433_v43, %v11323_v8  ;;  %v5467_v8 = vmul.f32 %v11433_v43, %v11329_v52  ;;  %v5468_v58 = vmul.f32 %v11433_v43, %v11331_v42 }
 0x926   :  { %v5469_v60 = vmul.f32 %v11433_v43, %v11333_v54  ;;  %v5471_v42 = vmul.f32 %v11433_v43, %v11337_v22  ;;  %v5470_v41 = vmul.f32 %v11433_v43, %v11335_v35  ;;  %v5472_v27 = vmul.f32 %v11433_v43, %v11354_v44 }
 0x927   :  { %v5494_v56 = vadd.f32 %v11436_v30, %v5475_v4  ;;  %v5481_v11 = vadd.f32 %v11436_v30, %v5462_v14  ;;  %v5480_v49 = vadd.f32 %v11436_v30, %v5461_v55  ;;  %v5479_v7 = vadd.f32 %v11436_v30, %v5460_v31 }
 0x928   :  { %v5482_v20 = vadd.f32 %v11436_v30, %v5463_v21  ;;  %v5485_v34 = vadd.f32 %v11436_v30, %v5466_v18  ;;  %v5484_v28 = vadd.f32 %v11436_v30, %v5465_v25  ;;  %v5483_v23 = vadd.f32 %v11436_v30, %v5464_v26  ;;  %v5559_v21 = vld [vmem:[#allocation5 + $0x4] sm:$0x3]  ;;  %v6943_v18 = vld [vmem:[%s11726_s7 + $0x18] sm:$0xff] }
 0x929   :  { %v5510_v29 = vmax.f32 %v5494_v56, 0.0  ;;  %v5497_v15 = vmax.f32 %v5481_v11, 0.0  ;;  %v5496_v51 = vmax.f32 %v5480_v49, 0.0  ;;  %v5495_v40 = vmax.f32 %v5479_v7, 0.0  ;;  %5563 = vst.msk [vmem:[#allocation6 + $0x8] sm:$0x3] %vm4263_vm13, %v5559_v21 }
 0x92a   :  { %v5498_v13 = vmax.f32 %v5482_v20, 0.0  ;;  %v5501_v1 = vmax.f32 %v5485_v34, 0.0  ;;  %v5500_v61 = vmax.f32 %v5484_v28, 0.0  ;;  %v5499_v33 = vmax.f32 %v5483_v23, 0.0  ;;  %v5619_v25 = vld [vmem:[#allocation5 + $0x24] sm:$0x3]  ;;  %v5578_v34 = vpop.permute.xlu2 %5577 }
 0x92b   :  { %5553 = vst.msk [vmem:[#allocation5 + $0x38] sm:$0x3] %vm4263_vm13, %v5510_v29  ;;  %v5486_v3 = vadd.f32 %v11436_v30, %v5467_v8  ;;  %v5487_v59 = vadd.f32 %v11436_v30, %v5468_v58  ;;  %v5488_v0 = vadd.f32 %v11436_v30, %v5469_v60  ;;  %v5490_v36 = vadd.f32 %v11436_v30, %v5471_v42  ;;  %v5693_v26 = vld [vmem:[#allocation5 + $0x30] sm:$0x3]  ;;  %v6940_v58 = vld [vmem:[%s11726_s7] sm:$0xff] }
 0x92c   :  { %5540 = vst.msk [vmem:[#allocation5 + $0x12] sm:$0x3] %vm4263_vm13, %v5497_v15  ;;  %v5473_v6 = vmul.f32 %v11433_v43, %v11382_v38  ;;  %v5474_v54 = vmul.f32 %v11433_v43, %v11404_v16  ;;  %v5489_v22 = vadd.f32 %v11436_v30, %v5470_v41  ;;  %v5491_v53 = vadd.f32 %v11436_v30, %v5472_v27  ;;  %v5779_v43 = vld [vmem:[%s11726_s7 + $0x20] sm:$0xf] }
 0x92d   :  { %5539 = vst.msk [vmem:[#allocation5 + $0x10] sm:$0x3] %vm4263_vm13, %v5496_v51  ;;  %v5502_v63 = vmax.f32 %v5486_v3, 0.0  ;;  %v5503_v2 = vmax.f32 %v5487_v59, 0.0  ;;  %v5504_v24 = vmax.f32 %v5488_v0, 0.0  ;;  %v5506_v47 = vmax.f32 %v5490_v36, 0.0 }
 0x92e   :  { %5538 = vst.msk [vmem:[#allocation5 + $0xe] sm:$0x3] %vm4263_vm13, %v5495_v40  ;;  %v5492_v10 = vadd.f32 %v11436_v30, %v5473_v6  ;;  %v5493_v35 = vadd.f32 %v11436_v30, %v5474_v54  ;;  %v5505_v44 = vmax.f32 %v5489_v22, 0.0  ;;  %v5507_v38 = vmax.f32 %v5491_v53, 0.0  ;;  %v5558_v51 = vld [vmem:[#allocation5] sm:$0x3] }
 0x92f   :  { %5541 = vst.msk [vmem:[#allocation5 + $0x14] sm:$0x3] %vm4263_vm13, %v5498_v13  ;;  %v5797_v62 = vunpack.c.l.b16 %v5779_v43  ;;  %v5576_v13 = vpop.permute.xlu1 %5575  ;;  %v5560_v3 = vld [vmem:[#allocation5 + $0x18] sm:$0x3] }
 0x930   :  { %5544 = vst.msk [vmem:[#allocation5 + $0x1e] sm:$0x3] %vm4263_vm13, %v5501_v1  ;;  %v5508_v16 = vmax.f32 %v5492_v10, 0.0  ;;  %v5509_v39 = vmax.f32 %v5493_v35, 0.0  ;;  %v6942_v1 = vld [vmem:[%s11726_s7 + $0x10] sm:$0xff] }
 0x931   :  { %5543 = vst.msk [vmem:[#allocation5 + $0x1c] sm:$0x3] %vm4263_vm13, %v5500_v61  ;;  %v5802_v4 = vpack.c.b16 %v5797_v62, %v5797_v62  ;;  %v5601_v61 = vpop.permute.xlu0 %5600  ;;  %v6945_v35 = vld [vmem:[%s11729_s10 + $0x8] sm:$0xf0] }
 0x932   :  { %5542 = vst.msk [vmem:[#allocation5 + $0x1a] sm:$0x3] %vm4263_vm13, %v5499_v33  ;;  %v5744_v28 = vld [vmem:[#allocation5 + $0x38] sm:$0x3]  ;;  %v5626_v8 = vpop.permute.xlu2 %5625 }
 0x933   :  { %v5642_v17 = vld [vmem:[#allocation5 + $0x12] sm:$0x3]  ;;  %5545 = vst.msk [vmem:[#allocation5 + $0x20] sm:$0x3] %vm4263_vm13, %v5502_v63  ;;  %v5814_v14 = vsel %vm3531_vm6, %v5802_v4, 0  ;;  %vm5835_vm6 = vcmask 130048  }
 0x934   :  { %5651 = vrot.lane.b32.xlu2 %v5642_v17, %s7049_s2  ;;  %v5618_v52 = vld [vmem:[#allocation5 + $0x10] sm:$0x3]  ;;  %5546 = vst.msk [vmem:[#allocation5 + $0x26] sm:$0x3] %vm4263_vm13, %v5503_v2  ;;  %5819 = vmatpush.bf16.msrb.mxu2 %v5814_v14  ;;  %v6941_v17 = vld [vmem:[%s11726_s7 + $0x8] sm:$0xff] }
 0x935   :  { %5627 = vrot.lane.b32.xlu0 %v5618_v52, %s7048_s21  ;;  %v5641_v9 = vld [vmem:[#allocation5 + $0xe] sm:$0x3]  ;;  %v5666_v45 = vld [vmem:[#allocation5 + $0x10] sm:$0x3]  ;;  %5547 = vst.msk [vmem:[#allocation5 + $0x28] sm:$0x3] %vm4263_vm13, %v5504_v24 }
 0x936   :  { %5649 = vrot.lane.b32.xlu1 %v5641_v9, %s7049_s2  ;;  %v5667_v50 = vld [vmem:[#allocation5 + $0x14] sm:$0x3]  ;;  %5549 = vst.msk [vmem:[#allocation5 + $0x2c] sm:$0x3] %vm4263_vm13, %v5506_v47 }
 0x937   :  { %v5717_v48 = vld [vmem:[#allocation5 + $0x1e] sm:$0x3]  ;;  %5548 = vst.msk [vmem:[#allocation5 + $0x2a] sm:$0x3] %vm4263_vm13, %v5505_v44  ;;  %v5603_v33 = vpop.permute.xlu1 %5602 }
 0x938   :  { %v5692_v19 = vld [vmem:[#allocation5 + $0x1c] sm:$0x3]  ;;  %5550 = vst.msk [vmem:[#allocation5 + $0x32] sm:$0x3] %vm4263_vm13, %v5507_v38  ;;  %v5570_v55 = vld [vmem:[#allocation5 + $0x1e] sm:$0x3]  ;;  %5820 = vmatpush.bf16.msrb.mxu2 %v6943_v18 }
 0x939   :  { %v5716_v37 = vld [vmem:[#allocation5 + $0x1a] sm:$0x3]  ;;  %5551 = vst.msk [vmem:[#allocation5 + $0x34] sm:$0x3] %vm4263_vm13, %v5508_v16  ;;  %v5741_v32 = vld [vmem:[#allocation5 + $0x1c] sm:$0x3] }
 0x93a   :  { %5552 = vst.msk [vmem:[#allocation5 + $0x36] sm:$0x3] %vm4263_vm13, %v5509_v39  ;;  %v5569_v57 = vld [vmem:[#allocation5 + $0x1a] sm:$0x3]  ;;  %v5742_v5 = vld [vmem:[#allocation5 + $0x20] sm:$0x3] }
 0x93b   :  { %v5561_v46 = vld [vmem:[#allocation5 + $0x1c] sm:$0x3]  ;;  %v5595_v30 = vld [vmem:[#allocation5 + $0x20] sm:$0x3]  ;;  %v5643_v56 = vld [vmem:[#allocation5 + $0x26] sm:$0x3] }
 0x93c   :  { %5699 = vrot.lane.b32.xlu2 %v5691_v12, %s7050_s3  ;;  %5565 = vst.msk [vmem:[#allocation6 + $0x18] sm:$0x3] %vm4263_vm13, %v5561_v46  ;;  %v5594_v31 = vld [vmem:[#allocation5 + $0x1c] sm:$0x3]  ;;  %v5620_v11 = vld [vmem:[#allocation5 + $0x28] sm:$0x3]  ;;  %5821 = vmatpush.bf16.msrb.mxu2 %v6942_v1 }
 0x93d   :  { %5674 = vrot.lane.b32.xlu0 %v5666_v45, %s7051_s17  ;;  %v5669_v49 = vld [vmem:[#allocation5 + $0x2c] sm:$0x3]  ;;  %v5668_v20 = vld [vmem:[#allocation5 + $0x28] sm:$0x3]  ;;  %5588 = vst.msk [vmem:[#allocation6 + $0x8] sm:$0x3] %vm4501_vm3, %v5578_v34 }
 0x93e   :  { %5676 = vrot.lane.b32.xlu1 %v5667_v50, %s7051_s17  ;;  %v5644_v7 = vld [vmem:[#allocation5 + $0x2a] sm:$0x3]  ;;  %5562 = vst.msk [vmem:[#allocation6] sm:$0x3] %vm4263_vm13, %v5558_v51 }
 0x93f   :  { %v5718_v29 = vld [vmem:[#allocation5 + $0x32] sm:$0x3]  ;;  %5587 = vst.msk [vmem:[#allocation6] sm:$0x3] %vm4501_vm3, %v5576_v13 }
 0x940   :  { %v5694_v15 = vld [vmem:[#allocation5 + $0x34] sm:$0x3]  ;;  %5612 = vst.msk [vmem:[#allocation6] sm:$0x3] %vm4599_vm4, %v5601_v61  ;;  %5822 = vmatpush.bf16.msrb.mxu2 %v6941_v17 }
 0x941   :  { %v5719_v40 = vld [vmem:[#allocation5 + $0x36] sm:$0x3]  ;;  %v5743_v23 = vld [vmem:[#allocation5 + $0x34] sm:$0x3]  ;;  %5637 = vst.msk [vmem:[#allocation6] sm:$0x3] %vm4697_vm5, %v5626_v8 }
 0x942   :  { %5613 = vst.msk [vmem:[#allocation6 + $0x8] sm:$0x3] %vm4599_vm4, %v5603_v33 }
 0x943   :  { %5564 = vst.msk [vmem:[#allocation6 + $0x10] sm:$0x3] %vm4263_vm13, %v5560_v3 }
 0x944   :  { %5726 = vrot.lane.b32.xlu2 %v5717_v48, %s7052_s23  ;;  %5823 = vmatpush.bf16.msrb.mxu2 %v6940_v58 }
 0x945   :  { %5701 = vrot.lane.b32.xlu0 %v5692_v19, %s7050_s3  ;;  %v6884_v19 = vld [vmem:[%s11729_s10] sm:$0xf] }
 0x946   :  { %5724 = vrot.lane.b32.xlu1 %v5716_v37, %s7052_s23  ;;  %v6885_v44 = vor.u32 %v6945_v35, %v6884_v19  ;;  %v6886_v19 = vld [vmem:[%s11729_s10 + $0xc] sm:$0xf0]  ;;  %v6911_v35 = vld [vmem:[%s11729_s10 + $0x20] sm:$0xf] }
 0x948   :  { %5953 = vmatpush.bf16.msrb.mxu3 %v6885_v44 }
 0x94c   :  { %5579 = vrot.lane.b32.xlu2 %v5569_v57, %s7043_s26 }
 0x94d   :  { %5749 = vrot.lane.b32.xlu0 %v5741_v32, %s7053_s22 }
 0x94e   :  { %5751 = vrot.lane.b32.xlu1 %v5742_v5, %s7053_s22 }
 0x954   :  { %5606 = vrot.lane.b32.xlu2 %v5595_v30, %s7047_s0 }
 0x955   :  { %5581 = vrot.lane.b32.xlu0 %v5570_v55, %s7043_s26  ;;  %v7055_v55 = vmov 8.0   ;;  %s6283_s26 = sshll.u32 %s11733_s14, 4  ;;  %s6284_s26 = int_to_ptr.hbm [resolvable:$true] %s6283_s26 }
 0x956   :  { %5604 = vrot.lane.b32.xlu1 %v5594_v31, %s7047_s0  ;;  %6986 = vrcp.f32 %v7055_v55  ;;  %v5890_v55 = vld [vmem:[%s11728_s9] sm:$0x1] }
 0x95c   :  { %5653 = vrot.lane.b32.xlu2 %v5643_v56, %s7049_s2  ;;  %v6987_v18 = vpop.eup %6986 }
 0x95d   :  { %5629 = vrot.lane.b32.xlu0 %v5619_v25, %s7048_s21  ;;  %v5850_v34 = vmul.f32 8.0, %v6987_v18  ;;  %vm5854_vm13 = vweird.f32 %v6987_v18 }
 0x95e   :  { %5631 = vrot.lane.b32.xlu1 %v5620_v11, %s7048_s21 }
 0x95f   :  { %v5851_v13 = vsub.f32 1.0, %v5850_v34 }
 0x961   :  { %v5852_v17 = vmul.f32 %v6987_v18, %v5851_v13 }
 0x964   :  { %5680 = vrot.lane.b32.xlu2 %v5669_v49, %s7051_s17 }
 0x965   :  { %5655 = vrot.lane.b32.xlu0 %v5644_v7, %s7049_s2 }
 0x966   :  { %5678 = vrot.lane.b32.xlu1 %v5668_v20, %s7051_s17 }
 0x96c   :  { %5728 = vrot.lane.b32.xlu2 %v5718_v29, %s7052_s23 }
 0x96d   :  { %5703 = vrot.lane.b32.xlu0 %v5693_v26, %s7050_s3 }
 0x96e   :  { %5705 = vrot.lane.b32.xlu1 %v5694_v15, %s7050_s3 }
 0x974   :  { %5755 = vrot.lane.b32.xlu2 %v5744_v28, %s7053_s22 }
 0x975   :  { %5730 = vrot.lane.b32.xlu0 %v5719_v40, %s7052_s23 }
 0x976   :  { %5753 = vrot.lane.b32.xlu1 %v5743_v23, %s7053_s22 }
 0x98e   :  { %v5652_v63 = vpop.permute.xlu2 %5651 }
 0x996   :  { %v5700_v52 = vpop.permute.xlu2 %5699 }
 0x99e   :  { %v5727_v9 = vpop.permute.xlu2 %5726 }
 0x9a6   :  { %v5580_v59 = vpop.permute.xlu2 %5579 }
 0x9a7   :  { %v5628_v12 = vpop.permute.xlu0 %5627  ;;  %5589 = vst.msk [vmem:[#allocation6 + $0x10] sm:$0x3] %vm4501_vm3, %v5580_v59 }
 0x9a8   :  { %5638 = vst.msk [vmem:[#allocation6 + $0x8] sm:$0x3] %vm4697_vm5, %v5628_v12  ;;  %v5650_v2 = vpop.permute.xlu1 %5649  ;;  %v5853_v12 = vadd.f32 %v6987_v18, %v5852_v17 }
 0x9a9   :  { %5662 = vst.msk [vmem:[#allocation6 + $0x8] sm:$0x3] %vm4794_vm7, %v5652_v63 }
 0x9aa   :  { %5661 = vst.msk [vmem:[#allocation6] sm:$0x3] %vm4794_vm7, %v5650_v2 }
 0x9ae   :  { %v5607_v36 = vpop.permute.xlu2 %5606 }
 0x9af   :  { %v5675_v45 = vpop.permute.xlu0 %5674 }
 0x9b0   :  { %5686 = vst.msk [vmem:[#allocation6] sm:$0x3] %vm4892_vm8, %v5675_v45  ;;  %v5677_v50 = vpop.permute.xlu1 %5676 }
 0x9b1   :  { %5711 = vst.msk [vmem:[#allocation6] sm:$0x3] %vm4990_vm9, %v5700_v52 }
 0x9b2   :  { %5687 = vst.msk [vmem:[#allocation6 + $0x8] sm:$0x3] %vm4892_vm8, %v5677_v50 }
 0x9b6   :  { %v5654_v22 = vpop.permute.xlu2 %5653 }
 0x9b7   :  { %v5702_v60 = vpop.permute.xlu0 %5701 }
 0x9b8   :  { %5712 = vst.msk [vmem:[#allocation6 + $0x8] sm:$0x3] %vm4990_vm9, %v5702_v60  ;;  %v5725_v42 = vpop.permute.xlu1 %5724 }
 0x9b9   :  { %5737 = vst.msk [vmem:[#allocation6 + $0x8] sm:$0x3] %vm5088_vm11, %v5727_v9 }
 0x9ba   :  { %5736 = vst.msk [vmem:[#allocation6] sm:$0x3] %vm5088_vm11, %v5725_v42  ;;  %v5855_v42 = vsel %vm5854_vm13, %v6987_v18, %v5853_v12  ;;  %v6926_v12 = vld [vmem:[%s11730_s11 + $0x8] sm:$0xf] }
 0x9be   :  { %v5681_v48 = vpop.permute.xlu2 %5680 }
 0x9bf   :  { %v5750_v0 = vpop.permute.xlu0 %5749 }
 0x9c0   :  { %5761 = vst.msk [vmem:[#allocation6] sm:$0x3] %vm5186_vm12, %v5750_v0  ;;  %v5752_v41 = vpop.permute.xlu1 %5751 }
 0x9c1   :  { %5762 = vst.msk [vmem:[#allocation6 + $0x8] sm:$0x3] %vm5186_vm12, %v5752_v41 }
 0x9c6   :  { %v5729_v37 = vpop.permute.xlu2 %5728 }
 0x9c7   :  { %v5582_v27 = vpop.permute.xlu0 %5581  ;;  %v5765_v6 = vld [vmem:[#allocation6] sm:$0xff] }
 0x9c8   :  { %5590 = vst.msk [vmem:[#allocation6 + $0x18] sm:$0x3] %vm4501_vm3, %v5582_v27  ;;  %v5605_v24 = vpop.permute.xlu1 %5604  ;;  %v5766_v54 = vld [vmem:[#allocation6 + $0x8] sm:$0xff] }
 0x9c9   :  { %5615 = vst.msk [vmem:[#allocation6 + $0x18] sm:$0x3] %vm4599_vm4, %v5607_v36  ;;  %v5769_v47 = vpack.c.bf16 %v5766_v54, %v5765_v6 }
 0x9ca   :  { %5614 = vst.msk [vmem:[#allocation6 + $0x10] sm:$0x3] %vm4599_vm4, %v5605_v24 }
 0x9cb   :  { %6880 = vmatmul.msk.bf16.vlgmr.msrb.gmra.mxu2 %vm5263_vm15, %v5769_v47 }
 0x9ce   :  { %v5756_v5 = vpop.permute.xlu2 %5755 }
 0x9cf   :  { %v5630_v53 = vpop.permute.xlu0 %5629 }
 0x9d0   :  { %5639 = vst.msk [vmem:[#allocation6 + $0x10] sm:$0x3] %vm4697_vm5, %v5630_v53  ;;  %v5632_v10 = vpop.permute.xlu1 %5631  ;;  %v6948_v53 = vld [vmem:[%s11729_s10 + $0x20] sm:$0xf0] }
 0x9d1   :  { %5663 = vst.msk [vmem:[#allocation6 + $0x10] sm:$0x3] %vm4794_vm7, %v5654_v22  ;;  %v6903_v22 = vld [vmem:[%s11729_s10 + $0x18] sm:$0xf] }
 0x9d2   :  { %5640 = vst.msk [vmem:[#allocation6 + $0x18] sm:$0x3] %vm4697_vm5, %v5632_v10  ;;  %v6904_v10 = vor.u32 %v6948_v53, %v6903_v22 }
 0x9d4   :  { %6026 = vmatpush.bf16.msra.mxu2 %v6904_v10 }
 0x9d7   :  { %v5656_v38 = vpop.permute.xlu0 %5655 }
 0x9d8   :  { %5664 = vst.msk [vmem:[#allocation6 + $0x18] sm:$0x3] %vm4794_vm7, %v5656_v38  ;;  %v5679_v16 = vpop.permute.xlu1 %5678  ;;  %v6949_v38 = vld [vmem:[%s11729_s10 + $0x28] sm:$0xf0] }
 0x9d9   :  { %5689 = vst.msk [vmem:[#allocation6 + $0x18] sm:$0x3] %vm4892_vm8, %v5681_v48  ;;  %v6944_v48 = vld [vmem:[%s11729_s10 + $0x4] sm:$0xf] }
 0x9da   :  { %5688 = vst.msk [vmem:[#allocation6 + $0x10] sm:$0x3] %vm4892_vm8, %v5679_v16  ;;  %v6889_v44 = vor.u32 %v6944_v48, %v6886_v19  ;;  %v6912_v16 = vor.u32 %v6949_v38, %v6911_v35 }
 0x9dc   :  { %5967 = vmatpush.bf16.msra.mxu3 %v6889_v44  ;;  %6054 = vmatpush.bf16.msrb.mxu2 %v6912_v16 }
 0x9df   :  { %v5704_v39 = vpop.permute.xlu0 %5703 }
 0x9e0   :  { %5713 = vst.msk [vmem:[#allocation6 + $0x10] sm:$0x3] %vm4990_vm9, %v5704_v39  ;;  %v5706_v57 = vpop.permute.xlu1 %5705 }
 0x9e1   :  { %5738 = vst.msk [vmem:[#allocation6 + $0x10] sm:$0x3] %vm5088_vm11, %v5729_v37 }
 0x9e2   :  { %5714 = vst.msk [vmem:[#allocation6 + $0x18] sm:$0x3] %vm4990_vm9, %v5706_v57 }
 0x9e7   :  { %v5731_v32 = vpop.permute.xlu0 %5730 }
 0x9e8   :  { %5739 = vst.msk [vmem:[#allocation6 + $0x18] sm:$0x3] %vm5088_vm11, %v5731_v32  ;;  %v5754_v46 = vpop.permute.xlu1 %5753 }
 0x9e9   :  { %5764 = vst.msk [vmem:[#allocation6 + $0x18] sm:$0x3] %vm5186_vm12, %v5756_v5 }
 0x9ea   :  { %5763 = vst.msk [vmem:[#allocation6 + $0x10] sm:$0x3] %vm5186_vm12, %v5754_v46  ;;  %v5877_v46 = vld [vmem:[%s11727_s8] sm:$0x1] }
 0x9f0   :  { %v5768_v43 = vld [vmem:[#allocation6 + $0x18] sm:$0xff] }
 0x9f1   :  { %v5767_v62 = vld [vmem:[#allocation6 + $0x10] sm:$0xff] }
 0x9f2   :  { %v5770_v4 = vpack.c.bf16 %v5768_v43, %v5767_v62 }
 0x9f4   :  { %6881 = vmatmul.msk.bf16.gmra.mxu2 %vm5263_vm15, %v5770_v4 }
 0xa4e   :  { %v11587_v30 = vpop.f32.mrf.mxu2 }
 0xa4f   :  { %v5857_v25 = vmul.f32 %v11587_v30, %v11587_v30  ;;  %v5836_v49 = vsel %vm5835_vm6, %v11587_v30, 0.0 }
 0xa51   :  { %v5861_v29 = vsel %vm5835_vm6, %v5857_v25, 0.0 }
 0xa56   :  { %v11589_v14 = vpop.f32.mrf.mxu2 }
 0xa57   :  { %v5858_v21 = vmul.f32 %v11589_v14, %v11589_v14  ;;  %v5837_v56 = vsel %vm5835_vm6, %v11589_v14, 0.0 }
 0xa58   :  { %v5838_v26 = vadd.f32 %v5837_v56, %v5836_v49 }
 0xa59   :  { %v5862_v7 = vsel %vm5835_vm6, %v5858_v21, 0.0 }
 0xa5a   :  { %v5863_v51 = vadd.f32 %v5862_v7, %v5861_v29 }
 0xa77   :  { %v11591_v31 = vpop.f32.mrf.mxu2 }
 0xa78   :  { %v5859_v11 = vmul.f32 %v11591_v31, %v11591_v31  ;;  %v5839_v20 = vsel %vm5835_vm6, %v11591_v31, 0.0 }
 0xa79   :  { %v5840_v28 = vadd.f32 %v5839_v20, %v5838_v26 }
 0xa7a   :  { %v5864_v15 = vsel %vm5835_vm6, %v5859_v11, 0.0 }
 0xa7b   :  { %v5865_v61 = vadd.f32 %v5864_v15, %v5863_v51  ;;  %v6892_v51 = vld [vmem:[%s11729_s10 + $0x8] sm:$0xf] }
 0xa7f   :  { %v5832_v40 = vpop.f32.mrf.mxu2 }
 0xa80   :  { %v5841_v23 = vsel %vm5835_vm6, %v5832_v40, 0.0  ;;  %v5860_v1 = vmul.f32 %v5832_v40, %v5832_v40 }
 0xa81   :  { %v5842_v8 = vadd.f32 %v5841_v23, %v5840_v28  ;;  %v6946_v28 = vld [vmem:[%s11729_s10 + $0x10] sm:$0xf0] }
 0xa82   :  { %v5866_v33 = vsel %vm5835_vm6, %v5860_v1, 0.0  ;;  %v6893_v1 = vor.u32 %v6946_v28, %v6892_v51 }
 0xa83   :  { %v5843_v3 = vrot.slane %v5842_v8, 4  ;;  %v5867_v63 = vadd.f32 %v5866_v33, %v5865_v61 }
 0xa85   :  { %v5844_v52 = vadd.f32 %v5843_v3, %v5842_v8  ;;  %v5868_v9 = vrot.slane %v5867_v63, 4  ;;  %v6920_v8 = vld [vmem:[%s11730_s11 + $0xc] sm:$0xf0]  ;;  %v6947_v3 = vld [vmem:[%s11729_s10 + $0x1c] sm:$0xf] }
 0xa87   :  { %v5845_v58 = vrot.slane %v5844_v52, 2  ;;  %v5869_v59 = vadd.f32 %v5868_v9, %v5867_v63  ;;  %v6905_v63 = vld [vmem:[%s11729_s10 + $0x24] sm:$0xf0]  ;;  %v6951_v9 = vld [vmem:[%s11730_s11 + $0x8] sm:$0xf0] }
 0xa88   :  { %v6908_v17 = vor.u32 %v6947_v3, %v6905_v63 }
 0xa89   :  { %v5846_v2 = vadd.f32 %v5845_v58, %v5844_v52  ;;  %v5870_v45 = vrot.slane %v5869_v59, 2  ;;  %v6918_v52 = vld [vmem:[%s11730_s11] sm:$0xf] }
 0xa8a   :  { %v6919_v58 = vor.u32 %v6951_v9, %v6918_v52 }
 0xa8b   :  { %v5847_v50 = vrot.slane %v5846_v2, 1  ;;  %v5871_v60 = vadd.f32 %v5870_v45, %v5869_v59  ;;  %v7056_v59 = vmov 0  }
 0xa8d   :  { %v5848_v0 = vadd.f32 %v5847_v50, %v5846_v2  ;;  %v5872_v36 = vrot.slane %v5871_v60, 1  ;;  %v6952_v2 = vld [vmem:[%s11730_s11 + $0x10] sm:$0xf0] }
 0xa8e   :  { %v6927_v45 = vor.u32 %v6952_v2, %v6926_v12 }
 0xa8f   :  { %v5856_v41 = vmul.f32 %v5855_v42, %v5848_v0  ;;  %v5873_v27 = vadd.f32 %v5872_v36, %v5871_v60 }
 0xa91   :  { %v5874_v6 = vmul.f32 %v5873_v27, %v5855_v42  ;;  %v5875_v24 = vmul.f32 %v5856_v41, %v5856_v41  ;;  %v5911_v42 = vld [vmem:[%s11731_s12] sm:$0x7] }
 0xa92   :  { %v5913_v0 = vperm.slane %v5911_v42, 0  ;;  %v5915_v35 = vperm.slane %v5911_v42, 2 }
 0xa93   :  { %v5876_v54 = vsub.f32 %v5874_v6, %v5875_v24 }
 0xa95   :  { %v5878_v47 = vadd.f32 1e-05, %v5876_v54 }
 0xa97   :  { %6988 = vrsqrt.f32 %v5878_v47  ;;  %vm5885_vm4 = vweird.f32 %v5878_v47 }
 0xa9d   :  { %v6989_v37 = vpop.eup %6988 }
 0xa9e   :  { %v5880_v39 = vmul.f32 %v6989_v37, %v5878_v47  ;;  %vm5886_vm3 = vweird.f32 %v6989_v37  ;;  %v5914_v47 = vperm.slane %v5911_v42, 1 }
 0xa9f   :  { %vm5887_vm5 = vmor %vm5885_vm4, %vm5886_vm3 }
 0xaa0   :  { %v5881_v57 = vmul.f32 %v6989_v37, %v5880_v39  ;;  %v11685_v39 = vld [vmem:[%s11732_s13] sm:$0x7]  ;;  %s7057_s13 = smov [#allocation7]  }
 0xaa1   :  { %s6281_s6 = sshll.u32 %s7057_s13, 4  ;;  %s6282_s6 = int_to_ptr.vmem [resolvable:$true] %s6281_s6 }
 0xaa2   :  { %v5882_v32 = vmul.f32 0.5, %v5881_v57  ;;  %v6074_v57 = vperm.slane %v11685_v39, 1 }
 0xaa4   :  { %v5883_v5 = vsub.f32 1.5, %v5882_v32 }
 0xaa6   :  { %v5884_v43 = vmul.f32 %v6989_v37, %v5883_v5 }
 0xaa8   :  { %v5888_v62 = vsel %vm5887_vm5, %v6989_v37, %v5884_v43 }
 0xaa9   :  { %v5889_v4 = vmul.f32 %v5888_v62, %v5877_v46 }
 0xaab   :  { %v5891_v21 = vmul.f32 %v5889_v4, %v5856_v41  ;;  %v5894_v18 = vperm.slane %v5889_v4, 0 }
 0xaad   :  { %v5892_v25 = vsub.f32 %v5890_v55, %v5891_v21  ;;  %v5897_v56 = vmul.f32 %v5894_v18, %v11589_v14  ;;  %v5899_v11 = vmul.f32 %v5894_v18, %v5832_v40  ;;  %v5896_v7 = vmul.f32 %v5894_v18, %v11587_v30 }
 0xaae   :  { %v5898_v20 = vmul.f32 %v5894_v18, %v11591_v31  ;;  %v6950_v31 = vld [vmem:[%s11730_s11 + $0x4] sm:$0xf] }
 0xaaf   :  { %v5901_v49 = vperm.slane %v5892_v25, 0  ;;  %v6923_v33 = vor.u32 %v6950_v31, %v6920_v8  ;;  %v6073_v25 = vperm.slane %v11685_v39, 0 }
 0xab1   :  { %v5904_v34 = vadd.f32 %v5901_v49, %v5897_v56  ;;  %v5906_v26 = vadd.f32 %v5901_v49, %v5899_v11  ;;  %v5903_v29 = vadd.f32 %v5901_v49, %v5896_v7  ;;  %v5905_v15 = vadd.f32 %v5901_v49, %v5898_v20 }
 0xab3   :  { %v5908_v23 = vmax.f32 %v5904_v34, 0.0  ;;  %v5910_v14 = vmax.f32 %v5906_v26, 0.0  ;;  %v5907_v40 = vmax.f32 %v5903_v29, 0.0  ;;  %v5909_v13 = vmax.f32 %v5905_v15, 0.0 }
 0xab5   :  { %v5994_v30 = vpack.c.bf16 %v5910_v14, %v5908_v23  ;;  %v5922_v61 = vpack.c.bf16 %v5909_v13, %v5907_v40 }
 0xab7   :  { %6894 = vmatmul.msk.bf16.vlgmr.msrb.gmra.mxu3 %vm5835_vm6, %v5922_v61  ;;  %6913 = vmatmul.msk.bf16.vlgmr.msra.gmra.mxu2 %vm5835_vm6, %v5994_v30 }
 0xab8   :  { %5981 = vmatpush.bf16.msrb.mxu3 %v6893_v1  ;;  %6118 = vmatpush.bf16.msra.mxu2 %v6923_v33 }
 0xac7   :  { %6895 = vmatmul.msk.bf16.vlgmr.msra.gmra.mxu3 %vm5835_vm6, %v5922_v61  ;;  %6915 = vmatmul.msk.bf16.vlgmr.msrb.gmra.mxu2 %vm5835_vm6, %v5994_v30 }
 0xac8   :  { %6040 = vmatpush.bf16.msra.mxu3 %v6908_v17  ;;  %6195 = vmatpush.bf16.msrb.mxu2 %v6919_v58 }
 0xad7   :  { %6896 = vmatmul.msk.bf16.vlgmr.msrb.gmra.mxu3 %vm5835_vm6, %v5922_v61  ;;  %6119 = vmatmul.bf16.vlgmr.msra.gmra.mxu2 %v7056_v59  ;;  %v6075_v61 = vperm.slane %v11685_v39, 2 }
 0xad8   :  { %6105 = vmatpush.bf16.msrb.mxu3 %v6919_v58  ;;  %6221 = vmatpush.bf16.msra.mxu2 %v6927_v45 }
 0xae7   :  { %6914 = vmatmul.msk.bf16.vlgmr.msra.gmra.mxu3 %vm5835_vm6, %v5994_v30 }
 0xae8   :  { %6131 = vmatpush.bf16.msra.mxu3 %v6927_v45 }
 0xaf7   :  { %6106 = vmatmul.bf16.vlgmr.msrb.gmra.mxu3 %v7056_v59 }
 0xaf8   :  { %6208 = vmatpush.bf16.msrb.mxu3 %v6923_v33 }
 0xb07   :  { %6132 = vmatmul.bf16.vlgmr.msra.gmra.mxu3 %v7056_v59 }
 0xb3a   :  { %v5955_v50 = vpop.f32.mrf.mxu3  ;;  %v6028_v60 = vpop.f32.mrf.mxu2 }
 0xb3b   :  { %v5988_v18 = vadd.f32 %v5955_v50, %v5913_v0 }
 0xb3d   :  { %v6061_v11 = vadd.f32 %v6028_v60, %v5988_v18 }
 0xb42   :  { %v5957_v36 = vpop.f32.mrf.mxu3  ;;  %v6030_v41 = vpop.f32.mrf.mxu2 }
 0xb43   :  { %v5991_v27 = vadd.f32 %v5957_v36, %v5913_v0 }
 0xb45   :  { %v11676_v6 = vadd.f32 %v6030_v41, %v5991_v27 }
 0xb4a   :  { %v5969_v24 = vpop.f32.mrf.mxu3  ;;  %v11678_v54 = vpop.f32.mrf.mxu2 }
 0xb4b   :  { %v5989_v32 = vadd.f32 %v5969_v24, %v5914_v47 }
 0xb52   :  { %v5971_v22 = vpop.f32.mrf.mxu3  ;;  %v6058_v53 = vpop.f32.mrf.mxu2 }
 0xb53   :  { %v5992_v10 = vadd.f32 %v5971_v22, %v5914_v47 }
 0xb5a   :  { %v5983_v48 = vpop.f32.mrf.mxu3  ;;  %v6120_v19 = vpop.f32.mrf.mxu2 }
 0xb5b   :  { %v6121_v43 = vadd.f32 %v6120_v19, %v6074_v57  ;;  %v5990_v17 = vadd.f32 %v5983_v48, %v5915_v35 }
 0xb5d   :  { %v6063_v45 = vadd.f32 %v11678_v54, %v5990_v17 }
 0xb62   :  { %v5985_v44 = vpop.f32.mrf.mxu3  ;;  %v6122_v38 = vpop.f32.mrf.mxu2 }
 0xb63   :  { %v5993_v16 = vadd.f32 %v5985_v44, %v5915_v35 }
 0xb65   :  { %v11680_v37 = vadd.f32 %v6058_v53, %v5993_v16 }
 0xb6a   :  { %v6042_v5 = vpop.f32.mrf.mxu3 }
 0xb6b   :  { %v6062_v46 = vadd.f32 %v6042_v5, %v5989_v32 }
 0xb6d   :  { %v6157_v62 = vadd.f32 %v6121_v43, %v6062_v46 }
 0xb6f   :  { %v6929_v21 = vmul.f32 -1.442695, %v6157_v62 }
 0xb71   :  { %6990 = vpow2.f32 %v6929_v21 }
 0xb72   :  { %v6044_v4 = vpop.f32.mrf.mxu3 }
 0xb73   :  { %v11690_v55 = vadd.f32 %v6044_v4, %v5992_v10 }
 0xb77   :  { %v6991_v20 = vpop.eup %6990 }
 0xb78   :  { %v6161_v26 = vadd.f32 1.0, %v6991_v20 }
 0xb7a   :  { %v6107_v56 = vpop.f32.mrf.mxu3  ;;  %v6173_v50 = vand.u32 2147483648, %v6161_v26  ;;  %vm6167_vm12 = vweird.f32 %v6161_v26  ;;  %v6171_v42 = vand.u32 2147483647, %v6161_v26 }
 0xb7b   :  { %v6108_v49 = vadd.f32 %v6107_v56, %v6073_v25 }
 0xb7c   :  { %v6174_v41 = vor.u32 1.1754944e-38, %v6173_v50  ;;  %vm6172_vm0 = vcmp.eq.f32.partialorder %v6171_v42, 8.507059e+37 }
 0xb7d   :  { %v6137_v7 = vadd.f32 %v6108_v49, %v6061_v11 }
 0xb7f   :  { %v6928_v34 = vmul.f32 -1.442695, %v6137_v7 }
 0xb81   :  { %6992 = vpow2.f32 %v6928_v34 }
 0xb82   :  { %v6109_v29 = vpop.f32.mrf.mxu3  ;;  %6994 = vrcp.f32 %v6161_v26 }
 0xb87   :  { %v6993_v15 = vpop.eup %6992 }
 0xb88   :  { %v6141_v51 = vadd.f32 1.0, %v6993_v15  ;;  %v6995_v23 = vpop.eup %6994 }
 0xb89   :  { %v6163_v14 = vmul.f32 %v6995_v23, %v6161_v26  ;;  %vm6168_vm11 = vweird.f32 %v6995_v23 }
 0xb8a   :  { %6996 = vrcp.f32 %v6141_v51  ;;  %v6133_v28 = vpop.f32.mrf.mxu3  ;;  %v6153_v8 = vand.u32 2147483648, %v6141_v51  ;;  %v6151_v3 = vand.u32 2147483647, %v6141_v51  ;;  %vm6147_vm8 = vweird.f32 %v6141_v51  ;;  %vm6169_vm15 = vmor %vm6167_vm12, %vm6168_vm11 }
 0xb8b   :  { %v6164_v1 = vsub.f32 1.0, %v6163_v14  ;;  %v6134_v52 = vadd.f32 %v6133_v28, %v6075_v61 }
 0xb8c   :  { %v6154_v58 = vor.u32 1.1754944e-38, %v6153_v8  ;;  %vm6152_vm10 = vcmp.eq.f32.partialorder %v6151_v3, 8.507059e+37 }
 0xb8d   :  { %v6165_v63 = vmul.f32 %v6995_v23, %v6164_v1 }
 0xb8f   :  { %v6166_v2 = vadd.f32 %v6995_v23, %v6165_v63 }
 0xb90   :  { %v6997_v40 = vpop.eup %6996 }
 0xb91   :  { %v6143_v13 = vmul.f32 %v6997_v40, %v6141_v51  ;;  %vm6148_vm7 = vweird.f32 %v6997_v40  ;;  %v6170_v36 = vsel %vm6169_vm15, %v6995_v23, %v6166_v2 }
 0xb92   :  { %v6135_v30 = vpop.f32.mrf.mxu3  ;;  %vm6149_vm9 = vmor %vm6147_vm8, %vm6148_vm7  ;;  %v6175_v27 = vsel %vm6172_vm0, %v6174_v41, %v6170_v36  ;;  %vm6274_vm7 = vcmask 123904  }
 0xb93   :  { %v6144_v31 = vsub.f32 1.0, %v6143_v13  ;;  %v6180_v24 = vsub.f32 1.0, %v6175_v27  ;;  %v6182_v53 = vmul.f32 0.0, %v6175_v27 }
 0xb95   :  { %v6145_v33 = vmul.f32 %v6997_v40, %v6144_v31 }
 0xb97   :  { %v6146_v9 = vadd.f32 %v6997_v40, %v6145_v33 }
 0xb99   :  { %v6150_v59 = vsel %vm6149_vm9, %v6997_v40, %v6146_v9 }
 0xb9a   :  { %v6155_v12 = vsel %vm6152_vm10, %v6154_v58, %v6150_v59 }
 0xb9b   :  { %v6177_v60 = vmul.f32 %v6155_v12, %v6134_v52 }
 0xb9d   :  { %v6178_v0 = vadd.f32 %v6177_v60, %v6063_v45 }
 0xb9f   :  { %6998 = vtanh.f32 %v6178_v0 }
 0xba5   :  { %v6999_v47 = vpop.eup %6998 }
 0xba6   :  { %v6181_v22 = vmul.f32 %v6999_v47, %v6180_v24 }
 0xba8   :  { %v11699_v10 = vadd.f32 %v6182_v53, %v6181_v22 }
 0xbaa   :  { %v6184_v54 = vpack.c.bf16 %v11699_v10, %v11699_v10 }
 0xbac   :  { %6930 = vmatmul.msk.bf16.vlgmr.msrb.gmra.mxu2 %vm5835_vm6, %v6184_v54  ;;  %6931 = vmatmul.msk.bf16.vlgmr.msrb.gmra.mxu3 %vm5835_vm6, %v6184_v54 }
 0xbbc   :  { %6932 = vmatmul.msk.bf16.vlgmr.msra.gmra.mxu2 %vm5835_vm6, %v6184_v54 }
 0xc2f   :  { %v6197_v48 = vpop.f32.mrf.mxu2  ;;  %v6210_v19 = vpop.f32.mrf.mxu3 }
 0xc30   :  { %v6198_v35 = vadd.f32 %v6197_v48, %v6073_v25  ;;  %v6211_v44 = vadd.f32 %v6210_v19, %v6074_v57 }
 0xc32   :  { %v6227_v38 = vadd.f32 %v6198_v35, %v11676_v6  ;;  %v6247_v16 = vadd.f32 %v6211_v44, %v11690_v55 }
 0xc34   :  { %v6933_v32 = vmul.f32 -1.442695, %v6227_v38  ;;  %v6934_v5 = vmul.f32 -1.442695, %v6247_v16 }
 0xc36   :  { %7000 = vpow2.f32 %v6933_v32 }
 0xc37   :  { %7002 = vpow2.f32 %v6934_v5  ;;  %v6199_v46 = vpop.f32.mrf.mxu2  ;;  %v6212_v43 = vpop.f32.mrf.mxu3 }
 0xc3c   :  { %v7001_v62 = vpop.eup %7000 }
 0xc3d   :  { %v7003_v4 = vpop.eup %7002  ;;  %v6231_v21 = vadd.f32 1.0, %v7001_v62 }
 0xc3e   :  { %v6251_v18 = vadd.f32 1.0, %v7003_v4 }
 0xc3f   :  { %7004 = vrcp.f32 %v6231_v21  ;;  %v6223_v56 = vpop.f32.mrf.mxu2  ;;  %v6243_v20 = vand.u32 2147483648, %v6231_v21  ;;  %v6241_v26 = vand.u32 2147483647, %v6231_v21  ;;  %vm6237_vm1 = vweird.f32 %v6231_v21 }
 0xc40   :  { %7006 = vrcp.f32 %v6251_v18  ;;  %v6224_v28 = vadd.f32 %v6223_v56, %v6075_v61  ;;  %v6263_v1 = vand.u32 2147483648, %v6251_v18  ;;  %vm6257_vm3 = vweird.f32 %v6251_v18 }
 0xc41   :  { %v6244_v51 = vor.u32 1.1754944e-38, %v6243_v20  ;;  %vm6242_vm6 = vcmp.eq.f32.partialorder %v6241_v26, 8.507059e+37  ;;  %v6261_v30 = vand.u32 2147483647, %v6251_v18 }
 0xc42   :  { %v6264_v33 = vor.u32 1.1754944e-38, %v6263_v1 }
 0xc43   :  { %vm6262_vm5 = vcmp.eq.f32.partialorder %v6261_v30, 8.507059e+37 }
 0xc45   :  { %v7005_v25 = vpop.eup %7004 }
 0xc46   :  { %v7007_v11 = vpop.eup %7006  ;;  %v6233_v57 = vmul.f32 %v7005_v25, %v6231_v21  ;;  %vm6238_vm14 = vweird.f32 %v7005_v25 }
 0xc47   :  { %v6253_v49 = vmul.f32 %v7007_v11, %v6251_v18  ;;  %v6225_v6 = vpop.f32.mrf.mxu2  ;;  %vm6239_vm2 = vmor %vm6237_vm1, %vm6238_vm14  ;;  %vm6258_vm13 = vweird.f32 %v7007_v11 }
 0xc48   :  { %v6234_v7 = vsub.f32 1.0, %v6233_v57  ;;  %vm6259_vm4 = vmor %vm6257_vm3, %vm6258_vm13 }
 0xc49   :  { %v6254_v55 = vsub.f32 1.0, %v6253_v49 }
 0xc4a   :  { %v6235_v34 = vmul.f32 %v7005_v25, %v6234_v7 }
 0xc4b   :  { %v6255_v29 = vmul.f32 %v7007_v11, %v6254_v55 }
 0xc4c   :  { %v6236_v15 = vadd.f32 %v7005_v25, %v6235_v34 }
 0xc4d   :  { %v6256_v40 = vadd.f32 %v7007_v11, %v6255_v29 }
 0xc4e   :  { %v6240_v23 = vsel %vm6239_vm2, %v7005_v25, %v6236_v15 }
 0xc4f   :  { %v6245_v14 = vsel %vm6242_vm6, %v6244_v51, %v6240_v23  ;;  %v6260_v8 = vsel %vm6259_vm4, %v7007_v11, %v6256_v40 }
 0xc50   :  { %v6267_v13 = vmul.f32 %v6245_v14, %v6224_v28  ;;  %v6265_v3 = vsel %vm6262_vm5, %v6264_v33, %v6260_v8 }
 0xc51   :  { %v6270_v63 = vsub.f32 1.0, %v6265_v3  ;;  %v6272_v17 = vmul.f32 %v6265_v3, %v11699_v10 }
 0xc52   :  { %v6268_v31 = vadd.f32 %v6267_v13, %v11680_v37 }
 0xc54   :  { %7008 = vtanh.f32 %v6268_v31 }
 0xc5a   :  { %v7009_v39 = vpop.eup %7008 }
 0xc5b   :  { %v6271_v61 = vmul.f32 %v7009_v39, %v6270_v63 }
 0xc5d   :  { %v6273_v52 = vadd.f32 %v6272_v17, %v6271_v61 }
 0xc5f   :  { %6275 = vst.msk [vmem:[#allocation7] sm:$0x3] %vm6274_vm7, %v6273_v52 }
 0xc60   :  { %6286 = dma.vmem_to_hbm [thread:$0]  %s6282_s6, 32, %s6284_s26, [#allocation8]  }
 0xc61   :  { %7034 = dma.done.wait [#allocation8], 32  }
 0xc62   :  { %7035 = vsyncadd [#allocation8], 4294967264 }
 0xc63   :  { %6291 = vsyncpa [#allocation8], 1 }

</bundles_post_ra>
